<compile_context>
chip_gen: v6e
topology: v6e:2x2x1
jax: 0.10.0
libtpu: 0.0.40
codegen_flags: <defaults>
</compile_context>

<pallas_src>
import jax
import jax.numpy as jnp
from jax.experimental import pallas as pl
from jax.experimental.pallas import tpu as pltpu

INPUT_DIM, HIDDEN_DIM, LATENT_DIM = 784, 400, 20


def _round_up(n, m):
    return ((n + m - 1) // m) * m


def encoder_kernel(x_ref, w1_ref, b1_ref, w2_ref, b2_ref, w3_ref, b3_ref,
                   z_ref, h_ref):
    """One batch tile of the 3-layer MLP.

    x tile: f32 (cast to bf16 on the VPU, hidden under the MXU).
    Weights: bf16, lane-padded.  Biases: f32.  Accumulation: f32 (MXU).
    Hidden scratch h_ref: bf16, lane-dense (512 wide).  Output z_ref: bf16.
    """
    # fc1 + ReLU
    h = jnp.dot(x_ref[...].astype(jnp.bfloat16), w1_ref[...],
                preferred_element_type=jnp.float32)
    h_ref[...] = jnp.maximum(h + b1_ref[...], 0.0).astype(h_ref.dtype)

    # fc2 + ReLU (hidden scratch already bf16 -> feeds the MXU directly)
    h = jnp.dot(h_ref[...], w2_ref[...], preferred_element_type=jnp.float32)
    h_ref[...] = jnp.maximum(h + b2_ref[...], 0.0).astype(h_ref.dtype)

    # fc3 (no activation); latent is lane-padded so the store is unmasked
    z = jnp.dot(h_ref[...], w3_ref[...], preferred_element_type=jnp.float32)
    z_ref[...] = (z + b3_ref[...]).astype(z_ref.dtype)


def prepare_params(params, compute_dtype=jnp.bfloat16):
    """One-time cast + zero lane-padding of the params (hoisted out of the
    per-call wrapper).  hidden 400 -> 512, latent 20 -> 128."""
    w1, b1, w2, b2, w3, b3 = params
    input_dim, hidden_dim = w1.shape
    latent_dim = w3.shape[1]
    hid_pad = _round_up(hidden_dim, 128)
    lat_pad = _round_up(latent_dim, 128)

    def pad2(a, rows, cols, dtype):
        out = jnp.zeros((rows, cols), dtype)
        return out.at[:a.shape[0], :a.shape[1]].set(a.astype(dtype))

    w1_p = pad2(w1, input_dim, hid_pad, compute_dtype)
    b1_p = pad2(b1, 1, hid_pad, jnp.float32)
    w2_p = pad2(w2, hid_pad, hid_pad, compute_dtype)
    b2_p = pad2(b2, 1, hid_pad, jnp.float32)
    w3_p = pad2(w3, hid_pad, lat_pad, compute_dtype)
    b3_p = pad2(b3, 1, lat_pad, jnp.float32)
    return (w1_p, b1_p, w2_p, b2_p, w3_p, b3_p)


def simple_encoder(x, packed_params, *, latent_dim=LATENT_DIM, batch_tile=512,
                   core_parallel=False, out_dtype=jnp.float32):
    """Forward pass of SimpleEncoder.  `packed_params` from prepare_params()."""
    w1, b1, w2, b2, w3, b3 = packed_params
    B, input_dim = x.shape
    hid_pad = w1.shape[1]
    lat_pad = w3.shape[1]
    assert batch_tile % 8 == 0, "batch_tile must be a multiple of 8 (sublanes)"

    # Zero-pad batch up to a multiple of the tile (sliced off at the end).
    B_pad = _round_up(B, batch_tile)
    x_p = x if B_pad == B else jnp.pad(x, ((0, B_pad - B), (0, 0)))
    grid = (B_pad // batch_tile,)

    # Weights/biases stay fully resident in VMEM (constant index_map);
    # only the batch dimension of x / z is tiled.
    rep = lambda shape: pl.BlockSpec(shape, lambda i: (0, 0))

    flops = 2 * B_pad * (input_dim * hid_pad + hid_pad * hid_pad
                         + hid_pad * lat_pad)
    bytes_accessed = (
        x_p.size * x_p.dtype.itemsize
        + (w1.size + w2.size + w3.size) * w1.dtype.itemsize   # bf16 weights
        + (b1.size + b2.size + b3.size) * 4                    # f32 biases
        + B_pad * lat_pad * 2)                                 # bf16 output

    # Per-step VMEM estimate (double-buffered inputs/outputs + scratch).
    vmem_est = (2 * (w1.size + w2.size + w3.size) * 2          # bf16 weights x2
                + 2 * batch_tile * input_dim * x_p.dtype.itemsize
                + 2 * batch_tile * lat_pad * 2
                + batch_tile * hid_pad * 2)
    cp_kwargs = {}
    if vmem_est > 12 * 1024 * 1024:        # smallest scoped default ~16 MiB (v5e)
        cp_kwargs["vmem_limit_bytes"] = min(int(vmem_est * 1.5), 64 * 1024 * 1024)

    # On v7x, pass core_parallel=True to shard the batch grid across both TCs.
    batch_sem = pltpu.CORE_PARALLEL if core_parallel else "parallel"

    z_pad = pl.pallas_call(
        encoder_kernel,
        out_shape=jax.ShapeDtypeStruct((B_pad, lat_pad), jnp.bfloat16),
        grid_spec=pltpu.PrefetchScalarGridSpec(
            num_scalar_prefetch=0,
            grid=grid,
            in_specs=[
                pl.BlockSpec((batch_tile, input_dim), lambda i: (i, 0)),  # x
                rep((input_dim, hid_pad)),                                # w1
                rep((1, hid_pad)),                                        # b1
                rep((hid_pad, hid_pad)),                                  # w2
                rep((1, hid_pad)),                                        # b2
                rep((hid_pad, lat_pad)),                                  # w3
                rep((1, lat_pad)),                                        # b3
            ],
            out_specs=pl.BlockSpec((batch_tile, lat_pad), lambda i: (i, 0)),
            scratch_shapes=[
                # bf16 lane-dense home for the (batch_tile, 512) intermediate.
                pltpu.VMEM((batch_tile, hid_pad), jnp.bfloat16),
            ],
        ),
        compiler_params=pltpu.CompilerParams(
            dimension_semantics=(batch_sem,), **cp_kwargs),
        cost_estimate=pl.CostEstimate(
            flops=int(flops), transcendentals=0,
            bytes_accessed=int(bytes_accessed)),
    )(x_p, w1, b1, w2, b2, w3, b3)

    z = z_pad[:B, :latent_dim]
    return z.astype(out_dtype) if z.dtype != out_dtype else z


def init_params(key, input_dim=INPUT_DIM, hidden_dim=HIDDEN_DIM,
                latent_dim=LATENT_DIM):
    """Deterministic synthetic parameters (PyTorch-like uniform init ranges)."""
    ks = jax.random.split(key, 6)

    def lin(kw, kb, fan_in, fan_out):
        bound = 1.0 / jnp.sqrt(fan_in)
        w = jax.random.uniform(kw, (fan_in, fan_out), jnp.float32, -bound, bound)
        b = jax.random.uniform(kb, (1, fan_out), jnp.float32, -bound, bound)
        return w, b

    w1, b1 = lin(ks[0], ks[1], input_dim, hidden_dim)
    w2, b2 = lin(ks[2], ks[3], hidden_dim, hidden_dim)
    w3, b3 = lin(ks[4], ks[5], hidden_dim, latent_dim)
    return (w1, b1, w2, b2, w3, b3)


def reference(x, params):
    w1, b1, w2, b2, w3, b3 = params
    h = jax.nn.relu(x @ w1 + b1)
    h = jax.nn.relu(h @ w2 + b2)
    return h @ w3 + b3


if __name__ == "__main__":
    key = jax.random.PRNGKey(0)
    k_param, k_x = jax.random.split(key)

    BATCH = 1024           # 2 tiles of 512 -> grid of 2 "parallel" steps
    BATCH_TILE = 512

    params = init_params(k_param, INPUT_DIM, HIDDEN_DIM, LATENT_DIM)
    packed = prepare_params(params)                 # one-time cast + lane-pad
    x = jax.random.normal(k_x, (BATCH, INPUT_DIM), jnp.float32)

    z = simple_encoder(x, packed, latent_dim=LATENT_DIM, batch_tile=BATCH_TILE)
    z = jax.block_until_ready(z)

    z_ref = reference(x, params)
    assert z.shape == (BATCH, LATENT_DIM)
    # bf16 MXU operands / bf16 output with f32 accumulation -> loosened
    # tolerance vs. the pure-f32 reference.
    max_err = jnp.max(jnp.abs(z - z_ref))
    assert jnp.allclose(z, z_ref, atol=4e-2, rtol=4e-2), (
        f"mismatch vs reference, max abs err={max_err}")

    print("KERNEL_OK")
</pallas_src>

<mosaic_0001>
module attributes {stable_mosaic.version = 11 : i64} {
  func.func @encoder_kernel(%arg0: i32, %arg1: memref<512x784xf32, #tpu.memory_space<vmem>>, %arg2: memref<784x512xbf16, #tpu.memory_space<vmem>>, %arg3: memref<1x512xf32, #tpu.memory_space<vmem>>, %arg4: memref<512x512xbf16, #tpu.memory_space<vmem>>, %arg5: memref<1x512xf32, #tpu.memory_space<vmem>>, %arg6: memref<512x128xbf16, #tpu.memory_space<vmem>>, %arg7: memref<1x128xf32, #tpu.memory_space<vmem>>, %arg8: memref<512x128xbf16, #tpu.memory_space<vmem>>, %arg9: memref<512x512xbf16, #tpu.memory_space<vmem>>) attributes {dimension_semantics = [#tpu.dimension_semantics<parallel>], iteration_bounds = array<i64: 2>, scalar_prefetch = 0 : i64, scratch_operands = 1 : i64, tpu.core_type = #tpu.core_type<tc>, window_params = [{transform_indices = @transform_0, window_bounds = array<i64: 512, 784>}, {pipeline_mode = #tpu.pipeline_mode<synchronous>, transform_indices = @transform_1, window_bounds = array<i64: 784, 512>}, {pipeline_mode = #tpu.pipeline_mode<synchronous>, transform_indices = @transform_2, window_bounds = array<i64: 1, 512>}, {pipeline_mode = #tpu.pipeline_mode<synchronous>, transform_indices = @transform_3, window_bounds = array<i64: 512, 512>}, {pipeline_mode = #tpu.pipeline_mode<synchronous>, transform_indices = @transform_4, window_bounds = array<i64: 1, 512>}, {pipeline_mode = #tpu.pipeline_mode<synchronous>, transform_indices = @transform_5, window_bounds = array<i64: 512, 128>}, {pipeline_mode = #tpu.pipeline_mode<synchronous>, transform_indices = @transform_6, window_bounds = array<i64: 1, 128>}, {transform_indices = @transform_7, window_bounds = array<i64: 512, 128>}]} {
    %c0 = arith.constant 0 : index
    %c0_0 = arith.constant 0 : index
    %0 = vector.load %arg1[%c0, %c0_0] : memref<512x784xf32, #tpu.memory_space<vmem>>, vector<512x784xf32>
    %1 = arith.truncf %0 : vector<512x784xf32> to vector<512x784xbf16>
    %c0_1 = arith.constant 0 : index
    %c0_2 = arith.constant 0 : index
    %2 = vector.load %arg2[%c0_1, %c0_2] : memref<784x512xbf16, #tpu.memory_space<vmem>>, vector<784x512xbf16>
    %cst = arith.constant dense<0.000000e+00> : vector<512x512xf32>
    %3 = tpu.matmul %1, %2, %cst {dimension_numbers = #tpu.dot_dimension_numbers<[1], [0], [0], [1], [0, 0, 1, 1], [], []>} : vector<512x784xbf16>, vector<784x512xbf16>, vector<512x512xf32> -> vector<512x512xf32>
    %c0_3 = arith.constant 0 : index
    %c0_4 = arith.constant 0 : index
    %4 = vector.load %arg3[%c0_3, %c0_4] : memref<1x512xf32, #tpu.memory_space<vmem>>, vector<1x512xf32>
    %5 = vector.broadcast %4 : vector<1x512xf32> to vector<512x512xf32>
    %6 = arith.addf %3, %5 : vector<512x512xf32>
    %cst_5 = arith.constant 0.000000e+00 : f32
    %7 = vector.broadcast %cst_5 : f32 to vector<512x512xf32>
    %8 = arith.maximumf %6, %7 : vector<512x512xf32>
    %9 = arith.truncf %8 : vector<512x512xf32> to vector<512x512xbf16>
    %c0_6 = arith.constant 0 : index
    %c0_7 = arith.constant 0 : index
    %10 = vector.load %arg9[%c0_6, %c0_7] : memref<512x512xbf16, #tpu.memory_space<vmem>>, vector<512x512xbf16>
    tpu.vector_store %arg9[%c0_6, %c0_7], %9 {strides = array<i32>} : memref<512x512xbf16, #tpu.memory_space<vmem>>, vector<512x512xbf16>,
    %c0_8 = arith.constant 0 : index
    %c0_9 = arith.constant 0 : index
    %11 = vector.load %arg9[%c0_8, %c0_9] : memref<512x512xbf16, #tpu.memory_space<vmem>>, vector<512x512xbf16>
    %c0_10 = arith.constant 0 : index
    %c0_11 = arith.constant 0 : index
    %12 = vector.load %arg4[%c0_10, %c0_11] : memref<512x512xbf16, #tpu.memory_space<vmem>>, vector<512x512xbf16>
    %cst_12 = arith.constant dense<0.000000e+00> : vector<512x512xf32>
    %13 = tpu.matmul %11, %12, %cst_12 {dimension_numbers = #tpu.dot_dimension_numbers<[1], [0], [0], [1], [0, 0, 1, 1], [], []>} : vector<512x512xbf16>, vector<512x512xbf16>, vector<512x512xf32> -> vector<512x512xf32>
    %c0_13 = arith.constant 0 : index
    %c0_14 = arith.constant 0 : index
    %14 = vector.load %arg5[%c0_13, %c0_14] : memref<1x512xf32, #tpu.memory_space<vmem>>, vector<1x512xf32>
    %15 = vector.broadcast %14 : vector<1x512xf32> to vector<512x512xf32>
    %16 = arith.addf %13, %15 : vector<512x512xf32>
    %cst_15 = arith.constant 0.000000e+00 : f32
    %17 = vector.broadcast %cst_15 : f32 to vector<512x512xf32>
    %18 = arith.maximumf %16, %17 : vector<512x512xf32>
    %19 = arith.truncf %18 : vector<512x512xf32> to vector<512x512xbf16>
    %c0_16 = arith.constant 0 : index
    %c0_17 = arith.constant 0 : index
    %20 = vector.load %arg9[%c0_16, %c0_17] : memref<512x512xbf16, #tpu.memory_space<vmem>>, vector<512x512xbf16>
    tpu.vector_store %arg9[%c0_16, %c0_17], %19 {strides = array<i32>} : memref<512x512xbf16, #tpu.memory_space<vmem>>, vector<512x512xbf16>,
    %c0_18 = arith.constant 0 : index
    %c0_19 = arith.constant 0 : index
    %21 = vector.load %arg9[%c0_18, %c0_19] : memref<512x512xbf16, #tpu.memory_space<vmem>>, vector<512x512xbf16>
    %c0_20 = arith.constant 0 : index
    %c0_21 = arith.constant 0 : index
    %22 = vector.load %arg6[%c0_20, %c0_21] : memref<512x128xbf16, #tpu.memory_space<vmem>>, vector<512x128xbf16>
    %cst_22 = arith.constant dense<0.000000e+00> : vector<512x128xf32>
    %23 = tpu.matmul %21, %22, %cst_22 {dimension_numbers = #tpu.dot_dimension_numbers<[1], [0], [0], [1], [0, 0, 1, 1], [], []>} : vector<512x512xbf16>, vector<512x128xbf16>, vector<512x128xf32> -> vector<512x128xf32>
    %c0_23 = arith.constant 0 : index
    %c0_24 = arith.constant 0 : index
    %24 = vector.load %arg7[%c0_23, %c0_24] : memref<1x128xf32, #tpu.memory_space<vmem>>, vector<1x128xf32>
    %25 = vector.broadcast %24 : vector<1x128xf32> to vector<512x128xf32>
    %26 = arith.addf %23, %25 : vector<512x128xf32>
    %27 = arith.truncf %26 : vector<512x128xf32> to vector<512x128xbf16>
    %c0_25 = arith.constant 0 : index
    %c0_26 = arith.constant 0 : index
    %28 = vector.load %arg8[%c0_25, %c0_26] : memref<512x128xbf16, #tpu.memory_space<vmem>>, vector<512x128xbf16>
    tpu.vector_store %arg8[%c0_25, %c0_26], %27 {strides = array<i32>} : memref<512x128xbf16, #tpu.memory_space<vmem>>, vector<512x128xbf16>,
    return
  }
  func.func @transform_0(%arg0: i32) -> (i32, i32) {
    %c0_i32 = arith.constant 0 : i32
    %c0_i32_0 = arith.constant 0 : i32
    return %arg0, %c0_i32 : i32, i32
  }
  func.func @transform_1(%arg0: i32) -> (i32, i32) {
    %c0_i32 = arith.constant 0 : i32
    %c0_i32_0 = arith.constant 0 : i32
    %c0_i32_1 = arith.constant 0 : i32
    return %c0_i32, %c0_i32_0 : i32, i32
  }
  func.func @transform_2(%arg0: i32) -> (i32, i32) {
    %c0_i32 = arith.constant 0 : i32
    %c0_i32_0 = arith.constant 0 : i32
    %c0_i32_1 = arith.constant 0 : i32
    return %c0_i32, %c0_i32_0 : i32, i32
  }
  func.func @transform_3(%arg0: i32) -> (i32, i32) {
    %c0_i32 = arith.constant 0 : i32
    %c0_i32_0 = arith.constant 0 : i32
    %c0_i32_1 = arith.constant 0 : i32
    return %c0_i32, %c0_i32_0 : i32, i32
  }
  func.func @transform_4(%arg0: i32) -> (i32, i32) {
    %c0_i32 = arith.constant 0 : i32
    %c0_i32_0 = arith.constant 0 : i32
    %c0_i32_1 = arith.constant 0 : i32
    return %c0_i32, %c0_i32_0 : i32, i32
  }
  func.func @transform_5(%arg0: i32) -> (i32, i32) {
    %c0_i32 = arith.constant 0 : i32
    %c0_i32_0 = arith.constant 0 : i32
    %c0_i32_1 = arith.constant 0 : i32
    return %c0_i32, %c0_i32_0 : i32, i32
  }
  func.func @transform_6(%arg0: i32) -> (i32, i32) {
    %c0_i32 = arith.constant 0 : i32
    %c0_i32_0 = arith.constant 0 : i32
    %c0_i32_1 = arith.constant 0 : i32
    return %c0_i32, %c0_i32_0 : i32, i32
  }
  func.func @transform_7(%arg0: i32) -> (i32, i32) {
    %c0_i32 = arith.constant 0 : i32
    %c0_i32_0 = arith.constant 0 : i32
    return %arg0, %c0_i32 : i32, i32
  }
}

</mosaic_0001>

<bundles_post_ra>
// kernel: tpu_custom_call.1
= control target key start
LH: loop header
LB: loop body
LE: loop exit
PB: predicated region body
PF: predicated region fallthrough
CT: control target
= control target key end

     0   :  { %12 = vsyncpa [#allocation4], 0  ;;  %s20378_s0 = inlined_call_operand.vmem [shape: f32[1024,784], index: 0, kind: input, shape index: {}]   ;;  %s20379_s1 = inlined_call_operand.vmem [shape: bf16[784,512], index: 1, kind: input, shape index: {}]   ;;  %s20380_s2 = inlined_call_operand.vmem [shape: f32[1,512], index: 2, kind: input, shape index: {}]   ;;  %s20381_s3 = inlined_call_operand.vmem [shape: bf16[512,512], index: 3, kind: input, shape index: {}]   ;;  %s20382_s4 = inlined_call_operand.vmem [shape: f32[1,512], index: 4, kind: input, shape index: {}]   ;;  %s20383_s5 = inlined_call_operand.vmem [shape: bf16[512,128], index: 5, kind: input, shape index: {}]   ;;  %s20384_s6 = inlined_call_operand.vmem [shape: f32[1,128], index: 6, kind: input, shape index: {}]   ;;  %s20385_s7 = inlined_call_operand.hbm [shape: bf16[1024,128], index: 7, kind: output, shape index: {}]  }
   0x1   :  { %14 = vsyncpa [#allocation4 + $0x1], 0  ;;  %s14801_s24 = smov 0   ;;  %s14803_s25 = smov 0  }
   0x2   :  { %s14805_s26 = smov 0   ;;  %s14807_s27 = smov 0  }
   0x3 LB: > { %s14822_s28 = sadd.s32 4294967295, %s14755_s27   ;;  %s12354_s29 = sadd.s32 4294967294, %s14755_s27   ;;  %s14755_s27 = sphi %s14807_s27, %s21936_s27   ;;  %s14751_s26 = sphi %s14805_s26, %s21935_s26   ;;  %s14747_s25 = sphi %s14803_s25, %s21934_s25   ;;  %s14743_s24 = sphi %s14801_s24, %s21933_s24  }
   0x4   : > { %s14826_s30 = sadd.s32 1, %s14755_s27   ;;  %s179_s8 = sadd.s32 1, %s14751_s26 }
   0x5   : > { %s176_s9 = ssub.s32 %s14755_s27, %s14826_s30  ;;  %p189_p0 = scmp.ne.s32.totalorder %s14751_s26, %s14747_s25 }
   0x6   : > { %p177_p1 = scmp.eq.s32.totalorder %s176_s9, 0  ;;  %p190_p2 = scmp.eq.s32.totalorder %s14822_s28, 1 }
   0x7   : > { %p195_p3 = scmp.ne.s32.totalorder %s14747_s25, %s14743_s24  ;;  %p196_p4 = scmp.eq.s32.totalorder %s12354_s29, 1 }
   0x8   : > { %s14837_s10 = scalar_select %p177_p1, %s14751_s26, %s179_s8  }
   0x9   : > { %p14839_p5 = por %p190_p2, %p189_p0  ;;  %p14843_p6 = por %p196_p4, %p195_p3 }
   0xa   : > { %p12357_p7 = scmp.ge.s32.totalorder %s14755_s27, 1  ;;  %p242_p8 = scmp.lt.s32.totalorder %s14755_s27, 3 }
   0xc   : > { %p243_p9 = pnand %p12357_p7, %p242_p8 }
   0xe   : > { %246 = sbr.rel (%p243_p9) target bundleno = 2085 (0x825), region = 48 }
  0x13   : > { %v14174_v0 = vld [vmem:[%s20379_s1 + $0xe4] ss:$16 sps:$4 sm:$0xff]   ;;  %v14178_v2 = vld [vmem:[%s20379_s1 + $0xe0] ss:$16 sps:$4 sm:$0xff]   ;;  %s12359_s15 = sshll.u32 %s14822_s28, 6  ;;  %vm2154_vm0 = vcmask 130048  }
  0x14   : > { %v14176_v1 = vld [vmem:[%s20379_s1 + $0x2e4] ss:$16 sps:$4 sm:$0xff]   ;;  %2251 = vmatprep.subr.bf16.mxu0 %v14174_v0  ;;  %v14179_v3 = vld [vmem:[%s20379_s1 + $0x2e0] ss:$16 sps:$4 sm:$0xff]   ;;  %p276_p10 = scmp.lt.s32.totalorder %s12359_s15, 127  ;;  %s13683_s21 = sshll.u32 %s14822_s28, 12 }
  0x15   : > { %2604 = vmatprep.subr.bf16.mxu1 %v14176_v1  ;;  %v14180_v4 = vld [vmem:[%s20379_s1 + $0xc4] ss:$16 sps:$4 sm:$0xff]   ;;  %2252 = vmatpush1.bf16.msra.mxu0 %v14178_v2  ;;  %v14184_v6 = vld [vmem:[%s20379_s1 + $0xc0] ss:$16 sps:$4 sm:$0xff]   ;;  %s20331_s13 = scalar_lea.hbm %s20385_s7, %s13683_s21  ;;  %s14758_s14 = smov [#allocation3]  }
  0x16   : > { %2605 = vmatpush1.bf16.msra.mxu1 %v14179_v3  ;;  %v14182_v5 = vld [vmem:[%s20379_s1 + $0x2c4] ss:$16 sps:$4 sm:$0xff]   ;;  %2253 = vmatprep.subr.bf16.mxu0 %v14180_v4  ;;  %v14185_v7 = vld [vmem:[%s20379_s1 + $0x2c0] ss:$16 sps:$4 sm:$0xff]   ;;  %s21938_s15 = smov (!%p276_p10, %s12359_s15), 127  ;;  %s14699_s16 = sshll.u32 %s14758_s14, 4  ;;  %s14700_s16 = int_to_ptr.vmem [resolvable:$false] %s14699_s16 }
  0x17   : > { %2606 = vmatprep.subr.bf16.mxu1 %v14182_v5  ;;  %v14186_v8 = vld [vmem:[%s20379_s1 + $0xa4] ss:$16 sps:$4 sm:$0xff]   ;;  %v14190_v10 = vld [vmem:[%s20379_s1 + $0xa0] ss:$16 sps:$4 sm:$0xff]   ;;  %s14131_s23 = smul.u32 56, %s21938_s15  ;;  %s14701_s17 = scalar_lea.vmem %s14700_s16, 8192 }
  0x18   : > { %v14188_v9 = vld [vmem:[%s20379_s1 + $0x2a4] ss:$16 sps:$4 sm:$0xff]   ;;  %v14191_v11 = vld [vmem:[%s20379_s1 + $0x2a0] ss:$16 sps:$4 sm:$0xff]  }
  0x19   : > { %2254 = vmatpush1.bf16.msra.mxu0 %v14184_v6  ;;  %v14192_v12 = vld [vmem:[%s20379_s1 + $0x84] ss:$16 sps:$4 sm:$0xff]   ;;  %v14196_v14 = vld [vmem:[%s20379_s1 + $0x80] ss:$16 sps:$4 sm:$0xff]   ;;  %s14985_s22 = scalar_lea.vmem %s20378_s0, %s14131_s23 }
  0x1a   : > { %2607 = vmatpush1.bf16.msra.mxu1 %v14185_v7  ;;  %2255 = vmatprep.subr.bf16.mxu0 %v14186_v8  ;;  %v14194_v13 = vld [vmem:[%s20379_s1 + $0x284] ss:$16 sps:$4 sm:$0xff]   ;;  %v14197_v15 = vld [vmem:[%s20379_s1 + $0x280] ss:$16 sps:$4 sm:$0xff]   ;;  %v285_v46 = vld [vmem:[%s14985_s22 + $0x8] sm:$0xff] }
  0x1b   : > { %2608 = vmatprep.subr.bf16.mxu1 %v14188_v9  ;;  %v14198_v16 = vld [vmem:[%s20379_s1 + $0x64] ss:$16 sps:$4 sm:$0xff]   ;;  %v14202_v18 = vld [vmem:[%s20379_s1 + $0x60] ss:$16 sps:$4 sm:$0xff]   ;;  %v287_v48 = vld [vmem:[%s14985_s22 + $0x18] sm:$0xff] }
  0x1c   : > { %v14200_v17 = vld [vmem:[%s20379_s1 + $0x264] ss:$16 sps:$4 sm:$0xff]   ;;  %v14203_v19 = vld [vmem:[%s20379_s1 + $0x260] ss:$16 sps:$4 sm:$0xff]   ;;  %v291_v7 = vld [vmem:[%s14985_s22 + $0x38] sm:$0xff] }
  0x1d   : > { %2256 = vmatpush1.bf16.msra.mxu0 %v14190_v10  ;;  %v14204_v20 = vld [vmem:[%s20379_s1 + $0x44] ss:$16 sps:$4 sm:$0xff]   ;;  %v14208_v22 = vld [vmem:[%s20379_s1 + $0x40] ss:$16 sps:$4 sm:$0xff]   ;;  %v293_v9 = vld [vmem:[%s14985_s22 + $0x48] sm:$0xff] }
  0x1e   : > { %2609 = vmatpush1.bf16.msra.mxu1 %v14191_v11  ;;  %2257 = vmatprep.subr.bf16.mxu0 %v14192_v12  ;;  %v14206_v21 = vld [vmem:[%s20379_s1 + $0x244] ss:$16 sps:$4 sm:$0xff]   ;;  %v14209_v23 = vld [vmem:[%s20379_s1 + $0x240] ss:$16 sps:$4 sm:$0xff]   ;;  %v299_v12 = vld [vmem:[%s14985_s22 + $0x78] sm:$0xff] }
  0x1f   : > { %2610 = vmatprep.subr.bf16.mxu1 %v14194_v13  ;;  %v14210_v24 = vld [vmem:[%s20379_s1 + $0x24] ss:$16 sps:$4 sm:$0xff]   ;;  %v14214_v26 = vld [vmem:[%s20379_s1 + $0x20] ss:$16 sps:$4 sm:$0xff]  }
  0x20   : > { %v14212_v25 = vld [vmem:[%s20379_s1 + $0x224] ss:$16 sps:$4 sm:$0xff]   ;;  %v14215_v27 = vld [vmem:[%s20379_s1 + $0x220] ss:$16 sps:$4 sm:$0xff]  }
  0x21   : > { %2258 = vmatpush1.bf16.msra.mxu0 %v14196_v14  ;;  %v14216_v28 = vld [vmem:[%s20379_s1 + $0x4] ss:$16 sps:$4 sm:$0xff]   ;;  %v14220_v30 = vld [vmem:[%s20379_s1] ss:$16 sps:$4 sm:$0xff]   ;;  %v301_v14 = vld [vmem:[%s14985_s22 + $0x88] sm:$0xff] }
  0x22   : > { %2611 = vmatpush1.bf16.msra.mxu1 %v14197_v15  ;;  %2259 = vmatprep.subr.bf16.mxu0 %v14198_v16  ;;  %v14218_v29 = vld [vmem:[%s20379_s1 + $0x204] ss:$16 sps:$4 sm:$0xff]   ;;  %v14221_v31 = vld [vmem:[%s20379_s1 + $0x200] ss:$16 sps:$4 sm:$0xff]  }
  0x23   : > { %2612 = vmatprep.subr.bf16.mxu1 %v14200_v17  ;;  %v14222_v32 = vld [vmem:[%s20379_s1 + $0x1e4] ss:$16 sps:$4 sm:$0xff]   ;;  %v14226_v34 = vld [vmem:[%s20379_s1 + $0x1e0] ss:$16 sps:$4 sm:$0xff]  }
  0x24   : > { %v14224_v33 = vld [vmem:[%s20379_s1 + $0x3e4] ss:$16 sps:$4 sm:$0xff]   ;;  %v14227_v35 = vld [vmem:[%s20379_s1 + $0x3e0] ss:$16 sps:$4 sm:$0xff]  }
  0x25   : > { %2260 = vmatpush1.bf16.msra.mxu0 %v14202_v18  ;;  %v14228_v36 = vld [vmem:[%s20379_s1 + $0x1c4] ss:$16 sps:$4 sm:$0xff]   ;;  %v14232_v38 = vld [vmem:[%s20379_s1 + $0x1c0] ss:$16 sps:$4 sm:$0xff]  }
  0x26   : > { %2613 = vmatpush1.bf16.msra.mxu1 %v14203_v19  ;;  %2261 = vmatprep.subr.bf16.mxu0 %v14204_v20  ;;  %v14230_v37 = vld [vmem:[%s20379_s1 + $0x3c4] ss:$16 sps:$4 sm:$0xff]   ;;  %v14233_v39 = vld [vmem:[%s20379_s1 + $0x3c0] ss:$16 sps:$4 sm:$0xff]  }
  0x27   : > { %2614 = vmatprep.subr.bf16.mxu1 %v14206_v21  ;;  %v14234_v40 = vld [vmem:[%s20379_s1 + $0x1a4] ss:$16 sps:$4 sm:$0xff]   ;;  %v14238_v42 = vld [vmem:[%s20379_s1 + $0x1a0] ss:$16 sps:$4 sm:$0xff]  }
  0x28   : > { %v14236_v41 = vld [vmem:[%s20379_s1 + $0x3a4] ss:$16 sps:$4 sm:$0xff]   ;;  %v14239_v43 = vld [vmem:[%s20379_s1 + $0x3a0] ss:$16 sps:$4 sm:$0xff]  }
  0x29   : > { %2262 = vmatpush1.bf16.msra.mxu0 %v14208_v22  ;;  %v14240_v44 = vld [vmem:[%s20379_s1 + $0x184] ss:$16 sps:$4 sm:$0xff]   ;;  %v14244_v50 = vld [vmem:[%s20379_s1 + $0x180] ss:$16 sps:$4 sm:$0xff]  }
  0x2a   : > { %2615 = vmatpush1.bf16.msra.mxu1 %v14209_v23  ;;  %2263 = vmatprep.subr.bf16.mxu0 %v14210_v24  ;;  %v14242_v45 = vld [vmem:[%s20379_s1 + $0x384] ss:$16 sps:$4 sm:$0xff]   ;;  %v14245_v51 = vld [vmem:[%s20379_s1 + $0x380] ss:$16 sps:$4 sm:$0xff]   ;;  %v305_v23 = vld [vmem:[%s14985_s22 + $0xa8] sm:$0xff] }
  0x2b   : > { %2616 = vmatprep.subr.bf16.mxu1 %v14212_v25  ;;  %v292_v47 = vld [vmem:[%s14985_s22 + $0x40] sm:$0xff]  ;;  %v294_v49 = vld [vmem:[%s14985_s22 + $0x50] sm:$0xff] }
  0x2c   : > { %v14246_v52 = vld [vmem:[%s20379_s1 + $0x164] ss:$16 sps:$4 sm:$0xff]   ;;  %v15006_v53 = vpack.c.bf16 %v292_v47, %v285_v46  ;;  %v15008_v54 = vpack.c.bf16 %v294_v49, %v287_v48  ;;  %v14250_v56 = vld [vmem:[%s20379_s1 + $0x160] ss:$16 sps:$4 sm:$0xff]  }
  0x2d   : > { %2264 = vmatpush1.bf16.msra.mxu0 %v14214_v26  ;;  %v14248_v55 = vld [vmem:[%s20379_s1 + $0x364] ss:$16 sps:$4 sm:$0xff]   ;;  %v14251_v57 = vld [vmem:[%s20379_s1 + $0x360] ss:$16 sps:$4 sm:$0xff]   ;;  %v307_v26 = vld [vmem:[%s14985_s22 + $0xb8] sm:$0xff] }
  0x2e   : > { %2617 = vmatpush1.bf16.msra.mxu1 %v14215_v27  ;;  %2265 = vmatprep.subr.bf16.mxu0 %v14216_v28  ;;  %v14252_v58 = vld [vmem:[%s20379_s1 + $0x144] ss:$16 sps:$4 sm:$0xff]   ;;  %v14256_v60 = vld [vmem:[%s20379_s1 + $0x140] ss:$16 sps:$4 sm:$0xff]   ;;  %v313_v27 = vld [vmem:[%s14985_s22 + $0xe8] sm:$0xff] }
  0x2f   : > { %2618 = vmatprep.subr.bf16.mxu1 %v14218_v29  ;;  %2283 = vmatprep.mubr.bf16.mxu0 %v15006_v53  ;;  %v14254_v59 = vld [vmem:[%s20379_s1 + $0x344] ss:$16 sps:$4 sm:$0xff]   ;;  %v14257_v61 = vld [vmem:[%s20379_s1 + $0x340] ss:$16 sps:$4 sm:$0xff]  }
  0x30   : > { %2636 = vmatprep.mubr.bf16.mxu1 %v15008_v54  ;;  %v14258_v62 = vld [vmem:[%s20379_s1 + $0x124] ss:$16 sps:$4 sm:$0xff]   ;;  %v14262_v0 = vld [vmem:[%s20379_s1 + $0x120] ss:$16 sps:$4 sm:$0xff]  }
  0x31   : > { %2266 = vmatpush1.bf16.msra.mxu0 %v14220_v30  ;;  %v14260_v63 = vld [vmem:[%s20379_s1 + $0x324] ss:$16 sps:$4 sm:$0xff]   ;;  %v14263_v1 = vld [vmem:[%s20379_s1 + $0x320] ss:$16 sps:$4 sm:$0xff]   ;;  %v315_v30 = vld [vmem:[%s14985_s22 + $0xf8] sm:$0xff] }
  0x32   : > { %2619 = vmatpush1.bf16.msra.mxu1 %v14221_v31  ;;  %2267 = vmatprep.subr.bf16.mxu0 %v14222_v32  ;;  %v14264_v2 = vld [vmem:[%s20379_s1 + $0x104] ss:$16 sps:$4 sm:$0xff]   ;;  %v14268_v4 = vld [vmem:[%s20379_s1 + $0x100] ss:$16 sps:$4 sm:$0xff]  }
  0x33   : > { %2620 = vmatprep.subr.bf16.mxu1 %v14224_v33  ;;  %v14266_v3 = vld [vmem:[%s20379_s1 + $0x304] ss:$16 sps:$4 sm:$0xff]   ;;  %v14269_v5 = vld [vmem:[%s20379_s1 + $0x300] ss:$16 sps:$4 sm:$0xff]  }
  0x34   : > { %v284_v6 = vld [vmem:[%s14985_s22] sm:$0xff]  ;;  %v286_v8 = vld [vmem:[%s14985_s22 + $0x10] sm:$0xff] }
  0x35   : > { %2268 = vmatpush2.bf16.msra.mxu0 %v14226_v34  ;;  %v14272_v10 = vld [vmem:[%s20379_s1 + $0x4e4] ss:$16 sps:$4 sm:$0xff]   ;;  %v15071_v16 = vpack.c.bf16 %v291_v7, %v284_v6  ;;  %v15073_v17 = vpack.c.bf16 %v293_v9, %v286_v8  ;;  %v14270_v18 = vld [vmem:[%s20379_s1 + $0x4e0] ss:$16 sps:$4 sm:$0xff]   ;;  %v347_v9 = vld [vmem:[%s14985_s22 + $0x1f8] sm:$0xff] }
  0x36   : > { %2621 = vmatpush2.bf16.msra.mxu1 %v14227_v35  ;;  %2269 = vmatprep.subr.bf16.mxu0 %v14228_v36  ;;  %v14275_v11 = vld [vmem:[%s20379_s1 + $0x604] ss:$16 sps:$4 sm:$0xff]   ;;  %v14273_v19 = vld [vmem:[%s20379_s1 + $0x600] ss:$16 sps:$4 sm:$0xff]  }
  0x37   : > { %2622 = vmatprep.subr.bf16.mxu1 %v14230_v37  ;;  %v306_v13 = vld [vmem:[%s14985_s22 + $0xb0] sm:$0xff]  ;;  %v308_v15 = vld [vmem:[%s14985_s22 + $0xc0] sm:$0xff] }
  0x38   : > { %v15081_v20 = vpack.c.bf16 %v306_v13, %v299_v12  ;;  %v15083_v21 = vpack.c.bf16 %v308_v15, %v301_v14  ;;  %v298_v22 = vld [vmem:[%s14985_s22 + $0x70] sm:$0xff]  ;;  %v300_v25 = vld [vmem:[%s14985_s22 + $0x80] sm:$0xff]  ;;  %v355_v12 = vld [vmem:[%s14985_s22 + $0x238] sm:$0xff] }
  0x39   : > { %2270 = vmatpush2.bf16.msra.mxu0 %v14232_v38  ;;  %v14278_v24 = vld [vmem:[%s20379_s1 + $0x4c4] ss:$16 sps:$4 sm:$0xff]   ;;  %v14276_v29 = vld [vmem:[%s20379_s1 + $0x4c0] ss:$16 sps:$4 sm:$0xff]   ;;  %v15106_v33 = vpack.c.bf16 %v305_v23, %v298_v22  ;;  %v15108_v34 = vpack.c.bf16 %v307_v26, %v300_v25  ;;  %v357_v14 = vld [vmem:[%s14985_s22 + $0x248] sm:$0xff] }
  0x3a   : > { %2623 = vmatpush2.bf16.msra.mxu1 %v14233_v39  ;;  %2271 = vmatprep.subr.bf16.mxu0 %v14234_v40  ;;  %20711 = vst [vmem:[#allocation6_spill] sm:$0xff] %v15081_v20  ;;  %20712 = vst [vmem:[#allocation7_spill] sm:$0xff] %v15083_v21  ;;  %v320_v28 = vld [vmem:[%s14985_s22 + $0x120] sm:$0xff]  ;;  %v322_v31 = vld [vmem:[%s14985_s22 + $0x130] sm:$0xff] }
  0x3b   : > { %2624 = vmatprep.subr.bf16.mxu1 %v14236_v41  ;;  %v14281_v32 = vld [vmem:[%s20379_s1 + $0x4a4] ss:$16 sps:$4 sm:$0xff]   ;;  %20713 = vst [vmem:[#allocation8_spill] sm:$0xff] %v15106_v33  ;;  %20714 = vst [vmem:[#allocation9_spill] sm:$0xff] %v15108_v34  ;;  %v15110_v35 = vpack.c.bf16 %v320_v28, %v313_v27  ;;  %v15112_v36 = vpack.c.bf16 %v322_v31, %v315_v30  ;;  %v14279_v37 = vld [vmem:[%s20379_s1 + $0x4a0] ss:$16 sps:$4 sm:$0xff]  }
  0x3c   : > { %v14284_v38 = vld [vmem:[%s20379_s1 + $0x484] ss:$16 sps:$4 sm:$0xff]   ;;  %v319_v40 = vld [vmem:[%s14985_s22 + $0x118] sm:$0xff]  ;;  %v14282_v47 = vld [vmem:[%s20379_s1 + $0x480] ss:$16 sps:$4 sm:$0xff]  }
  0x3d   : > { %2272 = vmatpush2.bf16.msra.mxu0 %v14238_v42  ;;  %20715 = vst [vmem:[#allocation10_spill] sm:$0xff] %v15110_v35  ;;  %20716 = vst [vmem:[#allocation11_spill] sm:$0xff] %v15112_v36  ;;  %v312_v39 = vld [vmem:[%s14985_s22 + $0xe0] sm:$0xff]  ;;  %v314_v41 = vld [vmem:[%s14985_s22 + $0xf0] sm:$0xff] }
  0x3e   : > { %2625 = vmatpush2.bf16.msra.mxu1 %v14239_v43  ;;  %2273 = vmatprep.subr.bf16.mxu0 %v14240_v44  ;;  %v321_v42 = vld [vmem:[%s14985_s22 + $0x128] sm:$0xff]  ;;  %v327_v43 = vld [vmem:[%s14985_s22 + $0x158] sm:$0xff]  ;;  %v334_v44 = vld [vmem:[%s14985_s22 + $0x190] sm:$0xff]  ;;  %v15138_v49 = vpack.c.bf16 %v319_v40, %v312_v39 }
  0x3f   : > { %2626 = vmatprep.subr.bf16.mxu1 %v14242_v45  ;;  %v329_v45 = vld [vmem:[%s14985_s22 + $0x168] sm:$0xff]  ;;  %v336_v46 = vld [vmem:[%s14985_s22 + $0x1a0] sm:$0xff]  ;;  %v362_v13 = vld [vmem:[%s14985_s22 + $0x270] sm:$0xff] }
  0x40   : > { %v14287_v48 = vld [vmem:[%s20379_s1 + $0x464] ss:$16 sps:$4 sm:$0xff]   ;;  %20717 = vst [vmem:[#allocation12_spill] sm:$0xff] %v15138_v49  ;;  %v14291_v7 = vld [vmem:[%s20379_s1 + $0x420] ss:$16 sps:$4 sm:$0xff]   ;;  %v361_v27 = vld [vmem:[%s14985_s22 + $0x268] sm:$0xff] }
  0x41   : > { %2274 = vmatpush2.bf16.msra.mxu0 %v14244_v50  ;;  %v15140_v50 = vpack.c.bf16 %v321_v42, %v314_v41  ;;  %v340_v8 = vld [vmem:[%s14985_s22 + $0x1c0] sm:$0xff]  ;;  %v354_v26 = vld [vmem:[%s14985_s22 + $0x230] sm:$0xff]  ;;  %v369_v30 = vld [vmem:[%s14985_s22 + $0x2a8] sm:$0xff] }
  0x42   : > { %2627 = vmatpush2.bf16.msra.mxu1 %v14245_v51  ;;  %2275 = vmatprep.subr.bf16.mxu0 %v14246_v52  ;;  %v15142_v51 = vpack.c.bf16 %v334_v44, %v327_v43  ;;  %v15144_v52 = vpack.c.bf16 %v336_v46, %v329_v45  ;;  %v364_v15 = vld [vmem:[%s14985_s22 + $0x280] sm:$0xff]  ;;  %v15199_v22 = vpack.c.bf16 %v347_v9, %v340_v8  ;;  %v375_v45 = vld [vmem:[%s14985_s22 + $0x2d8] sm:$0xff] }
  0x43   : > { %2628 = vmatprep.subr.bf16.mxu1 %v14248_v55  ;;  %20718 = vst [vmem:[#allocation13_spill] sm:$0xff] %v15140_v50  ;;  %v14285_v55 = vld [vmem:[%s20379_s1 + $0x460] ss:$16 sps:$4 sm:$0xff]   ;;  %v15205_v25 = vpack.c.bf16 %v364_v15, %v357_v14  ;;  %v14299_v39 = vld [vmem:[%s20379_s1 + $0x5e4] ss:$16 sps:$4 sm:$0xff]   ;;  %v15225_v40 = vpack.c.bf16 %v361_v27, %v354_v26  ;;  %v391_v9 = vld [vmem:[%s14985_s22 + $0x358] sm:$0xff] }
  0x44   : > { %20719 = vst [vmem:[#allocation14_spill] sm:$0xff] %v15142_v51  ;;  %20720 = vst [vmem:[#allocation15_spill] sm:$0xff] %v15144_v52  ;;  %v356_v28 = vld [vmem:[%s14985_s22 + $0x240] sm:$0xff] }
  0x45   : > { %2276 = vmatpush2.bf16.msra.mxu0 %v14250_v56  ;;  %v14290_v56 = vld [vmem:[%s20379_s1 + $0x444] ss:$16 sps:$4 sm:$0xff]   ;;  %20725 = vst [vmem:[#allocation20_spill] sm:$0xff] %v15199_v22  ;;  %20728 = vst [vmem:[#allocation23_spill] sm:$0xff] %v15205_v25  ;;  %v14300_v46 = vld [vmem:[%s20379_s1 + $0x5c0] ss:$16 sps:$4 sm:$0xff]  }
  0x46   : > { %2629 = vmatpush2.bf16.msra.mxu1 %v14251_v57  ;;  %2277 = vmatprep.subr.bf16.mxu0 %v14252_v58  ;;  %v326_v57 = vld [vmem:[%s14985_s22 + $0x150] sm:$0xff]  ;;  %v333_v58 = vld [vmem:[%s14985_s22 + $0x188] sm:$0xff]  ;;  %v376_v31 = vld [vmem:[%s14985_s22 + $0x2e0] sm:$0xff]  ;;  %20729 = vst [vmem:[#allocation24_spill] sm:$0xff] %v15225_v40 }
  0x47   : > { %2630 = vmatprep.subr.bf16.mxu1 %v14254_v59  ;;  %v328_v59 = vld [vmem:[%s14985_s22 + $0x160] sm:$0xff]  ;;  %v15229_v42 = vpack.c.bf16 %v376_v31, %v369_v30  ;;  %v398_v30 = vld [vmem:[%s14985_s22 + $0x390] sm:$0xff]  ;;  %v405_v31 = vld [vmem:[%s14985_s22 + $0x3c8] sm:$0xff] }
  0x48   : > { %v368_v44 = vld [vmem:[%s14985_s22 + $0x2a0] sm:$0xff] }
  0x49   : > { %2278 = vmatpush2.bf16.msra.mxu0 %v14256_v60  ;;  %v335_v60 = vld [vmem:[%s14985_s22 + $0x198] sm:$0xff]  ;;  %20731 = vst [vmem:[#allocation26_spill] sm:$0xff] %v15229_v42  ;;  %v384_v8 = vld [vmem:[%s14985_s22 + $0x320] sm:$0xff] }
  0x4a   : > { %2631 = vmatpush2.bf16.msra.mxu1 %v14257_v61  ;;  %2279 = vmatprep.subr.bf16.mxu0 %v14258_v62  ;;  %v341_v61 = vld [vmem:[%s14985_s22 + $0x1c8] sm:$0xff]  ;;  %v348_v62 = vld [vmem:[%s14985_s22 + $0x200] sm:$0xff]  ;;  %v15279_v15 = vpack.c.bf16 %v391_v9, %v384_v8 }
  0x4b   : > { %2632 = vmatprep.subr.bf16.mxu1 %v14260_v63  ;;  %v343_v63 = vld [vmem:[%s14985_s22 + $0x1d8] sm:$0xff]  ;;  %v14308_v26 = vld [vmem:[%s20379_s1 + $0x584] ss:$16 sps:$4 sm:$0xff]   ;;  %v14306_v27 = vld [vmem:[%s20379_s1 + $0x580] ss:$16 sps:$4 sm:$0xff]  }
  0x4c   : > { %20738 = vst [vmem:[#allocation33_spill] sm:$0xff] %v15279_v15 }
  0x4d   : > { %2280 = vmatpush2.bf16.msra.mxu0 %v14262_v0  ;;  %v350_v0 = vld [vmem:[%s14985_s22 + $0x210] sm:$0xff] }
  0x4e   : > { %2633 = vmatpush2.bf16.msra.mxu1 %v14263_v1  ;;  %2281 = vmatprep.subr.bf16.mxu0 %v14264_v2  ;;  %v14288_v1 = vld [vmem:[%s20379_s1 + $0x440] ss:$16 sps:$4 sm:$0xff]   ;;  %v15167_v2 = vpack.c.bf16 %v333_v58, %v326_v57  ;;  %v15176_v6 = vpack.c.bf16 %v350_v0, %v343_v63  ;;  %v385_v58 = vld [vmem:[%s14985_s22 + $0x328] sm:$0xff] }
  0x4f   : > { %2634 = vmatprep.subr.bf16.mxu1 %v14266_v3  ;;  %v15169_v3 = vpack.c.bf16 %v335_v60, %v328_v59  ;;  %v390_v57 = vld [vmem:[%s14985_s22 + $0x350] sm:$0xff]  ;;  %v392_v59 = vld [vmem:[%s14985_s22 + $0x360] sm:$0xff]  ;;  %v15251_v60 = vpack.c.bf16 %v375_v45, %v368_v44  ;;  %v15305_v45 = vpack.c.bf16 %v405_v31, %v398_v30  ;;  %v441_v30 = vld [vmem:[%s14985_s22 + $0x4e8] sm:$0xff] }
  0x50   : > { %20721 = vst [vmem:[#allocation16_spill] sm:$0xff] %v15167_v2  ;;  %20724 = vst [vmem:[#allocation19_spill] sm:$0xff] %v15176_v6  ;;  %v15257_v63 = vpack.c.bf16 %v392_v59, %v385_v58  ;;  %v14303_v0 = vld [vmem:[%s20379_s1 + $0x5a0] ss:$16 sps:$4 sm:$0xff]   ;;  %v425_v58 = vld [vmem:[%s14985_s22 + $0x468] sm:$0xff] }
  0x51   : > { %2282 = vmatpush2.bf16.msra.mxu0 %v14268_v4  ;;  %20722 = vst [vmem:[#allocation17_spill] sm:$0xff] %v15169_v3  ;;  %v14293_v4 = vld [vmem:[%s20379_s1 + $0x424] ss:$16 sps:$4 sm:$0xff]   ;;  %20733 = vst [vmem:[#allocation28_spill] sm:$0xff] %v15251_v60 }
  0x52   : > { %2635 = vmatpush2.bf16.msra.mxu1 %v14269_v5  ;;  %2957 = vmatprep.subr.bf16.mxu0 %v14272_v10  ;;  %v15174_v5 = vpack.c.bf16 %v348_v62, %v341_v61  ;;  %v342_v10 = vld [vmem:[%s14985_s22 + $0x1d0] sm:$0xff]  ;;  %20736 = vst [vmem:[#allocation31_spill] sm:$0xff] %v15257_v63  ;;  %20742 = vst [vmem:[#allocation37_spill] sm:$0xff] %v15305_v45  ;;  %v432_v59 = vld [vmem:[%s14985_s22 + $0x4a0] sm:$0xff] }
  0x53   : > { %3324 = vmatprep.subr.bf16.mxu1 %v14275_v11  ;;  %v349_v11 = vld [vmem:[%s14985_s22 + $0x208] sm:$0xff]  ;;  %v448_v31 = vld [vmem:[%s14985_s22 + $0x520] sm:$0xff] }
  0x54   : > { %2284 = vmatmul.mubr.bf16.vlgmr.msra.gmra.mxu0 %v15071_v16  ;;  %20723 = vst [vmem:[#allocation18_spill] sm:$0xff] %v15174_v5  ;;  %v15201_v23 = vpack.c.bf16 %v349_v11, %v342_v10  ;;  %v397_v10 = vld [vmem:[%s14985_s22 + $0x388] sm:$0xff]  ;;  %v404_v11 = vld [vmem:[%s14985_s22 + $0x3c0] sm:$0xff] }
  0x55   : > { %2637 = vmatmul.mubr.bf16.vlgmr.msra.gmra.mxu1 %v15073_v17  ;;  %2958 = vmatpush1.bf16.msra.mxu0 %v14270_v18  ;;  %v14294_v18 = vld [vmem:[%s20379_s1 + $0x400] ss:$16 sps:$4 sm:$0xff]  }
  0x56   : > { %3325 = vmatpush1.bf16.msra.mxu1 %v14273_v19  ;;  %2293 = vmatprep.mubr.bf16.mxu0 %v15081_v20  ;;  %v14296_v19 = vld [vmem:[%s20379_s1 + $0x404] ss:$16 sps:$4 sm:$0xff]   ;;  %20726 = vst [vmem:[#allocation21_spill] sm:$0xff] %v15201_v23 }
  0x57   : > { %2646 = vmatprep.mubr.bf16.mxu1 %v15083_v21  ;;  %2959 = vmatprep.subr.bf16.mxu0 %v14278_v24  ;;  %v15203_v24 = vpack.c.bf16 %v362_v13, %v355_v12  ;;  %v399_v12 = vld [vmem:[%s14985_s22 + $0x398] sm:$0xff]  ;;  %v406_v13 = vld [vmem:[%s14985_s22 + $0x3d0] sm:$0xff] }
  0x59   : > { %2960 = vmatpush1.bf16.msra.mxu0 %v14276_v29  ;;  %20727 = vst [vmem:[#allocation22_spill] sm:$0xff] %v15203_v24  ;;  %v363_v29 = vld [vmem:[%s14985_s22 + $0x278] sm:$0xff] }
  0x5a   : > { %2961 = vmatprep.subr.bf16.mxu0 %v14281_v32  ;;  %v14297_v32 = vld [vmem:[%s20379_s1 + $0x5e0] ss:$16 sps:$4 sm:$0xff]   ;;  %v15227_v41 = vpack.c.bf16 %v363_v29, %v356_v28  ;;  %v403_v29 = vld [vmem:[%s14985_s22 + $0x3b8] sm:$0xff] }
  0x5b   : > { %v396_v28 = vld [vmem:[%s14985_s22 + $0x380] sm:$0xff] }
  0x5c   : > { %2294 = vmatmul.mubr.bf16.gmra.mxu0 %v15106_v33  ;;  %20730 = vst [vmem:[#allocation25_spill] sm:$0xff] %v15227_v41  ;;  %v15303_v44 = vpack.c.bf16 %v403_v29, %v396_v28  ;;  %v439_v28 = vld [vmem:[%s14985_s22 + $0x4d8] sm:$0xff]  ;;  %v446_v29 = vld [vmem:[%s14985_s22 + $0x510] sm:$0xff] }
  0x5d   : > { %2647 = vmatmul.mubr.bf16.gmra.mxu1 %v15108_v34  ;;  %2303 = vmatprep.mubr.bf16.mxu0 %v15110_v35 }
  0x5e   : > { %2656 = vmatprep.mubr.bf16.mxu1 %v15112_v36  ;;  %2962 = vmatpush1.bf16.msra.mxu0 %v14279_v37  ;;  %v371_v37 = vld [vmem:[%s14985_s22 + $0x2b8] sm:$0xff]  ;;  %20741 = vst [vmem:[#allocation36_spill] sm:$0xff] %v15303_v44 }
  0x5f   : > { %2963 = vmatprep.subr.bf16.mxu0 %v14284_v38  ;;  %v378_v38 = vld [vmem:[%s14985_s22 + $0x2f0] sm:$0xff] }
  0x60   : > { %v15231_v43 = vpack.c.bf16 %v378_v38, %v371_v37  ;;  %v418_v37 = vld [vmem:[%s14985_s22 + $0x430] sm:$0xff]  ;;  %v413_v38 = vld [vmem:[%s14985_s22 + $0x408] sm:$0xff] }
  0x62   : > { %2964 = vmatpush1.bf16.msra.mxu0 %v14282_v47  ;;  %20732 = vst [vmem:[#allocation27_spill] sm:$0xff] %v15231_v43  ;;  %v14302_v47 = vld [vmem:[%s20379_s1 + $0x5c4] ss:$16 sps:$4 sm:$0xff]  }
  0x63   : > { %2965 = vmatprep.subr.bf16.mxu0 %v14287_v48  ;;  %v370_v48 = vld [vmem:[%s14985_s22 + $0x2b0] sm:$0xff] }
  0x64   : > { %2304 = vmatmul.mubr.bf16.gmra.mxu0 %v15138_v49  ;;  %v20841_v49 = vmov 0  }
  0x65   : > { %2657 = vmatmul.mubr.bf16.gmra.mxu1 %v15140_v50  ;;  %2313 = vmatprep.mubr.bf16.mxu0 %v15142_v51  ;;  %v14327_v51 = vld [vmem:[%s20379_s1 + $0xc8] ss:$16 sps:$4 sm:$0xff]  }
  0x66   : > { %2666 = vmatprep.mubr.bf16.mxu1 %v15144_v52  ;;  %2966 = vmatpush1.bf16.msra.mxu0 %v14285_v55  ;;  %v377_v55 = vld [vmem:[%s14985_s22 + $0x2e8] sm:$0xff] }
  0x67   : > { %2967 = vmatprep.subr.bf16.mxu0 %v14290_v56  ;;  %v383_v56 = vld [vmem:[%s14985_s22 + $0x318] sm:$0xff]  ;;  %v15253_v61 = vpack.c.bf16 %v377_v55, %v370_v48  ;;  %v410_v48 = vld [vmem:[%s14985_s22 + $0x3f0] sm:$0xff]  ;;  %v417_v55 = vld [vmem:[%s14985_s22 + $0x428] sm:$0xff] }
  0x68   : > { %v15255_v62 = vpack.c.bf16 %v390_v57, %v383_v56  ;;  %v412_v56 = vld [vmem:[%s14985_s22 + $0x400] sm:$0xff]  ;;  %v419_v57 = vld [vmem:[%s14985_s22 + $0x438] sm:$0xff]  ;;  %v15329_v8 = vpack.c.bf16 %v417_v55, %v410_v48  ;;  %v438_v48 = vld [vmem:[%s14985_s22 + $0x4d0] sm:$0xff] }
  0x69   : > { %20734 = vst [vmem:[#allocation29_spill] sm:$0xff] %v15253_v61  ;;  %v15331_v9 = vpack.c.bf16 %v419_v57, %v412_v56  ;;  %v445_v55 = vld [vmem:[%s14985_s22 + $0x508] sm:$0xff]  ;;  %v440_v56 = vld [vmem:[%s14985_s22 + $0x4e0] sm:$0xff]  ;;  %v447_v57 = vld [vmem:[%s14985_s22 + $0x518] sm:$0xff] }
  0x6a   : > { %2968 = vmatpush1.bf16.msra.mxu0 %v14288_v1  ;;  %20735 = vst [vmem:[#allocation30_spill] sm:$0xff] %v15255_v62  ;;  %v14305_v1 = vld [vmem:[%s20379_s1 + $0x5a4] ss:$16 sps:$4 sm:$0xff]   ;;  %20745 = vst [vmem:[#allocation40_spill] sm:$0xff] %v15329_v8  ;;  %v317_v52 = vld [vmem:[%s14985_s22 + $0x108] sm:$0xff] }
  0x6b   : > { %2969 = vmatprep.subr.bf16.mxu0 %v14293_v4  ;;  %v382_v4 = vld [vmem:[%s14985_s22 + $0x310] sm:$0xff]  ;;  %20746 = vst [vmem:[#allocation41_spill] sm:$0xff] %v15331_v9 }
  0x6c   : > { %2314 = vmatmul.mubr.bf16.gmra.mxu0 %v15167_v2 }
  0x6d   : > { %2667 = vmatmul.mubr.bf16.gmra.mxu1 %v15169_v3  ;;  %2323 = vmatprep.mubr.bf16.mxu0 %v15174_v5 }
  0x6e   : > { %2676 = vmatprep.mubr.bf16.mxu1 %v15176_v6  ;;  %2970 = vmatpush1.bf16.msra.mxu0 %v14291_v7  ;;  %v389_v7 = vld [vmem:[%s14985_s22 + $0x348] sm:$0xff] }
  0x6f   : > { %2971 = vmatprep.subr.bf16.mxu0 %v14296_v19  ;;  %v15277_v14 = vpack.c.bf16 %v389_v7, %v382_v4  ;;  %v15283_v19 = vpack.c.bf16 %v406_v13, %v399_v12  ;;  %v14309_v4 = vld [vmem:[%s20379_s1 + $0x560] ss:$16 sps:$4 sm:$0xff]   ;;  %v14311_v7 = vld [vmem:[%s20379_s1 + $0x564] ss:$16 sps:$4 sm:$0xff]   ;;  %v431_v13 = vld [vmem:[%s14985_s22 + $0x498] sm:$0xff] }
  0x70   : > { %v424_v12 = vld [vmem:[%s14985_s22 + $0x460] sm:$0xff] }
  0x71   : > { %20737 = vst [vmem:[#allocation32_spill] sm:$0xff] %v15277_v14  ;;  %20740 = vst [vmem:[#allocation35_spill] sm:$0xff] %v15283_v19 }
  0x72   : > { %2972 = vmatpush1.bf16.msra.mxu0 %v14294_v18  ;;  %v15281_v18 = vpack.c.bf16 %v404_v11, %v397_v10  ;;  %v15333_v10 = vpack.c.bf16 %v432_v59, %v425_v58  ;;  %v453_v58 = vld [vmem:[%s14985_s22 + $0x548] sm:$0xff]  ;;  %v460_v59 = vld [vmem:[%s14985_s22 + $0x580] sm:$0xff] }
  0x73   : > { %2973 = vmatprep.subr.bf16.mxu0 %v14299_v39  ;;  %v420_v39 = vld [vmem:[%s14985_s22 + $0x440] sm:$0xff] }
  0x74   : > { %2324 = vmatmul.mubr.bf16.gmra.mxu0 %v15199_v22  ;;  %20739 = vst [vmem:[#allocation34_spill] sm:$0xff] %v15281_v18  ;;  %20747 = vst [vmem:[#allocation42_spill] sm:$0xff] %v15333_v10 }
  0x75   : > { %2677 = vmatmul.mubr.bf16.gmra.mxu1 %v15201_v23  ;;  %2333 = vmatprep.mubr.bf16.mxu0 %v15203_v24 }
  0x76   : > { %2686 = vmatprep.mubr.bf16.mxu1 %v15205_v25  ;;  %2974 = vmatpush2.bf16.msra.mxu0 %v14297_v32  ;;  %v411_v32 = vld [vmem:[%s14985_s22 + $0x3f8] sm:$0xff] }
  0x77   : > { %2975 = vmatprep.subr.bf16.mxu0 %v14302_v47  ;;  %v15309_v47 = vpack.c.bf16 %v420_v39, %v413_v38  ;;  %v15353_v38 = vpack.c.bf16 %v446_v29, %v439_v28  ;;  %v15355_v39 = vpack.c.bf16 %v448_v31, %v441_v30  ;;  %v452_v28 = vld [vmem:[%s14985_s22 + $0x540] sm:$0xff]  ;;  %v459_v29 = vld [vmem:[%s14985_s22 + $0x578] sm:$0xff]  ;;  %v454_v30 = vld [vmem:[%s14985_s22 + $0x550] sm:$0xff] }
  0x78   : > { %v461_v31 = vld [vmem:[%s14985_s22 + $0x588] sm:$0xff] }
  0x79   : > { %20744 = vst [vmem:[#allocation39_spill] sm:$0xff] %v15309_v47  ;;  %20751 = vst [vmem:[#allocation46_spill] sm:$0xff] %v15353_v38 }
  0x7a   : > { %2976 = vmatpush2.bf16.msra.mxu0 %v14300_v46  ;;  %v15307_v46 = vpack.c.bf16 %v418_v37, %v411_v32  ;;  %v15349_v32 = vpack.c.bf16 %v431_v13, %v424_v12  ;;  %20752 = vst [vmem:[#allocation47_spill] sm:$0xff] %v15355_v39  ;;  %v15375_v12 = vpack.c.bf16 %v445_v55, %v438_v48  ;;  %v467_v48 = vld [vmem:[%s14985_s22 + $0x5b8] sm:$0xff]  ;;  %v474_v55 = vld [vmem:[%s14985_s22 + $0x5f0] sm:$0xff] }
  0x7b   : > { %2977 = vmatprep.subr.bf16.mxu0 %v14305_v1  ;;  %v434_v1 = vld [vmem:[%s14985_s22 + $0x4b0] sm:$0xff]  ;;  %v15377_v13 = vpack.c.bf16 %v447_v57, %v440_v56  ;;  %v469_v56 = vld [vmem:[%s14985_s22 + $0x5c8] sm:$0xff]  ;;  %v476_v57 = vld [vmem:[%s14985_s22 + $0x600] sm:$0xff] }
  0x7c   : > { %2334 = vmatmul.mubr.bf16.gmra.mxu0 %v15225_v40  ;;  %20743 = vst [vmem:[#allocation38_spill] sm:$0xff] %v15307_v46  ;;  %20749 = vst [vmem:[#allocation44_spill] sm:$0xff] %v15349_v32 }
  0x7d   : > { %2687 = vmatmul.mubr.bf16.gmra.mxu1 %v15227_v41  ;;  %2343 = vmatprep.mubr.bf16.mxu0 %v15229_v42  ;;  %20753 = vst [vmem:[#allocation48_spill] sm:$0xff] %v15375_v12  ;;  %20754 = vst [vmem:[#allocation49_spill] sm:$0xff] %v15377_v13 }
  0x7e   : > { %2696 = vmatprep.mubr.bf16.mxu1 %v15231_v43  ;;  %2978 = vmatpush2.bf16.msra.mxu0 %v14303_v0  ;;  %v427_v0 = vld [vmem:[%s14985_s22 + $0x478] sm:$0xff] }
  0x7f   : > { %2979 = vmatprep.subr.bf16.mxu0 %v14308_v26  ;;  %v15335_v11 = vpack.c.bf16 %v434_v1, %v427_v0  ;;  %v426_v26 = vld [vmem:[%s14985_s22 + $0x470] sm:$0xff]  ;;  %v455_v0 = vld [vmem:[%s14985_s22 + $0x558] sm:$0xff] }
  0x80   : > { %v462_v1 = vld [vmem:[%s14985_s22 + $0x590] sm:$0xff] }
  0x81   : > { %20748 = vst [vmem:[#allocation43_spill] sm:$0xff] %v15335_v11 }
  0x82   : > { %2980 = vmatpush2.bf16.msra.mxu0 %v14306_v27  ;;  %v433_v27 = vld [vmem:[%s14985_s22 + $0x4a8] sm:$0xff] }
  0x83   : > { %2981 = vmatprep.subr.bf16.mxu0 %v14311_v7  ;;  %v15351_v37 = vpack.c.bf16 %v433_v27, %v426_v26  ;;  %v14314_v7 = vld [vmem:[%s20379_s1 + $0x544] ss:$16 sps:$4 sm:$0xff]   ;;  %v15379_v26 = vpack.c.bf16 %v460_v59, %v453_v58  ;;  %v15381_v27 = vpack.c.bf16 %v462_v1, %v455_v0  ;;  %v15395_v58 = vpack.c.bf16 %v459_v29, %v452_v28  ;;  %v483_v29 = vld [vmem:[%s14985_s22 + $0x638] sm:$0xff] }
  0x84   : > { %2344 = vmatmul.mubr.bf16.gmra.mxu0 %v15251_v60  ;;  %v15397_v59 = vpack.c.bf16 %v461_v31, %v454_v30  ;;  %v15399_v0 = vpack.c.bf16 %v474_v55, %v467_v48  ;;  %v15401_v1 = vpack.c.bf16 %v476_v57, %v469_v56  ;;  %v488_v28 = vld [vmem:[%s14985_s22 + $0x660] sm:$0xff]  ;;  %v490_v30 = vld [vmem:[%s14985_s22 + $0x670] sm:$0xff] }
  0x85   : > { %2697 = vmatmul.mubr.bf16.gmra.mxu1 %v15253_v61  ;;  %2353 = vmatprep.mubr.bf16.mxu0 %v15255_v62  ;;  %20750 = vst [vmem:[#allocation45_spill] sm:$0xff] %v15351_v37  ;;  %20755 = vst [vmem:[#allocation50_spill] sm:$0xff] %v15379_v26  ;;  %v14315_v31 = vld [vmem:[%s20379_s1 + $0x520] ss:$16 sps:$4 sm:$0xff]   ;;  %v14317_v48 = vld [vmem:[%s20379_s1 + $0x524] ss:$16 sps:$4 sm:$0xff]  }
  0x86   : > { %2706 = vmatprep.mubr.bf16.mxu1 %v15257_v63  ;;  %2982 = vmatpush2.bf16.msra.mxu0 %v14309_v4  ;;  %v14312_v4 = vld [vmem:[%s20379_s1 + $0x540] ss:$16 sps:$4 sm:$0xff]   ;;  %20756 = vst [vmem:[#allocation51_spill] sm:$0xff] %v15381_v27  ;;  %20757 = vst [vmem:[#allocation52_spill] sm:$0xff] %v15395_v58 }
  0x87   : > { %2983 = vmatprep.subr.bf16.mxu0 %v14314_v7  ;;  %20758 = vst [vmem:[#allocation53_spill] sm:$0xff] %v15397_v59  ;;  %20759 = vst [vmem:[#allocation54_spill] sm:$0xff] %v15399_v0  ;;  %v473_v7 = vld [vmem:[%s14985_s22 + $0x5e8] sm:$0xff] }
  0x88   : > { %20760 = vst [vmem:[#allocation55_spill] sm:$0xff] %v15401_v1 }
  0x8a   : > { %2984 = vmatpush2.bf16.msra.mxu0 %v14312_v4  ;;  %v466_v4 = vld [vmem:[%s14985_s22 + $0x5b0] sm:$0xff] }
  0x8b   : > { %v15421_v55 = vpack.c.bf16 %v473_v7, %v466_v4  ;;  %2985 = vmatprep.subr.bf16.mxu0 %v14317_v48  ;;  %v504_v4 = vld [vmem:[%s14985_s22 + $0x6e0] sm:$0xff]  ;;  %v501_v48 = vld [vmem:[%s14985_s22 + $0x6c8] sm:$0xff] }
  0x8c   : > { %2354 = vmatmul.mubr.bf16.gmra.mxu0 %v15277_v14 }
  0x8d   : > { %2707 = vmatmul.mubr.bf16.gmra.mxu1 %v15279_v15  ;;  %2363 = vmatprep.mubr.bf16.mxu0 %v15281_v18  ;;  %20761 = vst [vmem:[#allocation56_spill] sm:$0xff] %v15421_v55 }
  0x8e   : > { %2716 = vmatprep.mubr.bf16.mxu1 %v15283_v19  ;;  %2986 = vmatpush2.bf16.msra.mxu0 %v14315_v31  ;;  %v494_v31 = vld [vmem:[%s14985_s22 + $0x690] sm:$0xff] }
  0x94   : > { %2364 = vmatmul.mubr.bf16.gmra.mxu0 %v15303_v44 }
  0x95   : > { %2717 = vmatmul.mubr.bf16.gmra.mxu1 %v15305_v45  ;;  %2373 = vmatprep.mubr.bf16.mxu0 %v15307_v46 }
  0x96   : > { %2726 = vmatprep.mubr.bf16.mxu1 %v15309_v47 }
  0x9c   : > { %2374 = vmatmul.mubr.bf16.gmra.mxu0 %v15329_v8 }
  0x9d   : > { %2727 = vmatmul.mubr.bf16.gmra.mxu1 %v15331_v9  ;;  %2383 = vmatprep.mubr.bf16.mxu0 %v15333_v10 }
  0x9e   : > { %2736 = vmatprep.mubr.bf16.mxu1 %v15335_v11 }
  0xa4   : > { %2384 = vmatmul.mubr.bf16.gmra.mxu0 %v15349_v32 }
  0xa5   : > { %2737 = vmatmul.mubr.bf16.gmra.mxu1 %v15351_v37  ;;  %2393 = vmatprep.mubr.bf16.mxu0 %v15353_v38  ;;  %v629_v38 = vld [vmem:[%s14985_s22 + $0xac8] sm:$0xff] }
  0xa6   : > { %2746 = vmatprep.mubr.bf16.mxu1 %v15355_v39  ;;  %v615_v39 = vld [vmem:[%s14985_s22 + $0xa58] sm:$0xff] }
  0xac   : > { %2394 = vmatmul.mubr.bf16.gmra.mxu0 %v15375_v12  ;;  %v475_v12 = vld [vmem:[%s14985_s22 + $0x5f8] sm:$0xff] }
  0xad   : > { %2747 = vmatmul.mubr.bf16.gmra.mxu1 %v15377_v13  ;;  %2403 = vmatprep.mubr.bf16.mxu0 %v15379_v26  ;;  %v468_v13 = vld [vmem:[%s14985_s22 + $0x5c0] sm:$0xff]  ;;  %v481_v26 = vld [vmem:[%s14985_s22 + $0x628] sm:$0xff] }
  0xae   : > { %2756 = vmatprep.mubr.bf16.mxu1 %v15381_v27  ;;  %v15423_v56 = vpack.c.bf16 %v475_v12, %v468_v13  ;;  %v15425_v57 = vpack.c.bf16 %v488_v28, %v481_v26  ;;  %v489_v27 = vld [vmem:[%s14985_s22 + $0x668] sm:$0xff]  ;;  %v495_v12 = vld [vmem:[%s14985_s22 + $0x698] sm:$0xff]  ;;  %v502_v13 = vld [vmem:[%s14985_s22 + $0x6d0] sm:$0xff] }
  0xaf   : > { %v497_v26 = vld [vmem:[%s14985_s22 + $0x6a8] sm:$0xff] }
  0xb0   : > { %20762 = vst [vmem:[#allocation57_spill] sm:$0xff] %v15423_v56  ;;  %20763 = vst [vmem:[#allocation58_spill] sm:$0xff] %v15425_v57 }
  0xb4   : > { %2404 = vmatmul.mubr.bf16.gmra.mxu0 %v15395_v58  ;;  %v482_v58 = vld [vmem:[%s14985_s22 + $0x630] sm:$0xff] }
  0xb5   : > { %2757 = vmatmul.mubr.bf16.gmra.mxu1 %v15397_v59  ;;  %2413 = vmatprep.mubr.bf16.mxu0 %v15399_v0  ;;  %v15427_v0 = vpack.c.bf16 %v490_v30, %v483_v29  ;;  %v487_v59 = vld [vmem:[%s14985_s22 + $0x658] sm:$0xff]  ;;  %v15443_v28 = vpack.c.bf16 %v489_v27, %v482_v58  ;;  %v15445_v29 = vpack.c.bf16 %v502_v13, %v495_v12  ;;  %v518_v58 = vld [vmem:[%s14985_s22 + $0x750] sm:$0xff] }
  0xb6   : > { %2766 = vmatprep.mubr.bf16.mxu1 %v15401_v1  ;;  %v480_v1 = vld [vmem:[%s14985_s22 + $0x620] sm:$0xff]  ;;  %v15447_v30 = vpack.c.bf16 %v504_v4, %v497_v26  ;;  %v511_v27 = vld [vmem:[%s14985_s22 + $0x718] sm:$0xff]  ;;  %v15467_v13 = vpack.c.bf16 %v501_v48, %v494_v31 }
  0xb7   : > { %20764 = vst [vmem:[#allocation59_spill] sm:$0xff] %v15427_v0  ;;  %v15441_v7 = vpack.c.bf16 %v487_v59, %v480_v1  ;;  %20766 = vst [vmem:[#allocation61_spill] sm:$0xff] %v15443_v28  ;;  %v516_v59 = vld [vmem:[%s14985_s22 + $0x740] sm:$0xff] }
  0xb8   : > { %20767 = vst [vmem:[#allocation62_spill] sm:$0xff] %v15445_v29  ;;  %20768 = vst [vmem:[#allocation63_spill] sm:$0xff] %v15447_v30  ;;  %v14318_v1 = vld [vmem:[%s20379_s1 + $0x500] ss:$16 sps:$4 sm:$0xff]   ;;  %v14320_v12 = vld [vmem:[%s20379_s1 + $0x504] ss:$16 sps:$4 sm:$0xff]  }
  0xb9   : > { %20765 = vst [vmem:[#allocation60_spill] sm:$0xff] %v15441_v7  ;;  %20769 = vst [vmem:[#allocation64_spill] sm:$0xff] %v15467_v13  ;;  %2987 = vmatprep.subr.bf16.mxu0 %v14320_v12  ;;  %v532_v31 = vld [vmem:[%s14985_s22 + $0x7c0] sm:$0xff]  ;;  %v529_v12 = vld [vmem:[%s14985_s22 + $0x7a8] sm:$0xff] }
  0xba   : > { %2988 = vmatpush2.bf16.msra.mxu0 %v14318_v1  ;;  %v522_v1 = vld [vmem:[%s14985_s22 + $0x770] sm:$0xff] }
  0xbc   : > { %2414 = vmatmul.mubr.bf16.gmra.mxu0 %v15421_v55  ;;  %v503_v55 = vld [vmem:[%s14985_s22 + $0x6d8] sm:$0xff] }
  0xbd   : > { %2767 = vmatmul.mubr.bf16.gmra.mxu1 %v15423_v56  ;;  %2423 = vmatprep.mubr.bf16.mxu0 %v15425_v57  ;;  %v496_v56 = vld [vmem:[%s14985_s22 + $0x6a0] sm:$0xff]  ;;  %v509_v57 = vld [vmem:[%s14985_s22 + $0x708] sm:$0xff] }
  0xbe   : > { %2776 = vmatprep.mubr.bf16.mxu1 %v15427_v0  ;;  %v15469_v26 = vpack.c.bf16 %v503_v55, %v496_v56  ;;  %v15471_v4 = vpack.c.bf16 %v516_v59, %v509_v57  ;;  %v517_v0 = vld [vmem:[%s14985_s22 + $0x748] sm:$0xff]  ;;  %v523_v55 = vld [vmem:[%s14985_s22 + $0x778] sm:$0xff]  ;;  %v530_v56 = vld [vmem:[%s14985_s22 + $0x7b0] sm:$0xff] }
  0xbf   : > { %v525_v57 = vld [vmem:[%s14985_s22 + $0x788] sm:$0xff] }
  0xc0   : > { %20770 = vst [vmem:[#allocation65_spill] sm:$0xff] %v15469_v26  ;;  %20771 = vst [vmem:[#allocation66_spill] sm:$0xff] %v15471_v4 }
  0xc4   : > { %2424 = vmatmul.mubr.bf16.gmra.mxu0 %v15441_v7  ;;  %v510_v7 = vld [vmem:[%s14985_s22 + $0x710] sm:$0xff] }
  0xc5   : > { %2777 = vmatmul.mubr.bf16.gmra.mxu1 %v15443_v28  ;;  %2433 = vmatprep.mubr.bf16.mxu0 %v15445_v29  ;;  %v15473_v29 = vpack.c.bf16 %v518_v58, %v511_v27  ;;  %v515_v28 = vld [vmem:[%s14985_s22 + $0x738] sm:$0xff]  ;;  %v15489_v59 = vpack.c.bf16 %v517_v0, %v510_v7  ;;  %v15491_v27 = vpack.c.bf16 %v530_v56, %v523_v55  ;;  %v546_v7 = vld [vmem:[%s14985_s22 + $0x830] sm:$0xff] }
  0xc6   : > { %2786 = vmatprep.mubr.bf16.mxu1 %v15447_v30  ;;  %v508_v30 = vld [vmem:[%s14985_s22 + $0x700] sm:$0xff]  ;;  %v15493_v58 = vpack.c.bf16 %v532_v31, %v525_v57  ;;  %v539_v0 = vld [vmem:[%s14985_s22 + $0x7f8] sm:$0xff]  ;;  %v15510_v55 = vpack.c.bf16 %v529_v12, %v522_v1 }
  0xc7   : > { %20772 = vst [vmem:[#allocation67_spill] sm:$0xff] %v15473_v29  ;;  %v15487_v48 = vpack.c.bf16 %v515_v28, %v508_v30  ;;  %20774 = vst [vmem:[#allocation69_spill] sm:$0xff] %v15489_v59  ;;  %v544_v28 = vld [vmem:[%s14985_s22 + $0x820] sm:$0xff]  ;;  %v14323_v30 = vld [vmem:[%s20379_s1 + $0xec] ss:$16 sps:$4 sm:$0xff]   ;;  %v15516_v31 = vpack.c.bf16 %v546_v7, %v539_v0 }
  0xc8   : > { %20775 = vst [vmem:[#allocation70_spill] sm:$0xff] %v15491_v27  ;;  %20776 = vst [vmem:[#allocation71_spill] sm:$0xff] %v15493_v58  ;;  %3663 = vmatprep.subr.bf16.mxu0 %v14323_v30  ;;  %v560_v1 = vld [vmem:[%s14985_s22 + $0x8a0] sm:$0xff]  ;;  %v550_v7 = vld [vmem:[%s14985_s22 + $0x850] sm:$0xff] }
  0xc9   : > { %20773 = vst [vmem:[#allocation68_spill] sm:$0xff] %v15487_v48  ;;  %20777 = vst [vmem:[#allocation72_spill] sm:$0xff] %v15510_v55  ;;  %v557_v30 = vld [vmem:[%s14985_s22 + $0x888] sm:$0xff] }
  0xca   : > { %20780 = vst [vmem:[#allocation75_spill] sm:$0xff] %v15516_v31 }
  0xcc   : > { %2434 = vmatmul.mubr.bf16.gmra.mxu0 %v15467_v13  ;;  %v531_v13 = vld [vmem:[%s14985_s22 + $0x7b8] sm:$0xff] }
  0xcd   : > { %2787 = vmatmul.mubr.bf16.gmra.mxu1 %v15469_v26  ;;  %2443 = vmatprep.mubr.bf16.mxu0 %v15471_v4  ;;  %v524_v26 = vld [vmem:[%s14985_s22 + $0x780] sm:$0xff]  ;;  %v545_v4 = vld [vmem:[%s14985_s22 + $0x828] sm:$0xff] }
  0xce   : > { %2796 = vmatprep.mubr.bf16.mxu1 %v15473_v29  ;;  %v537_v29 = vld [vmem:[%s14985_s22 + $0x7e8] sm:$0xff]  ;;  %v15512_v56 = vpack.c.bf16 %v531_v13, %v524_v26  ;;  %v558_v13 = vld [vmem:[%s14985_s22 + $0x890] sm:$0xff] }
  0xcf   : > { %v15514_v57 = vpack.c.bf16 %v544_v28, %v537_v29  ;;  %v551_v29 = vld [vmem:[%s14985_s22 + $0x858] sm:$0xff]  ;;  %v553_v26 = vld [vmem:[%s14985_s22 + $0x868] sm:$0xff] }
  0xd0   : > { %20778 = vst [vmem:[#allocation73_spill] sm:$0xff] %v15512_v56  ;;  %v15537_v28 = vpack.c.bf16 %v558_v13, %v551_v29  ;;  %v15539_v0 = vpack.c.bf16 %v560_v1, %v553_v26  ;;  %v15553_v29 = vpack.c.bf16 %v557_v30, %v550_v7  ;;  %v579_v7 = vld [vmem:[%s14985_s22 + $0x938] sm:$0xff]  ;;  %v588_v30 = vld [vmem:[%s14985_s22 + $0x980] sm:$0xff] }
  0xd1   : > { %20779 = vst [vmem:[#allocation74_spill] sm:$0xff] %v15514_v57 }
  0xd2   : > { %20783 = vst [vmem:[#allocation78_spill] sm:$0xff] %v15537_v28  ;;  %20784 = vst [vmem:[#allocation79_spill] sm:$0xff] %v15539_v0 }
  0xd3   : > { %20785 = vst [vmem:[#allocation80_spill] sm:$0xff] %v15553_v29 }
  0xd4   : > { %2444 = vmatmul.mubr.bf16.gmra.mxu0 %v15487_v48  ;;  %v538_v48 = vld [vmem:[%s14985_s22 + $0x7f0] sm:$0xff] }
  0xd5   : > { %2797 = vmatmul.mubr.bf16.gmra.mxu1 %v15489_v59  ;;  %2453 = vmatprep.mubr.bf16.mxu0 %v15491_v27  ;;  %v536_v27 = vld [vmem:[%s14985_s22 + $0x7e0] sm:$0xff]  ;;  %v543_v59 = vld [vmem:[%s14985_s22 + $0x818] sm:$0xff] }
  0xd6   : > { %2806 = vmatprep.mubr.bf16.mxu1 %v15493_v58  ;;  %v14326_v58 = vld [vmem:[%s20379_s1 + $0x2ec] ss:$16 sps:$4 sm:$0xff]   ;;  %v15533_v12 = vpack.c.bf16 %v543_v59, %v536_v27  ;;  %v574_v27 = vld [vmem:[%s14985_s22 + $0x910] sm:$0xff] }
  0xd7   : > { %4016 = vmatprep.subr.bf16.mxu1 %v14326_v58  ;;  %v15535_v58 = vpack.c.bf16 %v545_v4, %v538_v48  ;;  %v565_v59 = vld [vmem:[%s14985_s22 + $0x8c8] sm:$0xff]  ;;  %v572_v4 = vld [vmem:[%s14985_s22 + $0x900] sm:$0xff]  ;;  %v567_v48 = vld [vmem:[%s14985_s22 + $0x8d8] sm:$0xff] }
  0xd8   : > { %20781 = vst [vmem:[#allocation76_spill] sm:$0xff] %v15533_v12  ;;  %v15557_v26 = vpack.c.bf16 %v572_v4, %v565_v59  ;;  %v15559_v1 = vpack.c.bf16 %v574_v27, %v567_v48 }
  0xd9   : > { %20782 = vst [vmem:[#allocation77_spill] sm:$0xff] %v15535_v58 }
  0xda   : > { %20787 = vst [vmem:[#allocation82_spill] sm:$0xff] %v15557_v26  ;;  %20788 = vst [vmem:[#allocation83_spill] sm:$0xff] %v15559_v1 }
  0xdc   : > { %2454 = vmatmul.mubr.bf16.gmra.mxu0 %v15510_v55  ;;  %v559_v55 = vld [vmem:[%s14985_s22 + $0x898] sm:$0xff] }
  0xdd   : > { %2807 = vmatmul.mubr.bf16.gmra.mxu1 %v15512_v56  ;;  %2463 = vmatprep.mubr.bf16.mxu0 %v15514_v57  ;;  %v552_v56 = vld [vmem:[%s14985_s22 + $0x860] sm:$0xff]  ;;  %v573_v57 = vld [vmem:[%s14985_s22 + $0x908] sm:$0xff] }
  0xde   : > { %2816 = vmatprep.mubr.bf16.mxu1 %v15516_v31  ;;  %v15555_v13 = vpack.c.bf16 %v559_v55, %v552_v56  ;;  %v566_v31 = vld [vmem:[%s14985_s22 + $0x8d0] sm:$0xff]  ;;  %v581_v56 = vld [vmem:[%s14985_s22 + $0x948] sm:$0xff] }
  0xdf   : > { %v586_v55 = vld [vmem:[%s14985_s22 + $0x970] sm:$0xff]  ;;  %v15575_v4 = vpack.c.bf16 %v573_v57, %v566_v31  ;;  %v15579_v27 = vpack.c.bf16 %v588_v30, %v581_v56  ;;  %v600_v57 = vld [vmem:[%s14985_s22 + $0x9e0] sm:$0xff]  ;;  %v595_v31 = vld [vmem:[%s14985_s22 + $0x9b8] sm:$0xff] }
  0xe0   : > { %20786 = vst [vmem:[#allocation81_spill] sm:$0xff] %v15555_v13  ;;  %v15577_v48 = vpack.c.bf16 %v586_v55, %v579_v7 }
  0xe1   : > { %20790 = vst [vmem:[#allocation85_spill] sm:$0xff] %v15575_v4  ;;  %20792 = vst [vmem:[#allocation87_spill] sm:$0xff] %v15579_v27 }
  0xe2   : > { %20791 = vst [vmem:[#allocation86_spill] sm:$0xff] %v15577_v48 }
  0xe4   : > { %2464 = vmatmul.mubr.bf16.gmra.mxu0 %v15533_v12  ;;  %v571_v12 = vld [vmem:[%s14985_s22 + $0x8f8] sm:$0xff] }
  0xe5   : > { %2817 = vmatmul.mubr.bf16.gmra.mxu1 %v15535_v58  ;;  %2473 = vmatprep.mubr.bf16.mxu0 %v15537_v28  ;;  %v564_v58 = vld [vmem:[%s14985_s22 + $0x8c0] sm:$0xff]  ;;  %v587_v28 = vld [vmem:[%s14985_s22 + $0x978] sm:$0xff] }
  0xe6   : > { %2826 = vmatprep.mubr.bf16.mxu1 %v15539_v0  ;;  %v15573_v59 = vpack.c.bf16 %v571_v12, %v564_v58  ;;  %v580_v0 = vld [vmem:[%s14985_s22 + $0x940] sm:$0xff]  ;;  %v593_v12 = vld [vmem:[%s14985_s22 + $0x9a8] sm:$0xff]  ;;  %v602_v58 = vld [vmem:[%s14985_s22 + $0x9f0] sm:$0xff] }
  0xe7   : > { %v15595_v55 = vpack.c.bf16 %v587_v28, %v580_v0  ;;  %v15597_v56 = vpack.c.bf16 %v600_v57, %v593_v12  ;;  %v15599_v30 = vpack.c.bf16 %v602_v58, %v595_v31  ;;  %v609_v28 = vld [vmem:[%s14985_s22 + $0xa28] sm:$0xff]  ;;  %v616_v0 = vld [vmem:[%s14985_s22 + $0xa60] sm:$0xff] }
  0xe8   : > { %20789 = vst [vmem:[#allocation84_spill] sm:$0xff] %v15573_v59  ;;  %v15619_v58 = vpack.c.bf16 %v616_v0, %v609_v28 }
  0xe9   : > { %20794 = vst [vmem:[#allocation89_spill] sm:$0xff] %v15595_v55  ;;  %20795 = vst [vmem:[#allocation90_spill] sm:$0xff] %v15597_v56 }
  0xea   : > { %20796 = vst [vmem:[#allocation91_spill] sm:$0xff] %v15599_v30  ;;  %20800 = vst [vmem:[#allocation95_spill] sm:$0xff] %v15619_v58 }
  0xec   : > { %2474 = vmatmul.mubr.bf16.gmra.mxu0 %v15553_v29  ;;  %v585_v29 = vld [vmem:[%s14985_s22 + $0x968] sm:$0xff] }
  0xed   : > { %2827 = vmatmul.mubr.bf16.gmra.mxu1 %v15555_v13  ;;  %2483 = vmatprep.mubr.bf16.mxu0 %v15557_v26  ;;  %v578_v13 = vld [vmem:[%s14985_s22 + $0x930] sm:$0xff]  ;;  %v601_v26 = vld [vmem:[%s14985_s22 + $0x9e8] sm:$0xff] }
  0xee   : > { %2836 = vmatprep.mubr.bf16.mxu1 %v15559_v1  ;;  %v15593_v7 = vpack.c.bf16 %v585_v29, %v578_v13  ;;  %v594_v1 = vld [vmem:[%s14985_s22 + $0x9b0] sm:$0xff]  ;;  %v607_v29 = vld [vmem:[%s14985_s22 + $0xa18] sm:$0xff] }
  0xef   : > { %v614_v13 = vld [vmem:[%s14985_s22 + $0xa50] sm:$0xff]  ;;  %v15615_v57 = vpack.c.bf16 %v601_v26, %v594_v1  ;;  %v628_v26 = vld [vmem:[%s14985_s22 + $0xac0] sm:$0xff]  ;;  %v623_v1 = vld [vmem:[%s14985_s22 + $0xa98] sm:$0xff] }
  0xf0   : > { %20793 = vst [vmem:[#allocation88_spill] sm:$0xff] %v15593_v7  ;;  %v15617_v31 = vpack.c.bf16 %v614_v13, %v607_v29 }
  0xf1   : > { %20798 = vst [vmem:[#allocation93_spill] sm:$0xff] %v15615_v57 }
  0xf2   : > { %20799 = vst [vmem:[#allocation94_spill] sm:$0xff] %v15617_v31 }
  0xf4   : > { %2484 = vmatmul.mubr.bf16.gmra.mxu0 %v15573_v59  ;;  %v599_v59 = vld [vmem:[%s14985_s22 + $0x9d8] sm:$0xff] }
  0xf5   : > { %2837 = vmatmul.mubr.bf16.gmra.mxu1 %v15575_v4  ;;  %2493 = vmatprep.mubr.bf16.mxu0 %v15577_v48  ;;  %v592_v4 = vld [vmem:[%s14985_s22 + $0x9a0] sm:$0xff] }
  0xf6   : > { %2846 = vmatprep.mubr.bf16.mxu1 %v15579_v27  ;;  %v15613_v12 = vpack.c.bf16 %v599_v59, %v592_v4  ;;  %v613_v27 = vld [vmem:[%s14985_s22 + $0xa48] sm:$0xff]  ;;  %v608_v48 = vld [vmem:[%s14985_s22 + $0xa20] sm:$0xff]  ;;  %v630_v4 = vld [vmem:[%s14985_s22 + $0xad0] sm:$0xff] }
  0xf7   : > { %v621_v59 = vld [vmem:[%s14985_s22 + $0xa88] sm:$0xff]  ;;  %v15637_v28 = vpack.c.bf16 %v615_v39, %v608_v48  ;;  %v1152_v39 = vld [vmem:[%s20380_s2] sm:$0xf]  ;;  %v635_v48 = vld [vmem:[%s14985_s22 + $0xaf8] sm:$0xff] }
  0xf8   : > { %20797 = vst [vmem:[#allocation92_spill] sm:$0xff] %v15613_v12  ;;  %v15639_v0 = vpack.c.bf16 %v628_v26, %v621_v59 }
  0xf9   : > { %20803 = vst [vmem:[#allocation98_spill] sm:$0xff] %v15637_v28 }
  0xfa   : > { %20804 = vst [vmem:[#allocation99_spill] sm:$0xff] %v15639_v0 }
  0xfc   : > { %2494 = vmatmul.mubr.bf16.gmra.mxu0 %v15593_v7  ;;  %v606_v7 = vld [vmem:[%s14985_s22 + $0xa10] sm:$0xff] }
  0xfd   : > { %2847 = vmatmul.mubr.bf16.gmra.mxu1 %v15595_v55  ;;  %2503 = vmatprep.mubr.bf16.mxu0 %v15597_v56  ;;  %v1154_v55 = vlaneseq  ;;  %v15635_v13 = vpack.c.bf16 %v613_v27, %v606_v7  ;;  %v627_v56 = vld [vmem:[%s14985_s22 + $0xab8] sm:$0xff]  ;;  %v642_v27 = vld [vmem:[%s14985_s22 + $0xb30] sm:$0xff]  ;;  %v637_v7 = vld [vmem:[%s14985_s22 + $0xb08] sm:$0xff] }
  0xfe   : > { %2856 = vmatprep.mubr.bf16.mxu1 %v15599_v30  ;;  %v620_v30 = vld [vmem:[%s14985_s22 + $0xa80] sm:$0xff] }
  0xff   : > { %v15633_v29 = vshrl.u32 %v1154_v55, 7  ;;  %20802 = vst [vmem:[#allocation97_spill] sm:$0xff] %v15635_v13  ;;  %v644_v55 = vld [vmem:[%s14985_s22 + $0xb40] sm:$0xff]  ;;  %v15660_v59 = vpack.c.bf16 %v627_v56, %v620_v30  ;;  %v643_v30 = vld [vmem:[%s14985_s22 + $0xb38] sm:$0xff] }
 0x100   : > { %v636_v56 = vld [vmem:[%s14985_s22 + $0xb00] sm:$0xff] }
 0x101   : > { %20801 = vst [vmem:[#allocation96_spill] sm:$0xff] %v15633_v29  ;;  %20806 = vst [vmem:[#allocation101_spill] sm:$0xff] %v15660_v59  ;;  %v15694_v11 = vpack.c.bf16 %v643_v30, %v636_v56  ;;  %v655_v56 = vld [vmem:[%s14985_s22 + $0xb98] sm:$0xff]  ;;  %v657_v30 = vld [vmem:[%s14985_s22 + $0xba8] sm:$0xff] }
 0x103   : > { %20812 = vst [vmem:[#allocation106_spill] sm:$0xff] %v15694_v11 }
 0x104   : > { %2504 = vmatmul.mubr.bf16.gmra.mxu0 %v15613_v12  ;;  %v20441_v12 = vsub.s32 0, %v15633_v29 }
 0x105   : > { %2857 = vmatmul.mubr.bf16.gmra.mxu1 %v15615_v57  ;;  %2513 = vmatprep.mubr.bf16.mxu0 %v15617_v31  ;;  %v15641_v57 = vpack.c.bf16 %v630_v4, %v623_v1  ;;  %v15668_v4 = vpack.c.bf16 %v642_v27, %v635_v48  ;;  %v15670_v31 = vpack.c.bf16 %v644_v55, %v637_v7  ;;  %v651_v48 = vld [vmem:[%s14985_s22 + $0xb78] sm:$0xff]  ;;  %v658_v27 = vld [vmem:[%s14985_s22 + $0xbb0] sm:$0xff] }
 0x106   : > { %2866 = vmatprep.mubr.bf16.mxu1 %v15619_v58  ;;  %v622_v58 = vld [vmem:[%s14985_s22 + $0xa90] sm:$0xff]  ;;  %v15666_v1 = vrot.slane %v1152_v39, %v20441_v12  ;;  %v656_v12 = vld [vmem:[%s14985_s22 + $0xba0] sm:$0xff] }
 0x107   : > { %20805 = vst [vmem:[#allocation100_spill] sm:$0xff] %v15641_v57  ;;  %v15662_v26 = vpack.c.bf16 %v629_v38, %v622_v58  ;;  %20808 = vst [vmem:[#allocation103_spill] sm:$0xff] %v15668_v4  ;;  %v649_v58 = vld [vmem:[%s14985_s22 + $0xb68] sm:$0xff] }
 0x108   : > { %20809 = vst [vmem:[#allocation104_spill] sm:$0xff] %v15670_v31 }
 0x109   : > { %20807 = vst [vmem:[#allocation102_spill] sm:$0xff] %v15662_v26 }
 0x10c   : > { %2514 = vmatmul.mubr.bf16.gmra.mxu0 %v15635_v13  ;;  %v641_v13 = vld [vmem:[%s14985_s22 + $0xb28] sm:$0xff] }
 0x10d   : > { %2867 = vmatmul.mubr.bf16.gmra.mxu1 %v15637_v28  ;;  %2523 = vmatprep.mubr.bf16.mxu0 %v15639_v0  ;;  %v20810_v0 = vsub.s32 1, %v15633_v29 }
 0x10e   : > { %2876 = vmatprep.mubr.bf16.mxu1 %v15641_v57  ;;  %v634_v57 = vld [vmem:[%s14985_s22 + $0xaf0] sm:$0xff] }
 0x10f   : > { %v15674_v28 = vrot.slane %v1152_v39, %v20810_v0  ;;  %v15692_v32 = vpack.c.bf16 %v641_v13, %v634_v57  ;;  %v648_v13 = vld [vmem:[%s14985_s22 + $0xb60] sm:$0xff] }
 0x110   : > { %v15724_v46 = vpack.c.bf16 %v655_v56, %v648_v13  ;;  %v662_v13 = vld [vmem:[%s14985_s22 + $0xbd0] sm:$0xff]  ;;  %v669_v56 = vld [vmem:[%s14985_s22 + $0xc08] sm:$0xff] }
 0x111   : > { %20811 = vst [vmem:[#allocation105_spill] sm:$0xff] %v15692_v32 }
 0x112   : > { %20815 = vst [vmem:[#allocation109_spill] sm:$0xff] %v15724_v46 }
 0x114   : > { %v2285_v37 = vpop.f32.mrf.mxu0  ;;  %2524 = vmatmul.mubr.bf16.gmra.mxu0 %v15660_v59 }
 0x115   : > { %v2638_v38 = vpop.f32.mrf.mxu1  ;;  %2877 = vmatmul.mubr.bf16.gmra.mxu1 %v15662_v26  ;;  %v2286_v7 = vadd.f32 %v2285_v37, %v15666_v1  ;;  %2533 = vmatprep.mubr.bf16.mxu0 %v15668_v4  ;;  %v15699_v4 = vpack.c.bf16 %v656_v12, %v649_v58  ;;  %v663_v12 = vld [vmem:[%s14985_s22 + $0xbd8] sm:$0xff]  ;;  %v670_v58 = vld [vmem:[%s14985_s22 + $0xc10] sm:$0xff] }
 0x116   : > { %2886 = vmatprep.mubr.bf16.mxu1 %v15670_v31  ;;  %v2287_v0 = vpop.f32.mrf.mxu0 }
 0x117   : > { %v2640_v39 = vpop.f32.mrf.mxu1  ;;  %v15689_v55 = vadd.f32 %v2638_v38, %v2286_v7  ;;  %v2288_v59 = vadd.f32 %v2287_v0, %v15674_v28  ;;  %20813 = vst [vmem:[#allocation107_spill] sm:$0xff] %v15699_v4  ;;  %v15701_v38 = vpack.c.bf16 %v658_v27, %v651_v48  ;;  %v665_v48 = vld [vmem:[%s14985_s22 + $0xbe8] sm:$0xff]  ;;  %v672_v27 = vld [vmem:[%s14985_s22 + $0xc20] sm:$0xff] }
 0x118   : > { %v2289_v26 = vpop.f32.mrf.mxu0 }
 0x119   : > { %v2642_v29 = vpop.f32.mrf.mxu1  ;;  %v15696_v37 = vadd.f32 %v2640_v39, %v2288_v59  ;;  %v2290_v31 = vadd.f32 %v2289_v26, %v15666_v1  ;;  %20814 = vst [vmem:[#allocation108_spill] sm:$0xff] %v15701_v38  ;;  %v650_v59 = vld [vmem:[%s14985_s22 + $0xb70] sm:$0xff] }
 0x11a   : > { %v2291_v7 = vpop.f32.mrf.mxu0 }
 0x11b   : > { %v2644_v0 = vpop.f32.mrf.mxu1  ;;  %v15703_v10 = vadd.f32 %v2642_v29, %v2290_v31  ;;  %v2292_v57 = vadd.f32 %v2291_v7, %v15674_v28 }
 0x11c   : > { %v2295_v39 = vpop.f32.mrf.mxu0  ;;  %2534 = vmatmul.mubr.bf16.gmra.mxu0 %v15692_v32 }
 0x11d   : > { %v2648_v26 = vpop.f32.mrf.mxu1  ;;  %2887 = vmatmul.mubr.bf16.gmra.mxu1 %v15694_v11  ;;  %v15716_v9 = vadd.f32 %v2644_v0, %v2292_v57  ;;  %v2296_v31 = vadd.f32 %v2295_v39, %v15666_v1  ;;  %2543 = vmatprep.mubr.bf16.mxu0 %v15699_v4  ;;  %v15726_v0 = vpack.c.bf16 %v657_v30, %v650_v59 }
 0x11e   : > { %2896 = vmatprep.mubr.bf16.mxu1 %v15701_v38  ;;  %v2297_v29 = vpop.f32.mrf.mxu0  ;;  %v15731_v38 = vpack.c.bf16 %v670_v58, %v663_v12  ;;  %v15733_v4 = vpack.c.bf16 %v672_v27, %v665_v48  ;;  %v677_v58 = vld [vmem:[%s14985_s22 + $0xc48] sm:$0xff] }
 0x11f   : > { %v2650_v7 = vpop.f32.mrf.mxu1  ;;  %v15721_v32 = vadd.f32 %v2648_v26, %v2296_v31  ;;  %v2298_v11 = vadd.f32 %v2297_v29, %v15674_v28  ;;  %20816 = vst [vmem:[#allocation110_spill] sm:$0xff] %v15726_v0 }
 0x120   : > { %v2299_v8 = vpop.f32.mrf.mxu0  ;;  %20817 = vst [vmem:[#allocation111_spill] sm:$0xff] %v15731_v38  ;;  %20818 = vst [vmem:[#allocation112_spill] sm:$0xff] %v15733_v4 }
 0x121   : > { %v2652_v47 = vpop.f32.mrf.mxu1  ;;  %v15728_v57 = vadd.f32 %v2650_v7, %v2298_v11  ;;  %v2300_v39 = vadd.f32 %v2299_v8, %v15666_v1  ;;  %v664_v11 = vld [vmem:[%s14985_s22 + $0xbe0] sm:$0xff] }
 0x122   : > { %v2301_v26 = vpop.f32.mrf.mxu0  ;;  %v684_v7 = vld [vmem:[%s14985_s22 + $0xc80] sm:$0xff] }
 0x123   : > { %v2654_v31 = vpop.f32.mrf.mxu1  ;;  %v15735_v45 = vadd.f32 %v2652_v47, %v2300_v39  ;;  %v2302_v29 = vadd.f32 %v2301_v26, %v15674_v28  ;;  %v671_v47 = vld [vmem:[%s14985_s22 + $0xc18] sm:$0xff]  ;;  %v686_v26 = vld [vmem:[%s14985_s22 + $0xc90] sm:$0xff]  ;;  %v15763_v19 = vpack.c.bf16 %v684_v7, %v677_v58 }
 0x124   : > { %v2305_v59 = vpop.f32.mrf.mxu0  ;;  %2544 = vmatmul.mubr.bf16.gmra.mxu0 %v15724_v46  ;;  %v679_v39 = vld [vmem:[%s14985_s22 + $0xc58] sm:$0xff] }
 0x125   : > { %v2658_v8 = vpop.f32.mrf.mxu1  ;;  %2897 = vmatmul.mubr.bf16.gmra.mxu1 %v15726_v0  ;;  %v15743_v30 = vadd.f32 %v2654_v31, %v2302_v29  ;;  %v2306_v12 = vadd.f32 %v2305_v59, %v15666_v1  ;;  %2553 = vmatprep.mubr.bf16.mxu0 %v15731_v38  ;;  %v15756_v29 = vpack.c.bf16 %v669_v56, %v662_v13  ;;  %v691_v7 = vld [vmem:[%s14985_s22 + $0xcb8] sm:$0xff] }
 0x126   : > { %2906 = vmatprep.mubr.bf16.mxu1 %v15733_v4  ;;  %v2307_v48 = vpop.f32.mrf.mxu0  ;;  %v15758_v59 = vpack.c.bf16 %v671_v47, %v664_v11  ;;  %20821 = vst [vmem:[#allocation115_spill] sm:$0xff] %v15763_v19  ;;  %v15765_v18 = vpack.c.bf16 %v686_v26, %v679_v39  ;;  %v683_v11 = vld [vmem:[%s14985_s22 + $0xc78] sm:$0xff] }
 0x127   : > { %v2660_v27 = vpop.f32.mrf.mxu1  ;;  %v15753_v44 = vadd.f32 %v2658_v8, %v2306_v12  ;;  %v2308_v46 = vadd.f32 %v2307_v48, %v15674_v28  ;;  %20819 = vst [vmem:[#allocation113_spill] sm:$0xff] %v15756_v29 }
 0x128   : > { %v2309_v0 = vpop.f32.mrf.mxu0  ;;  %20820 = vst [vmem:[#allocation114_spill] sm:$0xff] %v15758_v59  ;;  %20822 = vst [vmem:[#allocation116_spill] sm:$0xff] %v15765_v18 }
 0x129   : > { %v2662_v31 = vpop.f32.mrf.mxu1  ;;  %v15760_v4 = vadd.f32 %v2660_v27, %v2308_v46  ;;  %v2310_v38 = vadd.f32 %v2309_v0, %v15666_v1  ;;  %v676_v0 = vld [vmem:[%s14985_s22 + $0xc40] sm:$0xff]  ;;  %v685_v27 = vld [vmem:[%s14985_s22 + $0xc88] sm:$0xff] }
 0x12a   : > { %v2311_v8 = vpop.f32.mrf.mxu0 }
 0x12b   : > { %v2664_v12 = vpop.f32.mrf.mxu1  ;;  %v15767_v48 = vadd.f32 %v2662_v31, %v2310_v38  ;;  %v2312_v13 = vadd.f32 %v2311_v8, %v15674_v28  ;;  %v678_v38 = vld [vmem:[%s14985_s22 + $0xc50] sm:$0xff]  ;;  %v693_v8 = vld [vmem:[%s14985_s22 + $0xcc8] sm:$0xff] }
 0x12c   : > { %v2315_v56 = vpop.f32.mrf.mxu0  ;;  %2554 = vmatmul.mubr.bf16.gmra.mxu0 %v15756_v29  ;;  %v698_v31 = vld [vmem:[%s14985_s22 + $0xcf0] sm:$0xff]  ;;  %v700_v29 = vld [vmem:[%s14985_s22 + $0xd00] sm:$0xff] }
 0x12d   : > { %v2668_v46 = vpop.f32.mrf.mxu1  ;;  %2907 = vmatmul.mubr.bf16.gmra.mxu1 %v15758_v59  ;;  %v15774_v47 = vadd.f32 %v2664_v12, %v2312_v13  ;;  %v2316_v58 = vadd.f32 %v2315_v56, %v15666_v1  ;;  %2563 = vmatprep.mubr.bf16.mxu0 %v15763_v19  ;;  %v15788_v56 = vpack.c.bf16 %v683_v11, %v676_v0 }
 0x12e   : > { %2916 = vmatprep.mubr.bf16.mxu1 %v15765_v18  ;;  %v2317_v39 = vpop.f32.mrf.mxu0  ;;  %v15790_v19 = vpack.c.bf16 %v685_v27, %v678_v38  ;;  %v15795_v63 = vpack.c.bf16 %v698_v31, %v691_v7  ;;  %v15797_v62 = vpack.c.bf16 %v700_v29, %v693_v8  ;;  %v690_v38 = vld [vmem:[%s14985_s22 + $0xcb0] sm:$0xff]  ;;  %v697_v29 = vld [vmem:[%s14985_s22 + $0xce8] sm:$0xff] }
 0x12f   : > { %v2670_v26 = vpop.f32.mrf.mxu1  ;;  %v15785_v15 = vadd.f32 %v2668_v46, %v2316_v58  ;;  %v2318_v59 = vadd.f32 %v2317_v39, %v15674_v28  ;;  %20823 = vst [vmem:[#allocation117_spill] sm:$0xff] %v15788_v56  ;;  %v705_v31 = vld [vmem:[%s14985_s22 + $0xd28] sm:$0xff] }
 0x130   : > { %v2319_v12 = vpop.f32.mrf.mxu0  ;;  %20824 = vst [vmem:[#allocation118_spill] sm:$0xff] %v15790_v19  ;;  %20825 = vst [vmem:[#allocation119_spill] sm:$0xff] %v15795_v63 }
 0x131   : > { %v2672_v13 = vpop.f32.mrf.mxu1  ;;  %v15792_v18 = vadd.f32 %v2670_v26, %v2318_v59  ;;  %v2320_v14 = vadd.f32 %v2319_v12, %v15666_v1  ;;  %20826 = vst [vmem:[#allocation120_spill] sm:$0xff] %v15797_v62  ;;  %v699_v26 = vld [vmem:[%s14985_s22 + $0xcf8] sm:$0xff] }
 0x132   : > { %v2321_v46 = vpop.f32.mrf.mxu0 }
 0x133   : > { %v2674_v58 = vpop.f32.mrf.mxu1  ;;  %v15799_v39 = vadd.f32 %v2672_v13, %v2320_v14  ;;  %v2322_v0 = vadd.f32 %v2321_v46, %v15674_v28  ;;  %v692_v14 = vld [vmem:[%s14985_s22 + $0xcc0] sm:$0xff]  ;;  %v707_v46 = vld [vmem:[%s14985_s22 + $0xd38] sm:$0xff] }
 0x134   : > { %v2325_v11 = vpop.f32.mrf.mxu0  ;;  %2564 = vmatmul.mubr.bf16.gmra.mxu0 %v15788_v56  ;;  %v712_v13 = vld [vmem:[%s14985_s22 + $0xd60] sm:$0xff]  ;;  %v714_v56 = vld [vmem:[%s14985_s22 + $0xd70] sm:$0xff] }
 0x135   : > { %v2678_v59 = vpop.f32.mrf.mxu1  ;;  %2917 = vmatmul.mubr.bf16.gmra.mxu1 %v15790_v19  ;;  %v15806_v27 = vadd.f32 %v2674_v58, %v2322_v0  ;;  %v2326_v7 = vadd.f32 %v2325_v11, %v15666_v1  ;;  %2573 = vmatprep.mubr.bf16.mxu0 %v15795_v63  ;;  %v15820_v11 = vpack.c.bf16 %v697_v29, %v690_v38 }
 0x136   : > { %2926 = vmatprep.mubr.bf16.mxu1 %v15797_v62  ;;  %v2327_v8 = vpop.f32.mrf.mxu0  ;;  %v15822_v63 = vpack.c.bf16 %v699_v26, %v692_v14  ;;  %v15827_v43 = vpack.c.bf16 %v712_v13, %v705_v31  ;;  %v15829_v42 = vpack.c.bf16 %v714_v56, %v707_v46  ;;  %v704_v14 = vld [vmem:[%s14985_s22 + $0xd20] sm:$0xff]  ;;  %v711_v56 = vld [vmem:[%s14985_s22 + $0xd58] sm:$0xff] }
 0x137   : > { %v2680_v12 = vpop.f32.mrf.mxu1  ;;  %v15817_v61 = vadd.f32 %v2678_v59, %v2326_v7  ;;  %v2328_v19 = vadd.f32 %v2327_v8, %v15674_v28  ;;  %20827 = vst [vmem:[#allocation121_spill] sm:$0xff] %v15820_v11  ;;  %v719_v13 = vld [vmem:[%s14985_s22 + $0xd98] sm:$0xff] }
 0x138   : > { %v2329_v58 = vpop.f32.mrf.mxu0  ;;  %20828 = vst [vmem:[#allocation122_spill] sm:$0xff] %v15822_v63  ;;  %20829 = vst [vmem:[#allocation123_spill] sm:$0xff] %v15827_v43 }
 0x139   : > { %v2682_v0 = vpop.f32.mrf.mxu1  ;;  %v15824_v62 = vadd.f32 %v2680_v12, %v2328_v19  ;;  %v2330_v60 = vadd.f32 %v2329_v58, %v15666_v1  ;;  %20830 = vst [vmem:[#allocation124_spill] sm:$0xff] %v15829_v42  ;;  %v713_v12 = vld [vmem:[%s14985_s22 + $0xd68] sm:$0xff] }
 0x13a   : > { %v2331_v59 = vpop.f32.mrf.mxu0 }
 0x13b   : > { %v2684_v7 = vpop.f32.mrf.mxu1  ;;  %v15831_v8 = vadd.f32 %v2682_v0, %v2330_v60  ;;  %v2332_v38 = vadd.f32 %v2331_v59, %v15674_v28  ;;  %v706_v60 = vld [vmem:[%s14985_s22 + $0xd30] sm:$0xff]  ;;  %v721_v59 = vld [vmem:[%s14985_s22 + $0xda8] sm:$0xff] }
 0x13c   : > { %v2335_v29 = vpop.f32.mrf.mxu0  ;;  %2574 = vmatmul.mubr.bf16.gmra.mxu0 %v15820_v11  ;;  %v726_v0 = vld [vmem:[%s14985_s22 + $0xdd0] sm:$0xff]  ;;  %v728_v11 = vld [vmem:[%s14985_s22 + $0xde0] sm:$0xff] }
 0x13d   : > { %v2688_v19 = vpop.f32.mrf.mxu1  ;;  %2927 = vmatmul.mubr.bf16.gmra.mxu1 %v15822_v63  ;;  %v15838_v26 = vadd.f32 %v2684_v7, %v2332_v38  ;;  %v2336_v31 = vadd.f32 %v2335_v29, %v15666_v1  ;;  %2583 = vmatprep.mubr.bf16.mxu0 %v15827_v43  ;;  %v15852_v29 = vpack.c.bf16 %v711_v56, %v704_v14 }
 0x13e   : > { %2936 = vmatprep.mubr.bf16.mxu1 %v15829_v42  ;;  %v2337_v46 = vpop.f32.mrf.mxu0  ;;  %v15854_v43 = vpack.c.bf16 %v713_v12, %v706_v60  ;;  %v15859_v25 = vpack.c.bf16 %v726_v0, %v719_v13  ;;  %v15861_v24 = vpack.c.bf16 %v728_v11, %v721_v59  ;;  %v718_v60 = vld [vmem:[%s14985_s22 + $0xd90] sm:$0xff]  ;;  %v720_v13 = vld [vmem:[%s14985_s22 + $0xda0] sm:$0xff] }
 0x13f   : > { %v2690_v58 = vpop.f32.mrf.mxu1  ;;  %v15849_v41 = vadd.f32 %v2688_v19, %v2336_v31  ;;  %v2338_v63 = vadd.f32 %v2337_v46, %v15674_v28  ;;  %20831 = vst [vmem:[#allocation125_spill] sm:$0xff] %v15852_v29 }
 0x140   : > { %v2339_v7 = vpop.f32.mrf.mxu0  ;;  %20832 = vst [vmem:[#allocation126_spill] sm:$0xff] %v15854_v43  ;;  %20833 = vst [vmem:[#allocation127_spill] sm:$0xff] %v15859_v25 }
 0x141   : > { %v2692_v38 = vpop.f32.mrf.mxu1  ;;  %v15856_v42 = vadd.f32 %v2690_v58, %v2338_v63  ;;  %v2340_v40 = vadd.f32 %v2339_v7, %v15666_v1  ;;  %20834 = vst [vmem:[#allocation128_spill] sm:$0xff] %v15861_v24  ;;  %v727_v58 = vld [vmem:[%s14985_s22 + $0xdd8] sm:$0xff]  ;;  %v289_v7 = vld [vmem:[%s14985_s22 + $0x28] sm:$0xff] }
 0x142   : > { %v2341_v19 = vpop.f32.mrf.mxu0 }
 0x143   : > { %v2694_v31 = vpop.f32.mrf.mxu1  ;;  %v15863_v46 = vadd.f32 %v2692_v38, %v2340_v40  ;;  %v2342_v14 = vadd.f32 %v2341_v19, %v15674_v28  ;;  %v725_v40 = vld [vmem:[%s14985_s22 + $0xdc8] sm:$0xff]  ;;  %v296_v38 = vld [vmem:[%s14985_s22 + $0x60] sm:$0xff] }
 0x144   : > { %v2345_v56 = vpop.f32.mrf.mxu0  ;;  %2584 = vmatmul.mubr.bf16.gmra.mxu0 %v15852_v29  ;;  %v15882_v29 = vpack.c.bf16 %v725_v40, %v718_v60  ;;  %v15889_v23 = vpack.c.bf16 %v296_v38, %v289_v7 }
 0x145   : > { %v2698_v63 = vpop.f32.mrf.mxu1  ;;  %2937 = vmatmul.mubr.bf16.gmra.mxu1 %v15854_v43  ;;  %v15869_v12 = vadd.f32 %v2694_v31, %v2342_v14  ;;  %v2346_v11 = vadd.f32 %v2345_v56, %v15666_v1  ;;  %2593 = vmatprep.mubr.bf16.mxu0 %v15859_v25  ;;  %v15884_v56 = vpack.c.bf16 %v727_v58, %v720_v13  ;;  %v20502_v58 = vmov 0  }
 0x146   : > { %2946 = vmatprep.mubr.bf16.mxu1 %v15861_v24  ;;  %v2347_v0 = vpop.f32.mrf.mxu0  ;;  %20835 = vst [vmem:[#allocation129_spill] sm:$0xff] %v15882_v29  ;;  %20837 = vst [vmem:[#allocation131_spill] sm:$0xff] %v15889_v23 }
 0x147   : > { %v2700_v59 = vpop.f32.mrf.mxu1  ;;  %v15879_v19 = vadd.f32 %v2698_v63, %v2346_v11  ;;  %v2348_v43 = vadd.f32 %v2347_v0, %v15674_v28  ;;  %20836 = vst [vmem:[#allocation130_spill] sm:$0xff] %v15884_v56 }
 0x148   : > { %v2349_v31 = vpop.f32.mrf.mxu0 }
 0x149   : > { %v2702_v14 = vpop.f32.mrf.mxu1  ;;  %v15886_v25 = vadd.f32 %v2700_v59, %v2348_v43  ;;  %v2350_v24 = vadd.f32 %v2349_v31, %v15666_v1  ;;  %v288_v43 = vld [vmem:[%s14985_s22 + $0x20] sm:$0xff]  ;;  %v297_v59 = vld [vmem:[%s14985_s22 + $0x68] sm:$0xff] }
 0x14a   : > { %v2351_v22 = vpop.f32.mrf.mxu0 }
 0x14b   : > { %v2704_v63 = vpop.f32.mrf.mxu1  ;;  %v15891_v11 = vadd.f32 %v2702_v14, %v2350_v24  ;;  %v2352_v0 = vadd.f32 %v2351_v22, %v15674_v28  ;;  %v295_v24 = vld [vmem:[%s14985_s22 + $0x58] sm:$0xff]  ;;  %v290_v22 = vld [vmem:[%s14985_s22 + $0x30] sm:$0xff] }
 0x14c   : > { %v2355_v6 = vpop.f32.mrf.mxu0  ;;  %2594 = vmatmul.mubr.bf16.gmra.mxu0 %v15882_v29 }
 0x14d   : > { %v2708_v60 = vpop.f32.mrf.mxu1  ;;  %2947 = vmatmul.mubr.bf16.gmra.mxu1 %v15884_v56  ;;  %v15897_v40 = vadd.f32 %v2704_v63, %v2352_v0  ;;  %v2356_v13 = vadd.f32 %v2355_v6, %v15666_v1  ;;  %2989 = vmatprep.mubr.bf16.mxu0 %v15889_v23  ;;  %v303_v56 = vld [vmem:[%s14985_s22 + $0x98] sm:$0xff]  ;;  %v310_v63 = vld [vmem:[%s14985_s22 + $0xd0] sm:$0xff]  ;;  %v15910_v6 = vpack.c.bf16 %v295_v24, %v288_v43 }
 0x14e   : > { %3342 = vmatprep.mubr.bf16.mxu1 %v20502_v58  ;;  %v2357_v7 = vpop.f32.mrf.mxu0  ;;  %v15912_v23 = vpack.c.bf16 %v297_v59, %v290_v22  ;;  %v15923_v22 = vpack.c.bf16 %v310_v63, %v303_v56  ;;  %v304_v56 = vld [vmem:[%s14985_s22 + $0xa0] sm:$0xff] }
 0x14f   : > { %v2710_v38 = vpop.f32.mrf.mxu1  ;;  %v15905_v31 = vadd.f32 %v2708_v60, %v2356_v13  ;;  %v2358_v14 = vadd.f32 %v2357_v7, %v15674_v28  ;;  %20838 = vst [vmem:[#allocation132_spill] sm:$0xff] %v15910_v6  ;;  %v14321_v60 = vld [vmem:[%s20379_s1 + $0xe8] ss:$16 sps:$4 sm:$0xff]  }
 0x150   : > { %v2359_v0 = vpop.f32.mrf.mxu0  ;;  %20839 = vst [vmem:[#allocation133_spill] sm:$0xff] %v15912_v23  ;;  %v14324_v13 = vld [vmem:[%s20379_s1 + $0x2e8] ss:$16 sps:$4 sm:$0xff]   ;;  %20840 = vst [vmem:[#allocation134_spill] sm:$0xff] %v15923_v22 }
 0x151   : > { %v2712_v29 = vpop.f32.mrf.mxu1  ;;  %v15914_v5 = vadd.f32 %v2710_v38, %v2358_v14  ;;  %v2360_v58 = vadd.f32 %v2359_v0, %v15666_v1  ;;  %v302_v38 = vld [vmem:[%s14985_s22 + $0x90] sm:$0xff]  ;;  %v14329_v14 = vld [vmem:[%s20379_s1 + $0xcc] ss:$16 sps:$4 sm:$0xff]  }
 0x152   : > { %v2361_v43 = vpop.f32.mrf.mxu0  ;;  %v14332_v0 = vld [vmem:[%s20379_s1 + $0x2cc] ss:$16 sps:$4 sm:$0xff]  }
 0x153   : > { %v2714_v24 = vpop.f32.mrf.mxu1  ;;  %v15925_v59 = vadd.f32 %v2712_v29, %v2360_v58  ;;  %v2362_v7 = vadd.f32 %v2361_v43, %v15674_v28  ;;  %v309_v29 = vld [vmem:[%s14985_s22 + $0xc8] sm:$0xff]  ;;  %v311_v58 = vld [vmem:[%s14985_s22 + $0xd8] sm:$0xff] }
 0x154   : > { %v2365_v3 = vpop.f32.mrf.mxu0  ;;  %2990 = vmatmul.mubr.bf16.vlgmr.msra.gmra.mxu0 %v15910_v6  ;;  %v14330_v6 = vld [vmem:[%s20379_s1 + $0x2c8] ss:$16 sps:$4 sm:$0xff]   ;;  %v15965_v34 = vpack.c.bf16 %v311_v58, %v304_v56  ;;  %v318_v58 = vld [vmem:[%s14985_s22 + $0x110] sm:$0xff] }
 0x155   : > { %v2718_v2 = vpop.f32.mrf.mxu1  ;;  %12557 = vmatmul.mubr.msk.bf16.vlgmr.msra.gmra.mxu1 %vm2154_vm0, %v15912_v23  ;;  %v15941_v63 = vadd.f32 %v2714_v24, %v2362_v7  ;;  %v2366_v43 = vadd.f32 %v2365_v3, %v15666_v1  ;;  %3664 = vmatpush1.bf16.msra.mxu0 %v14321_v60  ;;  %v324_v24 = vld [vmem:[%s14985_s22 + $0x140] sm:$0xff]  ;;  %v14335_v3 = vld [vmem:[%s20379_s1 + $0xac] ss:$16 sps:$4 sm:$0xff]  }
 0x156   : > { %4017 = vmatpush1.bf16.msra.mxu1 %v14324_v13  ;;  %v2367_v50 = vpop.f32.mrf.mxu0  ;;  %2999 = vmatprep.mubr.bf16.mxu0 %v15923_v22  ;;  %v14338_v60 = vld [vmem:[%s20379_s1 + $0x2ac] ss:$16 sps:$4 sm:$0xff]   ;;  %v15963_v22 = vpack.c.bf16 %v309_v29, %v302_v38  ;;  %20843 = vst [vmem:[#allocation136_spill] sm:$0xff] %v15965_v34  ;;  %v15970_v20 = vpack.c.bf16 %v324_v24, %v317_v52 }
 0x157   : > { %v2720_v23 = vpop.f32.mrf.mxu1  ;;  %3352 = vmatprep.mubr.bf16.mxu1 %v20841_v49  ;;  %v15960_v13 = vadd.f32 %v2718_v2, %v2366_v43  ;;  %v2368_v7 = vadd.f32 %v2367_v50, %v15674_v28  ;;  %3665 = vmatprep.subr.bf16.mxu0 %v14329_v14  ;;  %v14333_v14 = vld [vmem:[%s20379_s1 + $0xa8] ss:$16 sps:$4 sm:$0xff]   ;;  %v14341_v52 = vld [vmem:[%s20379_s1 + $0x8c] ss:$16 sps:$4 sm:$0xff]  }
 0x158   : > { %4018 = vmatprep.subr.bf16.mxu1 %v14332_v0  ;;  %v2369_v36 = vpop.f32.mrf.mxu0  ;;  %20842 = vst [vmem:[#allocation135_spill] sm:$0xff] %v15963_v22  ;;  %20844 = vst [vmem:[#allocation137_spill] sm:$0xff] %v15970_v20  ;;  %v325_v43 = vld [vmem:[%s14985_s22 + $0x148] sm:$0xff]  ;;  %v331_v24 = vld [vmem:[%s14985_s22 + $0x178] sm:$0xff] }
 0x159   : > { %v2722_v35 = vpop.f32.mrf.mxu1  ;;  %v15967_v33 = vadd.f32 %v2720_v23, %v2368_v7  ;;  %v2370_v21 = vadd.f32 %v2369_v36, %v15666_v1  ;;  %3666 = vmatpush1.bf16.msra.mxu0 %v14327_v51  ;;  %v14336_v23 = vld [vmem:[%s20379_s1 + $0x2a8] ss:$16 sps:$4 sm:$0xff]   ;;  %v338_v7 = vld [vmem:[%s14985_s22 + $0x1b0] sm:$0xff] }
 0x15a   : > { %4019 = vmatpush1.bf16.msra.mxu1 %v14330_v6  ;;  %v2371_v2 = vpop.f32.mrf.mxu0  ;;  %3667 = vmatprep.subr.bf16.mxu0 %v14335_v3  ;;  %v14344_v6 = vld [vmem:[%s20379_s1 + $0x28c] ss:$16 sps:$4 sm:$0xff]  }
 0x15b   : > { %v2724_v50 = vpop.f32.mrf.mxu1  ;;  %4020 = vmatprep.subr.bf16.mxu1 %v14338_v60  ;;  %v15978_v36 = vadd.f32 %v2722_v35, %v2370_v21  ;;  %v2372_v51 = vadd.f32 %v2371_v2, %v15674_v28  ;;  %v316_v21 = vld [vmem:[%s14985_s22 + $0x100] sm:$0xff]  ;;  %v323_v35 = vld [vmem:[%s14985_s22 + $0x138] sm:$0xff] }
 0x15c   : > { %v2375_v38 = vpop.f32.mrf.mxu0  ;;  %3000 = vmatmul.mubr.bf16.gmra.mxu0 %v15963_v22  ;;  %v14339_v2 = vld [vmem:[%s20379_s1 + $0x88] ss:$16 sps:$4 sm:$0xff]   ;;  %v16016_v22 = vpack.c.bf16 %v323_v35, %v316_v21 }
 0x15d   : > { %20845 = vst [vmem:[#allocation138_spill] sm:$0xff] %v15978_v36  ;;  %v2728_v0 = vpop.f32.mrf.mxu1  ;;  %12558 = vmatmul.mubr.msk.bf16.gmra.mxu1 %vm2154_vm0, %v15965_v34  ;;  %v15992_v29 = vadd.f32 %v2724_v50, %v2372_v51  ;;  %v2376_v56 = vadd.f32 %v2375_v38, %v15666_v1  ;;  %3009 = vmatprep.mubr.bf16.mxu0 %v15970_v20  ;;  %v14342_v50 = vld [vmem:[%s20379_s1 + $0x288] ss:$16 sps:$4 sm:$0xff]   ;;  %v14347_v20 = vld [vmem:[%s20379_s1 + $0x6c] ss:$16 sps:$4 sm:$0xff]  }
 0x15e   : > { %3362 = vmatprep.mubr.bf16.mxu1 %v20841_v49  ;;  %v2377_v3 = vpop.f32.mrf.mxu0  ;;  %3668 = vmatpush1.bf16.msra.mxu0 %v14333_v14  ;;  %v14350_v14 = vld [vmem:[%s20379_s1 + $0x26c] ss:$16 sps:$4 sm:$0xff]   ;;  %20848 = vst [vmem:[#allocation141_spill] sm:$0xff] %v16016_v22  ;;  %v14348_v21 = vld [vmem:[%s20379_s1 + $0x268] ss:$16 sps:$4 sm:$0xff]  }
 0x15f   : > { %20846 = vst [vmem:[#allocation139_spill] sm:$0xff] %v15992_v29  ;;  %v2730_v60 = vpop.f32.mrf.mxu1  ;;  %4021 = vmatpush1.bf16.msra.mxu1 %v14336_v23  ;;  %v16007_v51 = vadd.f32 %v2728_v0, %v2376_v56  ;;  %v2378_v38 = vadd.f32 %v2377_v3, %v15674_v28  ;;  %3669 = vmatprep.subr.bf16.mxu0 %v14341_v52 }
 0x160   : > { %4022 = vmatprep.subr.bf16.mxu1 %v14344_v6  ;;  %v2379_v23 = vpop.f32.mrf.mxu0  ;;  %v16018_v29 = vpack.c.bf16 %v325_v43, %v318_v58  ;;  %v16023_v52 = vpack.c.bf16 %v338_v7, %v331_v24  ;;  %v14353_v43 = vld [vmem:[%s20379_s1 + $0x4c] ss:$16 sps:$4 sm:$0xff]  }
 0x161   : > { %20847 = vst [vmem:[#allocation140_spill] sm:$0xff] %v16007_v51  ;;  %v2732_v34 = vpop.f32.mrf.mxu1  ;;  %v16020_v0 = vadd.f32 %v2730_v60, %v2378_v38  ;;  %v2380_v56 = vadd.f32 %v2379_v23, %v15666_v1  ;;  %v14345_v51 = vld [vmem:[%s20379_s1 + $0x68] ss:$16 sps:$4 sm:$0xff]   ;;  %v14356_v24 = vld [vmem:[%s20379_s1 + $0x24c] ss:$16 sps:$4 sm:$0xff]   ;;  %v332_v38 = vld [vmem:[%s14985_s22 + $0x180] sm:$0xff] }
 0x162   : > { %20849 = vst [vmem:[#allocation142_spill] sm:$0xff] %v16018_v29  ;;  %20851 = vst [vmem:[#allocation144_spill] sm:$0xff] %v16023_v52  ;;  %v2381_v6 = vpop.f32.mrf.mxu0  ;;  %3670 = vmatpush1.bf16.msra.mxu0 %v14339_v2  ;;  %v345_v23 = vld [vmem:[%s14985_s22 + $0x1e8] sm:$0xff] }
 0x163   : > { %20850 = vst [vmem:[#allocation143_spill] sm:$0xff] %v16020_v0  ;;  %v2734_v3 = vpop.f32.mrf.mxu1  ;;  %4023 = vmatpush1.bf16.msra.mxu1 %v14342_v50  ;;  %v16031_v35 = vadd.f32 %v2732_v34, %v2380_v56  ;;  %v2382_v58 = vadd.f32 %v2381_v6, %v15674_v28  ;;  %3671 = vmatprep.subr.bf16.mxu0 %v14347_v20  ;;  %v330_v34 = vld [vmem:[%s14985_s22 + $0x170] sm:$0xff]  ;;  %v337_v20 = vld [vmem:[%s14985_s22 + $0x1a8] sm:$0xff] }
 0x164   : > { %4024 = vmatprep.subr.bf16.mxu1 %v14350_v14  ;;  %v2385_v60 = vpop.f32.mrf.mxu0  ;;  %3010 = vmatmul.mubr.bf16.gmra.mxu0 %v16016_v22  ;;  %v339_v14 = vld [vmem:[%s14985_s22 + $0x1b8] sm:$0xff] }
 0x165   : > { %20852 = vst [vmem:[#allocation145_spill] sm:$0xff] %v16031_v35  ;;  %v2738_v7 = vpop.f32.mrf.mxu1  ;;  %12559 = vmatmul.mubr.msk.bf16.gmra.mxu1 %vm2154_vm0, %v16018_v29  ;;  %v16045_v2 = vadd.f32 %v2734_v3, %v2382_v58  ;;  %v2386_v50 = vadd.f32 %v2385_v60, %v15666_v1  ;;  %3019 = vmatprep.mubr.bf16.mxu0 %v16023_v52  ;;  %v352_v35 = vld [vmem:[%s14985_s22 + $0x220] sm:$0xff]  ;;  %v14351_v29 = vld [vmem:[%s20379_s1 + $0x48] ss:$16 sps:$4 sm:$0xff]   ;;  %v14359_v52 = vld [vmem:[%s20379_s1 + $0x2c] ss:$16 sps:$4 sm:$0xff]  }
 0x166   : > { %3372 = vmatprep.mubr.bf16.mxu1 %v20841_v49  ;;  %v2387_v56 = vpop.f32.mrf.mxu0  ;;  %3672 = vmatpush1.bf16.msra.mxu0 %v14345_v51  ;;  %v14354_v3 = vld [vmem:[%s20379_s1 + $0x248] ss:$16 sps:$4 sm:$0xff]   ;;  %v14362_v51 = vld [vmem:[%s20379_s1 + $0x22c] ss:$16 sps:$4 sm:$0xff]   ;;  %v16071_v0 = vpack.c.bf16 %v339_v14, %v332_v38 }
 0x167   : > { %20853 = vst [vmem:[#allocation146_spill] sm:$0xff] %v16045_v2  ;;  %v2740_v6 = vpop.f32.mrf.mxu1  ;;  %4025 = vmatpush1.bf16.msra.mxu1 %v14348_v21  ;;  %v16060_v58 = vadd.f32 %v2738_v7, %v2386_v50  ;;  %v2388_v60 = vadd.f32 %v2387_v56, %v15674_v28  ;;  %3673 = vmatprep.subr.bf16.mxu0 %v14353_v43  ;;  %v14368_v38 = vld [vmem:[%s20379_s1 + $0x20c] ss:$16 sps:$4 sm:$0xff]  }
 0x168   : > { %4026 = vmatprep.subr.bf16.mxu1 %v14356_v24  ;;  %v2389_v21 = vpop.f32.mrf.mxu0  ;;  %v16069_v2 = vpack.c.bf16 %v337_v20, %v330_v34  ;;  %20856 = vst [vmem:[#allocation149_spill] sm:$0xff] %v16071_v0  ;;  %v16076_v43 = vpack.c.bf16 %v352_v35, %v345_v23  ;;  %v14360_v34 = vld [vmem:[%s20379_s1 + $0x228] ss:$16 sps:$4 sm:$0xff]  }
 0x169   : > { %20854 = vst [vmem:[#allocation147_spill] sm:$0xff] %v16060_v58  ;;  %v2742_v22 = vpop.f32.mrf.mxu1  ;;  %v16073_v7 = vadd.f32 %v2740_v6, %v2388_v60  ;;  %v2390_v50 = vadd.f32 %v2389_v21, %v15666_v1  ;;  %v14357_v58 = vld [vmem:[%s20379_s1 + $0x28] ss:$16 sps:$4 sm:$0xff]   ;;  %v346_v60 = vld [vmem:[%s14985_s22 + $0x1f0] sm:$0xff] }
 0x16a   : > { %20855 = vst [vmem:[#allocation148_spill] sm:$0xff] %v16069_v2  ;;  %20858 = vst [vmem:[#allocation151_spill] sm:$0xff] %v16076_v43  ;;  %v2391_v24 = vpop.f32.mrf.mxu0  ;;  %3674 = vmatpush1.bf16.msra.mxu0 %v14351_v29  ;;  %v14365_v29 = vld [vmem:[%s20379_s1 + $0xc] ss:$16 sps:$4 sm:$0xff]  }
 0x16b   : > { %20857 = vst [vmem:[#allocation150_spill] sm:$0xff] %v16073_v7  ;;  %v2744_v56 = vpop.f32.mrf.mxu1  ;;  %4027 = vmatpush1.bf16.msra.mxu1 %v14354_v3  ;;  %v16084_v20 = vadd.f32 %v2742_v22, %v2390_v50  ;;  %v2392_v35 = vadd.f32 %v2391_v24, %v15674_v28  ;;  %3675 = vmatprep.subr.bf16.mxu0 %v14359_v52  ;;  %v344_v22 = vld [vmem:[%s14985_s22 + $0x1e0] sm:$0xff]  ;;  %v351_v52 = vld [vmem:[%s14985_s22 + $0x218] sm:$0xff] }
 0x16c   : > { %4028 = vmatprep.subr.bf16.mxu1 %v14362_v51  ;;  %v2395_v14 = vpop.f32.mrf.mxu0  ;;  %3020 = vmatmul.mubr.bf16.gmra.mxu0 %v16069_v2  ;;  %v353_v51 = vld [vmem:[%s14985_s22 + $0x228] sm:$0xff]  ;;  %v359_v21 = vld [vmem:[%s14985_s22 + $0x258] sm:$0xff] }
 0x16d   : > { %20859 = vst [vmem:[#allocation152_spill] sm:$0xff] %v16084_v20  ;;  %v2748_v23 = vpop.f32.mrf.mxu1  ;;  %12560 = vmatmul.mubr.msk.bf16.gmra.mxu1 %vm2154_vm0, %v16071_v0  ;;  %v16098_v6 = vadd.f32 %v2744_v56, %v2392_v35  ;;  %v2396_v3 = vadd.f32 %v2395_v14, %v15666_v1  ;;  %3029 = vmatprep.mubr.bf16.mxu0 %v16076_v43  ;;  %v366_v20 = vld [vmem:[%s14985_s22 + $0x290] sm:$0xff]  ;;  %v14363_v0 = vld [vmem:[%s20379_s1 + $0x8] ss:$16 sps:$4 sm:$0xff]   ;;  %v14371_v43 = vld [vmem:[%s20379_s1 + $0x1ec] ss:$16 sps:$4 sm:$0xff]  }
 0x16e   : > { %3382 = vmatprep.mubr.bf16.mxu1 %v20841_v49  ;;  %v2397_v50 = vpop.f32.mrf.mxu0  ;;  %3676 = vmatpush1.bf16.msra.mxu0 %v14357_v58  ;;  %v14366_v56 = vld [vmem:[%s20379_s1 + $0x208] ss:$16 sps:$4 sm:$0xff]   ;;  %v14374_v58 = vld [vmem:[%s20379_s1 + $0x3ec] ss:$16 sps:$4 sm:$0xff]   ;;  %v16124_v7 = vpack.c.bf16 %v353_v51, %v346_v60 }
 0x16f   : > { %20860 = vst [vmem:[#allocation153_spill] sm:$0xff] %v16098_v6  ;;  %v2750_v24 = vpop.f32.mrf.mxu1  ;;  %4029 = vmatpush1.bf16.msra.mxu1 %v14360_v34  ;;  %v16113_v35 = vadd.f32 %v2748_v23, %v2396_v3  ;;  %v2398_v14 = vadd.f32 %v2397_v50, %v15674_v28  ;;  %3677 = vmatprep.subr.bf16.mxu0 %v14365_v29  ;;  %v14380_v60 = vld [vmem:[%s20379_s1 + $0x3cc] ss:$16 sps:$4 sm:$0xff]  }
 0x170   : > { %4030 = vmatprep.subr.bf16.mxu1 %v14368_v38  ;;  %v2399_v34 = vpop.f32.mrf.mxu0  ;;  %v16122_v6 = vpack.c.bf16 %v351_v52, %v344_v22  ;;  %20863 = vst [vmem:[#allocation156_spill] sm:$0xff] %v16124_v7  ;;  %v16129_v29 = vpack.c.bf16 %v366_v20, %v359_v21  ;;  %v14372_v22 = vld [vmem:[%s20379_s1 + $0x3e8] ss:$16 sps:$4 sm:$0xff]  }
 0x171   : > { %20861 = vst [vmem:[#allocation154_spill] sm:$0xff] %v16113_v35  ;;  %v2752_v2 = vpop.f32.mrf.mxu1  ;;  %v16126_v23 = vadd.f32 %v2750_v24, %v2398_v14  ;;  %v2400_v3 = vadd.f32 %v2399_v34, %v15666_v1  ;;  %v14369_v35 = vld [vmem:[%s20379_s1 + $0x1e8] ss:$16 sps:$4 sm:$0xff]   ;;  %v360_v14 = vld [vmem:[%s14985_s22 + $0x260] sm:$0xff] }
 0x172   : > { %20862 = vst [vmem:[#allocation155_spill] sm:$0xff] %v16122_v6  ;;  %20865 = vst [vmem:[#allocation158_spill] sm:$0xff] %v16129_v29  ;;  %v2401_v38 = vpop.f32.mrf.mxu0  ;;  %3678 = vmatpush1.bf16.msra.mxu0 %v14363_v0  ;;  %v14377_v0 = vld [vmem:[%s20379_s1 + $0x1cc] ss:$16 sps:$4 sm:$0xff]  }
 0x173   : > { %20864 = vst [vmem:[#allocation157_spill] sm:$0xff] %v16126_v23  ;;  %v2754_v50 = vpop.f32.mrf.mxu1  ;;  %4031 = vmatpush1.bf16.msra.mxu1 %v14366_v56  ;;  %v16137_v52 = vadd.f32 %v2752_v2, %v2400_v3  ;;  %v2402_v20 = vadd.f32 %v2401_v38, %v15674_v28  ;;  %3679 = vmatprep.subr.bf16.mxu0 %v14371_v43  ;;  %v358_v2 = vld [vmem:[%s14985_s22 + $0x250] sm:$0xff]  ;;  %v365_v43 = vld [vmem:[%s14985_s22 + $0x288] sm:$0xff] }
 0x174   : > { %4032 = vmatprep.subr.bf16.mxu1 %v14374_v58  ;;  %v2405_v51 = vpop.f32.mrf.mxu0  ;;  %3030 = vmatmul.mubr.bf16.gmra.mxu0 %v16122_v6  ;;  %v367_v58 = vld [vmem:[%s14985_s22 + $0x298] sm:$0xff]  ;;  %v373_v34 = vld [vmem:[%s14985_s22 + $0x2c8] sm:$0xff]  ;;  %v16172_v6 = vpack.c.bf16 %v365_v43, %v358_v2 }
 0x175   : > { %20866 = vst [vmem:[#allocation159_spill] sm:$0xff] %v16137_v52  ;;  %v2758_v21 = vpop.f32.mrf.mxu1  ;;  %12561 = vmatmul.mubr.msk.bf16.gmra.mxu1 %vm2154_vm0, %v16124_v7  ;;  %v16151_v24 = vadd.f32 %v2754_v50, %v2402_v20  ;;  %v2406_v56 = vadd.f32 %v2405_v51, %v15666_v1  ;;  %3039 = vmatprep.mubr.bf16.mxu0 %v16129_v29  ;;  %v380_v52 = vld [vmem:[%s14985_s22 + $0x300] sm:$0xff]  ;;  %v14375_v7 = vld [vmem:[%s20379_s1 + $0x1c8] ss:$16 sps:$4 sm:$0xff]   ;;  %v14383_v29 = vld [vmem:[%s20379_s1 + $0x1ac] ss:$16 sps:$4 sm:$0xff]  }
 0x176   : > { %3392 = vmatprep.mubr.bf16.mxu1 %v20841_v49  ;;  %v2407_v3 = vpop.f32.mrf.mxu0  ;;  %3680 = vmatpush2.bf16.msra.mxu0 %v14369_v35  ;;  %v14378_v50 = vld [vmem:[%s20379_s1 + $0x3c8] ss:$16 sps:$4 sm:$0xff]   ;;  %20868 = vst [vmem:[#allocation161_spill] sm:$0xff] %v16172_v6 }
 0x177   : > { %20867 = vst [vmem:[#allocation160_spill] sm:$0xff] %v16151_v24  ;;  %v2760_v38 = vpop.f32.mrf.mxu1  ;;  %4033 = vmatpush2.bf16.msra.mxu1 %v14372_v22  ;;  %v16166_v20 = vadd.f32 %v2758_v21, %v2406_v56  ;;  %v2408_v51 = vadd.f32 %v2407_v3, %v15674_v28  ;;  %3681 = vmatprep.subr.bf16.mxu0 %v14377_v0  ;;  %v14386_v0 = vld [vmem:[%s20379_s1 + $0x3ac] ss:$16 sps:$4 sm:$0xff]   ;;  %v14381_v2 = vld [vmem:[%s20379_s1 + $0x1a8] ss:$16 sps:$4 sm:$0xff]  }
 0x178   : > { %4034 = vmatprep.subr.bf16.mxu1 %v14380_v60  ;;  %v2409_v35 = vpop.f32.mrf.mxu0  ;;  %v16174_v24 = vpack.c.bf16 %v367_v58, %v360_v14  ;;  %v16179_v21 = vpack.c.bf16 %v380_v52, %v373_v34  ;;  %v14384_v52 = vld [vmem:[%s20379_s1 + $0x3a8] ss:$16 sps:$4 sm:$0xff]   ;;  %v372_v34 = vld [vmem:[%s14985_s22 + $0x2c0] sm:$0xff] }
 0x179   : > { %v2762_v22 = vpop.f32.mrf.mxu1  ;;  %v16176_v23 = vadd.f32 %v2760_v38, %v2408_v51  ;;  %v2410_v36 = vadd.f32 %v2409_v35, %v15666_v1 }
 0x17a   : > { %20869 = vst [vmem:[#allocation162_spill] sm:$0xff] %v16174_v24  ;;  %20870 = vst [vmem:[#allocation163_spill] sm:$0xff] %v16179_v21  ;;  %v2411_v60 = vpop.f32.mrf.mxu0  ;;  %3682 = vmatpush2.bf16.msra.mxu0 %v14375_v7 }
 0x17b   : > { %v2764_v56 = vpop.f32.mrf.mxu1  ;;  %4035 = vmatpush2.bf16.msra.mxu1 %v14378_v50  ;;  %v16190_v43 = vadd.f32 %v2762_v22, %v2410_v36  ;;  %v2412_v14 = vadd.f32 %v2411_v60, %v15674_v28  ;;  %3683 = vmatprep.subr.bf16.mxu0 %v14383_v29  ;;  %v379_v36 = vld [vmem:[%s14985_s22 + $0x2f8] sm:$0xff]  ;;  %v374_v29 = vld [vmem:[%s14985_s22 + $0x2d0] sm:$0xff]  ;;  %v381_v50 = vld [vmem:[%s14985_s22 + $0x308] sm:$0xff] }
 0x17c   : > { %4036 = vmatprep.subr.bf16.mxu1 %v14386_v0  ;;  %v2415_v7 = vpop.f32.mrf.mxu0  ;;  %3040 = vmatmul.mubr.bf16.gmra.mxu0 %v16172_v6  ;;  %v387_v22 = vld [vmem:[%s14985_s22 + $0x338] sm:$0xff]  ;;  %v394_v0 = vld [vmem:[%s14985_s22 + $0x370] sm:$0xff] }
 0x17d   : > { %20871 = vst [vmem:[#allocation164_spill] sm:$0xff] %v16190_v43  ;;  %v2768_v58 = vpop.f32.mrf.mxu1  ;;  %12562 = vmatmul.mubr.msk.bf16.gmra.mxu1 %vm2154_vm0, %v16174_v24  ;;  %v16197_v3 = vadd.f32 %v2764_v56, %v2412_v14  ;;  %v2416_v38 = vadd.f32 %v2415_v7, %v15666_v1  ;;  %3049 = vmatprep.mubr.bf16.mxu0 %v16179_v21 }
 0x17e   : > { %3402 = vmatprep.mubr.bf16.mxu1 %v20841_v49  ;;  %v2417_v51 = vpop.f32.mrf.mxu0  ;;  %3684 = vmatpush2.bf16.msra.mxu0 %v14381_v2  ;;  %v16210_v24 = vpack.c.bf16 %v379_v36, %v372_v34  ;;  %v16212_v21 = vpack.c.bf16 %v381_v50, %v374_v29  ;;  %v16217_v43 = vpack.c.bf16 %v394_v0, %v387_v22  ;;  %v386_v29 = vld [vmem:[%s14985_s22 + $0x330] sm:$0xff]  ;;  %v395_v22 = vld [vmem:[%s14985_s22 + $0x378] sm:$0xff] }
 0x17f   : > { %20872 = vst [vmem:[#allocation165_spill] sm:$0xff] %v16197_v3  ;;  %v2770_v35 = vpop.f32.mrf.mxu1  ;;  %4037 = vmatpush2.bf16.msra.mxu1 %v14384_v52  ;;  %v16207_v60 = vadd.f32 %v2768_v58, %v2416_v38  ;;  %v2418_v56 = vadd.f32 %v2417_v51, %v15674_v28 }
 0x180   : > { %v2419_v14 = vpop.f32.mrf.mxu0  ;;  %20874 = vst [vmem:[#allocation167_spill] sm:$0xff] %v16210_v24  ;;  %20875 = vst [vmem:[#allocation168_spill] sm:$0xff] %v16212_v21 }
 0x181   : > { %20873 = vst [vmem:[#allocation166_spill] sm:$0xff] %v16207_v60  ;;  %v2772_v7 = vpop.f32.mrf.mxu1  ;;  %v16214_v6 = vadd.f32 %v2770_v35, %v2418_v56  ;;  %v2420_v3 = vadd.f32 %v2419_v14, %v15666_v1  ;;  %20877 = vst [vmem:[#allocation170_spill] sm:$0xff] %v16217_v43  ;;  %v388_v35 = vld [vmem:[%s14985_s22 + $0x340] sm:$0xff]  ;;  %v401_v14 = vld [vmem:[%s14985_s22 + $0x3a8] sm:$0xff] }
 0x182   : > { %v2421_v2 = vpop.f32.mrf.mxu0 }
 0x183   : > { %20876 = vst [vmem:[#allocation169_spill] sm:$0xff] %v16214_v6  ;;  %v2774_v52 = vpop.f32.mrf.mxu1  ;;  %v16219_v58 = vadd.f32 %v2772_v7, %v2420_v3  ;;  %v2422_v38 = vadd.f32 %v2421_v2, %v15674_v28  ;;  %v393_v3 = vld [vmem:[%s14985_s22 + $0x368] sm:$0xff]  ;;  %v408_v7 = vld [vmem:[%s14985_s22 + $0x3e0] sm:$0xff] }
 0x184   : > { %v2425_v34 = vpop.f32.mrf.mxu0  ;;  %3050 = vmatmul.mubr.bf16.gmra.mxu0 %v16210_v24  ;;  %v16245_v24 = vpack.c.bf16 %v393_v3, %v386_v29 }
 0x185   : > { %20878 = vst [vmem:[#allocation171_spill] sm:$0xff] %v16219_v58  ;;  %v2778_v36 = vpop.f32.mrf.mxu1  ;;  %12563 = vmatmul.mubr.msk.bf16.gmra.mxu1 %vm2154_vm0, %v16212_v21  ;;  %v16226_v50 = vadd.f32 %v2774_v52, %v2422_v38  ;;  %v2426_v51 = vadd.f32 %v2425_v34, %v15666_v1  ;;  %3059 = vmatprep.mubr.bf16.mxu0 %v16217_v43  ;;  %v14387_v52 = vld [vmem:[%s20379_s1 + $0x188] ss:$16 sps:$4 sm:$0xff]   ;;  %v14389_v38 = vld [vmem:[%s20379_s1 + $0x18c] ss:$16 sps:$4 sm:$0xff]  }
 0x186   : > { %3412 = vmatprep.mubr.bf16.mxu1 %v20841_v49  ;;  %v2427_v0 = vpop.f32.mrf.mxu0  ;;  %20881 = vst [vmem:[#allocation174_spill] sm:$0xff] %v16245_v24  ;;  %3685 = vmatprep.subr.bf16.mxu0 %v14389_v38 }
 0x187   : > { %20879 = vst [vmem:[#allocation172_spill] sm:$0xff] %v16226_v50  ;;  %v2780_v56 = vpop.f32.mrf.mxu1  ;;  %v16236_v2 = vadd.f32 %v2778_v36, %v2426_v51  ;;  %v2428_v21 = vadd.f32 %v2427_v0, %v15674_v28  ;;  %v16247_v50 = vpack.c.bf16 %v395_v22, %v388_v35  ;;  %v16252_v51 = vpack.c.bf16 %v408_v7, %v401_v14  ;;  %v14392_v0 = vld [vmem:[%s20379_s1 + $0x38c] ss:$16 sps:$4 sm:$0xff]  }
 0x188   : > { %v2429_v34 = vpop.f32.mrf.mxu0  ;;  %3686 = vmatpush2.bf16.msra.mxu0 %v14387_v52  ;;  %4038 = vmatprep.subr.bf16.mxu1 %v14392_v0  ;;  %v409_v52 = vld [vmem:[%s14985_s22 + $0x3e8] sm:$0xff]  ;;  %v422_v0 = vld [vmem:[%s14985_s22 + $0x450] sm:$0xff] }
 0x189   : > { %20880 = vst [vmem:[#allocation173_spill] sm:$0xff] %v16236_v2  ;;  %v2782_v43 = vpop.f32.mrf.mxu1  ;;  %20882 = vst [vmem:[#allocation175_spill] sm:$0xff] %v16247_v50  ;;  %v16249_v58 = vadd.f32 %v2780_v56, %v2428_v21  ;;  %v2430_v36 = vadd.f32 %v2429_v34, %v15666_v1  ;;  %v14390_v21 = vld [vmem:[%s20379_s1 + $0x388] ss:$16 sps:$4 sm:$0xff]   ;;  %v400_v56 = vld [vmem:[%s14985_s22 + $0x3a0] sm:$0xff] }
 0x18a   : > { %20884 = vst [vmem:[#allocation177_spill] sm:$0xff] %v16252_v51  ;;  %v2431_v2 = vpop.f32.mrf.mxu0  ;;  %4039 = vmatpush2.bf16.msra.mxu1 %v14390_v21 }
 0x18b   : > { %20883 = vst [vmem:[#allocation176_spill] sm:$0xff] %v16249_v58  ;;  %v2784_v6 = vpop.f32.mrf.mxu1  ;;  %v16260_v29 = vadd.f32 %v2782_v43, %v2430_v36  ;;  %v2432_v3 = vadd.f32 %v2431_v2, %v15674_v28  ;;  %v407_v43 = vld [vmem:[%s14985_s22 + $0x3d8] sm:$0xff]  ;;  %v402_v2 = vld [vmem:[%s14985_s22 + $0x3b0] sm:$0xff] }
 0x18c   : > { %v2435_v35 = vpop.f32.mrf.mxu0  ;;  %3060 = vmatmul.mubr.bf16.gmra.mxu0 %v16245_v24  ;;  %v415_v36 = vld [vmem:[%s14985_s22 + $0x418] sm:$0xff] }
 0x18d   : > { %20885 = vst [vmem:[#allocation178_spill] sm:$0xff] %v16260_v29  ;;  %v2788_v22 = vpop.f32.mrf.mxu1  ;;  %12564 = vmatmul.mubr.msk.bf16.gmra.mxu1 %vm2154_vm0, %v16247_v50  ;;  %v16267_v14 = vadd.f32 %v2784_v6, %v2432_v3  ;;  %v2436_v7 = vadd.f32 %v2435_v35, %v15666_v1  ;;  %3069 = vmatprep.mubr.bf16.mxu0 %v16252_v51 }
 0x18e   : > { %3422 = vmatprep.mubr.bf16.mxu1 %v20841_v49  ;;  %v2437_v38 = vpop.f32.mrf.mxu0  ;;  %v16280_v35 = vpack.c.bf16 %v407_v43, %v400_v56  ;;  %v16282_v51 = vpack.c.bf16 %v409_v52, %v402_v2  ;;  %v16287_v58 = vpack.c.bf16 %v422_v0, %v415_v36  ;;  %v423_v36 = vld [vmem:[%s14985_s22 + $0x458] sm:$0xff] }
 0x18f   : > { %20886 = vst [vmem:[#allocation179_spill] sm:$0xff] %v16267_v14  ;;  %v2790_v34 = vpop.f32.mrf.mxu1  ;;  %v16277_v24 = vadd.f32 %v2788_v22, %v2436_v7  ;;  %v2438_v50 = vadd.f32 %v2437_v38, %v15674_v28 }
 0x190   : > { %v2439_v6 = vpop.f32.mrf.mxu0  ;;  %20888 = vst [vmem:[#allocation181_spill] sm:$0xff] %v16280_v35  ;;  %20889 = vst [vmem:[#allocation182_spill] sm:$0xff] %v16282_v51 }
 0x191   : > { %20887 = vst [vmem:[#allocation180_spill] sm:$0xff] %v16277_v24  ;;  %v2792_v3 = vpop.f32.mrf.mxu1  ;;  %v16284_v14 = vadd.f32 %v2790_v34, %v2438_v50  ;;  %v2440_v29 = vadd.f32 %v2439_v6, %v15666_v1  ;;  %20891 = vst [vmem:[#allocation184_spill] sm:$0xff] %v16287_v58  ;;  %v414_v50 = vld [vmem:[%s14985_s22 + $0x410] sm:$0xff]  ;;  %v416_v34 = vld [vmem:[%s14985_s22 + $0x420] sm:$0xff] }
 0x192   : > { %v2441_v21 = vpop.f32.mrf.mxu0  ;;  %v450_v24 = vld [vmem:[%s14985_s22 + $0x530] sm:$0xff] }
 0x193   : > { %20890 = vst [vmem:[#allocation183_spill] sm:$0xff] %v16284_v14  ;;  %v2794_v22 = vpop.f32.mrf.mxu1  ;;  %v16289_v7 = vadd.f32 %v2792_v3, %v2440_v29  ;;  %v2442_v38 = vadd.f32 %v2441_v21, %v15674_v28  ;;  %v421_v29 = vld [vmem:[%s14985_s22 + $0x448] sm:$0xff]  ;;  %v436_v21 = vld [vmem:[%s14985_s22 + $0x4c0] sm:$0xff] }
 0x194   : > { %v2445_v56 = vpop.f32.mrf.mxu0  ;;  %3070 = vmatmul.mubr.bf16.gmra.mxu0 %v16280_v35  ;;  %v429_v3 = vld [vmem:[%s14985_s22 + $0x488] sm:$0xff] }
 0x195   : > { %20892 = vst [vmem:[#allocation185_spill] sm:$0xff] %v16289_v7  ;;  %v2798_v43 = vpop.f32.mrf.mxu1  ;;  %12565 = vmatmul.mubr.msk.bf16.gmra.mxu1 %vm2154_vm0, %v16282_v51  ;;  %v16296_v2 = vadd.f32 %v2794_v22, %v2442_v38  ;;  %v2446_v52 = vadd.f32 %v2445_v56, %v15666_v1  ;;  %3079 = vmatprep.mubr.bf16.mxu0 %v16287_v58 }
 0x196   : > { %3432 = vmatprep.mubr.bf16.mxu1 %v20841_v49  ;;  %v2447_v0 = vpop.f32.mrf.mxu0  ;;  %v16309_v38 = vpack.c.bf16 %v421_v29, %v414_v50  ;;  %v16311_v56 = vpack.c.bf16 %v423_v36, %v416_v34  ;;  %v16316_v14 = vpack.c.bf16 %v436_v21, %v429_v3  ;;  %v14393_v50 = vld [vmem:[%s20379_s1 + $0x168] ss:$16 sps:$4 sm:$0xff]   ;;  %v14398_v34 = vld [vmem:[%s20379_s1 + $0x36c] ss:$16 sps:$4 sm:$0xff]  }
 0x197   : > { %20893 = vst [vmem:[#allocation186_spill] sm:$0xff] %v16296_v2  ;;  %v2800_v6 = vpop.f32.mrf.mxu1  ;;  %v16306_v35 = vadd.f32 %v2798_v43, %v2446_v52  ;;  %v2448_v51 = vadd.f32 %v2447_v0, %v15674_v28  ;;  %v14395_v43 = vld [vmem:[%s20379_s1 + $0x16c] ss:$16 sps:$4 sm:$0xff]   ;;  %4040 = vmatprep.subr.bf16.mxu1 %v14398_v34 }
 0x198   : > { %v2449_v7 = vpop.f32.mrf.mxu0  ;;  %20895 = vst [vmem:[#allocation188_spill] sm:$0xff] %v16309_v38  ;;  %20896 = vst [vmem:[#allocation189_spill] sm:$0xff] %v16311_v56  ;;  %3687 = vmatprep.subr.bf16.mxu0 %v14395_v43  ;;  %v435_v21 = vld [vmem:[%s14985_s22 + $0x4b8] sm:$0xff]  ;;  %v437_v43 = vld [vmem:[%s14985_s22 + $0x4c8] sm:$0xff] }
 0x199   : > { %20894 = vst [vmem:[#allocation187_spill] sm:$0xff] %v16306_v35  ;;  %v2802_v22 = vpop.f32.mrf.mxu1  ;;  %v16313_v58 = vadd.f32 %v2800_v6, %v2448_v51  ;;  %v2450_v2 = vadd.f32 %v2449_v7, %v15666_v1  ;;  %20898 = vst [vmem:[#allocation191_spill] sm:$0xff] %v16316_v14  ;;  %v14396_v7 = vld [vmem:[%s20379_s1 + $0x368] ss:$16 sps:$4 sm:$0xff]   ;;  %3688 = vmatpush2.bf16.msra.mxu0 %v14393_v50 }
 0x19a   : > { %v2451_v52 = vpop.f32.mrf.mxu0  ;;  %4041 = vmatpush2.bf16.msra.mxu1 %v14396_v7 }
 0x19b   : > { %20897 = vst [vmem:[#allocation190_spill] sm:$0xff] %v16313_v58  ;;  %v2804_v35 = vpop.f32.mrf.mxu1  ;;  %v16324_v29 = vadd.f32 %v2802_v22, %v2450_v2  ;;  %v2452_v51 = vadd.f32 %v2451_v52, %v15674_v28  ;;  %v428_v2 = vld [vmem:[%s14985_s22 + $0x480] sm:$0xff]  ;;  %v430_v22 = vld [vmem:[%s14985_s22 + $0x490] sm:$0xff]  ;;  %v443_v58 = vld [vmem:[%s14985_s22 + $0x4f8] sm:$0xff] }
 0x19c   : > { %v2455_v36 = vpop.f32.mrf.mxu0  ;;  %3080 = vmatmul.mubr.bf16.gmra.mxu0 %v16309_v38  ;;  %v16357_v50 = vpack.c.bf16 %v450_v24, %v443_v58  ;;  %v444_v58 = vld [vmem:[%s14985_s22 + $0x500] sm:$0xff] }
 0x19d   : > { %20899 = vst [vmem:[#allocation192_spill] sm:$0xff] %v16324_v29  ;;  %v2808_v0 = vpop.f32.mrf.mxu1  ;;  %12566 = vmatmul.mubr.msk.bf16.gmra.mxu1 %vm2154_vm0, %v16311_v56  ;;  %v16337_v6 = vadd.f32 %v2804_v35, %v2452_v51  ;;  %v2456_v3 = vadd.f32 %v2455_v36, %v15666_v1  ;;  %3089 = vmatprep.mubr.bf16.mxu0 %v16316_v14 }
 0x19e   : > { %3442 = vmatprep.mubr.bf16.mxu1 %v20841_v49  ;;  %v2457_v52 = vpop.f32.mrf.mxu0  ;;  %v16350_v14 = vpack.c.bf16 %v435_v21, %v428_v2  ;;  %v16352_v56 = vpack.c.bf16 %v437_v43, %v430_v22  ;;  %20905 = vst [vmem:[#allocation198_spill] sm:$0xff] %v16357_v50  ;;  %v451_v43 = vld [vmem:[%s14985_s22 + $0x538] sm:$0xff] }
 0x19f   : > { %20900 = vst [vmem:[#allocation193_spill] sm:$0xff] %v16337_v6  ;;  %v2810_v29 = vpop.f32.mrf.mxu1  ;;  %v16347_v38 = vadd.f32 %v2808_v0, %v2456_v3  ;;  %v2458_v35 = vadd.f32 %v2457_v52, %v15674_v28 }
 0x1a0   : > { %v2459_v51 = vpop.f32.mrf.mxu0  ;;  %20902 = vst [vmem:[#allocation195_spill] sm:$0xff] %v16350_v14  ;;  %20903 = vst [vmem:[#allocation196_spill] sm:$0xff] %v16352_v56 }
 0x1a1   : > { %20901 = vst [vmem:[#allocation194_spill] sm:$0xff] %v16347_v38  ;;  %v2812_v36 = vpop.f32.mrf.mxu1  ;;  %v16354_v6 = vadd.f32 %v2810_v29, %v2458_v35  ;;  %v2460_v60 = vadd.f32 %v2459_v51, %v15666_v1  ;;  %v442_v29 = vld [vmem:[%s14985_s22 + $0x4f0] sm:$0xff]  ;;  %v457_v51 = vld [vmem:[%s14985_s22 + $0x568] sm:$0xff] }
 0x1a2   : > { %v2461_v34 = vpop.f32.mrf.mxu0 }
 0x1a3   : > { %20904 = vst [vmem:[#allocation197_spill] sm:$0xff] %v16354_v6  ;;  %v2814_v0 = vpop.f32.mrf.mxu1  ;;  %v16359_v3 = vadd.f32 %v2812_v36, %v2460_v60  ;;  %v2462_v7 = vadd.f32 %v2461_v34, %v15674_v28  ;;  %v449_v60 = vld [vmem:[%s14985_s22 + $0x528] sm:$0xff]  ;;  %v464_v36 = vld [vmem:[%s14985_s22 + $0x5a0] sm:$0xff]  ;;  %v478_v6 = vld [vmem:[%s14985_s22 + $0x610] sm:$0xff] }
 0x1a4   : > { %v2465_v2 = vpop.f32.mrf.mxu0  ;;  %3090 = vmatmul.mubr.bf16.gmra.mxu0 %v16350_v14 }
 0x1a5   : > { %20906 = vst [vmem:[#allocation199_spill] sm:$0xff] %v16359_v3  ;;  %v2818_v21 = vpop.f32.mrf.mxu1  ;;  %12567 = vmatmul.mubr.msk.bf16.gmra.mxu1 %vm2154_vm0, %v16352_v56  ;;  %v16366_v22 = vadd.f32 %v2814_v0, %v2462_v7  ;;  %v2466_v24 = vadd.f32 %v2465_v2, %v15666_v1  ;;  %3099 = vmatprep.mubr.bf16.mxu0 %v16357_v50 }
 0x1a6   : > { %3452 = vmatprep.mubr.bf16.mxu1 %v20841_v49  ;;  %v2467_v52 = vpop.f32.mrf.mxu0  ;;  %v16379_v7 = vpack.c.bf16 %v449_v60, %v442_v29  ;;  %v16381_v2 = vpack.c.bf16 %v451_v43, %v444_v58  ;;  %v16386_v3 = vpack.c.bf16 %v464_v36, %v457_v51  ;;  %v14399_v29 = vld [vmem:[%s20379_s1 + $0x148] ss:$16 sps:$4 sm:$0xff]   ;;  %v14404_v58 = vld [vmem:[%s20379_s1 + $0x34c] ss:$16 sps:$4 sm:$0xff]  }
 0x1a7   : > { %20907 = vst [vmem:[#allocation200_spill] sm:$0xff] %v16366_v22  ;;  %v2820_v35 = vpop.f32.mrf.mxu1  ;;  %v16376_v34 = vadd.f32 %v2818_v21, %v2466_v24  ;;  %v2468_v56 = vadd.f32 %v2467_v52, %v15674_v28  ;;  %v14401_v21 = vld [vmem:[%s20379_s1 + $0x14c] ss:$16 sps:$4 sm:$0xff]   ;;  %4042 = vmatprep.subr.bf16.mxu1 %v14404_v58 }
 0x1a8   : > { %v2469_v14 = vpop.f32.mrf.mxu0  ;;  %20909 = vst [vmem:[#allocation202_spill] sm:$0xff] %v16379_v7  ;;  %20910 = vst [vmem:[#allocation203_spill] sm:$0xff] %v16381_v2  ;;  %3689 = vmatprep.subr.bf16.mxu0 %v14401_v21  ;;  %v463_v36 = vld [vmem:[%s14985_s22 + $0x598] sm:$0xff]  ;;  %v465_v21 = vld [vmem:[%s14985_s22 + $0x5a8] sm:$0xff] }
 0x1a9   : > { %20908 = vst [vmem:[#allocation201_spill] sm:$0xff] %v16376_v34  ;;  %v2822_v0 = vpop.f32.mrf.mxu1  ;;  %v16383_v50 = vadd.f32 %v2820_v35, %v2468_v56  ;;  %v2470_v22 = vadd.f32 %v2469_v14, %v15666_v1  ;;  %20912 = vst [vmem:[#allocation205_spill] sm:$0xff] %v16386_v3  ;;  %v14402_v14 = vld [vmem:[%s20379_s1 + $0x348] ss:$16 sps:$4 sm:$0xff]   ;;  %3690 = vmatpush2.bf16.msra.mxu0 %v14399_v29 }
 0x1aa   : > { %v2471_v24 = vpop.f32.mrf.mxu0  ;;  %4043 = vmatpush2.bf16.msra.mxu1 %v14402_v14 }
 0x1ab   : > { %20911 = vst [vmem:[#allocation204_spill] sm:$0xff] %v16383_v50  ;;  %v2824_v34 = vpop.f32.mrf.mxu1  ;;  %v16394_v60 = vadd.f32 %v2822_v0, %v2470_v22  ;;  %v2472_v56 = vadd.f32 %v2471_v24, %v15674_v28  ;;  %v456_v22 = vld [vmem:[%s14985_s22 + $0x560] sm:$0xff]  ;;  %v458_v0 = vld [vmem:[%s14985_s22 + $0x570] sm:$0xff]  ;;  %v471_v50 = vld [vmem:[%s14985_s22 + $0x5d8] sm:$0xff] }
 0x1ac   : > { %v2475_v43 = vpop.f32.mrf.mxu0  ;;  %3100 = vmatmul.mubr.bf16.gmra.mxu0 %v16379_v7  ;;  %v16427_v29 = vpack.c.bf16 %v478_v6, %v471_v50  ;;  %v472_v50 = vld [vmem:[%s14985_s22 + $0x5e0] sm:$0xff] }
 0x1ad   : > { %20913 = vst [vmem:[#allocation206_spill] sm:$0xff] %v16394_v60  ;;  %v2828_v52 = vpop.f32.mrf.mxu1  ;;  %12568 = vmatmul.mubr.msk.bf16.gmra.mxu1 %vm2154_vm0, %v16381_v2  ;;  %v16407_v35 = vadd.f32 %v2824_v34, %v2472_v56  ;;  %v2476_v51 = vadd.f32 %v2475_v43, %v15666_v1  ;;  %3109 = vmatprep.mubr.bf16.mxu0 %v16386_v3 }
 0x1ae   : > { %3462 = vmatprep.mubr.bf16.mxu1 %v20841_v49  ;;  %v2477_v24 = vpop.f32.mrf.mxu0  ;;  %v16420_v3 = vpack.c.bf16 %v463_v36, %v456_v22  ;;  %v16422_v2 = vpack.c.bf16 %v465_v21, %v458_v0  ;;  %20919 = vst [vmem:[#allocation212_spill] sm:$0xff] %v16427_v29  ;;  %v479_v21 = vld [vmem:[%s14985_s22 + $0x618] sm:$0xff] }
 0x1af   : > { %20914 = vst [vmem:[#allocation207_spill] sm:$0xff] %v16407_v35  ;;  %v2830_v60 = vpop.f32.mrf.mxu1  ;;  %v16417_v7 = vadd.f32 %v2828_v52, %v2476_v51  ;;  %v2478_v34 = vadd.f32 %v2477_v24, %v15674_v28 }
 0x1b0   : > { %v2479_v56 = vpop.f32.mrf.mxu0  ;;  %20916 = vst [vmem:[#allocation209_spill] sm:$0xff] %v16420_v3  ;;  %20917 = vst [vmem:[#allocation210_spill] sm:$0xff] %v16422_v2 }
 0x1b1   : > { %20915 = vst [vmem:[#allocation208_spill] sm:$0xff] %v16417_v7  ;;  %v2832_v43 = vpop.f32.mrf.mxu1  ;;  %v16424_v35 = vadd.f32 %v2830_v60, %v2478_v34  ;;  %v2480_v38 = vadd.f32 %v2479_v56, %v15666_v1  ;;  %v470_v60 = vld [vmem:[%s14985_s22 + $0x5d0] sm:$0xff]  ;;  %v485_v56 = vld [vmem:[%s14985_s22 + $0x648] sm:$0xff] }
 0x1b2   : > { %v2481_v58 = vpop.f32.mrf.mxu0 }
 0x1b3   : > { %20918 = vst [vmem:[#allocation211_spill] sm:$0xff] %v16424_v35  ;;  %v2834_v52 = vpop.f32.mrf.mxu1  ;;  %v16429_v51 = vadd.f32 %v2832_v43, %v2480_v38  ;;  %v2482_v14 = vadd.f32 %v2481_v58, %v15674_v28  ;;  %v477_v38 = vld [vmem:[%s14985_s22 + $0x608] sm:$0xff]  ;;  %v492_v43 = vld [vmem:[%s14985_s22 + $0x680] sm:$0xff]  ;;  %v506_v35 = vld [vmem:[%s14985_s22 + $0x6f0] sm:$0xff] }
 0x1b4   : > { %v2485_v22 = vpop.f32.mrf.mxu0  ;;  %3110 = vmatmul.mubr.bf16.gmra.mxu0 %v16420_v3 }
 0x1b5   : > { %20920 = vst [vmem:[#allocation213_spill] sm:$0xff] %v16429_v51  ;;  %v2838_v36 = vpop.f32.mrf.mxu1  ;;  %12569 = vmatmul.mubr.msk.bf16.gmra.mxu1 %vm2154_vm0, %v16422_v2  ;;  %v16436_v0 = vadd.f32 %v2834_v52, %v2482_v14  ;;  %v2486_v6 = vadd.f32 %v2485_v22, %v15666_v1  ;;  %3119 = vmatprep.mubr.bf16.mxu0 %v16427_v29 }
 0x1b6   : > { %3472 = vmatprep.mubr.bf16.mxu1 %v20841_v49  ;;  %v2487_v24 = vpop.f32.mrf.mxu0  ;;  %v16449_v14 = vpack.c.bf16 %v477_v38, %v470_v60  ;;  %v16451_v22 = vpack.c.bf16 %v479_v21, %v472_v50  ;;  %v16456_v51 = vpack.c.bf16 %v492_v43, %v485_v56  ;;  %v14405_v60 = vld [vmem:[%s20379_s1 + $0x128] ss:$16 sps:$4 sm:$0xff]   ;;  %v14410_v50 = vld [vmem:[%s20379_s1 + $0x32c] ss:$16 sps:$4 sm:$0xff]  }
 0x1b7   : > { %20921 = vst [vmem:[#allocation214_spill] sm:$0xff] %v16436_v0  ;;  %v2840_v34 = vpop.f32.mrf.mxu1  ;;  %v16446_v58 = vadd.f32 %v2838_v36, %v2486_v6  ;;  %v2488_v2 = vadd.f32 %v2487_v24, %v15674_v28  ;;  %v14407_v36 = vld [vmem:[%s20379_s1 + $0x12c] ss:$16 sps:$4 sm:$0xff]   ;;  %4044 = vmatprep.subr.bf16.mxu1 %v14410_v50 }
 0x1b8   : > { %v2489_v3 = vpop.f32.mrf.mxu0  ;;  %20923 = vst [vmem:[#allocation216_spill] sm:$0xff] %v16449_v14  ;;  %20924 = vst [vmem:[#allocation217_spill] sm:$0xff] %v16451_v22  ;;  %3691 = vmatprep.subr.bf16.mxu0 %v14407_v36  ;;  %v491_v43 = vld [vmem:[%s14985_s22 + $0x678] sm:$0xff]  ;;  %v493_v36 = vld [vmem:[%s14985_s22 + $0x688] sm:$0xff] }
 0x1b9   : > { %20922 = vst [vmem:[#allocation215_spill] sm:$0xff] %v16446_v58  ;;  %v2842_v52 = vpop.f32.mrf.mxu1  ;;  %v16453_v29 = vadd.f32 %v2840_v34, %v2488_v2  ;;  %v2490_v0 = vadd.f32 %v2489_v3, %v15666_v1  ;;  %20926 = vst [vmem:[#allocation219_spill] sm:$0xff] %v16456_v51  ;;  %v14408_v3 = vld [vmem:[%s20379_s1 + $0x328] ss:$16 sps:$4 sm:$0xff]   ;;  %3692 = vmatpush2.bf16.msra.mxu0 %v14405_v60 }
 0x1ba   : > { %v2491_v6 = vpop.f32.mrf.mxu0  ;;  %4045 = vmatpush2.bf16.msra.mxu1 %v14408_v3 }
 0x1bb   : > { %20925 = vst [vmem:[#allocation218_spill] sm:$0xff] %v16453_v29  ;;  %v2844_v58 = vpop.f32.mrf.mxu1  ;;  %v16464_v38 = vadd.f32 %v2842_v52, %v2490_v0  ;;  %v2492_v2 = vadd.f32 %v2491_v6, %v15674_v28  ;;  %v484_v0 = vld [vmem:[%s14985_s22 + $0x640] sm:$0xff]  ;;  %v486_v52 = vld [vmem:[%s14985_s22 + $0x650] sm:$0xff]  ;;  %v499_v29 = vld [vmem:[%s14985_s22 + $0x6b8] sm:$0xff] }
 0x1bc   : > { %v2495_v21 = vpop.f32.mrf.mxu0  ;;  %3120 = vmatmul.mubr.bf16.gmra.mxu0 %v16449_v14  ;;  %v16497_v60 = vpack.c.bf16 %v506_v35, %v499_v29  ;;  %v500_v29 = vld [vmem:[%s14985_s22 + $0x6c0] sm:$0xff] }
 0x1bd   : > { %20927 = vst [vmem:[#allocation220_spill] sm:$0xff] %v16464_v38  ;;  %v2848_v24 = vpop.f32.mrf.mxu1  ;;  %12570 = vmatmul.mubr.msk.bf16.gmra.mxu1 %vm2154_vm0, %v16451_v22  ;;  %v16477_v34 = vadd.f32 %v2844_v58, %v2492_v2  ;;  %v2496_v56 = vadd.f32 %v2495_v21, %v15666_v1  ;;  %3129 = vmatprep.mubr.bf16.mxu0 %v16456_v51 }
 0x1be   : > { %3482 = vmatprep.mubr.bf16.mxu1 %v20841_v49  ;;  %v2497_v6 = vpop.f32.mrf.mxu0  ;;  %v16490_v51 = vpack.c.bf16 %v491_v43, %v484_v0  ;;  %v16492_v22 = vpack.c.bf16 %v493_v36, %v486_v52  ;;  %20933 = vst [vmem:[#allocation226_spill] sm:$0xff] %v16497_v60  ;;  %v507_v36 = vld [vmem:[%s14985_s22 + $0x6f8] sm:$0xff] }
 0x1bf   : > { %20928 = vst [vmem:[#allocation221_spill] sm:$0xff] %v16477_v34  ;;  %v2850_v38 = vpop.f32.mrf.mxu1  ;;  %v16487_v14 = vadd.f32 %v2848_v24, %v2496_v56  ;;  %v2498_v58 = vadd.f32 %v2497_v6, %v15674_v28 }
 0x1c0   : > { %v2499_v2 = vpop.f32.mrf.mxu0  ;;  %20930 = vst [vmem:[#allocation223_spill] sm:$0xff] %v16490_v51  ;;  %20931 = vst [vmem:[#allocation224_spill] sm:$0xff] %v16492_v22 }
 0x1c1   : > { %20929 = vst [vmem:[#allocation222_spill] sm:$0xff] %v16487_v14  ;;  %v2852_v21 = vpop.f32.mrf.mxu1  ;;  %v16494_v34 = vadd.f32 %v2850_v38, %v2498_v58  ;;  %v2500_v7 = vadd.f32 %v2499_v2, %v15666_v1  ;;  %v498_v38 = vld [vmem:[%s14985_s22 + $0x6b0] sm:$0xff]  ;;  %v513_v2 = vld [vmem:[%s14985_s22 + $0x728] sm:$0xff] }
 0x1c2   : > { %v2501_v50 = vpop.f32.mrf.mxu0 }
 0x1c3   : > { %20932 = vst [vmem:[#allocation225_spill] sm:$0xff] %v16494_v34  ;;  %v2854_v24 = vpop.f32.mrf.mxu1  ;;  %v16499_v56 = vadd.f32 %v2852_v21, %v2500_v7  ;;  %v2502_v3 = vadd.f32 %v2501_v50, %v15674_v28  ;;  %v505_v7 = vld [vmem:[%s14985_s22 + $0x6e8] sm:$0xff]  ;;  %v520_v21 = vld [vmem:[%s14985_s22 + $0x760] sm:$0xff]  ;;  %v534_v34 = vld [vmem:[%s14985_s22 + $0x7d0] sm:$0xff] }
 0x1c4   : > { %v2505_v0 = vpop.f32.mrf.mxu0  ;;  %3130 = vmatmul.mubr.bf16.gmra.mxu0 %v16490_v51 }
 0x1c5   : > { %20934 = vst [vmem:[#allocation227_spill] sm:$0xff] %v16499_v56  ;;  %v2858_v43 = vpop.f32.mrf.mxu1  ;;  %12571 = vmatmul.mubr.msk.bf16.gmra.mxu1 %vm2154_vm0, %v16492_v22  ;;  %v16506_v52 = vadd.f32 %v2854_v24, %v2502_v3  ;;  %v2506_v35 = vadd.f32 %v2505_v0, %v15666_v1  ;;  %3139 = vmatprep.mubr.bf16.mxu0 %v16497_v60 }
 0x1c6   : > { %3492 = vmatprep.mubr.bf16.mxu1 %v20841_v49  ;;  %v2507_v6 = vpop.f32.mrf.mxu0  ;;  %v16519_v3 = vpack.c.bf16 %v505_v7, %v498_v38  ;;  %v16521_v0 = vpack.c.bf16 %v507_v36, %v500_v29  ;;  %v16526_v56 = vpack.c.bf16 %v520_v21, %v513_v2  ;;  %v14411_v38 = vld [vmem:[%s20379_s1 + $0x108] ss:$16 sps:$4 sm:$0xff]   ;;  %v14416_v29 = vld [vmem:[%s20379_s1 + $0x30c] ss:$16 sps:$4 sm:$0xff]  }
 0x1c7   : > { %20935 = vst [vmem:[#allocation228_spill] sm:$0xff] %v16506_v52  ;;  %v2860_v58 = vpop.f32.mrf.mxu1  ;;  %v16516_v50 = vadd.f32 %v2858_v43, %v2506_v35  ;;  %v2508_v22 = vadd.f32 %v2507_v6, %v15674_v28  ;;  %v14413_v43 = vld [vmem:[%s20379_s1 + $0x10c] ss:$16 sps:$4 sm:$0xff]   ;;  %4046 = vmatprep.subr.bf16.mxu1 %v14416_v29 }
 0x1c8   : > { %v2509_v51 = vpop.f32.mrf.mxu0  ;;  %20937 = vst [vmem:[#allocation230_spill] sm:$0xff] %v16519_v3  ;;  %20938 = vst [vmem:[#allocation231_spill] sm:$0xff] %v16521_v0  ;;  %3693 = vmatprep.subr.bf16.mxu0 %v14413_v43  ;;  %v519_v21 = vld [vmem:[%s14985_s22 + $0x758] sm:$0xff]  ;;  %v521_v43 = vld [vmem:[%s14985_s22 + $0x768] sm:$0xff] }
 0x1c9   : > { %20936 = vst [vmem:[#allocation229_spill] sm:$0xff] %v16516_v50  ;;  %v2862_v24 = vpop.f32.mrf.mxu1  ;;  %v16523_v60 = vadd.f32 %v2860_v58, %v2508_v22  ;;  %v2510_v52 = vadd.f32 %v2509_v51, %v15666_v1  ;;  %20940 = vst [vmem:[#allocation233_spill] sm:$0xff] %v16526_v56  ;;  %v14414_v51 = vld [vmem:[%s20379_s1 + $0x308] ss:$16 sps:$4 sm:$0xff]   ;;  %3694 = vmatpush2.bf16.msra.mxu0 %v14411_v38 }
 0x1ca   : > { %v2511_v35 = vpop.f32.mrf.mxu0  ;;  %4047 = vmatpush2.bf16.msra.mxu1 %v14414_v51 }
 0x1cb   : > { %20939 = vst [vmem:[#allocation232_spill] sm:$0xff] %v16523_v60  ;;  %v2864_v50 = vpop.f32.mrf.mxu1  ;;  %v16534_v7 = vadd.f32 %v2862_v24, %v2510_v52  ;;  %v2512_v22 = vadd.f32 %v2511_v35, %v15674_v28  ;;  %v512_v52 = vld [vmem:[%s14985_s22 + $0x720] sm:$0xff]  ;;  %v514_v24 = vld [vmem:[%s14985_s22 + $0x730] sm:$0xff]  ;;  %v527_v60 = vld [vmem:[%s14985_s22 + $0x798] sm:$0xff] }
 0x1cc   : > { %v2515_v36 = vpop.f32.mrf.mxu0  ;;  %3140 = vmatmul.mubr.bf16.gmra.mxu0 %v16519_v3  ;;  %v16567_v38 = vpack.c.bf16 %v534_v34, %v527_v60  ;;  %v528_v60 = vld [vmem:[%s14985_s22 + $0x7a0] sm:$0xff] }
 0x1cd   : > { %20941 = vst [vmem:[#allocation234_spill] sm:$0xff] %v16534_v7  ;;  %v2868_v6 = vpop.f32.mrf.mxu1  ;;  %12572 = vmatmul.mubr.msk.bf16.gmra.mxu1 %vm2154_vm0, %v16521_v0  ;;  %v16547_v58 = vadd.f32 %v2864_v50, %v2512_v22  ;;  %v2516_v2 = vadd.f32 %v2515_v36, %v15666_v1  ;;  %3149 = vmatprep.mubr.bf16.mxu0 %v16526_v56 }
 0x1ce   : > { %3502 = vmatprep.mubr.bf16.mxu1 %v20841_v49  ;;  %v2517_v35 = vpop.f32.mrf.mxu0  ;;  %v16560_v56 = vpack.c.bf16 %v519_v21, %v512_v52  ;;  %v16562_v0 = vpack.c.bf16 %v521_v43, %v514_v24  ;;  %20946 = vst [vmem:[#allocation239_spill] sm:$0xff] %v16567_v38  ;;  %v535_v43 = vld [vmem:[%s14985_s22 + $0x7d8] sm:$0xff] }
 0x1cf   : > { %20942 = vst [vmem:[#allocation235_spill] sm:$0xff] %v16547_v58  ;;  %v2870_v7 = vpop.f32.mrf.mxu1  ;;  %v16557_v3 = vadd.f32 %v2868_v6, %v2516_v2  ;;  %v2518_v50 = vadd.f32 %v2517_v35, %v15674_v28 }
 0x1d0   : > { %v2519_v22 = vpop.f32.mrf.mxu0  ;;  %20943 = vst [vmem:[#allocation236_spill] sm:$0xff] %v16560_v56  ;;  %20944 = vst [vmem:[#allocation237_spill] sm:$0xff] %v16562_v0 }
 0x1d1   : > { %v2872_v36 = vpop.f32.mrf.mxu1  ;;  %v16564_v58 = vadd.f32 %v2870_v7, %v2518_v50  ;;  %v2520_v14 = vadd.f32 %v2519_v22, %v15666_v1  ;;  %v526_v7 = vld [vmem:[%s14985_s22 + $0x790] sm:$0xff]  ;;  %v541_v22 = vld [vmem:[%s14985_s22 + $0x808] sm:$0xff] }
 0x1d2   : > { %v2521_v29 = vpop.f32.mrf.mxu0 }
 0x1d3   : > { %20945 = vst [vmem:[#allocation238_spill] sm:$0xff] %v16564_v58  ;;  %v2874_v6 = vpop.f32.mrf.mxu1  ;;  %v16569_v2 = vadd.f32 %v2872_v36, %v2520_v14  ;;  %v2522_v51 = vadd.f32 %v2521_v29, %v15674_v28  ;;  %v533_v14 = vld [vmem:[%s14985_s22 + $0x7c8] sm:$0xff]  ;;  %v548_v36 = vld [vmem:[%s14985_s22 + $0x840] sm:$0xff] }
 0x1d4   : > { %v2525_v52 = vpop.f32.mrf.mxu0  ;;  %3150 = vmatmul.mubr.bf16.gmra.mxu0 %v16560_v56 }
 0x1d5   : > { %20947 = vst [vmem:[#allocation240_spill] sm:$0xff] %v16569_v2  ;;  %v2878_v21 = vpop.f32.mrf.mxu1  ;;  %12573 = vmatmul.mubr.msk.bf16.gmra.mxu1 %vm2154_vm0, %v16562_v0  ;;  %v16576_v24 = vadd.f32 %v2874_v6, %v2522_v51  ;;  %v2526_v34 = vadd.f32 %v2525_v52, %v15666_v1  ;;  %3159 = vmatprep.mubr.bf16.mxu0 %v16567_v38 }
 0x1d6   : > { %3512 = vmatprep.mubr.bf16.mxu1 %v20841_v49  ;;  %v2527_v35 = vpop.f32.mrf.mxu0  ;;  %v16589_v51 = vpack.c.bf16 %v533_v14, %v526_v7  ;;  %v16591_v52 = vpack.c.bf16 %v535_v43, %v528_v60  ;;  %v16596_v2 = vpack.c.bf16 %v548_v36, %v541_v22  ;;  %v540_v43 = vld [vmem:[%s14985_s22 + $0x800] sm:$0xff]  ;;  %v547_v22 = vld [vmem:[%s14985_s22 + $0x838] sm:$0xff]  ;;  %v542_v36 = vld [vmem:[%s14985_s22 + $0x810] sm:$0xff] }
 0x1d7   : > { %20948 = vst [vmem:[#allocation241_spill] sm:$0xff] %v16576_v24  ;;  %v2880_v50 = vpop.f32.mrf.mxu1  ;;  %v16586_v29 = vadd.f32 %v2878_v21, %v2526_v34  ;;  %v2528_v0 = vadd.f32 %v2527_v35, %v15674_v28  ;;  %v14419_v21 = vld [vmem:[%s20379_s1 + $0x4ec] ss:$16 sps:$4 sm:$0xff]  }
 0x1d8   : > { %v2529_v56 = vpop.f32.mrf.mxu0  ;;  %20950 = vst [vmem:[#allocation243_spill] sm:$0xff] %v16589_v51  ;;  %20951 = vst [vmem:[#allocation244_spill] sm:$0xff] %v16591_v52  ;;  %4369 = vmatprep.subr.bf16.mxu0 %v14419_v21 }
 0x1d9   : > { %20949 = vst [vmem:[#allocation242_spill] sm:$0xff] %v16586_v29  ;;  %v2882_v6 = vpop.f32.mrf.mxu1  ;;  %v16593_v38 = vadd.f32 %v2880_v50, %v2528_v0  ;;  %v2530_v24 = vadd.f32 %v2529_v56, %v15666_v1  ;;  %20953 = vst [vmem:[#allocation246_spill] sm:$0xff] %v16596_v2  ;;  %v14422_v56 = vld [vmem:[%s20379_s1 + $0x60c] ss:$16 sps:$4 sm:$0xff]  }
 0x1da   : > { %v2531_v34 = vpop.f32.mrf.mxu0  ;;  %4736 = vmatprep.subr.bf16.mxu1 %v14422_v56 }
 0x1db   : > { %20952 = vst [vmem:[#allocation245_spill] sm:$0xff] %v16593_v38  ;;  %v2884_v35 = vpop.f32.mrf.mxu1  ;;  %v16601_v7 = vadd.f32 %v2882_v6, %v2530_v24  ;;  %v2532_v14 = vadd.f32 %v2531_v34, %v15674_v28  ;;  %v549_v6 = vld [vmem:[%s14985_s22 + $0x848] sm:$0xff]  ;;  %v562_v38 = vld [vmem:[%s14985_s22 + $0x8b0] sm:$0xff] }
 0x1dc   : > { %v2535_v0 = vpop.f32.mrf.mxu0  ;;  %3160 = vmatmul.mubr.bf16.gmra.mxu0 %v16589_v51 }
 0x1dd   : > { %20954 = vst [vmem:[#allocation247_spill] sm:$0xff] %v16601_v7  ;;  %v2888_v60 = vpop.f32.mrf.mxu1  ;;  %12574 = vmatmul.mubr.msk.bf16.gmra.mxu1 %vm2154_vm0, %v16591_v52  ;;  %v16611_v50 = vadd.f32 %v2884_v35, %v2532_v14  ;;  %v2536_v24 = vadd.f32 %v2535_v0, %v15666_v1  ;;  %3169 = vmatprep.mubr.bf16.mxu0 %v16596_v2  ;;  %v555_v7 = vld [vmem:[%s14985_s22 + $0x878] sm:$0xff] }
 0x1de   : > { %3522 = vmatprep.mubr.bf16.mxu1 %v20841_v49  ;;  %v2537_v21 = vpop.f32.mrf.mxu0  ;;  %v16624_v0 = vpack.c.bf16 %v547_v22, %v540_v43  ;;  %v16626_v2 = vpack.c.bf16 %v549_v6, %v542_v36  ;;  %v16631_v58 = vpack.c.bf16 %v562_v38, %v555_v7  ;;  %v556_v7 = vld [vmem:[%s14985_s22 + $0x880] sm:$0xff]  ;;  %v563_v6 = vld [vmem:[%s14985_s22 + $0x8b8] sm:$0xff] }
 0x1df   : > { %20955 = vst [vmem:[#allocation248_spill] sm:$0xff] %v16611_v50  ;;  %v2890_v34 = vpop.f32.mrf.mxu1  ;;  %v16621_v51 = vadd.f32 %v2888_v60, %v2536_v24  ;;  %v2538_v52 = vadd.f32 %v2537_v21, %v15674_v28 }
 0x1e0   : > { %v2539_v35 = vpop.f32.mrf.mxu0  ;;  %20956 = vst [vmem:[#allocation249_spill] sm:$0xff] %v16624_v0  ;;  %20957 = vst [vmem:[#allocation250_spill] sm:$0xff] %v16626_v2 }
 0x1e1   : > { %v2892_v14 = vpop.f32.mrf.mxu1  ;;  %v16628_v50 = vadd.f32 %v2890_v34, %v2538_v52  ;;  %v2540_v29 = vadd.f32 %v2539_v35, %v15666_v1  ;;  %20959 = vst [vmem:[#allocation252_spill] sm:$0xff] %v16631_v58  ;;  %v554_v52 = vld [vmem:[%s14985_s22 + $0x870] sm:$0xff] }
 0x1e2   : > { %v2541_v56 = vpop.f32.mrf.mxu0 }
 0x1e3   : > { %20958 = vst [vmem:[#allocation251_spill] sm:$0xff] %v16628_v50  ;;  %v2894_v60 = vpop.f32.mrf.mxu1  ;;  %v16633_v24 = vadd.f32 %v2892_v14, %v2540_v29  ;;  %v2542_v21 = vadd.f32 %v2541_v56, %v15674_v28  ;;  %v561_v29 = vld [vmem:[%s14985_s22 + $0x8a8] sm:$0xff]  ;;  %v576_v56 = vld [vmem:[%s14985_s22 + $0x920] sm:$0xff] }
 0x1e4   : > { %v2545_v43 = vpop.f32.mrf.mxu0  ;;  %3170 = vmatmul.mubr.bf16.gmra.mxu0 %v16624_v0  ;;  %v569_v14 = vld [vmem:[%s14985_s22 + $0x8e8] sm:$0xff] }
 0x1e5   : > { %20960 = vst [vmem:[#allocation253_spill] sm:$0xff] %v16633_v24  ;;  %v2898_v22 = vpop.f32.mrf.mxu1  ;;  %12575 = vmatmul.mubr.msk.bf16.gmra.mxu1 %vm2154_vm0, %v16626_v2  ;;  %v16640_v36 = vadd.f32 %v2894_v60, %v2542_v21  ;;  %v2546_v38 = vadd.f32 %v2545_v43, %v15666_v1  ;;  %3179 = vmatprep.mubr.bf16.mxu0 %v16631_v58 }
 0x1e6   : > { %3532 = vmatprep.mubr.bf16.mxu1 %v20841_v49  ;;  %v2547_v34 = vpop.f32.mrf.mxu0  ;;  %v16655_v43 = vpack.c.bf16 %v563_v6, %v556_v7  ;;  %v16660_v50 = vpack.c.bf16 %v576_v56, %v569_v14  ;;  %v577_v14 = vld [vmem:[%s14985_s22 + $0x928] sm:$0xff] }
 0x1e7   : > { %20961 = vst [vmem:[#allocation254_spill] sm:$0xff] %v16640_v36  ;;  %v2900_v35 = vpop.f32.mrf.mxu1  ;;  %v16650_v0 = vadd.f32 %v2898_v22, %v2546_v38  ;;  %v2548_v2 = vadd.f32 %v2547_v34, %v15674_v28  ;;  %v16653_v36 = vpack.c.bf16 %v561_v29, %v554_v52 }
 0x1e8   : > { %v2549_v60 = vpop.f32.mrf.mxu0  ;;  %20964 = vst [vmem:[#allocation257_spill] sm:$0xff] %v16655_v43  ;;  %20966 = vst [vmem:[#allocation259_spill] sm:$0xff] %v16660_v50 }
 0x1e9   : > { %20962 = vst [vmem:[#allocation255_spill] sm:$0xff] %v16650_v0  ;;  %v2902_v21 = vpop.f32.mrf.mxu1  ;;  %20963 = vst [vmem:[#allocation256_spill] sm:$0xff] %v16653_v36  ;;  %v16657_v58 = vadd.f32 %v2900_v35, %v2548_v2  ;;  %v2550_v24 = vadd.f32 %v2549_v60, %v15666_v1  ;;  %v568_v2 = vld [vmem:[%s14985_s22 + $0x8e0] sm:$0xff]  ;;  %v570_v35 = vld [vmem:[%s14985_s22 + $0x8f0] sm:$0xff] }
 0x1ea   : > { %v2551_v22 = vpop.f32.mrf.mxu0 }
 0x1eb   : > { %20965 = vst [vmem:[#allocation258_spill] sm:$0xff] %v16657_v58  ;;  %v2904_v38 = vpop.f32.mrf.mxu1  ;;  %v16662_v0 = vadd.f32 %v2902_v21, %v2550_v24  ;;  %v2552_v34 = vadd.f32 %v2551_v22, %v15674_v28  ;;  %v575_v24 = vld [vmem:[%s14985_s22 + $0x918] sm:$0xff]  ;;  %v590_v22 = vld [vmem:[%s14985_s22 + $0x990] sm:$0xff] }
 0x1ec   : > { %v2555_v52 = vpop.f32.mrf.mxu0  ;;  %3180 = vmatmul.mubr.bf16.gmra.mxu0 %v16653_v36  ;;  %v583_v21 = vld [vmem:[%s14985_s22 + $0x958] sm:$0xff] }
 0x1ed   : > { %20967 = vst [vmem:[#allocation260_spill] sm:$0xff] %v16662_v0  ;;  %v2908_v29 = vpop.f32.mrf.mxu1  ;;  %12576 = vmatmul.mubr.msk.bf16.gmra.mxu1 %vm2154_vm0, %v16655_v43  ;;  %v16669_v7 = vadd.f32 %v2904_v38, %v2552_v34  ;;  %v2556_v6 = vadd.f32 %v2555_v52, %v15666_v1  ;;  %3189 = vmatprep.mubr.bf16.mxu0 %v16660_v50 }
 0x1ee   : > { %3542 = vmatprep.mubr.bf16.mxu1 %v20841_v49  ;;  %v2557_v56 = vpop.f32.mrf.mxu0  ;;  %v16684_v52 = vpack.c.bf16 %v577_v14, %v570_v35  ;;  %v16689_v58 = vpack.c.bf16 %v590_v22, %v583_v21  ;;  %v591_v21 = vld [vmem:[%s14985_s22 + $0x998] sm:$0xff] }
 0x1ef   : > { %20968 = vst [vmem:[#allocation261_spill] sm:$0xff] %v16669_v7  ;;  %v2910_v60 = vpop.f32.mrf.mxu1  ;;  %v16679_v36 = vadd.f32 %v2908_v29, %v2556_v6  ;;  %v2558_v43 = vadd.f32 %v2557_v56, %v15674_v28  ;;  %v16682_v7 = vpack.c.bf16 %v575_v24, %v568_v2 }
 0x1f0   : > { %v2559_v38 = vpop.f32.mrf.mxu0  ;;  %20971 = vst [vmem:[#allocation264_spill] sm:$0xff] %v16684_v52  ;;  %20973 = vst [vmem:[#allocation266_spill] sm:$0xff] %v16689_v58 }
 0x1f1   : > { %20969 = vst [vmem:[#allocation262_spill] sm:$0xff] %v16679_v36  ;;  %v2912_v34 = vpop.f32.mrf.mxu1  ;;  %20970 = vst [vmem:[#allocation263_spill] sm:$0xff] %v16682_v7  ;;  %v16686_v50 = vadd.f32 %v2910_v60, %v2558_v43  ;;  %v2560_v0 = vadd.f32 %v2559_v38, %v15666_v1  ;;  %v582_v43 = vld [vmem:[%s14985_s22 + $0x950] sm:$0xff]  ;;  %v584_v60 = vld [vmem:[%s14985_s22 + $0x960] sm:$0xff] }
 0x1f2   : > { %v2561_v29 = vpop.f32.mrf.mxu0 }
 0x1f3   : > { %20972 = vst [vmem:[#allocation265_spill] sm:$0xff] %v16686_v50  ;;  %v2914_v6 = vpop.f32.mrf.mxu1  ;;  %v16691_v36 = vadd.f32 %v2912_v34, %v2560_v0  ;;  %v2562_v56 = vadd.f32 %v2561_v29, %v15674_v28  ;;  %v589_v0 = vld [vmem:[%s14985_s22 + $0x988] sm:$0xff]  ;;  %v604_v29 = vld [vmem:[%s14985_s22 + $0xa00] sm:$0xff] }
 0x1f4   : > { %v2565_v2 = vpop.f32.mrf.mxu0  ;;  %3190 = vmatmul.mubr.bf16.gmra.mxu0 %v16682_v7  ;;  %v597_v34 = vld [vmem:[%s14985_s22 + $0x9c8] sm:$0xff] }
 0x1f5   : > { %20974 = vst [vmem:[#allocation267_spill] sm:$0xff] %v16691_v36  ;;  %v2918_v24 = vpop.f32.mrf.mxu1  ;;  %12577 = vmatmul.mubr.msk.bf16.gmra.mxu1 %vm2154_vm0, %v16684_v52  ;;  %v16698_v35 = vadd.f32 %v2914_v6, %v2562_v56  ;;  %v2566_v14 = vadd.f32 %v2565_v2, %v15666_v1  ;;  %3199 = vmatprep.mubr.bf16.mxu0 %v16689_v58 }
 0x1f6   : > { %3552 = vmatprep.mubr.bf16.mxu1 %v20841_v49  ;;  %v2567_v22 = vpop.f32.mrf.mxu0  ;;  %v16713_v2 = vpack.c.bf16 %v591_v21, %v584_v60  ;;  %v16718_v50 = vpack.c.bf16 %v604_v29, %v597_v34  ;;  %v605_v34 = vld [vmem:[%s14985_s22 + $0xa08] sm:$0xff] }
 0x1f7   : > { %20975 = vst [vmem:[#allocation268_spill] sm:$0xff] %v16698_v35  ;;  %v2920_v38 = vpop.f32.mrf.mxu1  ;;  %v16708_v7 = vadd.f32 %v2918_v24, %v2566_v14  ;;  %v2568_v52 = vadd.f32 %v2567_v22, %v15674_v28  ;;  %v16711_v35 = vpack.c.bf16 %v589_v0, %v582_v43 }
 0x1f8   : > { %v2569_v6 = vpop.f32.mrf.mxu0  ;;  %20978 = vst [vmem:[#allocation271_spill] sm:$0xff] %v16713_v2  ;;  %20980 = vst [vmem:[#allocation273_spill] sm:$0xff] %v16718_v50 }
 0x1f9   : > { %20976 = vst [vmem:[#allocation269_spill] sm:$0xff] %v16708_v7  ;;  %v2922_v56 = vpop.f32.mrf.mxu1  ;;  %20977 = vst [vmem:[#allocation270_spill] sm:$0xff] %v16711_v35  ;;  %v16715_v58 = vadd.f32 %v2920_v38, %v2568_v52  ;;  %v2570_v36 = vadd.f32 %v2569_v6, %v15666_v1  ;;  %v596_v52 = vld [vmem:[%s14985_s22 + $0x9c0] sm:$0xff]  ;;  %v598_v38 = vld [vmem:[%s14985_s22 + $0x9d0] sm:$0xff] }
 0x1fa   : > { %v2571_v24 = vpop.f32.mrf.mxu0 }
 0x1fb   : > { %20979 = vst [vmem:[#allocation272_spill] sm:$0xff] %v16715_v58  ;;  %v2924_v14 = vpop.f32.mrf.mxu1  ;;  %v16720_v7 = vadd.f32 %v2922_v56, %v2570_v36  ;;  %v2572_v22 = vadd.f32 %v2571_v24, %v15674_v28  ;;  %v603_v36 = vld [vmem:[%s14985_s22 + $0x9f8] sm:$0xff]  ;;  %v618_v24 = vld [vmem:[%s14985_s22 + $0xa70] sm:$0xff] }
 0x1fc   : > { %v2575_v43 = vpop.f32.mrf.mxu0  ;;  %3200 = vmatmul.mubr.bf16.gmra.mxu0 %v16711_v35  ;;  %v611_v56 = vld [vmem:[%s14985_s22 + $0xa38] sm:$0xff] }
 0x1fd   : > { %20981 = vst [vmem:[#allocation274_spill] sm:$0xff] %v16720_v7  ;;  %v2928_v0 = vpop.f32.mrf.mxu1  ;;  %12578 = vmatmul.mubr.msk.bf16.gmra.mxu1 %vm2154_vm0, %v16713_v2  ;;  %v16727_v60 = vadd.f32 %v2924_v14, %v2572_v22  ;;  %v2576_v21 = vadd.f32 %v2575_v43, %v15666_v1  ;;  %3209 = vmatprep.mubr.bf16.mxu0 %v16718_v50 }
 0x1fe   : > { %3562 = vmatprep.mubr.bf16.mxu1 %v20841_v49  ;;  %v2577_v29 = vpop.f32.mrf.mxu0  ;;  %v16742_v43 = vpack.c.bf16 %v605_v34, %v598_v38  ;;  %v16747_v58 = vpack.c.bf16 %v618_v24, %v611_v56  ;;  %v619_v56 = vld [vmem:[%s14985_s22 + $0xa78] sm:$0xff] }
 0x1ff   : > { %20982 = vst [vmem:[#allocation275_spill] sm:$0xff] %v16727_v60  ;;  %v2930_v6 = vpop.f32.mrf.mxu1  ;;  %v16737_v35 = vadd.f32 %v2928_v0, %v2576_v21  ;;  %v2578_v2 = vadd.f32 %v2577_v29, %v15674_v28  ;;  %v16740_v60 = vpack.c.bf16 %v603_v36, %v596_v52 }
 0x200   : > { %v2579_v14 = vpop.f32.mrf.mxu0  ;;  %20985 = vst [vmem:[#allocation278_spill] sm:$0xff] %v16742_v43  ;;  %20987 = vst [vmem:[#allocation280_spill] sm:$0xff] %v16747_v58 }
 0x201   : > { %20983 = vst [vmem:[#allocation276_spill] sm:$0xff] %v16737_v35  ;;  %v2932_v22 = vpop.f32.mrf.mxu1  ;;  %20984 = vst [vmem:[#allocation277_spill] sm:$0xff] %v16740_v60  ;;  %v16744_v50 = vadd.f32 %v2930_v6, %v2578_v2  ;;  %v2580_v7 = vadd.f32 %v2579_v14, %v15666_v1  ;;  %v610_v2 = vld [vmem:[%s14985_s22 + $0xa30] sm:$0xff]  ;;  %v612_v6 = vld [vmem:[%s14985_s22 + $0xa40] sm:$0xff] }
 0x202   : > { %v2581_v0 = vpop.f32.mrf.mxu0 }
 0x203   : > { %20986 = vst [vmem:[#allocation279_spill] sm:$0xff] %v16744_v50  ;;  %v2934_v21 = vpop.f32.mrf.mxu1  ;;  %v16749_v35 = vadd.f32 %v2932_v22, %v2580_v7  ;;  %v2582_v29 = vadd.f32 %v2581_v0, %v15674_v28  ;;  %v617_v7 = vld [vmem:[%s14985_s22 + $0xa68] sm:$0xff]  ;;  %v632_v0 = vld [vmem:[%s14985_s22 + $0xae0] sm:$0xff] }
 0x204   : > { %v2585_v52 = vpop.f32.mrf.mxu0  ;;  %3210 = vmatmul.mubr.bf16.gmra.mxu0 %v16740_v60  ;;  %v625_v22 = vld [vmem:[%s14985_s22 + $0xaa8] sm:$0xff] }
 0x205   : > { %20988 = vst [vmem:[#allocation281_spill] sm:$0xff] %v16749_v35  ;;  %v2938_v36 = vpop.f32.mrf.mxu1  ;;  %12579 = vmatmul.mubr.msk.bf16.gmra.mxu1 %vm2154_vm0, %v16742_v43  ;;  %v16756_v38 = vadd.f32 %v2934_v21, %v2582_v29  ;;  %v2586_v34 = vadd.f32 %v2585_v52, %v15666_v1  ;;  %3219 = vmatprep.mubr.bf16.mxu0 %v16747_v58 }
 0x206   : > { %3572 = vmatprep.mubr.bf16.mxu1 %v20841_v49  ;;  %v2587_v24 = vpop.f32.mrf.mxu0  ;;  %v16771_v52 = vpack.c.bf16 %v619_v56, %v612_v6  ;;  %v16776_v50 = vpack.c.bf16 %v632_v0, %v625_v22  ;;  %v633_v22 = vld [vmem:[%s14985_s22 + $0xae8] sm:$0xff] }
 0x207   : > { %20989 = vst [vmem:[#allocation282_spill] sm:$0xff] %v16756_v38  ;;  %v2940_v14 = vpop.f32.mrf.mxu1  ;;  %v16766_v60 = vadd.f32 %v2938_v36, %v2586_v34  ;;  %v2588_v43 = vadd.f32 %v2587_v24, %v15674_v28  ;;  %v16769_v38 = vpack.c.bf16 %v617_v7, %v610_v2 }
 0x208   : > { %v2589_v21 = vpop.f32.mrf.mxu0  ;;  %20992 = vst [vmem:[#allocation285_spill] sm:$0xff] %v16771_v52  ;;  %20994 = vst [vmem:[#allocation287_spill] sm:$0xff] %v16776_v50 }
 0x209   : > { %20990 = vst [vmem:[#allocation283_spill] sm:$0xff] %v16766_v60  ;;  %v2942_v29 = vpop.f32.mrf.mxu1  ;;  %20991 = vst [vmem:[#allocation284_spill] sm:$0xff] %v16769_v38  ;;  %v16773_v58 = vadd.f32 %v2940_v14, %v2588_v43  ;;  %v2590_v35 = vadd.f32 %v2589_v21, %v15666_v1  ;;  %v624_v43 = vld [vmem:[%s14985_s22 + $0xaa0] sm:$0xff]  ;;  %v626_v14 = vld [vmem:[%s14985_s22 + $0xab0] sm:$0xff] }
 0x20a   : > { %v2591_v36 = vpop.f32.mrf.mxu0 }
 0x20b   : > { %20993 = vst [vmem:[#allocation286_spill] sm:$0xff] %v16773_v58  ;;  %v2944_v34 = vpop.f32.mrf.mxu1  ;;  %v16778_v60 = vadd.f32 %v2942_v29, %v2590_v35  ;;  %v2592_v24 = vadd.f32 %v2591_v36, %v15674_v28  ;;  %v631_v35 = vld [vmem:[%s14985_s22 + $0xad8] sm:$0xff]  ;;  %v646_v36 = vld [vmem:[%s14985_s22 + $0xb50] sm:$0xff] }
 0x20c   : > { %v2595_v2 = vpop.f32.mrf.mxu0  ;;  %3220 = vmatmul.mubr.bf16.gmra.mxu0 %v16769_v38  ;;  %v639_v29 = vld [vmem:[%s14985_s22 + $0xb18] sm:$0xff] }
 0x20d   : > { %20995 = vst [vmem:[#allocation288_spill] sm:$0xff] %v16778_v60  ;;  %v2948_v7 = vpop.f32.mrf.mxu1  ;;  %12580 = vmatmul.mubr.msk.bf16.gmra.mxu1 %vm2154_vm0, %v16771_v52  ;;  %v16785_v6 = vadd.f32 %v2944_v34, %v2592_v24  ;;  %v2596_v56 = vadd.f32 %v2595_v2, %v15666_v1  ;;  %3229 = vmatprep.mubr.bf16.mxu0 %v16776_v50 }
 0x20e   : > { %3582 = vmatprep.mubr.bf16.mxu1 %v20841_v49  ;;  %v2597_v0 = vpop.f32.mrf.mxu0  ;;  %v16800_v2 = vpack.c.bf16 %v633_v22, %v626_v14  ;;  %v16805_v58 = vpack.c.bf16 %v646_v36, %v639_v29  ;;  %v640_v22 = vld [vmem:[%s14985_s22 + $0xb20] sm:$0xff]  ;;  %v653_v36 = vld [vmem:[%s14985_s22 + $0xb88] sm:$0xff] }
 0x20f   : > { %20996 = vst [vmem:[#allocation289_spill] sm:$0xff] %v16785_v6  ;;  %v2950_v21 = vpop.f32.mrf.mxu1  ;;  %v16795_v38 = vadd.f32 %v2948_v7, %v2596_v56  ;;  %v2598_v52 = vadd.f32 %v2597_v0, %v15674_v28  ;;  %v16798_v6 = vpack.c.bf16 %v631_v35, %v624_v43 }
 0x210   : > { %v2599_v34 = vpop.f32.mrf.mxu0  ;;  %20999 = vst [vmem:[#allocation292_spill] sm:$0xff] %v16800_v2  ;;  %21001 = vst [vmem:[#allocation294_spill] sm:$0xff] %v16805_v58 }
 0x211   : > { %20997 = vst [vmem:[#allocation290_spill] sm:$0xff] %v16795_v38  ;;  %v2952_v24 = vpop.f32.mrf.mxu1  ;;  %20998 = vst [vmem:[#allocation291_spill] sm:$0xff] %v16798_v6  ;;  %v16802_v50 = vadd.f32 %v2950_v21, %v2598_v52  ;;  %v2600_v60 = vadd.f32 %v2599_v34, %v15666_v1  ;;  %v638_v1 = vld [vmem:[%s14985_s22 + $0xb10] sm:$0xff]  ;;  %v660_v34 = vld [vmem:[%s14985_s22 + $0xbc0] sm:$0xff] }
 0x212   : > { %v2601_v7 = vpop.f32.mrf.mxu0 }
 0x213   : > { %21000 = vst [vmem:[#allocation293_spill] sm:$0xff] %v16802_v50  ;;  %v2954_v56 = vpop.f32.mrf.mxu1  ;;  %v16807_v38 = vadd.f32 %v2952_v24, %v2600_v60  ;;  %v2602_v0 = vadd.f32 %v2601_v7, %v15674_v28  ;;  %v645_v60 = vld [vmem:[%s14985_s22 + $0xb48] sm:$0xff]  ;;  %v647_v28 = vld [vmem:[%s14985_s22 + $0xb58] sm:$0xff] }
 0x214   : > { %v2991_v43 = vpop.f32.mrf.mxu0  ;;  %3230 = vmatmul.mubr.bf16.gmra.mxu0 %v16798_v6  ;;  %v16830_v6 = vpack.c.bf16 %v660_v34, %v653_v36  ;;  %v667_v34 = vld [vmem:[%s14985_s22 + $0xbf8] sm:$0xff] }
 0x215   : > { %21002 = vst [vmem:[#allocation295_spill] sm:$0xff] %v16807_v38  ;;  %v3344_v52 = vpop.f32.mrf.mxu1  ;;  %12581 = vmatmul.mubr.msk.bf16.gmra.mxu1 %vm2154_vm0, %v16800_v2  ;;  %v16814_v35 = vadd.f32 %v2954_v56, %v2602_v0  ;;  %v2992_v14 = vadd.f32 %v2991_v43, %v15689_v55  ;;  %3239 = vmatprep.mubr.bf16.mxu0 %v16805_v58 }
 0x216   : > { %3592 = vmatprep.mubr.bf16.mxu1 %v20841_v49  ;;  %v2993_v21 = vpop.f32.mrf.mxu0  ;;  %v16825_v0 = vpack.c.bf16 %v645_v60, %v638_v1  ;;  %v16827_v55 = vpack.c.bf16 %v647_v28, %v640_v22  ;;  %21006 = vst [vmem:[#allocation299_spill] sm:$0xff] %v16830_v6 }
 0x217   : > { %21003 = vst [vmem:[#allocation296_spill] sm:$0xff] %v16814_v35  ;;  %v3346_v29 = vpop.f32.mrf.mxu1  ;;  %v3345_v24 = vadd.f32 %v3344_v52, %v2992_v14  ;;  %v2994_v7 = vadd.f32 %v2993_v21, %v15696_v37 }
 0x218   : > { %v2995_v2 = vpop.f32.mrf.mxu0  ;;  %21004 = vst [vmem:[#allocation297_spill] sm:$0xff] %v16825_v0  ;;  %21005 = vst [vmem:[#allocation298_spill] sm:$0xff] %v16827_v55 }
 0x219   : > { %v3348_v56 = vpop.f32.mrf.mxu1  ;;  %v3347_v43 = vadd.f32 %v3346_v29, %v2994_v7  ;;  %v2996_v58 = vadd.f32 %v2995_v2, %v15703_v10  ;;  %v652_v10 = vld [vmem:[%s14985_s22 + $0xb80] sm:$0xff]  ;;  %v5075_v2 = vmax.f32 %v3345_v24, 0.0  ;;  %v674_v7 = vld [vmem:[%s14985_s22 + $0xc30] sm:$0xff] }
 0x21a   : > { %v2997_v35 = vpop.f32.mrf.mxu0 }
 0x21b   : > { %v3350_v38 = vpop.f32.mrf.mxu1  ;;  %v3349_v52 = vadd.f32 %v3348_v56, %v2996_v58  ;;  %v2998_v37 = vadd.f32 %v2997_v35, %v15716_v9  ;;  %v659_v9 = vld [vmem:[%s14985_s22 + $0xbb8] sm:$0xff]  ;;  %v654_v58 = vld [vmem:[%s14985_s22 + $0xb90] sm:$0xff]  ;;  %v661_v35 = vld [vmem:[%s14985_s22 + $0xbc8] sm:$0xff]  ;;  %v5076_v21 = vmax.f32 %v3347_v43, 0.0 }
 0x21c   : > { %v3001_v14 = vpop.f32.mrf.mxu0  ;;  %3240 = vmatmul.mubr.bf16.gmra.mxu0 %v16825_v0  ;;  %v16853_v0 = vpack.c.bf16 %v674_v7, %v667_v34  ;;  %v681_v7 = vld [vmem:[%s14985_s22 + $0xc68] sm:$0xff] }
 0x21d   : > { %v3354_v1 = vpop.f32.mrf.mxu1  ;;  %12582 = vmatmul.mubr.msk.bf16.gmra.mxu1 %vm2154_vm0, %v16827_v55  ;;  %v5079_v60 = vmax.f32 %v3349_v52, 0.0  ;;  %v3351_v22 = vadd.f32 %v3350_v38, %v2998_v37  ;;  %v3002_v28 = vadd.f32 %v3001_v14, %v15721_v32  ;;  %3249 = vmatprep.mubr.bf16.mxu0 %v16830_v6  ;;  %v16848_v37 = vpack.c.bf16 %v659_v9, %v652_v10 }
 0x21e   : > { %3602 = vmatprep.mubr.bf16.mxu1 %v20841_v49  ;;  %v3003_v29 = vpop.f32.mrf.mxu0  ;;  %v16850_v14 = vpack.c.bf16 %v661_v35, %v654_v58  ;;  %v668_v35 = vld [vmem:[%s14985_s22 + $0xc00] sm:$0xff] }
 0x21f   : > { %v3356_v36 = vpop.f32.mrf.mxu1  ;;  %v16845_v56 = vpack.c.bf16 %v5079_v60, %v5075_v2  ;;  %v5080_v55 = vmax.f32 %v3351_v22, 0.0  ;;  %v3355_v24 = vadd.f32 %v3354_v1, %v3002_v28  ;;  %v3004_v38 = vadd.f32 %v3003_v29, %v15728_v57 }
 0x220   : > { %v3005_v52 = vpop.f32.mrf.mxu0 }
 0x221   : > { %21007 = vst [vmem:[#allocation300_spill] sm:$0xff] %v16845_v56  ;;  %v3358_v32 = vpop.f32.mrf.mxu1  ;;  %v3357_v6 = vadd.f32 %v3356_v36, %v3004_v38  ;;  %v3006_v43 = vadd.f32 %v3005_v52, %v15735_v45  ;;  %v16855_v50 = vpack.c.bf16 %v5080_v55, %v5076_v21  ;;  %v666_v45 = vld [vmem:[%s14985_s22 + $0xbf0] sm:$0xff]  ;;  %v5083_v55 = vmax.f32 %v3355_v24, 0.0  ;;  %v675_v21 = vld [vmem:[%s14985_s22 + $0xc38] sm:$0xff]  ;;  %v688_v38 = vld [vmem:[%s14985_s22 + $0xca0] sm:$0xff] }
 0x222   : > { %v3007_v2 = vpop.f32.mrf.mxu0 }
 0x223   : > { %21008 = vst [vmem:[#allocation301_spill] sm:$0xff] %v16855_v50  ;;  %v3360_v1 = vpop.f32.mrf.mxu1  ;;  %v3359_v57 = vadd.f32 %v3358_v32, %v3006_v43  ;;  %v3008_v60 = vadd.f32 %v3007_v2, %v15743_v30  ;;  %v673_v30 = vld [vmem:[%s14985_s22 + $0xc28] sm:$0xff]  ;;  %v5084_v29 = vmax.f32 %v3357_v6, 0.0 }
 0x224   : > { %v3011_v22 = vpop.f32.mrf.mxu0  ;;  %3250 = vmatmul.mubr.bf16.gmra.mxu0 %v16848_v37 }
 0x225   : > { %v3364_v10 = vpop.f32.mrf.mxu1  ;;  %12583 = vmatmul.mubr.msk.bf16.gmra.mxu1 %vm2154_vm0, %v16850_v14  ;;  %v5087_v28 = vmax.f32 %v3359_v57, 0.0  ;;  %v3361_v9 = vadd.f32 %v3360_v1, %v3008_v60  ;;  %v3012_v58 = vadd.f32 %v3011_v22, %v15753_v44  ;;  %3259 = vmatprep.mubr.bf16.mxu0 %v16853_v0  ;;  %v16873_v1 = vpack.c.bf16 %v673_v30, %v666_v45 }
 0x226   : > { %3612 = vmatprep.mubr.bf16.mxu1 %v20841_v49  ;;  %v3013_v36 = vpop.f32.mrf.mxu0  ;;  %v16875_v57 = vpack.c.bf16 %v675_v21, %v668_v35  ;;  %v16878_v22 = vpack.c.bf16 %v688_v38, %v681_v7 }
 0x227   : > { %v3366_v34 = vpop.f32.mrf.mxu1  ;;  %v16870_v52 = vpack.c.bf16 %v5087_v28, %v5083_v55  ;;  %v5088_v32 = vmax.f32 %v3361_v9, 0.0  ;;  %v3365_v24 = vadd.f32 %v3364_v10, %v3012_v58  ;;  %v3014_v43 = vadd.f32 %v3013_v36, %v15760_v4  ;;  %v689_v36 = vld [vmem:[%s14985_s22 + $0xca8] sm:$0xff] }
 0x228   : > { %v3015_v2 = vpop.f32.mrf.mxu0 }
 0x229   : > { %21009 = vst [vmem:[#allocation302_spill] sm:$0xff] %v16870_v52  ;;  %v3368_v44 = vpop.f32.mrf.mxu1  ;;  %v3367_v60 = vadd.f32 %v3366_v34, %v3014_v43  ;;  %v3016_v6 = vadd.f32 %v3015_v2, %v15767_v48  ;;  %v16880_v56 = vpack.c.bf16 %v5088_v32, %v5084_v29  ;;  %v680_v48 = vld [vmem:[%s14985_s22 + $0xc60] sm:$0xff]  ;;  %v5091_v58 = vmax.f32 %v3365_v24, 0.0  ;;  %v682_v29 = vld [vmem:[%s14985_s22 + $0xc70] sm:$0xff]  ;;  %v695_v32 = vld [vmem:[%s14985_s22 + $0xcd8] sm:$0xff] }
 0x22a   : > { %v3017_v55 = vpop.f32.mrf.mxu0  ;;  %v702_v43 = vld [vmem:[%s14985_s22 + $0xd10] sm:$0xff] }
 0x22b   : > { %21010 = vst [vmem:[#allocation303_spill] sm:$0xff] %v16880_v56  ;;  %v3370_v10 = vpop.f32.mrf.mxu1  ;;  %v3369_v4 = vadd.f32 %v3368_v44, %v3016_v6  ;;  %v3018_v28 = vadd.f32 %v3017_v55, %v15774_v47  ;;  %v687_v47 = vld [vmem:[%s14985_s22 + $0xc98] sm:$0xff]  ;;  %v5092_v34 = vmax.f32 %v3367_v60, 0.0  ;;  %v21294_v56 = vld [vmem:[#allocation132_spill] sm:$0xff] }
 0x22c   : > { %v3021_v9 = vpop.f32.mrf.mxu0  ;;  %3260 = vmatmul.mubr.bf16.gmra.mxu0 %v16873_v1 }
 0x22d   : > { %v3374_v45 = vpop.f32.mrf.mxu1  ;;  %12584 = vmatmul.mubr.msk.bf16.gmra.mxu1 %vm2154_vm0, %v16875_v57  ;;  %v5095_v30 = vmax.f32 %v3369_v4, 0.0  ;;  %v3371_v35 = vadd.f32 %v3370_v10, %v3018_v28  ;;  %v3022_v21 = vadd.f32 %v3021_v9, %v15785_v15  ;;  %3269 = vmatprep.mubr.bf16.mxu0 %v16878_v22  ;;  %v16898_v10 = vpack.c.bf16 %v687_v47, %v680_v48 }
 0x22e   : > { %3622 = vmatprep.mubr.bf16.mxu1 %v20841_v49  ;;  %v3023_v7 = vpop.f32.mrf.mxu0  ;;  %v16900_v4 = vpack.c.bf16 %v689_v36, %v682_v29  ;;  %v16903_v9 = vpack.c.bf16 %v702_v43, %v695_v32 }
 0x22f   : > { %v3376_v38 = vpop.f32.mrf.mxu1  ;;  %v16895_v2 = vpack.c.bf16 %v5095_v30, %v5091_v58  ;;  %v5096_v44 = vmax.f32 %v3371_v35, 0.0  ;;  %v3375_v24 = vadd.f32 %v3374_v45, %v3022_v21  ;;  %v3024_v6 = vadd.f32 %v3023_v7, %v15792_v18  ;;  %v703_v7 = vld [vmem:[%s14985_s22 + $0xd18] sm:$0xff] }
 0x230   : > { %v3025_v55 = vpop.f32.mrf.mxu0 }
 0x231   : > { %21011 = vst [vmem:[#allocation304_spill] sm:$0xff] %v16895_v2  ;;  %v3378_v15 = vpop.f32.mrf.mxu1  ;;  %v3377_v28 = vadd.f32 %v3376_v38, %v3024_v6  ;;  %v3026_v60 = vadd.f32 %v3025_v55, %v15799_v39  ;;  %v16905_v52 = vpack.c.bf16 %v5096_v44, %v5092_v34  ;;  %v694_v39 = vld [vmem:[%s14985_s22 + $0xcd0] sm:$0xff]  ;;  %v5099_v21 = vmax.f32 %v3375_v24, 0.0  ;;  %v696_v34 = vld [vmem:[%s14985_s22 + $0xce0] sm:$0xff]  ;;  %v709_v44 = vld [vmem:[%s14985_s22 + $0xd48] sm:$0xff] }
 0x232   : > { %v3027_v58 = vpop.f32.mrf.mxu0  ;;  %v716_v6 = vld [vmem:[%s14985_s22 + $0xd80] sm:$0xff] }
 0x233   : > { %21012 = vst [vmem:[#allocation305_spill] sm:$0xff] %v16905_v52  ;;  %v3380_v45 = vpop.f32.mrf.mxu1  ;;  %v3379_v18 = vadd.f32 %v3378_v15, %v3026_v60  ;;  %v3028_v30 = vadd.f32 %v3027_v58, %v15806_v27  ;;  %v701_v27 = vld [vmem:[%s14985_s22 + $0xd08] sm:$0xff]  ;;  %v5100_v38 = vmax.f32 %v3377_v28, 0.0 }
 0x234   : > { %v3031_v35 = vpop.f32.mrf.mxu0  ;;  %3270 = vmatmul.mubr.bf16.gmra.mxu0 %v16898_v10 }
 0x235   : > { %v3384_v48 = vpop.f32.mrf.mxu1  ;;  %12585 = vmatmul.mubr.msk.bf16.gmra.mxu1 %vm2154_vm0, %v16900_v4  ;;  %v5103_v47 = vmax.f32 %v3379_v18, 0.0  ;;  %v3381_v29 = vadd.f32 %v3380_v45, %v3028_v30  ;;  %v3032_v36 = vadd.f32 %v3031_v35, %v15817_v61  ;;  %3279 = vmatprep.mubr.bf16.mxu0 %v16903_v9  ;;  %v16923_v45 = vpack.c.bf16 %v701_v27, %v694_v39 }
 0x236   : > { %3632 = vmatprep.mubr.bf16.mxu1 %v20841_v49  ;;  %v3033_v32 = vpop.f32.mrf.mxu0  ;;  %v16925_v18 = vpack.c.bf16 %v703_v7, %v696_v34  ;;  %v16928_v35 = vpack.c.bf16 %v716_v6, %v709_v44 }
 0x237   : > { %v3386_v43 = vpop.f32.mrf.mxu1  ;;  %v16920_v55 = vpack.c.bf16 %v5103_v47, %v5099_v21  ;;  %v5104_v15 = vmax.f32 %v3381_v29, 0.0  ;;  %v3385_v24 = vadd.f32 %v3384_v48, %v3032_v36  ;;  %v3034_v60 = vadd.f32 %v3033_v32, %v15824_v62  ;;  %v717_v32 = vld [vmem:[%s14985_s22 + $0xd88] sm:$0xff] }
 0x238   : > { %v3035_v58 = vpop.f32.mrf.mxu0 }
 0x239   : > { %21013 = vst [vmem:[#allocation306_spill] sm:$0xff] %v16920_v55  ;;  %v3388_v61 = vpop.f32.mrf.mxu1  ;;  %v3387_v30 = vadd.f32 %v3386_v43, %v3034_v60  ;;  %v3036_v28 = vadd.f32 %v3035_v58, %v15831_v8  ;;  %v16930_v2 = vpack.c.bf16 %v5104_v15, %v5100_v38  ;;  %v708_v8 = vld [vmem:[%s14985_s22 + $0xd40] sm:$0xff]  ;;  %v5107_v36 = vmax.f32 %v3385_v24, 0.0  ;;  %v710_v38 = vld [vmem:[%s14985_s22 + $0xd50] sm:$0xff]  ;;  %v723_v15 = vld [vmem:[%s14985_s22 + $0xdb8] sm:$0xff] }
 0x23a   : > { %v3037_v21 = vpop.f32.mrf.mxu0  ;;  %v730_v60 = vld [vmem:[%s14985_s22 + $0xdf0] sm:$0xff] }
 0x23b   : > { %21014 = vst [vmem:[#allocation307_spill] sm:$0xff] %v16930_v2  ;;  %v3390_v48 = vpop.f32.mrf.mxu1  ;;  %v3389_v62 = vadd.f32 %v3388_v61, %v3036_v28  ;;  %v3038_v47 = vadd.f32 %v3037_v21, %v15838_v26  ;;  %v715_v26 = vld [vmem:[%s14985_s22 + $0xd78] sm:$0xff]  ;;  %v5108_v43 = vmax.f32 %v3387_v30, 0.0 }
 0x23c   : > { %v3041_v29 = vpop.f32.mrf.mxu0  ;;  %3280 = vmatmul.mubr.bf16.gmra.mxu0 %v16923_v45 }
 0x23d   : > { %v3394_v39 = vpop.f32.mrf.mxu1  ;;  %12586 = vmatmul.mubr.msk.bf16.gmra.mxu1 %vm2154_vm0, %v16925_v18  ;;  %v5111_v27 = vmax.f32 %v3389_v62, 0.0  ;;  %v3391_v34 = vadd.f32 %v3390_v48, %v3038_v47  ;;  %v3042_v7 = vadd.f32 %v3041_v29, %v15849_v41  ;;  %3289 = vmatprep.mubr.bf16.mxu0 %v16928_v35  ;;  %v16948_v48 = vpack.c.bf16 %v715_v26, %v708_v8 }
 0x23e   : > { %3642 = vmatprep.mubr.bf16.mxu1 %v20841_v49  ;;  %v3043_v44 = vpop.f32.mrf.mxu0  ;;  %v16950_v62 = vpack.c.bf16 %v717_v32, %v710_v38  ;;  %v16953_v29 = vpack.c.bf16 %v730_v60, %v723_v15 }
 0x23f   : > { %v3396_v6 = vpop.f32.mrf.mxu1  ;;  %v16945_v58 = vpack.c.bf16 %v5111_v27, %v5107_v36  ;;  %v5112_v61 = vmax.f32 %v3391_v34, 0.0  ;;  %v3395_v24 = vadd.f32 %v3394_v39, %v3042_v7  ;;  %v3044_v28 = vadd.f32 %v3043_v44, %v15856_v42  ;;  %v724_v44 = vld [vmem:[%s14985_s22 + $0xdc0] sm:$0xff] }
 0x240   : > { %v3045_v21 = vpop.f32.mrf.mxu0 }
 0x241   : > { %21015 = vst [vmem:[#allocation308_spill] sm:$0xff] %v16945_v58  ;;  %v3398_v41 = vpop.f32.mrf.mxu1  ;;  %v3397_v47 = vadd.f32 %v3396_v6, %v3044_v28  ;;  %v3046_v30 = vadd.f32 %v3045_v21, %v15863_v46  ;;  %v16955_v55 = vpack.c.bf16 %v5112_v61, %v5108_v43  ;;  %v722_v46 = vld [vmem:[%s14985_s22 + $0xdb0] sm:$0xff]  ;;  %v5115_v7 = vmax.f32 %v3395_v24, 0.0  ;;  %v729_v43 = vld [vmem:[%s14985_s22 + $0xde8] sm:$0xff] }
 0x242   : > { %v3047_v36 = vpop.f32.mrf.mxu0 }
 0x243   : > { %21016 = vst [vmem:[#allocation309_spill] sm:$0xff] %v16955_v55  ;;  %v3400_v39 = vpop.f32.mrf.mxu1  ;;  %v3399_v42 = vadd.f32 %v3398_v41, %v3046_v30  ;;  %v3048_v27 = vadd.f32 %v3047_v36, %v15869_v12  ;;  %v731_v12 = vld [vmem:[%s14985_s22 + $0xdf8] sm:$0xff]  ;;  %v5116_v6 = vmax.f32 %v3397_v47, 0.0  ;;  %v16971_v36 = vpack.c.bf16 %v729_v43, %v722_v46  ;;  %s272_s22 = sand.u32 1, %s14747_s25  }
 0x244   : > { %v3051_v34 = vpop.f32.mrf.mxu0  ;;  %3290 = vmatmul.mubr.bf16.gmra.mxu0 %v16948_v48  ;;  %s12358_s18 = sshll.u32 %s272_s22, 8  ;;  %s20338_s23 = scalar_lea.sflag [#allocation4], %s272_s22 }
 0x245   : > { %v3404_v8 = vpop.f32.mrf.mxu1  ;;  %12587 = vmatmul.mubr.msk.bf16.gmra.mxu1 %vm2154_vm0, %v16950_v62  ;;  %v5119_v26 = vmax.f32 %v3399_v42, 0.0  ;;  %v3401_v38 = vadd.f32 %v3400_v39, %v3048_v27  ;;  %v3052_v32 = vadd.f32 %v3051_v34, %v15879_v19  ;;  %3299 = vmatprep.mubr.bf16.mxu0 %v16953_v29  ;;  %21018 = vst [vmem:[#allocation311_spill] sm:$0xff] %v16971_v36  ;;  %s20175_s15 = scalar_lea.vmem [#allocation3], %s12358_s18 }
 0x246   : > { %3652 = vmatprep.mubr.bf16.mxu1 %v20841_v49  ;;  %v3053_v15 = vpop.f32.mrf.mxu0  ;;  %v16973_v19 = vpack.c.bf16 %v731_v12, %v724_v44  ;;  %s12292_s29 = sshll.u32 %s20175_s15, 4  ;;  %s20333_s29 = int_to_ptr.vmem [resolvable:$true] %s12292_s29 }
 0x247   : > { %v3406_v60 = vpop.f32.mrf.mxu1  ;;  %v16968_v61 = vpack.c.bf16 %v5119_v26, %v5115_v7  ;;  %v5120_v28 = vmax.f32 %v3401_v38, 0.0  ;;  %v3405_v21 = vadd.f32 %v3404_v8, %v3052_v32  ;;  %v3054_v24 = vadd.f32 %v3053_v15, %v15886_v25  ;;  %s14695_s28 = scalar_lea.vmem %s20333_s29, 4096  ;;  %p14702_p0 = scmp.lt.s32.totalorder %s20333_s29, %s14700_s16 }
 0x248   : > { %v3055_v41 = vpop.f32.mrf.mxu0  ;;  %21019 = vst [vmem:[#allocation312_spill] sm:$0xff] %v16973_v19  ;;  %p14696_p11 = scmp.ne.s32.totalorder %s20333_s29, %s14695_s28  ;;  %p14703_p1 = scmp.lt.s32.totalorder %s14701_s17, %s14695_s28 }
 0x249   : > { %21017 = vst [vmem:[#allocation310_spill] sm:$0xff] %v16968_v61  ;;  %v3408_v30 = vpop.f32.mrf.mxu1  ;;  %v3407_v39 = vadd.f32 %v3406_v60, %v3054_v24  ;;  %v3056_v42 = vadd.f32 %v3055_v41, %v15891_v11  ;;  %v16976_v27 = vpack.c.bf16 %v5120_v28, %v5116_v6  ;;  %v5123_v8 = vmax.f32 %v3405_v21, 0.0 }
 0x24a   : > { %v3057_v47 = vpop.f32.mrf.mxu0  ;;  %p14697_p12 = pnand %p14696_p11, %p14839_p5  ;;  %p14704_p2 = por %p14703_p1, %p14702_p0 }
 0x24b   : > { %21020 = vst [vmem:[#allocation313_spill] sm:$0xff] %v16976_v27  ;;  %v3410_v34 = vpop.f32.mrf.mxu1  ;;  %v3409_v58 = vadd.f32 %v3408_v30, %v3056_v42  ;;  %v3058_v7 = vadd.f32 %v3057_v47, %v15897_v40  ;;  %v5124_v11 = vmax.f32 %v3407_v39, 0.0  ;;  %v14425_v39 = vld [vmem:[%s20379_s1 + $0x4cc] ss:$16 sps:$4 sm:$0xff]  }
 0x24c   : > { %v3061_v26 = vpop.f32.mrf.mxu0  ;;  %3300 = vmatmul.mubr.bf16.gmra.mxu0 %v16971_v36  ;;  %p14698_p13 = pneg %p14697_p12 }
 0x24d   : > { %v3414_v25 = vpop.f32.mrf.mxu1  ;;  %12588 = vmatmul.mubr.msk.bf16.gmra.mxu1 %vm2154_vm0, %v16973_v19  ;;  %v5127_v46 = vmax.f32 %v3409_v58, 0.0  ;;  %v3411_v38 = vadd.f32 %v3410_v34, %v3058_v7  ;;  %v3062_v32 = vadd.f32 %v3061_v26, %v15905_v31  ;;  %3695 = vmatprep.mubr.bf16.mxu0 %v15006_v53  ;;  %v14417_v53 = vld [vmem:[%s20379_s1 + $0x4e8] ss:$16 sps:$4 sm:$0xff]  }
 0x24e   : > { %4048 = vmatprep.mubr.bf16.mxu1 %v15008_v54  ;;  %v3063_v43 = vpop.f32.mrf.mxu0  ;;  %v14420_v54 = vld [vmem:[%s20379_s1 + $0x608] ss:$16 sps:$4 sm:$0xff]   ;;  %p14705_p3 = pnand %p14704_p2, %p14698_p13 }
 0x24f   : > { %v3416_v44 = vpop.f32.mrf.mxu1  ;;  %v16985_v40 = vpack.c.bf16 %v5127_v46, %v5123_v8  ;;  %v5128_v12 = vmax.f32 %v3411_v38, 0.0  ;;  %v3415_v6 = vadd.f32 %v3414_v25, %v3062_v32  ;;  %v3064_v15 = vadd.f32 %v3063_v43, %v15914_v5  ;;  %v21023_v38 = vld [vmem:[#allocation6_spill] sm:$0xff]  ;;  %v21024_v32 = vld [vmem:[#allocation7_spill] sm:$0xff] }
 0x250   : > { %v3065_v60 = vpop.f32.mrf.mxu0 }
 0x251   : > { %21021 = vst [vmem:[#allocation314_spill] sm:$0xff] %v16985_v40  ;;  %v3418_v28 = vpop.f32.mrf.mxu1  ;;  %v3417_v21 = vadd.f32 %v3416_v44, %v3064_v15  ;;  %v3066_v58 = vadd.f32 %v3065_v60, %v15925_v59  ;;  %v16995_v31 = vpack.c.bf16 %v5128_v12, %v5124_v11  ;;  %v5131_v47 = vmax.f32 %v3415_v6, 0.0  ;;  %v21026_v15 = vld [vmem:[#allocation138_spill] sm:$0xff] }
 0x252   : > { %v3067_v24 = vpop.f32.mrf.mxu0 }
 0x253   : > { %21022 = vst [vmem:[#allocation315_spill] sm:$0xff] %v16995_v31  ;;  %v3420_v41 = vpop.f32.mrf.mxu1  ;;  %v3419_v30 = vadd.f32 %v3418_v28, %v3066_v58  ;;  %v3068_v5 = vadd.f32 %v3067_v24, %v15941_v63  ;;  %v14423_v63 = vld [vmem:[%s20379_s1 + $0x4c8] ss:$16 sps:$4 sm:$0xff]   ;;  %v5132_v25 = vmax.f32 %v3417_v21, 0.0 }
 0x254   : > { %v3071_v59 = vpop.f32.mrf.mxu0  ;;  %3696 = vmatmul.mubr.bf16.vlgmr.msra.gmra.mxu0 %v15071_v16  ;;  %v14428_v16 = vld [vmem:[%s20379_s1 + $0x4ac] ss:$16 sps:$4 sm:$0xff]  }
 0x255   : > { %v3424_v42 = vpop.f32.mrf.mxu1  ;;  %4049 = vmatmul.mubr.bf16.vlgmr.msra.gmra.mxu1 %v15073_v17  ;;  %v5135_v34 = vmax.f32 %v3419_v30, 0.0  ;;  %v3421_v7 = vadd.f32 %v3420_v41, %v3068_v5  ;;  %v3072_v26 = vadd.f32 %v3071_v59, %v15960_v13  ;;  %4370 = vmatpush1.bf16.msra.mxu0 %v14417_v53  ;;  %v14426_v53 = vld [vmem:[%s20379_s1 + $0x4a8] ss:$16 sps:$4 sm:$0xff]  }
 0x256   : > { %4737 = vmatpush1.bf16.msra.mxu1 %v14420_v54  ;;  %v3073_v8 = vpop.f32.mrf.mxu0  ;;  %3705 = vmatprep.mubr.bf16.mxu0 %v21023_v38  ;;  %v21028_v24 = vld [vmem:[#allocation139_spill] sm:$0xff]  ;;  %v21030_v59 = vld [vmem:[#allocation9_spill] sm:$0xff] }
 0x257   : > { %v3426_v46 = vpop.f32.mrf.mxu1  ;;  %4058 = vmatprep.mubr.bf16.mxu1 %v21024_v32  ;;  %v17012_v17 = vpack.c.bf16 %v5135_v34, %v5131_v47  ;;  %v5136_v13 = vmax.f32 %v3421_v7, 0.0  ;;  %v3425_v11 = vadd.f32 %v3424_v42, %v3072_v26  ;;  %v3074_v43 = vadd.f32 %v3073_v8, %v15967_v33  ;;  %4371 = vmatprep.subr.bf16.mxu0 %v14425_v39  ;;  %v14431_v33 = vld [vmem:[%s20379_s1 + $0x48c] ss:$16 sps:$4 sm:$0xff]   ;;  %v21029_v39 = vld [vmem:[#allocation8_spill] sm:$0xff]  ;;  %v14429_v32 = vld [vmem:[%s20379_s1 + $0x488] ss:$16 sps:$4 sm:$0xff]  }
 0x258   : > { %v3075_v44 = vpop.f32.mrf.mxu0  ;;  %v21031_v7 = vld [vmem:[#allocation140_spill] sm:$0xff] }
 0x259   : > { %21025 = vst [vmem:[#allocation6_spill] sm:$0xff] %v17012_v17  ;;  %v3428_v12 = vpop.f32.mrf.mxu1  ;;  %v3427_v6 = vadd.f32 %v3426_v46, %v3074_v43  ;;  %v3076_v60 = vadd.f32 %v3075_v44, %v21026_v15  ;;  %4372 = vmatpush1.bf16.msra.mxu0 %v14423_v63  ;;  %v17016_v28 = vpack.c.bf16 %v5136_v13, %v5132_v25  ;;  %v5139_v42 = vmax.f32 %v3425_v11, 0.0  ;;  %v21032_v63 = vld [vmem:[#allocation10_spill] sm:$0xff]  ;;  %v21033_v25 = vld [vmem:[#allocation11_spill] sm:$0xff] }
 0x25a   : > { %v3077_v21 = vpop.f32.mrf.mxu0  ;;  %4373 = vmatprep.subr.bf16.mxu0 %v14428_v16  ;;  %v21035_v43 = vld [vmem:[#allocation143_spill] sm:$0xff] }
 0x25b   : > { %21027 = vst [vmem:[#allocation7_spill] sm:$0xff] %v17016_v28  ;;  %v3430_v58 = vpop.f32.mrf.mxu1  ;;  %v3429_v54 = vadd.f32 %v3428_v12, %v3076_v60  ;;  %v3078_v41 = vadd.f32 %v3077_v21, %v21028_v24  ;;  %v5140_v8 = vmax.f32 %v3427_v6, 0.0  ;;  %v14434_v12 = vld [vmem:[%s20379_s1 + $0x46c] ss:$16 sps:$4 sm:$0xff]  }
 0x25c   : > { %v3081_v30 = vpop.f32.mrf.mxu0  ;;  %3706 = vmatmul.mubr.bf16.gmra.mxu0 %v21029_v39  ;;  %v21036_v21 = vld [vmem:[#allocation145_spill] sm:$0xff] }
 0x25d   : > { %v3434_v5 = vpop.f32.mrf.mxu1  ;;  %4059 = vmatmul.mubr.bf16.gmra.mxu1 %v21030_v59  ;;  %v5143_v47 = vmax.f32 %v3429_v54, 0.0  ;;  %v3431_v34 = vadd.f32 %v3430_v58, %v3078_v41  ;;  %v3082_v26 = vadd.f32 %v3081_v30, %v21031_v7  ;;  %3715 = vmatprep.mubr.bf16.mxu0 %v21032_v63  ;;  %v14432_v41 = vld [vmem:[%s20379_s1 + $0x468] ss:$16 sps:$4 sm:$0xff]   ;;  %v14437_v39 = vld [vmem:[%s20379_s1 + $0x44c] ss:$16 sps:$4 sm:$0xff]  }
 0x25e   : > { %4068 = vmatprep.mubr.bf16.mxu1 %v21033_v25  ;;  %v3083_v46 = vpop.f32.mrf.mxu0  ;;  %4374 = vmatpush1.bf16.msra.mxu0 %v14426_v53  ;;  %v21041_v25 = vld [vmem:[#allocation147_spill] sm:$0xff] }
 0x25f   : > { %v3436_v38 = vpop.f32.mrf.mxu1  ;;  %v17033_v16 = vpack.c.bf16 %v5143_v47, %v5139_v42  ;;  %v5144_v13 = vmax.f32 %v3431_v34, 0.0  ;;  %v3435_v11 = vadd.f32 %v3434_v5, %v3082_v26  ;;  %v3084_v44 = vadd.f32 %v3083_v46, %v21035_v43  ;;  %4375 = vmatprep.subr.bf16.mxu0 %v14431_v33  ;;  %v21038_v33 = vld [vmem:[#allocation146_spill] sm:$0xff]  ;;  %v21039_v47 = vld [vmem:[#allocation12_spill] sm:$0xff]  ;;  %v21040_v34 = vld [vmem:[#allocation13_spill] sm:$0xff] }
 0x260   : > { %v3085_v15 = vpop.f32.mrf.mxu0  ;;  %v21042_v46 = vld [vmem:[#allocation14_spill] sm:$0xff] }
 0x261   : > { %21034 = vst [vmem:[#allocation138_spill] sm:$0xff] %v17033_v16  ;;  %v3438_v6 = vpop.f32.mrf.mxu1  ;;  %v3437_v60 = vadd.f32 %v3436_v38, %v3084_v44  ;;  %v3086_v58 = vadd.f32 %v3085_v15, %v21036_v21  ;;  %v17040_v53 = vpack.c.bf16 %v5144_v13, %v5140_v8  ;;  %v5147_v7 = vmax.f32 %v3435_v11, 0.0  ;;  %v21043_v38 = vld [vmem:[#allocation15_spill] sm:$0xff] }
 0x262   : > { %v3087_v54 = vpop.f32.mrf.mxu0  ;;  %4376 = vmatpush1.bf16.msra.mxu0 %v14429_v32  ;;  %v14435_v44 = vld [vmem:[%s20379_s1 + $0x448] ss:$16 sps:$4 sm:$0xff]  }
 0x263   : > { %21037 = vst [vmem:[#allocation139_spill] sm:$0xff] %v17040_v53  ;;  %v3440_v24 = vpop.f32.mrf.mxu1  ;;  %v3439_v30 = vadd.f32 %v3438_v6, %v3086_v58  ;;  %v3088_v5 = vadd.f32 %v3087_v54, %v21038_v33  ;;  %4377 = vmatprep.subr.bf16.mxu0 %v14434_v12  ;;  %v5148_v32 = vmax.f32 %v3437_v60, 0.0  ;;  %v21045_v6 = vld [vmem:[#allocation150_spill] sm:$0xff]  ;;  %v14440_v58 = vld [vmem:[%s20379_s1 + $0x42c] ss:$16 sps:$4 sm:$0xff]  }
 0x264   : > { %v3091_v59 = vpop.f32.mrf.mxu0  ;;  %3716 = vmatmul.mubr.bf16.gmra.mxu0 %v21039_v47 }
 0x265   : > { %v3444_v42 = vpop.f32.mrf.mxu1  ;;  %4069 = vmatmul.mubr.bf16.gmra.mxu1 %v21040_v34  ;;  %v5151_v26 = vmax.f32 %v3439_v30, 0.0  ;;  %v3441_v63 = vadd.f32 %v3440_v24, %v3088_v5  ;;  %v3092_v8 = vadd.f32 %v3091_v59, %v21041_v25  ;;  %3725 = vmatprep.mubr.bf16.mxu0 %v21042_v46  ;;  %v21046_v30 = vld [vmem:[#allocation152_spill] sm:$0xff] }
 0x266   : > { %4078 = vmatprep.mubr.bf16.mxu1 %v21043_v38  ;;  %v3093_v13 = vpop.f32.mrf.mxu0  ;;  %4378 = vmatpush1.bf16.msra.mxu0 %v14432_v41  ;;  %v21049_v25 = vld [vmem:[#allocation16_spill] sm:$0xff] }
 0x267   : > { %v3446_v43 = vpop.f32.mrf.mxu1  ;;  %v17057_v12 = vpack.c.bf16 %v5151_v26, %v5147_v7  ;;  %v5152_v15 = vmax.f32 %v3441_v63, 0.0  ;;  %v3445_v11 = vadd.f32 %v3444_v42, %v3092_v8  ;;  %v3094_v21 = vadd.f32 %v3093_v13, %v21045_v6  ;;  %4379 = vmatprep.subr.bf16.mxu0 %v14437_v39  ;;  %v14438_v42 = vld [vmem:[%s20379_s1 + $0x428] ss:$16 sps:$4 sm:$0xff]   ;;  %v14443_v7 = vld [vmem:[%s20379_s1 + $0x40c] ss:$16 sps:$4 sm:$0xff]   ;;  %v21051_v13 = vld [vmem:[#allocation154_spill] sm:$0xff] }
 0x268   : > { %v3095_v54 = vpop.f32.mrf.mxu0  ;;  %v21048_v39 = vld [vmem:[#allocation153_spill] sm:$0xff] }
 0x269   : > { %21044 = vst [vmem:[#allocation8_spill] sm:$0xff] %v17057_v12  ;;  %v3448_v60 = vpop.f32.mrf.mxu1  ;;  %v3447_v24 = vadd.f32 %v3446_v43, %v3094_v21  ;;  %v3096_v41 = vadd.f32 %v3095_v54, %v21046_v30  ;;  %v17064_v33 = vpack.c.bf16 %v5152_v15, %v5148_v32  ;;  %v21050_v8 = vld [vmem:[#allocation17_spill] sm:$0xff]  ;;  %v5155_v46 = vmax.f32 %v3445_v11, 0.0  ;;  %v21053_v15 = vld [vmem:[#allocation19_spill] sm:$0xff] }
 0x26a   : > { %v3097_v5 = vpop.f32.mrf.mxu0  ;;  %4380 = vmatpush1.bf16.msra.mxu0 %v14435_v44  ;;  %v21052_v44 = vld [vmem:[#allocation18_spill] sm:$0xff]  ;;  %v14441_v54 = vld [vmem:[%s20379_s1 + $0x408] ss:$16 sps:$4 sm:$0xff]  }
 0x26b   : > { %21047 = vst [vmem:[#allocation9_spill] sm:$0xff] %v17064_v33  ;;  %v3450_v59 = vpop.f32.mrf.mxu1  ;;  %v3449_v47 = vadd.f32 %v3448_v60, %v3096_v41  ;;  %v3098_v34 = vadd.f32 %v3097_v5, %v21048_v39  ;;  %4381 = vmatprep.subr.bf16.mxu0 %v14440_v58  ;;  %v5156_v6 = vmax.f32 %v3447_v24, 0.0  ;;  %v21055_v41 = vld [vmem:[#allocation157_spill] sm:$0xff] }
 0x26c   : > { %v3101_v26 = vpop.f32.mrf.mxu0  ;;  %3726 = vmatmul.mubr.bf16.gmra.mxu0 %v21049_v25 }
 0x26d   : > { %v3454_v63 = vpop.f32.mrf.mxu1  ;;  %4079 = vmatmul.mubr.bf16.gmra.mxu1 %v21050_v8  ;;  %v5159_v38 = vmax.f32 %v3449_v47, 0.0  ;;  %v3451_v32 = vadd.f32 %v3450_v59, %v3098_v34  ;;  %v3102_v43 = vadd.f32 %v3101_v26, %v21051_v13  ;;  %3735 = vmatprep.mubr.bf16.mxu0 %v21052_v44  ;;  %v14446_v59 = vld [vmem:[%s20379_s1 + $0x5ec] ss:$16 sps:$4 sm:$0xff]   ;;  %v21059_v44 = vld [vmem:[#allocation20_spill] sm:$0xff] }
 0x26e   : > { %4088 = vmatprep.mubr.bf16.mxu1 %v21053_v15  ;;  %v3103_v21 = vpop.f32.mrf.mxu0  ;;  %4382 = vmatpush1.bf16.msra.mxu0 %v14438_v42  ;;  %v21056_v34 = vld [vmem:[#allocation159_spill] sm:$0xff]  ;;  %v21060_v15 = vld [vmem:[#allocation21_spill] sm:$0xff] }
 0x26f   : > { %v3456_v58 = vpop.f32.mrf.mxu1  ;;  %v17081_v60 = vpack.c.bf16 %v5159_v38, %v5155_v46  ;;  %v5160_v30 = vmax.f32 %v3451_v32, 0.0  ;;  %v3455_v11 = vadd.f32 %v3454_v63, %v3102_v43  ;;  %v3104_v5 = vadd.f32 %v3103_v21, %v21055_v41  ;;  %4383 = vmatprep.subr.bf16.mxu0 %v14443_v7  ;;  %v14444_v63 = vld [vmem:[%s20379_s1 + $0x5e8] ss:$16 sps:$4 sm:$0xff]   ;;  %v21058_v7 = vld [vmem:[#allocation160_spill] sm:$0xff]  ;;  %v14449_v32 = vld [vmem:[%s20379_s1 + $0x5cc] ss:$16 sps:$4 sm:$0xff]  }
 0x270   : > { %v3105_v47 = vpop.f32.mrf.mxu0  ;;  %v21062_v41 = vld [vmem:[#allocation23_spill] sm:$0xff] }
 0x271   : > { %21054 = vst [vmem:[#allocation140_spill] sm:$0xff] %v17081_v60  ;;  %v3458_v24 = vpop.f32.mrf.mxu1  ;;  %v3457_v39 = vadd.f32 %v3456_v58, %v3104_v5  ;;  %v3106_v42 = vadd.f32 %v3105_v47, %v21056_v34  ;;  %v17088_v26 = vpack.c.bf16 %v5160_v30, %v5156_v6  ;;  %v5163_v6 = vmax.f32 %v3455_v11, 0.0  ;;  %v21061_v30 = vld [vmem:[#allocation22_spill] sm:$0xff] }
 0x272   : > { %v3107_v25 = vpop.f32.mrf.mxu0  ;;  %4384 = vmatpush1.bf16.msra.mxu0 %v14441_v54 }
 0x273   : > { %21057 = vst [vmem:[#allocation10_spill] sm:$0xff] %v17088_v26  ;;  %v3460_v8 = vpop.f32.mrf.mxu1  ;;  %v3459_v46 = vadd.f32 %v3458_v24, %v3106_v42  ;;  %v3108_v38 = vadd.f32 %v3107_v25, %v21058_v7  ;;  %4385 = vmatprep.subr.bf16.mxu0 %v14446_v59  ;;  %v5164_v5 = vmax.f32 %v3457_v39, 0.0  ;;  %v14447_v24 = vld [vmem:[%s20379_s1 + $0x5c8] ss:$16 sps:$4 sm:$0xff]   ;;  %v21064_v7 = vld [vmem:[#allocation164_spill] sm:$0xff] }
 0x274   : > { %v3111_v13 = vpop.f32.mrf.mxu0  ;;  %3736 = vmatmul.mubr.bf16.gmra.mxu0 %v21059_v44  ;;  %v14452_v39 = vld [vmem:[%s20379_s1 + $0x5ac] ss:$16 sps:$4 sm:$0xff]  }
 0x275   : > { %v3464_v43 = vpop.f32.mrf.mxu1  ;;  %4089 = vmatmul.mubr.bf16.gmra.mxu1 %v21060_v15  ;;  %v5167_v21 = vmax.f32 %v3459_v46, 0.0  ;;  %v3461_v58 = vadd.f32 %v3460_v8, %v3108_v38  ;;  %v3112_v54 = vadd.f32 %v3111_v13, %v16166_v20  ;;  %3745 = vmatprep.mubr.bf16.mxu0 %v21061_v30 }
 0x276   : > { %4098 = vmatprep.mubr.bf16.mxu1 %v21062_v41  ;;  %v3113_v59 = vpop.f32.mrf.mxu0  ;;  %4386 = vmatpush2.bf16.msra.mxu0 %v14444_v63 }
 0x277   : > { %v3466_v47 = vpop.f32.mrf.mxu1  ;;  %v17105_v34 = vpack.c.bf16 %v5167_v21, %v5163_v6  ;;  %v5168_v42 = vmax.f32 %v3461_v58, 0.0  ;;  %v3465_v11 = vadd.f32 %v3464_v43, %v3112_v54  ;;  %v3114_v25 = vadd.f32 %v3113_v59, %v16176_v23  ;;  %4387 = vmatprep.subr.bf16.mxu0 %v14449_v32  ;;  %v14450_v43 = vld [vmem:[%s20379_s1 + $0x5a8] ss:$16 sps:$4 sm:$0xff]   ;;  %v21067_v58 = vld [vmem:[#allocation24_spill] sm:$0xff]  ;;  %v21069_v59 = vld [vmem:[#allocation166_spill] sm:$0xff] }
 0x278   : > { %v3115_v20 = vpop.f32.mrf.mxu0  ;;  %v21066_v32 = vld [vmem:[#allocation165_spill] sm:$0xff] }
 0x279   : > { %21063 = vst [vmem:[#allocation11_spill] sm:$0xff] %v17105_v34  ;;  %v3468_v8 = vpop.f32.mrf.mxu1  ;;  %v3467_v46 = vadd.f32 %v3466_v47, %v3114_v25  ;;  %v3116_v38 = vadd.f32 %v3115_v20, %v21064_v7  ;;  %v17112_v63 = vpack.c.bf16 %v5168_v42, %v5164_v5  ;;  %v21068_v54 = vld [vmem:[#allocation25_spill] sm:$0xff]  ;;  %v5171_v30 = vmax.f32 %v3465_v11, 0.0  ;;  %v21071_v42 = vld [vmem:[#allocation27_spill] sm:$0xff] }
 0x27a   : > { %v3117_v13 = vpop.f32.mrf.mxu0  ;;  %4388 = vmatpush2.bf16.msra.mxu0 %v14447_v24  ;;  %v21070_v24 = vld [vmem:[#allocation26_spill] sm:$0xff] }
 0x27b   : > { %21065 = vst [vmem:[#allocation143_spill] sm:$0xff] %v17112_v63  ;;  %v3470_v44 = vpop.f32.mrf.mxu1  ;;  %v3469_v23 = vadd.f32 %v3468_v8, %v3116_v38  ;;  %v3118_v15 = vadd.f32 %v3117_v13, %v21066_v32  ;;  %4389 = vmatprep.subr.bf16.mxu0 %v14452_v39  ;;  %v5172_v25 = vmax.f32 %v3467_v46, 0.0  ;;  %v21073_v13 = vld [vmem:[#allocation169_spill] sm:$0xff]  ;;  %v21076_v46 = vld [vmem:[#allocation172_spill] sm:$0xff] }
 0x27c   : > { %v3121_v6 = vpop.f32.mrf.mxu0  ;;  %3746 = vmatmul.mubr.bf16.gmra.mxu0 %v21067_v58 }
 0x27d   : > { %v3474_v21 = vpop.f32.mrf.mxu1  ;;  %4099 = vmatmul.mubr.bf16.gmra.mxu1 %v21068_v54  ;;  %v5175_v41 = vmax.f32 %v3469_v23, 0.0  ;;  %v3471_v5 = vadd.f32 %v3470_v44, %v3118_v15  ;;  %v3122_v47 = vadd.f32 %v3121_v6, %v21069_v59  ;;  %3755 = vmatprep.mubr.bf16.mxu0 %v21070_v24  ;;  %v21074_v44 = vld [vmem:[#allocation171_spill] sm:$0xff] }
 0x27e   : > { %4108 = vmatprep.mubr.bf16.mxu1 %v21071_v42  ;;  %v3123_v20 = vpop.f32.mrf.mxu0  ;;  %4390 = vmatpush2.bf16.msra.mxu0 %v14450_v43 }
 0x27f   : > { %v3476_v8 = vpop.f32.mrf.mxu1  ;;  %v17123_v7 = vpack.c.bf16 %v5175_v41, %v5171_v30  ;;  %v5176_v38 = vmax.f32 %v3471_v5, 0.0  ;;  %v3475_v39 = vadd.f32 %v3474_v21, %v3122_v47  ;;  %v3124_v32 = vadd.f32 %v3123_v20, %v21073_v13  ;;  %v21077_v30 = vld [vmem:[#allocation28_spill] sm:$0xff]  ;;  %v21078_v41 = vld [vmem:[#allocation29_spill] sm:$0xff]  ;;  %v21080_v13 = vld [vmem:[#allocation30_spill] sm:$0xff] }
 0x280   : > { %v3125_v58 = vpop.f32.mrf.mxu0  ;;  %v21079_v20 = vld [vmem:[#allocation173_spill] sm:$0xff] }
 0x281   : > { %21072 = vst [vmem:[#allocation145_spill] sm:$0xff] %v17123_v7  ;;  %v3478_v11 = vpop.f32.mrf.mxu1  ;;  %v3477_v23 = vadd.f32 %v3476_v8, %v3124_v32  ;;  %v3126_v15 = vadd.f32 %v3125_v58, %v21074_v44  ;;  %v17127_v6 = vpack.c.bf16 %v5176_v38, %v5172_v25  ;;  %v5179_v21 = vmax.f32 %v3475_v39, 0.0  ;;  %v21081_v25 = vld [vmem:[#allocation31_spill] sm:$0xff]  ;;  %v21096_v7 = vld [vmem:[#allocation186_spill] sm:$0xff] }
 0x282   : > { %v3127_v54 = vpop.f32.mrf.mxu0 }
 0x283   : > { %21075 = vst [vmem:[#allocation146_spill] sm:$0xff] %v17127_v6  ;;  %v3480_v59 = vpop.f32.mrf.mxu1  ;;  %v3479_v24 = vadd.f32 %v3478_v11, %v3126_v15  ;;  %v3128_v42 = vadd.f32 %v3127_v54, %v21076_v46  ;;  %v5180_v38 = vmax.f32 %v3477_v23, 0.0  ;;  %v21083_v54 = vld [vmem:[#allocation176_spill] sm:$0xff] }
 0x284   : > { %v3131_v34 = vpop.f32.mrf.mxu0  ;;  %3756 = vmatmul.mubr.bf16.gmra.mxu0 %v21077_v30 }
 0x285   : > { %v3484_v43 = vpop.f32.mrf.mxu1  ;;  %4109 = vmatmul.mubr.bf16.gmra.mxu1 %v21078_v41  ;;  %v5183_v5 = vmax.f32 %v3479_v24, 0.0  ;;  %v3481_v47 = vadd.f32 %v3480_v59, %v3128_v42  ;;  %v3132_v8 = vadd.f32 %v3131_v34, %v21079_v20  ;;  %3765 = vmatprep.mubr.bf16.mxu0 %v21080_v13  ;;  %v21084_v24 = vld [vmem:[#allocation178_spill] sm:$0xff]  ;;  %v14455_v34 = vld [vmem:[%s20379_s1 + $0x58c] ss:$16 sps:$4 sm:$0xff]  }
 0x286   : > { %4118 = vmatprep.mubr.bf16.mxu1 %v21081_v25  ;;  %v3133_v32 = vpop.f32.mrf.mxu0  ;;  %4391 = vmatprep.subr.bf16.mxu0 %v14455_v34  ;;  %v21087_v25 = vld [vmem:[#allocation32_spill] sm:$0xff] }
 0x287   : > { %v3486_v58 = vpop.f32.mrf.mxu1  ;;  %v17135_v11 = vpack.c.bf16 %v5183_v5, %v5179_v21  ;;  %v5184_v44 = vmax.f32 %v3481_v47, 0.0  ;;  %v3485_v15 = vadd.f32 %v3484_v43, %v3132_v8  ;;  %v3134_v46 = vadd.f32 %v3133_v32, %v21083_v54  ;;  %v14453_v21 = vld [vmem:[%s20379_s1 + $0x588] ss:$16 sps:$4 sm:$0xff]  }
 0x288   : > { %v3135_v30 = vpop.f32.mrf.mxu0  ;;  %v21086_v5 = vld [vmem:[#allocation179_spill] sm:$0xff]  ;;  %v21088_v32 = vld [vmem:[#allocation33_spill] sm:$0xff]  ;;  %4392 = vmatpush2.bf16.msra.mxu0 %v14453_v21 }
 0x289   : > { %21082 = vst [vmem:[#allocation12_spill] sm:$0xff] %v17135_v11  ;;  %v3488_v41 = vpop.f32.mrf.mxu1  ;;  %v3487_v39 = vadd.f32 %v3486_v58, %v3134_v46  ;;  %v3136_v59 = vadd.f32 %v3135_v30, %v21084_v24  ;;  %v17142_v42 = vpack.c.bf16 %v5184_v44, %v5180_v38  ;;  %v5187_v58 = vmax.f32 %v3485_v15, 0.0  ;;  %v21089_v44 = vld [vmem:[#allocation180_spill] sm:$0xff]  ;;  %v21090_v30 = vld [vmem:[#allocation34_spill] sm:$0xff]  ;;  %v21091_v24 = vld [vmem:[#allocation35_spill] sm:$0xff] }
 0x28a   : > { %v3137_v23 = vpop.f32.mrf.mxu0 }
 0x28b   : > { %21085 = vst [vmem:[#allocation13_spill] sm:$0xff] %v17142_v42  ;;  %v3490_v20 = vpop.f32.mrf.mxu1  ;;  %v3489_v43 = vadd.f32 %v3488_v41, %v3136_v59  ;;  %v3138_v47 = vadd.f32 %v3137_v23, %v21086_v5  ;;  %v21093_v5 = vld [vmem:[#allocation183_spill] sm:$0xff]  ;;  %v5188_v42 = vmax.f32 %v3487_v39, 0.0 }
 0x28c   : > { %v3141_v8 = vpop.f32.mrf.mxu0  ;;  %3766 = vmatmul.mubr.bf16.gmra.mxu0 %v21087_v25 }
 0x28d   : > { %v3494_v13 = vpop.f32.mrf.mxu1  ;;  %4119 = vmatmul.mubr.bf16.gmra.mxu1 %v21088_v32  ;;  %v5191_v54 = vmax.f32 %v3489_v43, 0.0  ;;  %v3491_v38 = vadd.f32 %v3490_v20, %v3138_v47  ;;  %v3142_v46 = vadd.f32 %v3141_v8, %v21089_v44  ;;  %3775 = vmatprep.mubr.bf16.mxu0 %v21090_v30  ;;  %v21094_v20 = vld [vmem:[#allocation185_spill] sm:$0xff] }
 0x28e   : > { %4128 = vmatprep.mubr.bf16.mxu1 %v21091_v24  ;;  %v3143_v11 = vpop.f32.mrf.mxu0 }
 0x28f   : > { %v3496_v41 = vpop.f32.mrf.mxu1  ;;  %v17153_v59 = vpack.c.bf16 %v5191_v54, %v5187_v58  ;;  %v5192_v34 = vmax.f32 %v3491_v38, 0.0  ;;  %v3495_v23 = vadd.f32 %v3494_v13, %v3142_v46  ;;  %v3144_v25 = vadd.f32 %v3143_v11, %v21093_v5  ;;  %v21097_v54 = vld [vmem:[#allocation36_spill] sm:$0xff]  ;;  %v21098_v13 = vld [vmem:[#allocation37_spill] sm:$0xff]  ;;  %v21099_v46 = vld [vmem:[#allocation187_spill] sm:$0xff] }
 0x290   : > { %v3145_v32 = vpop.f32.mrf.mxu0  ;;  %v21100_v5 = vld [vmem:[#allocation38_spill] sm:$0xff] }
 0x291   : > { %21092 = vst [vmem:[#allocation147_spill] sm:$0xff] %v17153_v59  ;;  %v3498_v15 = vpop.f32.mrf.mxu1  ;;  %v3497_v43 = vadd.f32 %v3496_v41, %v3144_v25  ;;  %v3146_v47 = vadd.f32 %v3145_v32, %v21094_v20  ;;  %v17157_v30 = vpack.c.bf16 %v5192_v34, %v5188_v42  ;;  %v5195_v11 = vmax.f32 %v3495_v23, 0.0  ;;  %v21101_v25 = vld [vmem:[#allocation39_spill] sm:$0xff] }
 0x292   : > { %v3147_v8 = vpop.f32.mrf.mxu0  ;;  %v14456_v23 = vld [vmem:[%s20379_s1 + $0x568] ss:$16 sps:$4 sm:$0xff]  }
 0x293   : > { %v3500_v44 = vpop.f32.mrf.mxu1  ;;  %21095 = vst [vmem:[#allocation14_spill] sm:$0xff] %v17157_v30  ;;  %v3499_v24 = vadd.f32 %v3498_v15, %v3146_v47  ;;  %v3148_v6 = vadd.f32 %v3147_v8, %v21096_v7  ;;  %v5196_v42 = vmax.f32 %v3497_v43, 0.0  ;;  %v21103_v47 = vld [vmem:[#allocation190_spill] sm:$0xff]  ;;  %v21104_v43 = vld [vmem:[#allocation192_spill] sm:$0xff] }
 0x294   : > { %v3151_v21 = vpop.f32.mrf.mxu0  ;;  %3776 = vmatmul.mubr.bf16.gmra.mxu0 %v21097_v54 }
 0x295   : > { %v3504_v58 = vpop.f32.mrf.mxu1  ;;  %4129 = vmatmul.mubr.bf16.gmra.mxu1 %v21098_v13  ;;  %v5199_v39 = vmax.f32 %v3499_v24, 0.0  ;;  %v3501_v38 = vadd.f32 %v3500_v44, %v3148_v6  ;;  %v3152_v41 = vadd.f32 %v3151_v21, %v21099_v46  ;;  %3785 = vmatprep.mubr.bf16.mxu0 %v21100_v5  ;;  %v14458_v6 = vld [vmem:[%s20379_s1 + $0x56c] ss:$16 sps:$4 sm:$0xff]  }
 0x296   : > { %4138 = vmatprep.mubr.bf16.mxu1 %v21101_v25  ;;  %v3153_v34 = vpop.f32.mrf.mxu0  ;;  %4393 = vmatprep.subr.bf16.mxu0 %v14458_v6  ;;  %v21107_v25 = vld [vmem:[#allocation40_spill] sm:$0xff]  ;;  %v21110_v6 = vld [vmem:[#allocation42_spill] sm:$0xff] }
 0x297   : > { %v3506_v32 = vpop.f32.mrf.mxu1  ;;  %v17165_v15 = vpack.c.bf16 %v5199_v39, %v5195_v11  ;;  %v5200_v7 = vmax.f32 %v3501_v38, 0.0  ;;  %v3505_v20 = vadd.f32 %v3504_v58, %v3152_v41  ;;  %v3154_v8 = vadd.f32 %v3153_v34, %v21103_v47  ;;  %4394 = vmatpush2.bf16.msra.mxu0 %v14456_v23  ;;  %v21106_v38 = vld [vmem:[#allocation193_spill] sm:$0xff] }
 0x298   : > { %v3155_v44 = vpop.f32.mrf.mxu0  ;;  %v21108_v34 = vld [vmem:[#allocation41_spill] sm:$0xff] }
 0x299   : > { %21102 = vst [vmem:[#allocation15_spill] sm:$0xff] %v17165_v15  ;;  %v3508_v24 = vpop.f32.mrf.mxu1  ;;  %v3507_v21 = vadd.f32 %v3506_v32, %v3154_v8  ;;  %v3156_v54 = vadd.f32 %v3155_v44, %v21104_v43  ;;  %v17175_v13 = vpack.c.bf16 %v5200_v7, %v5196_v42  ;;  %v5203_v47 = vmax.f32 %v3505_v20, 0.0  ;;  %v21109_v8 = vld [vmem:[#allocation194_spill] sm:$0xff]  ;;  %v21111_v42 = vld [vmem:[#allocation43_spill] sm:$0xff] }
 0x29a   : > { %v3157_v11 = vpop.f32.mrf.mxu0 }
 0x29b   : > { %21105 = vst [vmem:[#allocation150_spill] sm:$0xff] %v17175_v13  ;;  %v3510_v58 = vpop.f32.mrf.mxu1  ;;  %v3509_v39 = vadd.f32 %v3508_v24, %v3156_v54  ;;  %v3158_v46 = vadd.f32 %v3157_v11, %v21106_v38  ;;  %v5204_v7 = vmax.f32 %v3507_v21, 0.0  ;;  %v21113_v38 = vld [vmem:[#allocation197_spill] sm:$0xff] }
 0x29c   : > { %v3161_v41 = vpop.f32.mrf.mxu0  ;;  %3786 = vmatmul.mubr.bf16.gmra.mxu0 %v21107_v25 }
 0x29d   : > { %v3514_v5 = vpop.f32.mrf.mxu1  ;;  %4139 = vmatmul.mubr.bf16.gmra.mxu1 %v21108_v34  ;;  %v5207_v15 = vmax.f32 %v3509_v39, 0.0  ;;  %v3511_v32 = vadd.f32 %v3510_v58, %v3158_v46  ;;  %v3162_v44 = vadd.f32 %v3161_v41, %v21109_v8  ;;  %3795 = vmatprep.mubr.bf16.mxu0 %v21110_v6  ;;  %v21114_v39 = vld [vmem:[#allocation199_spill] sm:$0xff] }
 0x29e   : > { %4148 = vmatprep.mubr.bf16.mxu1 %v21111_v42  ;;  %v3163_v23 = vpop.f32.mrf.mxu0  ;;  %v21116_v42 = vld [vmem:[#allocation200_spill] sm:$0xff] }
 0x29f   : > { %v3516_v24 = vpop.f32.mrf.mxu1  ;;  %v17183_v43 = vpack.c.bf16 %v5207_v15, %v5203_v47  ;;  %v5208_v54 = vmax.f32 %v3511_v32, 0.0  ;;  %v3515_v11 = vadd.f32 %v3514_v5, %v3162_v44  ;;  %v3164_v25 = vadd.f32 %v3163_v23, %v21113_v38  ;;  %v21117_v15 = vld [vmem:[#allocation44_spill] sm:$0xff]  ;;  %v21118_v47 = vld [vmem:[#allocation45_spill] sm:$0xff]  ;;  %v21120_v38 = vld [vmem:[#allocation46_spill] sm:$0xff] }
 0x2a0   : > { %v3165_v13 = vpop.f32.mrf.mxu0  ;;  %v21119_v23 = vld [vmem:[#allocation201_spill] sm:$0xff] }
 0x2a1   : > { %21112 = vst [vmem:[#allocation152_spill] sm:$0xff] %v17183_v43  ;;  %v3518_v34 = vpop.f32.mrf.mxu1  ;;  %v3517_v20 = vadd.f32 %v3516_v24, %v3164_v25  ;;  %v3166_v58 = vadd.f32 %v3165_v13, %v21114_v39  ;;  %v17187_v46 = vpack.c.bf16 %v5208_v54, %v5204_v7  ;;  %v5211_v5 = vmax.f32 %v3515_v11, 0.0  ;;  %v21121_v13 = vld [vmem:[#allocation47_spill] sm:$0xff] }
 0x2a2   : > { %v3167_v41 = vpop.f32.mrf.mxu0  ;;  %v14459_v11 = vld [vmem:[%s20379_s1 + $0x548] ss:$16 sps:$4 sm:$0xff]  }
 0x2a3   : > { %21115 = vst [vmem:[#allocation153_spill] sm:$0xff] %v17187_v46  ;;  %v3520_v8 = vpop.f32.mrf.mxu1  ;;  %v3519_v6 = vadd.f32 %v3518_v34, %v3166_v58  ;;  %v3168_v21 = vadd.f32 %v3167_v41, %v21116_v42  ;;  %v5212_v7 = vmax.f32 %v3517_v20, 0.0  ;;  %v21123_v41 = vld [vmem:[#allocation204_spill] sm:$0xff]  ;;  %v21124_v20 = vld [vmem:[#allocation206_spill] sm:$0xff] }
 0x2a4   : > { %v3171_v59 = vpop.f32.mrf.mxu0  ;;  %3796 = vmatmul.mubr.bf16.gmra.mxu0 %v21117_v15 }
 0x2a5   : > { %v3524_v30 = vpop.f32.mrf.mxu1  ;;  %4149 = vmatmul.mubr.bf16.gmra.mxu1 %v21118_v47  ;;  %v5215_v32 = vmax.f32 %v3519_v6, 0.0  ;;  %v3521_v44 = vadd.f32 %v3520_v8, %v3168_v21  ;;  %v3172_v24 = vadd.f32 %v3171_v59, %v21119_v23  ;;  %3805 = vmatprep.mubr.bf16.mxu0 %v21120_v38  ;;  %v14461_v59 = vld [vmem:[%s20379_s1 + $0x54c] ss:$16 sps:$4 sm:$0xff]  }
 0x2a6   : > { %4158 = vmatprep.mubr.bf16.mxu1 %v21121_v13  ;;  %v3173_v54 = vpop.f32.mrf.mxu0  ;;  %4395 = vmatprep.subr.bf16.mxu0 %v14461_v59  ;;  %v21127_v13 = vld [vmem:[#allocation48_spill] sm:$0xff]  ;;  %v21130_v59 = vld [vmem:[#allocation50_spill] sm:$0xff] }
 0x2a7   : > { %v3526_v25 = vpop.f32.mrf.mxu1  ;;  %v17195_v34 = vpack.c.bf16 %v5215_v32, %v5211_v5  ;;  %v5216_v39 = vmax.f32 %v3521_v44, 0.0  ;;  %v3525_v58 = vadd.f32 %v3524_v30, %v3172_v24  ;;  %v3174_v42 = vadd.f32 %v3173_v54, %v21123_v41  ;;  %4396 = vmatpush2.bf16.msra.mxu0 %v14459_v11  ;;  %v21126_v44 = vld [vmem:[#allocation207_spill] sm:$0xff]  ;;  %v21128_v54 = vld [vmem:[#allocation49_spill] sm:$0xff] }
 0x2a8   : > { %v3175_v8 = vpop.f32.mrf.mxu0 }
 0x2a9   : > { %21122 = vst [vmem:[#allocation16_spill] sm:$0xff] %v17195_v34  ;;  %v3528_v6 = vpop.f32.mrf.mxu1  ;;  %v3527_v21 = vadd.f32 %v3526_v25, %v3174_v42  ;;  %v3176_v15 = vadd.f32 %v3175_v8, %v21124_v20  ;;  %v17205_v47 = vpack.c.bf16 %v5216_v39, %v5212_v7  ;;  %v5219_v41 = vmax.f32 %v3525_v58, 0.0  ;;  %v21129_v42 = vld [vmem:[#allocation208_spill] sm:$0xff]  ;;  %v21131_v7 = vld [vmem:[#allocation51_spill] sm:$0xff] }
 0x2aa   : > { %v3177_v5 = vpop.f32.mrf.mxu0 }
 0x2ab   : > { %21125 = vst [vmem:[#allocation17_spill] sm:$0xff] %v17205_v47  ;;  %v3530_v30 = vpop.f32.mrf.mxu1  ;;  %v3529_v32 = vadd.f32 %v3528_v6, %v3176_v15  ;;  %v3178_v23 = vadd.f32 %v3177_v5, %v21126_v44  ;;  %v5220_v39 = vmax.f32 %v3527_v21, 0.0  ;;  %v21133_v44 = vld [vmem:[#allocation211_spill] sm:$0xff] }
 0x2ac   : > { %v3181_v24 = vpop.f32.mrf.mxu0  ;;  %3806 = vmatmul.mubr.bf16.gmra.mxu0 %v21127_v13 }
 0x2ad   : > { %v3534_v38 = vpop.f32.mrf.mxu1  ;;  %4159 = vmatmul.mubr.bf16.gmra.mxu1 %v21128_v54  ;;  %v5223_v34 = vmax.f32 %v3529_v32, 0.0  ;;  %v3531_v25 = vadd.f32 %v3530_v30, %v3178_v23  ;;  %v3182_v8 = vadd.f32 %v3181_v24, %v21129_v42  ;;  %3815 = vmatprep.mubr.bf16.mxu0 %v21130_v59  ;;  %v21134_v32 = vld [vmem:[#allocation213_spill] sm:$0xff] }
 0x2ae   : > { %4168 = vmatprep.mubr.bf16.mxu1 %v21131_v7  ;;  %v3183_v11 = vpop.f32.mrf.mxu0  ;;  %v21136_v7 = vld [vmem:[#allocation214_spill] sm:$0xff] }
 0x2af   : > { %v3536_v6 = vpop.f32.mrf.mxu1  ;;  %v17213_v20 = vpack.c.bf16 %v5223_v34, %v5219_v41  ;;  %v5224_v15 = vmax.f32 %v3531_v25, 0.0  ;;  %v3535_v5 = vadd.f32 %v3534_v38, %v3182_v8  ;;  %v3184_v13 = vadd.f32 %v3183_v11, %v21133_v44  ;;  %v21137_v34 = vld [vmem:[#allocation52_spill] sm:$0xff]  ;;  %v21138_v41 = vld [vmem:[#allocation53_spill] sm:$0xff]  ;;  %v21139_v11 = vld [vmem:[#allocation215_spill] sm:$0xff] }
 0x2b0   : > { %v3185_v47 = vpop.f32.mrf.mxu0  ;;  %v21140_v44 = vld [vmem:[#allocation54_spill] sm:$0xff] }
 0x2b1   : > { %21132 = vst [vmem:[#allocation154_spill] sm:$0xff] %v17213_v20  ;;  %v3538_v54 = vpop.f32.mrf.mxu1  ;;  %v3537_v58 = vadd.f32 %v3536_v6, %v3184_v13  ;;  %v3186_v30 = vadd.f32 %v3185_v47, %v21134_v32  ;;  %v17217_v23 = vpack.c.bf16 %v5224_v15, %v5220_v39  ;;  %v5227_v38 = vmax.f32 %v3535_v5, 0.0  ;;  %v21141_v47 = vld [vmem:[#allocation55_spill] sm:$0xff] }
 0x2b2   : > { %v3187_v24 = vpop.f32.mrf.mxu0  ;;  %v14462_v5 = vld [vmem:[%s20379_s1 + $0x528] ss:$16 sps:$4 sm:$0xff]  }
 0x2b3   : > { %21135 = vst [vmem:[#allocation18_spill] sm:$0xff] %v17217_v23  ;;  %v3540_v42 = vpop.f32.mrf.mxu1  ;;  %v3539_v59 = vadd.f32 %v3538_v54, %v3186_v30  ;;  %v3188_v21 = vadd.f32 %v3187_v24, %v21136_v7  ;;  %v5228_v39 = vmax.f32 %v3537_v58, 0.0  ;;  %v21143_v24 = vld [vmem:[#allocation218_spill] sm:$0xff]  ;;  %v21144_v58 = vld [vmem:[#allocation220_spill] sm:$0xff] }
 0x2b4   : > { %v3191_v43 = vpop.f32.mrf.mxu0  ;;  %3816 = vmatmul.mubr.bf16.gmra.mxu0 %v21137_v34 }
 0x2b5   : > { %v3544_v46 = vpop.f32.mrf.mxu1  ;;  %4169 = vmatmul.mubr.bf16.gmra.mxu1 %v21138_v41  ;;  %v5231_v25 = vmax.f32 %v3539_v59, 0.0  ;;  %v3541_v8 = vadd.f32 %v3540_v42, %v3188_v21  ;;  %v3192_v6 = vadd.f32 %v3191_v43, %v21139_v11  ;;  %3825 = vmatprep.mubr.bf16.mxu0 %v21140_v44  ;;  %v14464_v43 = vld [vmem:[%s20379_s1 + $0x52c] ss:$16 sps:$4 sm:$0xff]  }
 0x2b6   : > { %4178 = vmatprep.mubr.bf16.mxu1 %v21141_v47  ;;  %v3193_v15 = vpop.f32.mrf.mxu0  ;;  %4397 = vmatprep.subr.bf16.mxu0 %v14464_v43  ;;  %v21147_v47 = vld [vmem:[#allocation56_spill] sm:$0xff]  ;;  %v21150_v43 = vld [vmem:[#allocation58_spill] sm:$0xff] }
 0x2b7   : > { %v3546_v13 = vpop.f32.mrf.mxu1  ;;  %v17225_v54 = vpack.c.bf16 %v5231_v25, %v5227_v38  ;;  %v5232_v32 = vmax.f32 %v3541_v8, 0.0  ;;  %v3545_v30 = vadd.f32 %v3544_v46, %v3192_v6  ;;  %v3194_v7 = vadd.f32 %v3193_v15, %v21143_v24  ;;  %4398 = vmatpush2.bf16.msra.mxu0 %v14462_v5  ;;  %v21146_v8 = vld [vmem:[#allocation221_spill] sm:$0xff] }
 0x2b8   : > { %v3195_v42 = vpop.f32.mrf.mxu0  ;;  %v21148_v15 = vld [vmem:[#allocation57_spill] sm:$0xff] }
 0x2b9   : > { %21142 = vst [vmem:[#allocation19_spill] sm:$0xff] %v17225_v54  ;;  %v3548_v59 = vpop.f32.mrf.mxu1  ;;  %v3547_v21 = vadd.f32 %v3546_v13, %v3194_v7  ;;  %v3196_v34 = vadd.f32 %v3195_v42, %v21144_v58  ;;  %v17235_v41 = vpack.c.bf16 %v5232_v32, %v5228_v39  ;;  %v5235_v24 = vmax.f32 %v3545_v30, 0.0  ;;  %v21149_v7 = vld [vmem:[#allocation222_spill] sm:$0xff]  ;;  %v21151_v39 = vld [vmem:[#allocation59_spill] sm:$0xff] }
 0x2ba   : > { %v3197_v38 = vpop.f32.mrf.mxu0 }
 0x2bb   : > { %21145 = vst [vmem:[#allocation157_spill] sm:$0xff] %v17235_v41  ;;  %v3550_v46 = vpop.f32.mrf.mxu1  ;;  %v3549_v25 = vadd.f32 %v3548_v59, %v3196_v34  ;;  %v3198_v11 = vadd.f32 %v3197_v38, %v21146_v8  ;;  %v5236_v32 = vmax.f32 %v3547_v21, 0.0  ;;  %v21153_v8 = vld [vmem:[#allocation225_spill] sm:$0xff] }
 0x2bc   : > { %v3201_v6 = vpop.f32.mrf.mxu0  ;;  %3826 = vmatmul.mubr.bf16.gmra.mxu0 %v21147_v47 }
 0x2bd   : > { %v3554_v44 = vpop.f32.mrf.mxu1  ;;  %4179 = vmatmul.mubr.bf16.gmra.mxu1 %v21148_v15  ;;  %v5239_v54 = vmax.f32 %v3549_v25, 0.0  ;;  %v3551_v13 = vadd.f32 %v3550_v46, %v3198_v11  ;;  %v3202_v42 = vadd.f32 %v3201_v6, %v21149_v7  ;;  %3835 = vmatprep.mubr.bf16.mxu0 %v21150_v43  ;;  %v21154_v25 = vld [vmem:[#allocation227_spill] sm:$0xff] }
 0x2be   : > { %4188 = vmatprep.mubr.bf16.mxu1 %v21151_v39  ;;  %v3203_v5 = vpop.f32.mrf.mxu0  ;;  %v21156_v39 = vld [vmem:[#allocation228_spill] sm:$0xff] }
 0x2bf   : > { %v3556_v59 = vpop.f32.mrf.mxu1  ;;  %v17243_v58 = vpack.c.bf16 %v5239_v54, %v5235_v24  ;;  %v5240_v34 = vmax.f32 %v3551_v13, 0.0  ;;  %v3555_v38 = vadd.f32 %v3554_v44, %v3202_v42  ;;  %v3204_v47 = vadd.f32 %v3203_v5, %v21153_v8  ;;  %v21157_v54 = vld [vmem:[#allocation60_spill] sm:$0xff]  ;;  %v21158_v24 = vld [vmem:[#allocation61_spill] sm:$0xff]  ;;  %v21160_v8 = vld [vmem:[#allocation62_spill] sm:$0xff] }
 0x2c0   : > { %v3205_v41 = vpop.f32.mrf.mxu0  ;;  %v21159_v5 = vld [vmem:[#allocation229_spill] sm:$0xff] }
 0x2c1   : > { %21152 = vst [vmem:[#allocation159_spill] sm:$0xff] %v17243_v58  ;;  %v3558_v15 = vpop.f32.mrf.mxu1  ;;  %v3557_v30 = vadd.f32 %v3556_v59, %v3204_v47  ;;  %v3206_v46 = vadd.f32 %v3205_v41, %v21154_v25  ;;  %v17247_v11 = vpack.c.bf16 %v5240_v34, %v5236_v32  ;;  %v5243_v44 = vmax.f32 %v3555_v38, 0.0  ;;  %v21161_v41 = vld [vmem:[#allocation63_spill] sm:$0xff] }
 0x2c2   : > { %v3207_v6 = vpop.f32.mrf.mxu0  ;;  %v14465_v38 = vld [vmem:[%s20379_s1 + $0x508] ss:$16 sps:$4 sm:$0xff]  }
 0x2c3   : > { %21155 = vst [vmem:[#allocation160_spill] sm:$0xff] %v17247_v11  ;;  %v3560_v7 = vpop.f32.mrf.mxu1  ;;  %v3559_v43 = vadd.f32 %v3558_v15, %v3206_v46  ;;  %v3208_v21 = vadd.f32 %v3207_v6, %v21156_v39  ;;  %v5244_v32 = vmax.f32 %v3557_v30, 0.0  ;;  %v21163_v6 = vld [vmem:[#allocation232_spill] sm:$0xff]  ;;  %v21164_v30 = vld [vmem:[#allocation234_spill] sm:$0xff] }
 0x2c4   : > { %v3211_v20 = vpop.f32.mrf.mxu0  ;;  %3836 = vmatmul.mubr.bf16.gmra.mxu0 %v21157_v54 }
 0x2c5   : > { %v3564_v23 = vpop.f32.mrf.mxu1  ;;  %4189 = vmatmul.mubr.bf16.gmra.mxu1 %v21158_v24  ;;  %v5247_v13 = vmax.f32 %v3559_v43, 0.0  ;;  %v3561_v42 = vadd.f32 %v3560_v7, %v3208_v21  ;;  %v3212_v59 = vadd.f32 %v3211_v20, %v21159_v5  ;;  %3845 = vmatprep.mubr.bf16.mxu0 %v21160_v8  ;;  %v14467_v20 = vld [vmem:[%s20379_s1 + $0x50c] ss:$16 sps:$4 sm:$0xff]  }
 0x2c6   : > { %4198 = vmatprep.mubr.bf16.mxu1 %v21161_v41  ;;  %v3213_v34 = vpop.f32.mrf.mxu0  ;;  %4399 = vmatprep.subr.bf16.mxu0 %v14467_v20  ;;  %v21167_v41 = vld [vmem:[#allocation64_spill] sm:$0xff]  ;;  %v21169_v20 = vld [vmem:[#allocation66_spill] sm:$0xff] }
 0x2c7   : > { %v3566_v47 = vpop.f32.mrf.mxu1  ;;  %v17255_v15 = vpack.c.bf16 %v5247_v13, %v5243_v44  ;;  %v5248_v25 = vmax.f32 %v3561_v42, 0.0  ;;  %v3565_v46 = vadd.f32 %v3564_v23, %v3212_v59  ;;  %v3214_v39 = vadd.f32 %v3213_v34, %v21163_v6  ;;  %4400 = vmatpush2.bf16.msra.mxu0 %v14465_v38  ;;  %v21166_v42 = vld [vmem:[#allocation235_spill] sm:$0xff]  ;;  %v21168_v34 = vld [vmem:[#allocation65_spill] sm:$0xff] }
 0x2c8   : > { %v3215_v7 = vpop.f32.mrf.mxu0 }
 0x2c9   : > { %21162 = vst [vmem:[#allocation20_spill] sm:$0xff] %v17255_v15  ;;  %v3568_v43 = vpop.f32.mrf.mxu1  ;;  %v3567_v21 = vadd.f32 %v3566_v47, %v3214_v39  ;;  %v3216_v54 = vadd.f32 %v3215_v7, %v21164_v30  ;;  %v17265_v24 = vpack.c.bf16 %v5248_v25, %v5244_v32  ;;  %v5251_v6 = vmax.f32 %v3565_v46, 0.0  ;;  %v21170_v32 = vld [vmem:[#allocation67_spill] sm:$0xff] }
 0x2ca   : > { %v3217_v44 = vpop.f32.mrf.mxu0 }
 0x2cb   : > { %21165 = vst [vmem:[#allocation21_spill] sm:$0xff] %v17265_v24  ;;  %v3570_v23 = vpop.f32.mrf.mxu1  ;;  %v3569_v13 = vadd.f32 %v3568_v43, %v3216_v54  ;;  %v3218_v5 = vadd.f32 %v3217_v44, %v21166_v42  ;;  %v5252_v25 = vmax.f32 %v3567_v21, 0.0  ;;  %v21172_v44 = vld [vmem:[#allocation238_spill] sm:$0xff] }
 0x2cc   : > { %v3221_v59 = vpop.f32.mrf.mxu0  ;;  %3846 = vmatmul.mubr.bf16.gmra.mxu0 %v21167_v41 }
 0x2cd   : > { %v3574_v8 = vpop.f32.mrf.mxu1  ;;  %4199 = vmatmul.mubr.bf16.gmra.mxu1 %v21168_v34  ;;  %v5255_v15 = vmax.f32 %v3569_v13, 0.0  ;;  %v3571_v47 = vadd.f32 %v3570_v23, %v3218_v5  ;;  %v3222_v39 = vadd.f32 %v3221_v59, %v16557_v3  ;;  %3855 = vmatprep.mubr.bf16.mxu0 %v21169_v20  ;;  %v21173_v13 = vld [vmem:[#allocation240_spill] sm:$0xff] }
 0x2ce   : > { %4208 = vmatprep.mubr.bf16.mxu1 %v21170_v32  ;;  %v3223_v38 = vpop.f32.mrf.mxu0  ;;  %v21175_v32 = vld [vmem:[#allocation241_spill] sm:$0xff] }
 0x2cf   : > { %v3576_v7 = vpop.f32.mrf.mxu1  ;;  %v17273_v43 = vpack.c.bf16 %v5255_v15, %v5251_v6  ;;  %v5256_v30 = vmax.f32 %v3571_v47, 0.0  ;;  %v3575_v54 = vadd.f32 %v3574_v8, %v3222_v39  ;;  %v3224_v42 = vadd.f32 %v3223_v38, %v21172_v44  ;;  %v21176_v15 = vld [vmem:[#allocation68_spill] sm:$0xff]  ;;  %v21177_v6 = vld [vmem:[#allocation69_spill] sm:$0xff]  ;;  %v21178_v38 = vld [vmem:[#allocation242_spill] sm:$0xff] }
 0x2d0   : > { %v3225_v41 = vpop.f32.mrf.mxu0  ;;  %v21179_v44 = vld [vmem:[#allocation70_spill] sm:$0xff] }
 0x2d1   : > { %21171 = vst [vmem:[#allocation22_spill] sm:$0xff] %v17273_v43  ;;  %v3578_v34 = vpop.f32.mrf.mxu1  ;;  %v3577_v46 = vadd.f32 %v3576_v7, %v3224_v42  ;;  %v3226_v23 = vadd.f32 %v3225_v41, %v21173_v13  ;;  %v17277_v5 = vpack.c.bf16 %v5256_v30, %v5252_v25  ;;  %v5259_v8 = vmax.f32 %v3575_v54, 0.0  ;;  %v21180_v25 = vld [vmem:[#allocation71_spill] sm:$0xff]  ;;  %v14470_v54 = vld [vmem:[%s20381_s3 + $0xe4] ss:$16 sps:$4 sm:$0xff]  }
 0x2d2   : > { %v3227_v3 = vpop.f32.mrf.mxu0  ;;  %7785 = vmatprep.subr.bf16.mxu0 %v14470_v54 }
 0x2d3   : > { %21174 = vst [vmem:[#allocation23_spill] sm:$0xff] %v17277_v5  ;;  %v3580_v59 = vpop.f32.mrf.mxu1  ;;  %v3579_v20 = vadd.f32 %v3578_v34, %v3226_v23  ;;  %v3228_v21 = vadd.f32 %v3227_v3, %v21175_v32  ;;  %v5260_v30 = vmax.f32 %v3577_v46, 0.0  ;;  %v21182_v3 = vld [vmem:[#allocation245_spill] sm:$0xff]  ;;  %v14473_v46 = vld [vmem:[%s20381_s3 + $0x2e4] ss:$16 sps:$4 sm:$0xff]  }
 0x2d4   : > { %v3231_v24 = vpop.f32.mrf.mxu0  ;;  %3856 = vmatmul.mubr.bf16.gmra.mxu0 %v21176_v15  ;;  %8138 = vmatprep.subr.bf16.mxu1 %v14473_v46 }
 0x2d5   : > { %v3584_v58 = vpop.f32.mrf.mxu1  ;;  %4209 = vmatmul.mubr.bf16.gmra.mxu1 %v21177_v6  ;;  %v5263_v47 = vmax.f32 %v3579_v20, 0.0  ;;  %v3581_v39 = vadd.f32 %v3580_v59, %v3228_v21  ;;  %v3232_v7 = vadd.f32 %v3231_v24, %v21178_v38  ;;  %3865 = vmatprep.mubr.bf16.mxu0 %v21179_v44  ;;  %v21183_v21 = vld [vmem:[#allocation247_spill] sm:$0xff] }
 0x2d6   : > { %4218 = vmatprep.mubr.bf16.mxu1 %v21180_v25  ;;  %v3233_v42 = vpop.f32.mrf.mxu0  ;;  %v21186_v25 = vld [vmem:[#allocation72_spill] sm:$0xff] }
 0x2d7   : > { %v3586_v41 = vpop.f32.mrf.mxu1  ;;  %v17285_v34 = vpack.c.bf16 %v5263_v47, %v5259_v8  ;;  %v5264_v13 = vmax.f32 %v3581_v39, 0.0  ;;  %v3585_v23 = vadd.f32 %v3584_v58, %v3232_v7  ;;  %v3234_v32 = vadd.f32 %v3233_v42, %v21182_v3  ;;  %v21185_v39 = vld [vmem:[#allocation248_spill] sm:$0xff]  ;;  %v21187_v42 = vld [vmem:[#allocation73_spill] sm:$0xff] }
 0x2d8   : > { %v3235_v59 = vpop.f32.mrf.mxu0 }
 0x2d9   : > { %21181 = vst [vmem:[#allocation164_spill] sm:$0xff] %v17285_v34  ;;  %v3588_v20 = vpop.f32.mrf.mxu1  ;;  %v3587_v24 = vadd.f32 %v3586_v41, %v3234_v32  ;;  %v3236_v15 = vadd.f32 %v3235_v59, %v21183_v21  ;;  %v17295_v6 = vpack.c.bf16 %v5264_v13, %v5260_v30  ;;  %v5267_v41 = vmax.f32 %v3585_v23, 0.0  ;;  %v21188_v59 = vld [vmem:[#allocation74_spill] sm:$0xff]  ;;  %v21189_v30 = vld [vmem:[#allocation75_spill] sm:$0xff] }
 0x2da   : > { %v3237_v8 = vpop.f32.mrf.mxu0 }
 0x2db   : > { %21184 = vst [vmem:[#allocation165_spill] sm:$0xff] %v17295_v6  ;;  %v3590_v58 = vpop.f32.mrf.mxu1  ;;  %v3589_v47 = vadd.f32 %v3588_v20, %v3236_v15  ;;  %v3238_v38 = vadd.f32 %v3237_v8, %v21185_v39  ;;  %v5268_v13 = vmax.f32 %v3587_v24, 0.0  ;;  %v21191_v39 = vld [vmem:[#allocation251_spill] sm:$0xff] }
 0x2dc   : > { %v3241_v7 = vpop.f32.mrf.mxu0  ;;  %3866 = vmatmul.mubr.bf16.gmra.mxu0 %v21186_v25 }
 0x2dd   : > { %v3594_v44 = vpop.f32.mrf.mxu1  ;;  %4219 = vmatmul.mubr.bf16.gmra.mxu1 %v21187_v42  ;;  %v5271_v3 = vmax.f32 %v3589_v47, 0.0  ;;  %v3591_v32 = vadd.f32 %v3590_v58, %v3238_v38  ;;  %v3242_v54 = vadd.f32 %v3241_v7, %v16621_v51  ;;  %3875 = vmatprep.mubr.bf16.mxu0 %v21188_v59  ;;  %v21192_v47 = vld [vmem:[#allocation253_spill] sm:$0xff] }
 0x2de   : > { %4228 = vmatprep.mubr.bf16.mxu1 %v21189_v30  ;;  %v3243_v20 = vpop.f32.mrf.mxu0  ;;  %v21194_v30 = vld [vmem:[#allocation254_spill] sm:$0xff] }
 0x2df   : > { %v3596_v21 = vpop.f32.mrf.mxu1  ;;  %v17303_v15 = vpack.c.bf16 %v5271_v3, %v5267_v41  ;;  %v5272_v46 = vmax.f32 %v3591_v32, 0.0  ;;  %v3595_v8 = vadd.f32 %v3594_v44, %v3242_v54  ;;  %v3244_v25 = vadd.f32 %v3243_v20, %v21191_v39  ;;  %v21195_v41 = vld [vmem:[#allocation76_spill] sm:$0xff]  ;;  %v21196_v3 = vld [vmem:[#allocation77_spill] sm:$0xff]  ;;  %v21197_v20 = vld [vmem:[#allocation255_spill] sm:$0xff] }
 0x2e0   : > { %v3245_v34 = vpop.f32.mrf.mxu0  ;;  %v21198_v39 = vld [vmem:[#allocation78_spill] sm:$0xff] }
 0x2e1   : > { %21190 = vst [vmem:[#allocation24_spill] sm:$0xff] %v17303_v15  ;;  %v3598_v42 = vpop.f32.mrf.mxu1  ;;  %v3597_v23 = vadd.f32 %v3596_v21, %v3244_v25  ;;  %v3246_v58 = vadd.f32 %v3245_v34, %v21192_v47  ;;  %v17307_v38 = vpack.c.bf16 %v5272_v46, %v5268_v13  ;;  %v5275_v44 = vmax.f32 %v3595_v8, 0.0  ;;  %v21199_v34 = vld [vmem:[#allocation79_spill] sm:$0xff] }
 0x2e2   : > { %v3247_v51 = vpop.f32.mrf.mxu0 }
 0x2e3   : > { %21193 = vst [vmem:[#allocation25_spill] sm:$0xff] %v17307_v38  ;;  %v3600_v7 = vpop.f32.mrf.mxu1  ;;  %v3599_v59 = vadd.f32 %v3598_v42, %v3246_v58  ;;  %v3248_v24 = vadd.f32 %v3247_v51, %v21194_v30  ;;  %v5276_v13 = vmax.f32 %v3597_v23, 0.0  ;;  %v21201_v51 = vld [vmem:[#allocation258_spill] sm:$0xff] }
 0x2e4   : > { %v3251_v6 = vpop.f32.mrf.mxu0  ;;  %3876 = vmatmul.mubr.bf16.gmra.mxu0 %v21195_v41 }
 0x2e5   : > { %v3604_v43 = vpop.f32.mrf.mxu1  ;;  %4229 = vmatmul.mubr.bf16.gmra.mxu1 %v21196_v3  ;;  %v5279_v32 = vmax.f32 %v3599_v59, 0.0  ;;  %v3601_v54 = vadd.f32 %v3600_v7, %v3248_v24  ;;  %v3252_v21 = vadd.f32 %v3251_v6, %v21197_v20  ;;  %3885 = vmatprep.mubr.bf16.mxu0 %v21198_v39  ;;  %v21202_v59 = vld [vmem:[#allocation260_spill] sm:$0xff] }
 0x2e6   : > { %4238 = vmatprep.mubr.bf16.mxu1 %v21199_v34  ;;  %v3253_v46 = vpop.f32.mrf.mxu0  ;;  %v21204_v34 = vld [vmem:[#allocation261_spill] sm:$0xff] }
 0x2e7   : > { %v3606_v25 = vpop.f32.mrf.mxu1  ;;  %v17315_v42 = vpack.c.bf16 %v5279_v32, %v5275_v44  ;;  %v5280_v47 = vmax.f32 %v3601_v54, 0.0  ;;  %v3605_v58 = vadd.f32 %v3604_v43, %v3252_v21  ;;  %v3254_v30 = vadd.f32 %v3253_v46, %v21201_v51  ;;  %v21205_v44 = vld [vmem:[#allocation80_spill] sm:$0xff]  ;;  %v21206_v32 = vld [vmem:[#allocation81_spill] sm:$0xff]  ;;  %v21207_v46 = vld [vmem:[#allocation262_spill] sm:$0xff] }
 0x2e8   : > { %v3255_v41 = vpop.f32.mrf.mxu0  ;;  %v21208_v51 = vld [vmem:[#allocation82_spill] sm:$0xff] }
 0x2e9   : > { %21200 = vst [vmem:[#allocation166_spill] sm:$0xff] %v17315_v42  ;;  %v3608_v3 = vpop.f32.mrf.mxu1  ;;  %v3607_v8 = vadd.f32 %v3606_v25, %v3254_v30  ;;  %v3256_v7 = vadd.f32 %v3255_v41, %v21202_v59  ;;  %v17319_v24 = vpack.c.bf16 %v5280_v47, %v5276_v13  ;;  %v5283_v43 = vmax.f32 %v3605_v58, 0.0  ;;  %v21209_v13 = vld [vmem:[#allocation83_spill] sm:$0xff] }
 0x2ea   : > { %v3257_v6 = vpop.f32.mrf.mxu0 }
 0x2eb   : > { %21203 = vst [vmem:[#allocation26_spill] sm:$0xff] %v17319_v24  ;;  %v3610_v20 = vpop.f32.mrf.mxu1  ;;  %v3609_v39 = vadd.f32 %v3608_v3, %v3256_v7  ;;  %v3258_v23 = vadd.f32 %v3257_v6, %v21204_v34  ;;  %v5284_v47 = vmax.f32 %v3607_v8, 0.0  ;;  %v21211_v6 = vld [vmem:[#allocation265_spill] sm:$0xff] }
 0x2ec   : > { %v3261_v15 = vpop.f32.mrf.mxu0  ;;  %3886 = vmatmul.mubr.bf16.gmra.mxu0 %v21205_v44 }
 0x2ed   : > { %v3614_v38 = vpop.f32.mrf.mxu1  ;;  %4239 = vmatmul.mubr.bf16.gmra.mxu1 %v21206_v32  ;;  %v5287_v54 = vmax.f32 %v3609_v39, 0.0  ;;  %v3611_v21 = vadd.f32 %v3610_v20, %v3258_v23  ;;  %v3262_v25 = vadd.f32 %v3261_v15, %v21207_v46  ;;  %3895 = vmatprep.mubr.bf16.mxu0 %v21208_v51  ;;  %v21212_v39 = vld [vmem:[#allocation267_spill] sm:$0xff] }
 0x2ee   : > { %4248 = vmatprep.mubr.bf16.mxu1 %v21209_v13  ;;  %v3263_v30 = vpop.f32.mrf.mxu0  ;;  %v21214_v13 = vld [vmem:[#allocation268_spill] sm:$0xff] }
 0x2ef   : > { %v3616_v41 = vpop.f32.mrf.mxu1  ;;  %v17327_v3 = vpack.c.bf16 %v5287_v54, %v5283_v43  ;;  %v5288_v59 = vmax.f32 %v3611_v21, 0.0  ;;  %v3615_v7 = vadd.f32 %v3614_v38, %v3262_v25  ;;  %v3264_v34 = vadd.f32 %v3263_v30, %v21211_v6  ;;  %v21215_v43 = vld [vmem:[#allocation84_spill] sm:$0xff]  ;;  %v21216_v54 = vld [vmem:[#allocation85_spill] sm:$0xff]  ;;  %v21218_v6 = vld [vmem:[#allocation86_spill] sm:$0xff] }
 0x2f0   : > { %v3265_v44 = vpop.f32.mrf.mxu0  ;;  %v21217_v30 = vld [vmem:[#allocation269_spill] sm:$0xff] }
 0x2f1   : > { %21210 = vst [vmem:[#allocation27_spill] sm:$0xff] %v17327_v3  ;;  %v3618_v32 = vpop.f32.mrf.mxu1  ;;  %v3617_v58 = vadd.f32 %v3616_v41, %v3264_v34  ;;  %v3266_v20 = vadd.f32 %v3265_v44, %v21212_v39  ;;  %v17331_v23 = vpack.c.bf16 %v5288_v59, %v5284_v47  ;;  %v5291_v38 = vmax.f32 %v3615_v7, 0.0  ;;  %v21219_v47 = vld [vmem:[#allocation87_spill] sm:$0xff] }
 0x2f2   : > { %v3267_v15 = vpop.f32.mrf.mxu0 }
 0x2f3   : > { %21213 = vst [vmem:[#allocation169_spill] sm:$0xff] %v17331_v23  ;;  %v3620_v46 = vpop.f32.mrf.mxu1  ;;  %v3619_v51 = vadd.f32 %v3618_v32, %v3266_v20  ;;  %v3268_v8 = vadd.f32 %v3267_v15, %v21214_v13  ;;  %v5292_v59 = vmax.f32 %v3617_v58, 0.0  ;;  %v21221_v15 = vld [vmem:[#allocation272_spill] sm:$0xff] }
 0x2f4   : > { %v3271_v42 = vpop.f32.mrf.mxu0  ;;  %3896 = vmatmul.mubr.bf16.gmra.mxu0 %v21215_v43 }
 0x2f5   : > { %v3624_v24 = vpop.f32.mrf.mxu1  ;;  %4249 = vmatmul.mubr.bf16.gmra.mxu1 %v21216_v54  ;;  %v5295_v21 = vmax.f32 %v3619_v51, 0.0  ;;  %v3621_v25 = vadd.f32 %v3620_v46, %v3268_v8  ;;  %v3272_v41 = vadd.f32 %v3271_v42, %v21217_v30  ;;  %3905 = vmatprep.mubr.bf16.mxu0 %v21218_v6  ;;  %v21222_v51 = vld [vmem:[#allocation274_spill] sm:$0xff] }
 0x2f6   : > { %4258 = vmatprep.mubr.bf16.mxu1 %v21219_v47  ;;  %v3273_v34 = vpop.f32.mrf.mxu0  ;;  %v21224_v47 = vld [vmem:[#allocation275_spill] sm:$0xff] }
 0x2f7   : > { %v3626_v44 = vpop.f32.mrf.mxu1  ;;  %v17339_v32 = vpack.c.bf16 %v5295_v21, %v5291_v38  ;;  %v5296_v39 = vmax.f32 %v3621_v25, 0.0  ;;  %v3625_v20 = vadd.f32 %v3624_v24, %v3272_v41  ;;  %v3274_v13 = vadd.f32 %v3273_v34, %v21221_v15  ;;  %v21225_v38 = vld [vmem:[#allocation88_spill] sm:$0xff]  ;;  %v21226_v21 = vld [vmem:[#allocation89_spill] sm:$0xff]  ;;  %v21228_v15 = vld [vmem:[#allocation90_spill] sm:$0xff] }
 0x2f8   : > { %v3275_v43 = vpop.f32.mrf.mxu0  ;;  %v21227_v34 = vld [vmem:[#allocation276_spill] sm:$0xff] }
 0x2f9   : > { %21220 = vst [vmem:[#allocation171_spill] sm:$0xff] %v17339_v32  ;;  %v3628_v54 = vpop.f32.mrf.mxu1  ;;  %v3627_v7 = vadd.f32 %v3626_v44, %v3274_v13  ;;  %v3276_v46 = vadd.f32 %v3275_v43, %v21222_v51  ;;  %v17343_v8 = vpack.c.bf16 %v5296_v39, %v5292_v59  ;;  %v5299_v24 = vmax.f32 %v3625_v20, 0.0  ;;  %v21229_v59 = vld [vmem:[#allocation91_spill] sm:$0xff] }
 0x2fa   : > { %v3277_v42 = vpop.f32.mrf.mxu0 }
 0x2fb   : > { %21223 = vst [vmem:[#allocation172_spill] sm:$0xff] %v17343_v8  ;;  %v3630_v30 = vpop.f32.mrf.mxu1  ;;  %v3629_v6 = vadd.f32 %v3628_v54, %v3276_v46  ;;  %v3278_v58 = vadd.f32 %v3277_v42, %v21224_v47  ;;  %v5300_v39 = vmax.f32 %v3627_v7, 0.0  ;;  %v21231_v42 = vld [vmem:[#allocation279_spill] sm:$0xff] }
 0x2fc   : > { %v3281_v3 = vpop.f32.mrf.mxu0  ;;  %3906 = vmatmul.mubr.bf16.gmra.mxu0 %v21225_v38 }
 0x2fd   : > { %v3634_v23 = vpop.f32.mrf.mxu1  ;;  %4259 = vmatmul.mubr.bf16.gmra.mxu1 %v21226_v21  ;;  %v5303_v25 = vmax.f32 %v3629_v6, 0.0  ;;  %v3631_v41 = vadd.f32 %v3630_v30, %v3278_v58  ;;  %v3282_v44 = vadd.f32 %v3281_v3, %v21227_v34  ;;  %3915 = vmatprep.mubr.bf16.mxu0 %v21228_v15  ;;  %v21232_v6 = vld [vmem:[#allocation281_spill] sm:$0xff] }
 0x2fe   : > { %4268 = vmatprep.mubr.bf16.mxu1 %v21229_v59  ;;  %v3283_v13 = vpop.f32.mrf.mxu0  ;;  %v21234_v59 = vld [vmem:[#allocation282_spill] sm:$0xff] }
 0x2ff   : > { %v3636_v43 = vpop.f32.mrf.mxu1  ;;  %v17351_v54 = vpack.c.bf16 %v5303_v25, %v5299_v24  ;;  %v5304_v51 = vmax.f32 %v3631_v41, 0.0  ;;  %v3635_v46 = vadd.f32 %v3634_v23, %v3282_v44  ;;  %v3284_v47 = vadd.f32 %v3283_v13, %v21231_v42  ;;  %v21235_v24 = vld [vmem:[#allocation92_spill] sm:$0xff]  ;;  %v21236_v25 = vld [vmem:[#allocation93_spill] sm:$0xff]  ;;  %v21237_v13 = vld [vmem:[#allocation283_spill] sm:$0xff] }
 0x300   : > { %v3285_v38 = vpop.f32.mrf.mxu0  ;;  %v21238_v42 = vld [vmem:[#allocation94_spill] sm:$0xff] }
 0x301   : > { %21230 = vst [vmem:[#allocation28_spill] sm:$0xff] %v17351_v54  ;;  %v3638_v21 = vpop.f32.mrf.mxu1  ;;  %v3637_v20 = vadd.f32 %v3636_v43, %v3284_v47  ;;  %v3286_v30 = vadd.f32 %v3285_v38, %v21232_v6  ;;  %v17355_v58 = vpack.c.bf16 %v5304_v51, %v5300_v39  ;;  %v5307_v23 = vmax.f32 %v3635_v46, 0.0  ;;  %v21239_v39 = vld [vmem:[#allocation95_spill] sm:$0xff] }
 0x302   : > { %v3287_v3 = vpop.f32.mrf.mxu0 }
 0x303   : > { %21233 = vst [vmem:[#allocation29_spill] sm:$0xff] %v17355_v58  ;;  %v3640_v34 = vpop.f32.mrf.mxu1  ;;  %v3639_v15 = vadd.f32 %v3638_v21, %v3286_v30  ;;  %v3288_v7 = vadd.f32 %v3287_v3, %v21234_v59  ;;  %v5308_v51 = vmax.f32 %v3637_v20, 0.0  ;;  %v21241_v3 = vld [vmem:[#allocation286_spill] sm:$0xff] }
 0x304   : > { %v3291_v32 = vpop.f32.mrf.mxu0  ;;  %3916 = vmatmul.mubr.bf16.gmra.mxu0 %v21235_v24 }
 0x305   : > { %v3644_v8 = vpop.f32.mrf.mxu1  ;;  %4269 = vmatmul.mubr.bf16.gmra.mxu1 %v21236_v25  ;;  %v5311_v41 = vmax.f32 %v3639_v15, 0.0  ;;  %v3641_v44 = vadd.f32 %v3640_v34, %v3288_v7  ;;  %v3292_v43 = vadd.f32 %v3291_v32, %v21237_v13  ;;  %3925 = vmatprep.mubr.bf16.mxu0 %v21238_v42  ;;  %v21242_v15 = vld [vmem:[#allocation288_spill] sm:$0xff] }
 0x306   : > { %4278 = vmatprep.mubr.bf16.mxu1 %v21239_v39  ;;  %v3293_v47 = vpop.f32.mrf.mxu0  ;;  %v21244_v39 = vld [vmem:[#allocation289_spill] sm:$0xff] }
 0x307   : > { %v3646_v38 = vpop.f32.mrf.mxu1  ;;  %v17363_v21 = vpack.c.bf16 %v5311_v41, %v5307_v23  ;;  %v5312_v6 = vmax.f32 %v3641_v44, 0.0  ;;  %v3645_v30 = vadd.f32 %v3644_v8, %v3292_v43  ;;  %v3294_v59 = vadd.f32 %v3293_v47, %v21241_v3  ;;  %v21245_v23 = vld [vmem:[#allocation97_spill] sm:$0xff]  ;;  %v21246_v41 = vld [vmem:[#allocation98_spill] sm:$0xff]  ;;  %v21247_v8 = vld [vmem:[#allocation96_spill] sm:$0xff] }
 0x308   : > { %v3295_v24 = vpop.f32.mrf.mxu0  ;;  %v21248_v3 = vld [vmem:[#allocation290_spill] sm:$0xff] }
 0x309   : > { %21240 = vst [vmem:[#allocation173_spill] sm:$0xff] %v17363_v21  ;;  %v3648_v25 = vpop.f32.mrf.mxu1  ;;  %v3647_v46 = vadd.f32 %v3646_v38, %v3294_v59  ;;  %v3296_v34 = vadd.f32 %v3295_v24, %v21242_v15  ;;  %v17367_v7 = vpack.c.bf16 %v5312_v6, %v5308_v51  ;;  %v5315_v43 = vmax.f32 %v3645_v30, 0.0  ;;  %v21249_v51 = vld [vmem:[#allocation99_spill] sm:$0xff]  ;;  %v21250_v6 = vld [vmem:[#allocation100_spill] sm:$0xff] }
 0x30a   : > { %v3297_v32 = vpop.f32.mrf.mxu0 }
 0x30b   : > { %21243 = vst [vmem:[#allocation30_spill] sm:$0xff] %v17367_v7  ;;  %v3650_v13 = vpop.f32.mrf.mxu1  ;;  %v3649_v42 = vadd.f32 %v3648_v25, %v3296_v34  ;;  %v3298_v20 = vadd.f32 %v3297_v32, %v21244_v39  ;;  %v5316_v24 = vmax.f32 %v3647_v46, 0.0  ;;  %v20633_v34 = vsub.s32 3, %v21247_v8 }
 0x30c   : > { %v3301_v54 = vpop.f32.mrf.mxu0  ;;  %3926 = vmatmul.mubr.bf16.gmra.mxu0 %v21245_v23  ;;  %v21254_v46 = vsub.s32 2, %v21247_v8 }
 0x30d   : > { %v3654_v58 = vpop.f32.mrf.mxu1  ;;  %4279 = vmatmul.mubr.bf16.gmra.mxu1 %v21246_v41  ;;  %v5319_v47 = vmax.f32 %v3649_v42, 0.0  ;;  %v3651_v38 = vadd.f32 %v3650_v13, %v3298_v20  ;;  %v3302_v59 = vadd.f32 %v3301_v54, %v21248_v3  ;;  %3935 = vmatprep.mubr.bf16.mxu0 %v21249_v51  ;;  %v21252_v41 = vld [vmem:[#allocation293_spill] sm:$0xff]  ;;  %v21253_v20 = vld [vmem:[#allocation295_spill] sm:$0xff]  ;;  %v14692_v3 = vld [vmem:[%s20380_s2] sm:$0xf] }
 0x30e   : > { %4288 = vmatprep.mubr.bf16.mxu1 %v21250_v6  ;;  %v3303_v25 = vpop.f32.mrf.mxu0  ;;  %v17386_v51 = vrot.slane %v14692_v3, %v21254_v46 }
 0x30f   : > { %v3656_v15 = vpop.f32.mrf.mxu1  ;;  %v17377_v32 = vpack.c.bf16 %v5319_v47, %v5315_v43  ;;  %v5320_v39 = vmax.f32 %v3651_v38, 0.0  ;;  %v3655_v23 = vadd.f32 %v3654_v58, %v3302_v59  ;;  %v3304_v44 = vadd.f32 %v3303_v25, %v21252_v41  ;;  %v21256_v38 = vld [vmem:[#allocation296_spill] sm:$0xff] }
 0x310   : > { %v3305_v30 = vpop.f32.mrf.mxu0 }
 0x311   : > { %21251 = vst [vmem:[#allocation31_spill] sm:$0xff] %v17377_v32  ;;  %v3658_v42 = vpop.f32.mrf.mxu1  ;;  %v3657_v13 = vadd.f32 %v3656_v15, %v3304_v44  ;;  %v3306_v54 = vadd.f32 %v3305_v30, %v21253_v20  ;;  %v17388_v6 = vpack.c.bf16 %v5320_v39, %v5316_v24  ;;  %v17393_v44 = vrot.slane %v14692_v3, %v20633_v34  ;;  %v21257_v15 = vld [vmem:[#allocation101_spill] sm:$0xff]  ;;  %v21258_v30 = vld [vmem:[#allocation102_spill] sm:$0xff]  ;;  %v21259_v39 = vld [vmem:[#allocation103_spill] sm:$0xff] }
 0x312   : > { %v3307_v43 = vpop.f32.mrf.mxu0  ;;  %v5323_v20 = vmax.f32 %v3655_v23, 0.0 }
 0x313   : > { %21255 = vst [vmem:[#allocation176_spill] sm:$0xff] %v17388_v6  ;;  %v3660_v47 = vpop.f32.mrf.mxu1  ;;  %v3659_v58 = vadd.f32 %v3658_v42, %v3306_v54  ;;  %v3308_v59 = vadd.f32 %v3307_v43, %v21256_v38  ;;  %v21260_v42 = vld [vmem:[#allocation104_spill] sm:$0xff]  ;;  %v5324_v54 = vmax.f32 %v3657_v13, 0.0 }
 0x314   : > { %v3697_v25 = vpop.f32.mrf.mxu0  ;;  %3936 = vmatmul.mubr.bf16.gmra.mxu0 %v21257_v15 }
 0x315   : > { %v4050_v41 = vpop.f32.mrf.mxu1  ;;  %4289 = vmatmul.mubr.bf16.gmra.mxu1 %v21258_v30  ;;  %v5327_v46 = vmax.f32 %v3659_v58, 0.0  ;;  %v3661_v32 = vadd.f32 %v3660_v47, %v3308_v59  ;;  %v3698_v24 = vadd.f32 %v3697_v25, %v17386_v51  ;;  %3945 = vmatprep.mubr.bf16.mxu0 %v21259_v39 }
 0x316   : > { %4298 = vmatprep.mubr.bf16.mxu1 %v21260_v42  ;;  %v3699_v43 = vpop.f32.mrf.mxu0 }
 0x317   : > { %v4052_v38 = vpop.f32.mrf.mxu1  ;;  %v17400_v3 = vpack.c.bf16 %v5327_v46, %v5323_v20  ;;  %v5328_v34 = vmax.f32 %v3661_v32, 0.0  ;;  %v17402_v6 = vadd.f32 %v4050_v41, %v3698_v24  ;;  %v3700_v15 = vadd.f32 %v3699_v43, %v17393_v44  ;;  %v21263_v32 = vld [vmem:[#allocation105_spill] sm:$0xff]  ;;  %v21264_v24 = vld [vmem:[#allocation106_spill] sm:$0xff] }
 0x318   : > { %v3701_v30 = vpop.f32.mrf.mxu0 }
 0x319   : > { %21261 = vst [vmem:[#allocation178_spill] sm:$0xff] %v17400_v3  ;;  %v4054_v23 = vpop.f32.mrf.mxu1  ;;  %v17405_v58 = vadd.f32 %v4052_v38, %v3700_v15  ;;  %v3702_v47 = vadd.f32 %v3701_v30, %v17386_v51  ;;  %v17408_v59 = vpack.c.bf16 %v5328_v34, %v5324_v54  ;;  %v21265_v38 = vld [vmem:[#allocation107_spill] sm:$0xff]  ;;  %v21266_v34 = vld [vmem:[#allocation108_spill] sm:$0xff] }
 0x31a   : > { %v3703_v25 = vpop.f32.mrf.mxu0 }
 0x31b   : > { %21262 = vst [vmem:[#allocation179_spill] sm:$0xff] %v17408_v59  ;;  %v4056_v39 = vpop.f32.mrf.mxu1  ;;  %v17410_v13 = vadd.f32 %v4054_v23, %v3702_v47  ;;  %v3704_v20 = vadd.f32 %v3703_v25, %v17393_v44 }
 0x31c   : > { %v3707_v46 = vpop.f32.mrf.mxu0  ;;  %3946 = vmatmul.mubr.bf16.gmra.mxu0 %v21263_v32 }
 0x31d   : > { %v4060_v41 = vpop.f32.mrf.mxu1  ;;  %4299 = vmatmul.mubr.bf16.gmra.mxu1 %v21264_v24  ;;  %v17415_v42 = vadd.f32 %v4056_v39, %v3704_v20  ;;  %v3708_v43 = vadd.f32 %v3707_v46, %v17386_v51  ;;  %3955 = vmatprep.mubr.bf16.mxu0 %v21265_v38 }
 0x31e   : > { %4308 = vmatprep.mubr.bf16.mxu1 %v21266_v34  ;;  %v3709_v54 = vpop.f32.mrf.mxu0  ;;  %v21267_v34 = vld [vmem:[#allocation109_spill] sm:$0xff] }
 0x31f   : > { %v4062_v15 = vpop.f32.mrf.mxu1  ;;  %v17420_v30 = vadd.f32 %v4060_v41, %v3708_v43  ;;  %v3710_v23 = vadd.f32 %v3709_v54, %v17393_v44  ;;  %v21268_v41 = vld [vmem:[#allocation110_spill] sm:$0xff] }
 0x320   : > { %v3711_v47 = vpop.f32.mrf.mxu0 }
 0x321   : > { %v4064_v25 = vpop.f32.mrf.mxu1  ;;  %v17423_v32 = vadd.f32 %v4062_v15, %v3710_v23  ;;  %v3712_v24 = vadd.f32 %v3711_v47, %v17386_v51  ;;  %v21269_v15 = vld [vmem:[#allocation111_spill] sm:$0xff]  ;;  %v21270_v23 = vld [vmem:[#allocation112_spill] sm:$0xff] }
 0x322   : > { %v3713_v39 = vpop.f32.mrf.mxu0 }
 0x323   : > { %v4066_v20 = vpop.f32.mrf.mxu1  ;;  %v17426_v3 = vadd.f32 %v4064_v25, %v3712_v24  ;;  %v3714_v46 = vadd.f32 %v3713_v39, %v17393_v44 }
 0x324   : > { %v3717_v38 = vpop.f32.mrf.mxu0  ;;  %3956 = vmatmul.mubr.bf16.gmra.mxu0 %v21267_v34 }
 0x325   : > { %v4070_v59 = vpop.f32.mrf.mxu1  ;;  %4309 = vmatmul.mubr.bf16.gmra.mxu1 %v21268_v41  ;;  %v17431_v43 = vadd.f32 %v4066_v20, %v3714_v46  ;;  %v3718_v54 = vadd.f32 %v3717_v38, %v17386_v51  ;;  %3965 = vmatprep.mubr.bf16.mxu0 %v21269_v15 }
 0x326   : > { %4318 = vmatprep.mubr.bf16.mxu1 %v21270_v23  ;;  %v3719_v47 = vpop.f32.mrf.mxu0  ;;  %v21271_v23 = vld [vmem:[#allocation113_spill] sm:$0xff] }
 0x327   : > { %v4072_v21 = vpop.f32.mrf.mxu1  ;;  %v17436_v25 = vadd.f32 %v4070_v59, %v3718_v54  ;;  %v3720_v24 = vadd.f32 %v3719_v47, %v17393_v44  ;;  %v21272_v59 = vld [vmem:[#allocation114_spill] sm:$0xff] }
 0x328   : > { %v3721_v39 = vpop.f32.mrf.mxu0 }
 0x329   : > { %v4074_v7 = vpop.f32.mrf.mxu1  ;;  %v17439_v34 = vadd.f32 %v4072_v21, %v3720_v24  ;;  %v3722_v41 = vadd.f32 %v3721_v39, %v17386_v51  ;;  %v21273_v21 = vld [vmem:[#allocation115_spill] sm:$0xff]  ;;  %v21274_v24 = vld [vmem:[#allocation116_spill] sm:$0xff] }
 0x32a   : > { %v3723_v20 = vpop.f32.mrf.mxu0 }
 0x32b   : > { %v4076_v46 = vpop.f32.mrf.mxu1  ;;  %v17442_v8 = vadd.f32 %v4074_v7, %v3722_v41  ;;  %v3724_v38 = vadd.f32 %v3723_v20, %v17393_v44 }
 0x32c   : > { %v3727_v15 = vpop.f32.mrf.mxu0  ;;  %3966 = vmatmul.mubr.bf16.gmra.mxu0 %v21271_v23 }
 0x32d   : > { %v4080_v5 = vpop.f32.mrf.mxu1  ;;  %4319 = vmatmul.mubr.bf16.gmra.mxu1 %v21272_v59  ;;  %v17447_v54 = vadd.f32 %v4076_v46, %v3724_v38  ;;  %v3728_v47 = vadd.f32 %v3727_v15, %v17386_v51  ;;  %3975 = vmatprep.mubr.bf16.mxu0 %v21273_v21 }
 0x32e   : > { %4328 = vmatprep.mubr.bf16.mxu1 %v21274_v24  ;;  %v3729_v39 = vpop.f32.mrf.mxu0  ;;  %v21275_v24 = vld [vmem:[#allocation117_spill] sm:$0xff] }
 0x32f   : > { %v4082_v11 = vpop.f32.mrf.mxu1  ;;  %v17452_v7 = vadd.f32 %v4080_v5, %v3728_v47  ;;  %v3730_v41 = vadd.f32 %v3729_v39, %v17393_v44  ;;  %v21276_v5 = vld [vmem:[#allocation118_spill] sm:$0xff] }
 0x330   : > { %v3731_v20 = vpop.f32.mrf.mxu0 }
 0x331   : > { %v4084_v63 = vpop.f32.mrf.mxu1  ;;  %v17455_v23 = vadd.f32 %v4082_v11, %v3730_v41  ;;  %v3732_v59 = vadd.f32 %v3731_v20, %v17386_v51  ;;  %v21277_v11 = vld [vmem:[#allocation119_spill] sm:$0xff]  ;;  %v21278_v41 = vld [vmem:[#allocation120_spill] sm:$0xff] }
 0x332   : > { %v3733_v46 = vpop.f32.mrf.mxu0 }
 0x333   : > { %v4086_v38 = vpop.f32.mrf.mxu1  ;;  %v17458_v60 = vadd.f32 %v4084_v63, %v3732_v59  ;;  %v3734_v15 = vadd.f32 %v3733_v46, %v17393_v44 }
 0x334   : > { %v3737_v21 = vpop.f32.mrf.mxu0  ;;  %3976 = vmatmul.mubr.bf16.gmra.mxu0 %v21275_v24 }
 0x335   : > { %v4090_v26 = vpop.f32.mrf.mxu1  ;;  %4329 = vmatmul.mubr.bf16.gmra.mxu1 %v21276_v5  ;;  %v17463_v47 = vadd.f32 %v4086_v38, %v3734_v15  ;;  %v3738_v39 = vadd.f32 %v3737_v21, %v17386_v51  ;;  %3985 = vmatprep.mubr.bf16.mxu0 %v21277_v11 }
 0x336   : > { %4338 = vmatprep.mubr.bf16.mxu1 %v21278_v41  ;;  %v3739_v20 = vpop.f32.mrf.mxu0  ;;  %v21279_v41 = vld [vmem:[#allocation121_spill] sm:$0xff] }
 0x337   : > { %v4092_v12 = vpop.f32.mrf.mxu1  ;;  %v17468_v63 = vadd.f32 %v4090_v26, %v3738_v39  ;;  %v3740_v59 = vadd.f32 %v3739_v20, %v17393_v44  ;;  %v21280_v26 = vld [vmem:[#allocation122_spill] sm:$0xff] }
 0x338   : > { %v3741_v46 = vpop.f32.mrf.mxu0 }
 0x339   : > { %v4094_v33 = vpop.f32.mrf.mxu1  ;;  %v17471_v24 = vadd.f32 %v4092_v12, %v3740_v59  ;;  %v3742_v5 = vadd.f32 %v3741_v46, %v17386_v51  ;;  %v21281_v12 = vld [vmem:[#allocation123_spill] sm:$0xff]  ;;  %v21282_v59 = vld [vmem:[#allocation124_spill] sm:$0xff] }
 0x33a   : > { %v3743_v38 = vpop.f32.mrf.mxu0 }
 0x33b   : > { %v4096_v15 = vpop.f32.mrf.mxu1  ;;  %v17474_v16 = vadd.f32 %v4094_v33, %v3742_v5  ;;  %v3744_v21 = vadd.f32 %v3743_v38, %v17393_v44 }
 0x33c   : > { %v3747_v11 = vpop.f32.mrf.mxu0  ;;  %3986 = vmatmul.mubr.bf16.gmra.mxu0 %v21279_v41 }
 0x33d   : > { %v4100_v53 = vpop.f32.mrf.mxu1  ;;  %4339 = vmatmul.mubr.bf16.gmra.mxu1 %v21280_v26  ;;  %v17479_v39 = vadd.f32 %v4096_v15, %v3744_v21  ;;  %v3748_v20 = vadd.f32 %v3747_v11, %v17386_v51  ;;  %3995 = vmatprep.mubr.bf16.mxu0 %v21281_v12 }
 0x33e   : > { %4348 = vmatprep.mubr.bf16.mxu1 %v21282_v59  ;;  %v3749_v46 = vpop.f32.mrf.mxu0  ;;  %v21283_v59 = vld [vmem:[#allocation125_spill] sm:$0xff] }
 0x33f   : > { %v4102_v17 = vpop.f32.mrf.mxu1  ;;  %v17484_v33 = vadd.f32 %v4100_v53, %v3748_v20  ;;  %v3750_v5 = vadd.f32 %v3749_v46, %v17393_v44  ;;  %v21284_v53 = vld [vmem:[#allocation126_spill] sm:$0xff] }
 0x340   : > { %v3751_v38 = vpop.f32.mrf.mxu0 }
 0x341   : > { %v4104_v28 = vpop.f32.mrf.mxu1  ;;  %v17487_v41 = vadd.f32 %v4102_v17, %v3750_v5  ;;  %v3752_v26 = vadd.f32 %v3751_v38, %v17386_v51  ;;  %v21285_v17 = vld [vmem:[#allocation127_spill] sm:$0xff]  ;;  %v21286_v5 = vld [vmem:[#allocation128_spill] sm:$0xff] }
 0x342   : > { %v3753_v15 = vpop.f32.mrf.mxu0 }
 0x343   : > { %v4106_v21 = vpop.f32.mrf.mxu1  ;;  %v17490_v40 = vadd.f32 %v4104_v28, %v3752_v26  ;;  %v3754_v11 = vadd.f32 %v3753_v15, %v17393_v44 }
 0x344   : > { %v3757_v12 = vpop.f32.mrf.mxu0  ;;  %3996 = vmatmul.mubr.bf16.gmra.mxu0 %v21283_v59 }
 0x345   : > { %v4110_v31 = vpop.f32.mrf.mxu1  ;;  %4349 = vmatmul.mubr.bf16.gmra.mxu1 %v21284_v53  ;;  %v17495_v20 = vadd.f32 %v4106_v21, %v3754_v11  ;;  %v3758_v46 = vadd.f32 %v3757_v12, %v17386_v51  ;;  %4005 = vmatprep.mubr.bf16.mxu0 %v21285_v17 }
 0x346   : > { %4358 = vmatprep.mubr.bf16.mxu1 %v21286_v5  ;;  %v3759_v38 = vpop.f32.mrf.mxu0  ;;  %v21287_v5 = vld [vmem:[#allocation129_spill] sm:$0xff] }
 0x347   : > { %v4112_v61 = vpop.f32.mrf.mxu1  ;;  %v17500_v28 = vadd.f32 %v4110_v31, %v3758_v46  ;;  %v3760_v26 = vadd.f32 %v3759_v38, %v17393_v44  ;;  %v21288_v31 = vld [vmem:[#allocation130_spill] sm:$0xff] }
 0x348   : > { %v3761_v15 = vpop.f32.mrf.mxu0 }
 0x349   : > { %v4114_v27 = vpop.f32.mrf.mxu1  ;;  %v17503_v59 = vadd.f32 %v4112_v61, %v3760_v26  ;;  %v3762_v53 = vadd.f32 %v3761_v15, %v17386_v51  ;;  %v21290_v61 = vld [vmem:[#allocation131_spill] sm:$0xff] }
 0x34a   : > { %v3763_v21 = vpop.f32.mrf.mxu0 }
 0x34b   : > { %v4116_v11 = vpop.f32.mrf.mxu1  ;;  %v17506_v55 = vadd.f32 %v4114_v27, %v3762_v53  ;;  %v3764_v12 = vadd.f32 %v3763_v21, %v17393_v44 }
 0x34c   : > { %v3767_v17 = vpop.f32.mrf.mxu0  ;;  %4006 = vmatmul.mubr.bf16.gmra.mxu0 %v21287_v5 }
 0x34d   : > { %v4120_v2 = vpop.f32.mrf.mxu1  ;;  %4359 = vmatmul.mubr.bf16.gmra.mxu1 %v21288_v31  ;;  %v17511_v46 = vadd.f32 %v4116_v11, %v3764_v12  ;;  %v3768_v38 = vadd.f32 %v3767_v17, %v17386_v51  ;;  %4401 = vmatprep.mubr.bf16.mxu0 %v21290_v61  ;;  %v14468_v11 = vld [vmem:[%s20381_s3 + $0xe0] ss:$16 sps:$4 sm:$0xff]  }
 0x34e   : > { %4754 = vmatprep.mubr.bf16.mxu1 %v20841_v49  ;;  %v3769_v26 = vpop.f32.mrf.mxu0  ;;  %v14471_v12 = vld [vmem:[%s20381_s3 + $0x2e0] ss:$16 sps:$4 sm:$0xff]  }
 0x34f   : > { %21289 = vst [vmem:[#allocation32_spill] sm:$0xff] %v17511_v46  ;;  %v4122_v15 = vpop.f32.mrf.mxu1  ;;  %v17516_v27 = vadd.f32 %v4120_v2, %v3768_v38  ;;  %v3770_v53 = vadd.f32 %v3769_v26, %v17393_v44  ;;  %v14476_v26 = vld [vmem:[%s20381_s3 + $0xc4] ss:$16 sps:$4 sm:$0xff]   ;;  %v14480_v46 = vld [vmem:[%s20381_s3 + $0xa0] ss:$16 sps:$4 sm:$0xff]  }
 0x350   : > { %v3771_v21 = vpop.f32.mrf.mxu0 }
 0x351   : > { %21291 = vst [vmem:[#allocation33_spill] sm:$0xff] %v17516_v27  ;;  %v4124_v52 = vpop.f32.mrf.mxu1  ;;  %v17519_v5 = vadd.f32 %v4122_v15, %v3770_v53  ;;  %v3772_v31 = vadd.f32 %v3771_v21, %v17386_v51  ;;  %v14479_v15 = vld [vmem:[%s20381_s3 + $0x2c4] ss:$16 sps:$4 sm:$0xff]  }
 0x352   : > { %v3773_v17 = vpop.f32.mrf.mxu0 }
 0x353   : > { %21292 = vst [vmem:[#allocation180_spill] sm:$0xff] %v17519_v5  ;;  %v4126_v61 = vpop.f32.mrf.mxu1  ;;  %v17528_v2 = vadd.f32 %v4124_v52, %v3772_v31  ;;  %v3774_v38 = vadd.f32 %v3773_v17, %v17393_v44  ;;  %v21295_v5 = vld [vmem:[#allocation133_spill] sm:$0xff]  ;;  %v14474_v31 = vld [vmem:[%s20381_s3 + $0xc0] ss:$16 sps:$4 sm:$0xff]  }
 0x354   : > { %v3777_v53 = vpop.f32.mrf.mxu0  ;;  %4402 = vmatmul.mubr.bf16.vlgmr.msra.gmra.mxu0 %v21294_v56  ;;  %v14477_v17 = vld [vmem:[%s20381_s3 + $0x2c0] ss:$16 sps:$4 sm:$0xff]  }
 0x355   : > { %21293 = vst [vmem:[#allocation34_spill] sm:$0xff] %v17528_v2  ;;  %v4130_v21 = vpop.f32.mrf.mxu1  ;;  %12589 = vmatmul.mubr.msk.bf16.vlgmr.msra.gmra.mxu1 %vm2154_vm0, %v21295_v5  ;;  %v17540_v50 = vadd.f32 %v4126_v61, %v3774_v38  ;;  %v3778_v52 = vadd.f32 %v3777_v53, %v17386_v51  ;;  %7786 = vmatpush1.bf16.msra.mxu0 %v14468_v11  ;;  %v21297_v56 = vld [vmem:[#allocation134_spill] sm:$0xff] }
 0x356   : > { %8139 = vmatpush1.bf16.msra.mxu1 %v14471_v12  ;;  %v3779_v2 = vpop.f32.mrf.mxu0  ;;  %4411 = vmatprep.mubr.bf16.mxu0 %v21297_v56  ;;  %v14482_v5 = vld [vmem:[%s20381_s3 + $0xa4] ss:$16 sps:$4 sm:$0xff]  }
 0x357   : > { %21296 = vst [vmem:[#allocation35_spill] sm:$0xff] %v17540_v50  ;;  %v4132_v27 = vpop.f32.mrf.mxu1  ;;  %4764 = vmatprep.mubr.bf16.mxu1 %v20841_v49  ;;  %v14485_v11 = vld [vmem:[%s20381_s3 + $0x2a4] ss:$16 sps:$4 sm:$0xff]   ;;  %v17557_v12 = vadd.f32 %v4130_v21, %v3778_v52  ;;  %v3780_v61 = vadd.f32 %v3779_v2, %v17393_v44  ;;  %7787 = vmatprep.subr.bf16.mxu0 %v14476_v26  ;;  %v14483_v2 = vld [vmem:[%s20381_s3 + $0x2a0] ss:$16 sps:$4 sm:$0xff]  }
 0x358   : > { %8140 = vmatprep.subr.bf16.mxu1 %v14479_v15  ;;  %v3781_v38 = vpop.f32.mrf.mxu0  ;;  %v14488_v15 = vld [vmem:[%s20381_s3 + $0x84] ss:$16 sps:$4 sm:$0xff]  }
 0x359   : > { %v4134_v53 = vpop.f32.mrf.mxu1  ;;  %v17560_v50 = vadd.f32 %v4132_v27, %v3780_v61  ;;  %v3782_v56 = vadd.f32 %v3781_v38, %v17386_v51  ;;  %7788 = vmatpush1.bf16.msra.mxu0 %v14474_v31  ;;  %v14491_v21 = vld [vmem:[%s20381_s3 + $0x284] ss:$16 sps:$4 sm:$0xff]  }
 0x35a   : > { %8141 = vmatpush1.bf16.msra.mxu1 %v14477_v17  ;;  %v3783_v19 = vpop.f32.mrf.mxu0  ;;  %7789 = vmatprep.subr.bf16.mxu0 %v14482_v5  ;;  %v21300_v17 = vld [vmem:[#allocation135_spill] sm:$0xff]  ;;  %v21301_v5 = vld [vmem:[#allocation136_spill] sm:$0xff] }
 0x35b   : > { %21298 = vst [vmem:[#allocation183_spill] sm:$0xff] %v17560_v50  ;;  %v4136_v36 = vpop.f32.mrf.mxu1  ;;  %8142 = vmatprep.subr.bf16.mxu1 %v14485_v11  ;;  %v17569_v26 = vadd.f32 %v4134_v53, %v3782_v56  ;;  %v3784_v27 = vadd.f32 %v3783_v19, %v17393_v44  ;;  %v21303_v19 = vld [vmem:[#allocation137_spill] sm:$0xff]  ;;  %v14486_v56 = vld [vmem:[%s20381_s3 + $0x80] ss:$16 sps:$4 sm:$0xff]  }
 0x35c   : > { %v3787_v52 = vpop.f32.mrf.mxu0  ;;  %4412 = vmatmul.mubr.bf16.gmra.mxu0 %v21300_v17  ;;  %v14489_v17 = vld [vmem:[%s20381_s3 + $0x280] ss:$16 sps:$4 sm:$0xff]  }
 0x35d   : > { %21299 = vst [vmem:[#allocation185_spill] sm:$0xff] %v17569_v26  ;;  %v4140_v31 = vpop.f32.mrf.mxu1  ;;  %12590 = vmatmul.mubr.msk.bf16.gmra.mxu1 %vm2154_vm0, %v21301_v5  ;;  %v17581_v11 = vadd.f32 %v4136_v36, %v3784_v27  ;;  %v3788_v61 = vadd.f32 %v3787_v52, %v17386_v51  ;;  %4421 = vmatprep.mubr.bf16.mxu0 %v21303_v19  ;;  %v14494_v52 = vld [vmem:[%s20381_s3 + $0x64] ss:$16 sps:$4 sm:$0xff]   ;;  %v21331_v26 = vld [vmem:[#allocation163_spill] sm:$0xff] }
 0x35e   : > { %4774 = vmatprep.mubr.bf16.mxu1 %v20841_v49  ;;  %v3789_v38 = vpop.f32.mrf.mxu0  ;;  %7790 = vmatpush1.bf16.msra.mxu0 %v14480_v46  ;;  %v14497_v46 = vld [vmem:[%s20381_s3 + $0x264] ss:$16 sps:$4 sm:$0xff]  }
 0x35f   : > { %21302 = vst [vmem:[#allocation186_spill] sm:$0xff] %v17581_v11  ;;  %v4142_v53 = vpop.f32.mrf.mxu1  ;;  %8143 = vmatpush1.bf16.msra.mxu1 %v14483_v2  ;;  %v17592_v36 = vadd.f32 %v4140_v31, %v3788_v61  ;;  %v3790_v27 = vadd.f32 %v3789_v38, %v17393_v44  ;;  %7791 = vmatprep.subr.bf16.mxu0 %v14488_v15  ;;  %v14492_v15 = vld [vmem:[%s20381_s3 + $0x60] ss:$16 sps:$4 sm:$0xff]  }
 0x360   : > { %8144 = vmatprep.subr.bf16.mxu1 %v14491_v21  ;;  %v3791_v2 = vpop.f32.mrf.mxu0  ;;  %v14495_v21 = vld [vmem:[%s20381_s3 + $0x260] ss:$16 sps:$4 sm:$0xff]  }
 0x361   : > { %21304 = vst [vmem:[#allocation36_spill] sm:$0xff] %v17592_v36  ;;  %v4144_v5 = vpop.f32.mrf.mxu1  ;;  %v17601_v19 = vadd.f32 %v4142_v53, %v3790_v27  ;;  %v3792_v11 = vadd.f32 %v3791_v2, %v17386_v51  ;;  %v14500_v53 = vld [vmem:[%s20381_s3 + $0x44] ss:$16 sps:$4 sm:$0xff]   ;;  %v21307_v2 = vld [vmem:[#allocation141_spill] sm:$0xff] }
 0x362   : > { %v3793_v31 = vpop.f32.mrf.mxu0  ;;  %7792 = vmatpush1.bf16.msra.mxu0 %v14486_v56  ;;  %v14503_v56 = vld [vmem:[%s20381_s3 + $0x244] ss:$16 sps:$4 sm:$0xff]  }
 0x363   : > { %21305 = vst [vmem:[#allocation37_spill] sm:$0xff] %v17601_v19  ;;  %v4146_v61 = vpop.f32.mrf.mxu1  ;;  %8145 = vmatpush1.bf16.msra.mxu1 %v14489_v17  ;;  %v17610_v38 = vadd.f32 %v4144_v5, %v3792_v11  ;;  %v3794_v36 = vadd.f32 %v3793_v31, %v17393_v44  ;;  %7793 = vmatprep.subr.bf16.mxu0 %v14494_v52  ;;  %v21308_v19 = vld [vmem:[#allocation142_spill] sm:$0xff] }
 0x364   : > { %8146 = vmatprep.subr.bf16.mxu1 %v14497_v46  ;;  %v3797_v17 = vpop.f32.mrf.mxu0  ;;  %4422 = vmatmul.mubr.bf16.gmra.mxu0 %v21307_v2  ;;  %v21310_v46 = vld [vmem:[#allocation144_spill] sm:$0xff] }
 0x365   : > { %21306 = vst [vmem:[#allocation187_spill] sm:$0xff] %v17610_v38  ;;  %v4150_v27 = vpop.f32.mrf.mxu1  ;;  %12591 = vmatmul.mubr.msk.bf16.gmra.mxu1 %vm2154_vm0, %v21308_v19  ;;  %v17622_v11 = vadd.f32 %v4146_v61, %v3794_v36  ;;  %v3798_v52 = vadd.f32 %v3797_v17, %v17386_v51  ;;  %4431 = vmatprep.mubr.bf16.mxu0 %v21310_v46  ;;  %v14498_v38 = vld [vmem:[%s20381_s3 + $0x40] ss:$16 sps:$4 sm:$0xff]   ;;  %v14506_v17 = vld [vmem:[%s20381_s3 + $0x24] ss:$16 sps:$4 sm:$0xff]  }
 0x366   : > { %4784 = vmatprep.mubr.bf16.mxu1 %v20841_v49  ;;  %v3799_v5 = vpop.f32.mrf.mxu0  ;;  %7794 = vmatpush1.bf16.msra.mxu0 %v14492_v15  ;;  %v14501_v19 = vld [vmem:[%s20381_s3 + $0x240] ss:$16 sps:$4 sm:$0xff]   ;;  %v14509_v15 = vld [vmem:[%s20381_s3 + $0x224] ss:$16 sps:$4 sm:$0xff]  }
 0x367   : > { %21309 = vst [vmem:[#allocation38_spill] sm:$0xff] %v17622_v11  ;;  %v4152_v31 = vpop.f32.mrf.mxu1  ;;  %8147 = vmatpush1.bf16.msra.mxu1 %v14495_v21  ;;  %v17633_v36 = vadd.f32 %v4150_v27, %v3798_v52  ;;  %v3800_v61 = vadd.f32 %v3799_v5, %v17393_v44  ;;  %7795 = vmatprep.subr.bf16.mxu0 %v14500_v53  ;;  %v14504_v53 = vld [vmem:[%s20381_s3 + $0x20] ss:$16 sps:$4 sm:$0xff]  }
 0x368   : > { %8148 = vmatprep.subr.bf16.mxu1 %v14503_v56  ;;  %v3801_v21 = vpop.f32.mrf.mxu0  ;;  %v14507_v56 = vld [vmem:[%s20381_s3 + $0x220] ss:$16 sps:$4 sm:$0xff]  }
 0x369   : > { %21311 = vst [vmem:[#allocation39_spill] sm:$0xff] %v17633_v36  ;;  %v4154_v2 = vpop.f32.mrf.mxu1  ;;  %v17642_v46 = vadd.f32 %v4152_v31, %v3800_v61  ;;  %v3802_v11 = vadd.f32 %v3801_v21, %v17386_v51  ;;  %v14512_v31 = vld [vmem:[%s20381_s3 + $0x4] ss:$16 sps:$4 sm:$0xff]  }
 0x36a   : > { %v3803_v27 = vpop.f32.mrf.mxu0  ;;  %7796 = vmatpush1.bf16.msra.mxu0 %v14498_v38  ;;  %v14515_v38 = vld [vmem:[%s20381_s3 + $0x204] ss:$16 sps:$4 sm:$0xff]  }
 0x36b   : > { %21312 = vst [vmem:[#allocation190_spill] sm:$0xff] %v17642_v46  ;;  %v4156_v52 = vpop.f32.mrf.mxu1  ;;  %8149 = vmatpush1.bf16.msra.mxu1 %v14501_v19  ;;  %v17651_v5 = vadd.f32 %v4154_v2, %v3802_v11  ;;  %v3804_v36 = vadd.f32 %v3803_v27, %v17393_v44  ;;  %7797 = vmatprep.subr.bf16.mxu0 %v14506_v17  ;;  %v21314_v21 = vld [vmem:[#allocation148_spill] sm:$0xff]  ;;  %v21315_v46 = vld [vmem:[#allocation149_spill] sm:$0xff] }
 0x36c   : > { %8150 = vmatprep.subr.bf16.mxu1 %v14509_v15  ;;  %v3807_v19 = vpop.f32.mrf.mxu0  ;;  %4432 = vmatmul.mubr.bf16.gmra.mxu0 %v21314_v21  ;;  %v21317_v15 = vld [vmem:[#allocation151_spill] sm:$0xff] }
 0x36d   : > { %21313 = vst [vmem:[#allocation192_spill] sm:$0xff] %v17651_v5  ;;  %v4160_v61 = vpop.f32.mrf.mxu1  ;;  %12592 = vmatmul.mubr.msk.bf16.gmra.mxu1 %vm2154_vm0, %v21315_v46  ;;  %v17663_v11 = vadd.f32 %v4156_v52, %v3804_v36  ;;  %v3808_v17 = vadd.f32 %v3807_v19, %v17386_v51  ;;  %4441 = vmatprep.mubr.bf16.mxu0 %v21317_v15  ;;  %v14510_v5 = vld [vmem:[%s20381_s3] ss:$16 sps:$4 sm:$0xff]   ;;  %v14518_v19 = vld [vmem:[%s20381_s3 + $0x1e4] ss:$16 sps:$4 sm:$0xff]  }
 0x36e   : > { %4794 = vmatprep.mubr.bf16.mxu1 %v20841_v49  ;;  %v3809_v2 = vpop.f32.mrf.mxu0  ;;  %7798 = vmatpush1.bf16.msra.mxu0 %v14504_v53  ;;  %v14513_v46 = vld [vmem:[%s20381_s3 + $0x200] ss:$16 sps:$4 sm:$0xff]   ;;  %v14521_v53 = vld [vmem:[%s20381_s3 + $0x3e4] ss:$16 sps:$4 sm:$0xff]  }
 0x36f   : > { %21316 = vst [vmem:[#allocation193_spill] sm:$0xff] %v17663_v11  ;;  %v4162_v27 = vpop.f32.mrf.mxu1  ;;  %8151 = vmatpush1.bf16.msra.mxu1 %v14507_v56  ;;  %v17674_v36 = vadd.f32 %v4160_v61, %v3808_v17  ;;  %v3810_v52 = vadd.f32 %v3809_v2, %v17393_v44  ;;  %7799 = vmatprep.subr.bf16.mxu0 %v14512_v31  ;;  %v14516_v31 = vld [vmem:[%s20381_s3 + $0x1e0] ss:$16 sps:$4 sm:$0xff]  }
 0x370   : > { %8152 = vmatprep.subr.bf16.mxu1 %v14515_v38  ;;  %v3811_v56 = vpop.f32.mrf.mxu0  ;;  %v14519_v38 = vld [vmem:[%s20381_s3 + $0x3e0] ss:$16 sps:$4 sm:$0xff]  }
 0x371   : > { %21318 = vst [vmem:[#allocation40_spill] sm:$0xff] %v17674_v36  ;;  %v4164_v21 = vpop.f32.mrf.mxu1  ;;  %v17683_v15 = vadd.f32 %v4162_v27, %v3810_v52  ;;  %v3812_v11 = vadd.f32 %v3811_v56, %v17386_v51  ;;  %v14524_v27 = vld [vmem:[%s20381_s3 + $0x1c4] ss:$16 sps:$4 sm:$0xff]   ;;  %v21321_v56 = vld [vmem:[#allocation155_spill] sm:$0xff] }
 0x372   : > { %v3813_v61 = vpop.f32.mrf.mxu0  ;;  %7800 = vmatpush1.bf16.msra.mxu0 %v14510_v5  ;;  %v14527_v5 = vld [vmem:[%s20381_s3 + $0x3c4] ss:$16 sps:$4 sm:$0xff]  }
 0x373   : > { %21319 = vst [vmem:[#allocation41_spill] sm:$0xff] %v17683_v15  ;;  %v4166_v17 = vpop.f32.mrf.mxu1  ;;  %8153 = vmatpush1.bf16.msra.mxu1 %v14513_v46  ;;  %v17692_v2 = vadd.f32 %v4164_v21, %v3812_v11  ;;  %v3814_v36 = vadd.f32 %v3813_v61, %v17393_v44  ;;  %7801 = vmatprep.subr.bf16.mxu0 %v14518_v19  ;;  %v21322_v15 = vld [vmem:[#allocation156_spill] sm:$0xff] }
 0x374   : > { %8154 = vmatprep.subr.bf16.mxu1 %v14521_v53  ;;  %v3817_v46 = vpop.f32.mrf.mxu0  ;;  %4442 = vmatmul.mubr.bf16.gmra.mxu0 %v21321_v56  ;;  %v21324_v53 = vld [vmem:[#allocation158_spill] sm:$0xff] }
 0x375   : > { %21320 = vst [vmem:[#allocation194_spill] sm:$0xff] %v17692_v2  ;;  %v4170_v52 = vpop.f32.mrf.mxu1  ;;  %12593 = vmatmul.mubr.msk.bf16.gmra.mxu1 %vm2154_vm0, %v21322_v15  ;;  %v17704_v11 = vadd.f32 %v4166_v17, %v3814_v36  ;;  %v3818_v19 = vadd.f32 %v3817_v46, %v17386_v51  ;;  %4451 = vmatprep.mubr.bf16.mxu0 %v21324_v53  ;;  %v14522_v2 = vld [vmem:[%s20381_s3 + $0x1c0] ss:$16 sps:$4 sm:$0xff]   ;;  %v14530_v46 = vld [vmem:[%s20381_s3 + $0x1a4] ss:$16 sps:$4 sm:$0xff]  }
 0x376   : > { %4804 = vmatprep.mubr.bf16.mxu1 %v20841_v49  ;;  %v3819_v21 = vpop.f32.mrf.mxu0  ;;  %7802 = vmatpush2.bf16.msra.mxu0 %v14516_v31  ;;  %v14525_v15 = vld [vmem:[%s20381_s3 + $0x3c0] ss:$16 sps:$4 sm:$0xff]  }
 0x377   : > { %21323 = vst [vmem:[#allocation42_spill] sm:$0xff] %v17704_v11  ;;  %v4172_v61 = vpop.f32.mrf.mxu1  ;;  %8155 = vmatpush2.bf16.msra.mxu1 %v14519_v38  ;;  %v17715_v36 = vadd.f32 %v4170_v52, %v3818_v19  ;;  %v3820_v17 = vadd.f32 %v3819_v21, %v17393_v44  ;;  %7803 = vmatprep.subr.bf16.mxu0 %v14524_v27  ;;  %v14533_v11 = vld [vmem:[%s20381_s3 + $0x3a4] ss:$16 sps:$4 sm:$0xff]   ;;  %v14528_v27 = vld [vmem:[%s20381_s3 + $0x1a0] ss:$16 sps:$4 sm:$0xff]  }
 0x378   : > { %8156 = vmatprep.subr.bf16.mxu1 %v14527_v5  ;;  %v3821_v31 = vpop.f32.mrf.mxu0  ;;  %v14531_v5 = vld [vmem:[%s20381_s3 + $0x3a0] ss:$16 sps:$4 sm:$0xff]  }
 0x379   : > { %21325 = vst [vmem:[#allocation43_spill] sm:$0xff] %v17715_v36  ;;  %v4174_v38 = vpop.f32.mrf.mxu1  ;;  %v17721_v56 = vadd.f32 %v4172_v61, %v3820_v17  ;;  %v3822_v53 = vadd.f32 %v3821_v31, %v17386_v51 }
 0x37a   : > { %v3823_v52 = vpop.f32.mrf.mxu0  ;;  %7804 = vmatpush2.bf16.msra.mxu0 %v14522_v2  ;;  %v21329_v2 = vld [vmem:[#allocation162_spill] sm:$0xff] }
 0x37b   : > { %21326 = vst [vmem:[#allocation197_spill] sm:$0xff] %v17721_v56  ;;  %v4176_v19 = vpop.f32.mrf.mxu1  ;;  %8157 = vmatpush2.bf16.msra.mxu1 %v14525_v15  ;;  %v17733_v21 = vadd.f32 %v4174_v38, %v3822_v53  ;;  %v3824_v61 = vadd.f32 %v3823_v52, %v17393_v44  ;;  %7805 = vmatprep.subr.bf16.mxu0 %v14530_v46  ;;  %v21328_v56 = vld [vmem:[#allocation161_spill] sm:$0xff] }
 0x37c   : > { %8158 = vmatprep.subr.bf16.mxu1 %v14533_v11  ;;  %v3827_v17 = vpop.f32.mrf.mxu0  ;;  %4452 = vmatmul.mubr.bf16.gmra.mxu0 %v21328_v56 }
 0x37d   : > { %21327 = vst [vmem:[#allocation199_spill] sm:$0xff] %v17733_v21  ;;  %v4180_v31 = vpop.f32.mrf.mxu1  ;;  %12594 = vmatmul.mubr.msk.bf16.gmra.mxu1 %vm2154_vm0, %v21329_v2  ;;  %v17739_v15 = vadd.f32 %v4176_v19, %v3824_v61  ;;  %v3828_v36 = vadd.f32 %v3827_v17, %v17386_v51  ;;  %4461 = vmatprep.mubr.bf16.mxu0 %v21331_v26 }
 0x37e   : > { %4814 = vmatprep.mubr.bf16.mxu1 %v20841_v49  ;;  %v3829_v38 = vpop.f32.mrf.mxu0  ;;  %7806 = vmatpush2.bf16.msra.mxu0 %v14528_v27  ;;  %v21335_v27 = vld [vmem:[#allocation167_spill] sm:$0xff] }
 0x37f   : > { %21330 = vst [vmem:[#allocation200_spill] sm:$0xff] %v17739_v15  ;;  %v4182_v53 = vpop.f32.mrf.mxu1  ;;  %8159 = vmatpush2.bf16.msra.mxu1 %v14531_v5  ;;  %v17744_v11 = vadd.f32 %v4180_v31, %v3828_v36  ;;  %v3830_v46 = vadd.f32 %v3829_v38, %v17393_v44  ;;  %v21336_v36 = vld [vmem:[#allocation168_spill] sm:$0xff]  ;;  %v21338_v38 = vld [vmem:[#allocation170_spill] sm:$0xff] }
 0x380   : > { %v3831_v56 = vpop.f32.mrf.mxu0 }
 0x381   : > { %21332 = vst [vmem:[#allocation44_spill] sm:$0xff] %v17744_v11  ;;  %v4184_v52 = vpop.f32.mrf.mxu1  ;;  %v17747_v21 = vadd.f32 %v4182_v53, %v3830_v46  ;;  %v3832_v19 = vadd.f32 %v3831_v56, %v17386_v51  ;;  %v21349_v11 = vld [vmem:[#allocation181_spill] sm:$0xff] }
 0x382   : > { %v3833_v61 = vpop.f32.mrf.mxu0 }
 0x383   : > { %21333 = vst [vmem:[#allocation45_spill] sm:$0xff] %v17747_v21  ;;  %v4186_v17 = vpop.f32.mrf.mxu1  ;;  %v17750_v2 = vadd.f32 %v4184_v52, %v3832_v19  ;;  %v3834_v26 = vadd.f32 %v3833_v61, %v17393_v44  ;;  %v14534_v19 = vld [vmem:[%s20381_s3 + $0x180] ss:$16 sps:$4 sm:$0xff]   ;;  %v14536_v61 = vld [vmem:[%s20381_s3 + $0x184] ss:$16 sps:$4 sm:$0xff]  }
 0x384   : > { %v3837_v15 = vpop.f32.mrf.mxu0  ;;  %4462 = vmatmul.mubr.bf16.gmra.mxu0 %v21335_v27  ;;  %7807 = vmatprep.subr.bf16.mxu0 %v14536_v61  ;;  %v21343_v61 = vld [vmem:[#allocation175_spill] sm:$0xff] }
 0x385   : > { %21334 = vst [vmem:[#allocation201_spill] sm:$0xff] %v17750_v2  ;;  %v4190_v50 = vpop.f32.mrf.mxu1  ;;  %12595 = vmatmul.mubr.msk.bf16.gmra.mxu1 %vm2154_vm0, %v21336_v36  ;;  %v17756_v5 = vadd.f32 %v4186_v17, %v3834_v26  ;;  %v3838_v31 = vadd.f32 %v3837_v15, %v17386_v51  ;;  %4471 = vmatprep.mubr.bf16.mxu0 %v21338_v38  ;;  %v14537_v38 = vld [vmem:[%s20381_s3 + $0x380] ss:$16 sps:$4 sm:$0xff]  }
 0x386   : > { %4824 = vmatprep.mubr.bf16.mxu1 %v20841_v49  ;;  %v3839_v53 = vpop.f32.mrf.mxu0  ;;  %7808 = vmatpush2.bf16.msra.mxu0 %v14534_v19 }
 0x387   : > { %21337 = vst [vmem:[#allocation46_spill] sm:$0xff] %v17756_v5  ;;  %v4192_v46 = vpop.f32.mrf.mxu1  ;;  %v17761_v56 = vadd.f32 %v4190_v50, %v3838_v31  ;;  %v3840_v52 = vadd.f32 %v3839_v53, %v17393_v44  ;;  %v14539_v50 = vld [vmem:[%s20381_s3 + $0x384] ss:$16 sps:$4 sm:$0xff]   ;;  %v21345_v5 = vld [vmem:[#allocation177_spill] sm:$0xff] }
 0x388   : > { %v3841_v17 = vpop.f32.mrf.mxu0  ;;  %8160 = vmatprep.subr.bf16.mxu1 %v14539_v50 }
 0x389   : > { %21339 = vst [vmem:[#allocation47_spill] sm:$0xff] %v17761_v56  ;;  %v4194_v15 = vpop.f32.mrf.mxu1  ;;  %v17770_v26 = vadd.f32 %v4192_v46, %v3840_v52  ;;  %v3842_v27 = vadd.f32 %v3841_v17, %v17386_v51  ;;  %v21342_v17 = vld [vmem:[#allocation174_spill] sm:$0xff]  ;;  %8161 = vmatpush2.bf16.msra.mxu1 %v14537_v38 }
 0x38a   : > { %v3843_v36 = vpop.f32.mrf.mxu0  ;;  %v21350_v38 = vld [vmem:[#allocation182_spill] sm:$0xff] }
 0x38b   : > { %21340 = vst [vmem:[#allocation204_spill] sm:$0xff] %v17770_v26  ;;  %v4196_v31 = vpop.f32.mrf.mxu1  ;;  %v17779_v53 = vadd.f32 %v4194_v15, %v3842_v27  ;;  %v3844_v56 = vadd.f32 %v3843_v36, %v17393_v44 }
 0x38c   : > { %v3847_v46 = vpop.f32.mrf.mxu0  ;;  %4472 = vmatmul.mubr.bf16.gmra.mxu0 %v21342_v17 }
 0x38d   : > { %21341 = vst [vmem:[#allocation206_spill] sm:$0xff] %v17779_v53  ;;  %v4200_v52 = vpop.f32.mrf.mxu1  ;;  %12596 = vmatmul.mubr.msk.bf16.gmra.mxu1 %vm2154_vm0, %v21343_v61  ;;  %v17785_v26 = vadd.f32 %v4196_v31, %v3844_v56  ;;  %v3848_v19 = vadd.f32 %v3847_v46, %v17386_v51  ;;  %4481 = vmatprep.mubr.bf16.mxu0 %v21345_v5 }
 0x38e   : > { %4834 = vmatprep.mubr.bf16.mxu1 %v20841_v49  ;;  %v3849_v15 = vpop.f32.mrf.mxu0 }
 0x38f   : > { %21344 = vst [vmem:[#allocation207_spill] sm:$0xff] %v17785_v26  ;;  %v4202_v27 = vpop.f32.mrf.mxu1  ;;  %v17790_v36 = vadd.f32 %v4200_v52, %v3848_v19  ;;  %v3850_v50 = vadd.f32 %v3849_v15, %v17393_v44  ;;  %v21352_v15 = vld [vmem:[#allocation184_spill] sm:$0xff] }
 0x390   : > { %v3851_v53 = vpop.f32.mrf.mxu0 }
 0x391   : > { %21346 = vst [vmem:[#allocation48_spill] sm:$0xff] %v17790_v36  ;;  %v4204_v17 = vpop.f32.mrf.mxu1  ;;  %v17793_v2 = vadd.f32 %v4202_v27, %v3850_v50  ;;  %v3852_v56 = vadd.f32 %v3851_v53, %v17386_v51 }
 0x392   : > { %v3853_v31 = vpop.f32.mrf.mxu0 }
 0x393   : > { %21347 = vst [vmem:[#allocation49_spill] sm:$0xff] %v17793_v2  ;;  %v4206_v61 = vpop.f32.mrf.mxu1  ;;  %v17796_v46 = vadd.f32 %v4204_v17, %v3852_v56  ;;  %v3854_v5 = vadd.f32 %v3853_v31, %v17393_v44 }
 0x394   : > { %v3857_v26 = vpop.f32.mrf.mxu0  ;;  %4482 = vmatmul.mubr.bf16.gmra.mxu0 %v21349_v11 }
 0x395   : > { %21348 = vst [vmem:[#allocation208_spill] sm:$0xff] %v17796_v46  ;;  %v4210_v21 = vpop.f32.mrf.mxu1  ;;  %12597 = vmatmul.mubr.msk.bf16.gmra.mxu1 %vm2154_vm0, %v21350_v38  ;;  %v17802_v52 = vadd.f32 %v4206_v61, %v3854_v5  ;;  %v3858_v19 = vadd.f32 %v3857_v26, %v17386_v51  ;;  %4491 = vmatprep.mubr.bf16.mxu0 %v21352_v15  ;;  %v14542_v26 = vld [vmem:[%s20381_s3 + $0x164] ss:$16 sps:$4 sm:$0xff]   ;;  %v14540_v15 = vld [vmem:[%s20381_s3 + $0x160] ss:$16 sps:$4 sm:$0xff]  }
 0x396   : > { %4844 = vmatprep.mubr.bf16.mxu1 %v20841_v49  ;;  %v3859_v53 = vpop.f32.mrf.mxu0  ;;  %7809 = vmatprep.subr.bf16.mxu0 %v14542_v26  ;;  %v21359_v26 = vld [vmem:[#allocation191_spill] sm:$0xff] }
 0x397   : > { %21351 = vst [vmem:[#allocation50_spill] sm:$0xff] %v17802_v52  ;;  %v4212_v27 = vpop.f32.mrf.mxu1  ;;  %v17807_v50 = vadd.f32 %v4210_v21, %v3858_v19  ;;  %v3860_v17 = vadd.f32 %v3859_v53, %v17393_v44  ;;  %v14543_v53 = vld [vmem:[%s20381_s3 + $0x360] ss:$16 sps:$4 sm:$0xff]   ;;  %7810 = vmatpush2.bf16.msra.mxu0 %v14540_v15 }
 0x398   : > { %v3861_v56 = vpop.f32.mrf.mxu0 }
 0x399   : > { %21353 = vst [vmem:[#allocation51_spill] sm:$0xff] %v17807_v50  ;;  %v4214_v31 = vpop.f32.mrf.mxu1  ;;  %v17810_v11 = vadd.f32 %v4212_v27, %v3860_v17  ;;  %v3862_v38 = vadd.f32 %v3861_v56, %v17386_v51  ;;  %v14545_v27 = vld [vmem:[%s20381_s3 + $0x364] ss:$16 sps:$4 sm:$0xff]   ;;  %v21357_v50 = vld [vmem:[#allocation189_spill] sm:$0xff] }
 0x39a   : > { %v3863_v61 = vpop.f32.mrf.mxu0  ;;  %8162 = vmatprep.subr.bf16.mxu1 %v14545_v27  ;;  %v21363_v27 = vld [vmem:[#allocation195_spill] sm:$0xff] }
 0x39b   : > { %21354 = vst [vmem:[#allocation211_spill] sm:$0xff] %v17810_v11  ;;  %v4216_v5 = vpop.f32.mrf.mxu1  ;;  %v17819_v21 = vadd.f32 %v4214_v31, %v3862_v38  ;;  %v3864_v19 = vadd.f32 %v3863_v61, %v17393_v44  ;;  %v21356_v11 = vld [vmem:[#allocation188_spill] sm:$0xff]  ;;  %8163 = vmatpush2.bf16.msra.mxu1 %v14543_v53 }
 0x39c   : > { %v3867_v17 = vpop.f32.mrf.mxu0  ;;  %4492 = vmatmul.mubr.bf16.gmra.mxu0 %v21356_v11 }
 0x39d   : > { %21355 = vst [vmem:[#allocation213_spill] sm:$0xff] %v17819_v21  ;;  %v4220_v56 = vpop.f32.mrf.mxu1  ;;  %12598 = vmatmul.mubr.msk.bf16.gmra.mxu1 %vm2154_vm0, %v21357_v50  ;;  %v17831_v31 = vadd.f32 %v4216_v5, %v3864_v19  ;;  %v3868_v38 = vadd.f32 %v3867_v17, %v17386_v51  ;;  %4501 = vmatprep.mubr.bf16.mxu0 %v21359_v26 }
 0x39e   : > { %4854 = vmatprep.mubr.bf16.mxu1 %v20841_v49  ;;  %v3869_v61 = vpop.f32.mrf.mxu0 }
 0x39f   : > { %21358 = vst [vmem:[#allocation214_spill] sm:$0xff] %v17831_v31  ;;  %v4222_v21 = vpop.f32.mrf.mxu1  ;;  %v17836_v52 = vadd.f32 %v4220_v56, %v3868_v38  ;;  %v3870_v46 = vadd.f32 %v3869_v61, %v17393_v44  ;;  %v21364_v56 = vld [vmem:[#allocation196_spill] sm:$0xff] }
 0x3a0   : > { %v3871_v11 = vpop.f32.mrf.mxu0 }
 0x3a1   : > { %21360 = vst [vmem:[#allocation52_spill] sm:$0xff] %v17836_v52  ;;  %v4224_v2 = vpop.f32.mrf.mxu1  ;;  %v17839_v50 = vadd.f32 %v4222_v21, %v3870_v46  ;;  %v3872_v5 = vadd.f32 %v3871_v11, %v17386_v51  ;;  %v21366_v21 = vld [vmem:[#allocation198_spill] sm:$0xff] }
 0x3a2   : > { %v3873_v19 = vpop.f32.mrf.mxu0 }
 0x3a3   : > { %21361 = vst [vmem:[#allocation53_spill] sm:$0xff] %v17839_v50  ;;  %v4226_v17 = vpop.f32.mrf.mxu1  ;;  %v17842_v26 = vadd.f32 %v4224_v2, %v3872_v5  ;;  %v3874_v31 = vadd.f32 %v3873_v19, %v17393_v44 }
 0x3a4   : > { %v3877_v36 = vpop.f32.mrf.mxu0  ;;  %4502 = vmatmul.mubr.bf16.gmra.mxu0 %v21363_v27 }
 0x3a5   : > { %21362 = vst [vmem:[#allocation215_spill] sm:$0xff] %v17842_v26  ;;  %v4230_v15 = vpop.f32.mrf.mxu1  ;;  %12599 = vmatmul.mubr.msk.bf16.gmra.mxu1 %vm2154_vm0, %v21364_v56  ;;  %v17848_v53 = vadd.f32 %v4226_v17, %v3874_v31  ;;  %v3878_v46 = vadd.f32 %v3877_v36, %v17386_v51  ;;  %4511 = vmatprep.mubr.bf16.mxu0 %v21366_v21  ;;  %v14548_v36 = vld [vmem:[%s20381_s3 + $0x144] ss:$16 sps:$4 sm:$0xff]   ;;  %v14546_v21 = vld [vmem:[%s20381_s3 + $0x140] ss:$16 sps:$4 sm:$0xff]  }
 0x3a6   : > { %4864 = vmatprep.mubr.bf16.mxu1 %v20841_v49  ;;  %v3879_v38 = vpop.f32.mrf.mxu0  ;;  %7811 = vmatprep.subr.bf16.mxu0 %v14548_v36  ;;  %v21373_v36 = vld [vmem:[#allocation205_spill] sm:$0xff] }
 0x3a7   : > { %21365 = vst [vmem:[#allocation54_spill] sm:$0xff] %v17848_v53  ;;  %v4232_v2 = vpop.f32.mrf.mxu1  ;;  %v17853_v61 = vadd.f32 %v4230_v15, %v3878_v46  ;;  %v3880_v11 = vadd.f32 %v3879_v38, %v17393_v44  ;;  %v14549_v38 = vld [vmem:[%s20381_s3 + $0x340] ss:$16 sps:$4 sm:$0xff]   ;;  %7812 = vmatpush2.bf16.msra.mxu0 %v14546_v21 }
 0x3a8   : > { %v3881_v5 = vpop.f32.mrf.mxu0 }
 0x3a9   : > { %21367 = vst [vmem:[#allocation55_spill] sm:$0xff] %v17853_v61  ;;  %v4234_v19 = vpop.f32.mrf.mxu1  ;;  %v17856_v27 = vadd.f32 %v4232_v2, %v3880_v11  ;;  %v3882_v56 = vadd.f32 %v3881_v5, %v17386_v51  ;;  %v14551_v2 = vld [vmem:[%s20381_s3 + $0x344] ss:$16 sps:$4 sm:$0xff]   ;;  %v21371_v61 = vld [vmem:[#allocation203_spill] sm:$0xff] }
 0x3aa   : > { %v3883_v31 = vpop.f32.mrf.mxu0  ;;  %8164 = vmatprep.subr.bf16.mxu1 %v14551_v2  ;;  %v21377_v2 = vld [vmem:[#allocation209_spill] sm:$0xff] }
 0x3ab   : > { %21368 = vst [vmem:[#allocation218_spill] sm:$0xff] %v17856_v27  ;;  %v4236_v17 = vpop.f32.mrf.mxu1  ;;  %v17865_v15 = vadd.f32 %v4234_v19, %v3882_v56  ;;  %v3884_v46 = vadd.f32 %v3883_v31, %v17393_v44  ;;  %v21370_v27 = vld [vmem:[#allocation202_spill] sm:$0xff]  ;;  %8165 = vmatpush2.bf16.msra.mxu1 %v14549_v38 }
 0x3ac   : > { %v3887_v11 = vpop.f32.mrf.mxu0  ;;  %4512 = vmatmul.mubr.bf16.gmra.mxu0 %v21370_v27 }
 0x3ad   : > { %21369 = vst [vmem:[#allocation220_spill] sm:$0xff] %v17865_v15  ;;  %v4240_v5 = vpop.f32.mrf.mxu1  ;;  %12600 = vmatmul.mubr.msk.bf16.gmra.mxu1 %vm2154_vm0, %v21371_v61  ;;  %v17877_v19 = vadd.f32 %v4236_v17, %v3884_v46  ;;  %v3888_v56 = vadd.f32 %v3887_v11, %v17386_v51  ;;  %4521 = vmatprep.mubr.bf16.mxu0 %v21373_v36 }
 0x3ae   : > { %4874 = vmatprep.mubr.bf16.mxu1 %v20841_v49  ;;  %v3889_v31 = vpop.f32.mrf.mxu0 }
 0x3af   : > { %21372 = vst [vmem:[#allocation221_spill] sm:$0xff] %v17877_v19  ;;  %v4242_v15 = vpop.f32.mrf.mxu1  ;;  %v17882_v53 = vadd.f32 %v4240_v5, %v3888_v56  ;;  %v3890_v26 = vadd.f32 %v3889_v31, %v17393_v44  ;;  %v21378_v5 = vld [vmem:[#allocation210_spill] sm:$0xff] }
 0x3b0   : > { %v3891_v27 = vpop.f32.mrf.mxu0 }
 0x3b1   : > { %21374 = vst [vmem:[#allocation56_spill] sm:$0xff] %v17882_v53  ;;  %v4244_v50 = vpop.f32.mrf.mxu1  ;;  %v17885_v61 = vadd.f32 %v4242_v15, %v3890_v26  ;;  %v3892_v17 = vadd.f32 %v3891_v27, %v17386_v51  ;;  %v21380_v15 = vld [vmem:[#allocation212_spill] sm:$0xff] }
 0x3b2   : > { %v3893_v46 = vpop.f32.mrf.mxu0 }
 0x3b3   : > { %21375 = vst [vmem:[#allocation57_spill] sm:$0xff] %v17885_v61  ;;  %v4246_v11 = vpop.f32.mrf.mxu1  ;;  %v17888_v36 = vadd.f32 %v4244_v50, %v3892_v17  ;;  %v3894_v19 = vadd.f32 %v3893_v46, %v17393_v44 }
 0x3b4   : > { %v3897_v52 = vpop.f32.mrf.mxu0  ;;  %4522 = vmatmul.mubr.bf16.gmra.mxu0 %v21377_v2 }
 0x3b5   : > { %21376 = vst [vmem:[#allocation222_spill] sm:$0xff] %v17888_v36  ;;  %v4250_v21 = vpop.f32.mrf.mxu1  ;;  %12601 = vmatmul.mubr.msk.bf16.gmra.mxu1 %vm2154_vm0, %v21378_v5  ;;  %v17894_v38 = vadd.f32 %v4246_v11, %v3894_v19  ;;  %v3898_v26 = vadd.f32 %v3897_v52, %v17386_v51  ;;  %4531 = vmatprep.mubr.bf16.mxu0 %v21380_v15  ;;  %v14554_v52 = vld [vmem:[%s20381_s3 + $0x124] ss:$16 sps:$4 sm:$0xff]   ;;  %v14552_v15 = vld [vmem:[%s20381_s3 + $0x120] ss:$16 sps:$4 sm:$0xff]  }
 0x3b6   : > { %4884 = vmatprep.mubr.bf16.mxu1 %v20841_v49  ;;  %v3899_v56 = vpop.f32.mrf.mxu0  ;;  %7813 = vmatprep.subr.bf16.mxu0 %v14554_v52  ;;  %v21387_v52 = vld [vmem:[#allocation219_spill] sm:$0xff] }
 0x3b7   : > { %21379 = vst [vmem:[#allocation58_spill] sm:$0xff] %v17894_v38  ;;  %v4252_v50 = vpop.f32.mrf.mxu1  ;;  %v17899_v31 = vadd.f32 %v4250_v21, %v3898_v26  ;;  %v3900_v27 = vadd.f32 %v3899_v56, %v17393_v44  ;;  %v14555_v56 = vld [vmem:[%s20381_s3 + $0x320] ss:$16 sps:$4 sm:$0xff]   ;;  %7814 = vmatpush2.bf16.msra.mxu0 %v14552_v15 }
 0x3b8   : > { %v3901_v17 = vpop.f32.mrf.mxu0 }
 0x3b9   : > { %21381 = vst [vmem:[#allocation59_spill] sm:$0xff] %v17899_v31  ;;  %v4254_v46 = vpop.f32.mrf.mxu1  ;;  %v17902_v2 = vadd.f32 %v4252_v50, %v3900_v27  ;;  %v3902_v5 = vadd.f32 %v3901_v17, %v17386_v51  ;;  %v14557_v50 = vld [vmem:[%s20381_s3 + $0x324] ss:$16 sps:$4 sm:$0xff]   ;;  %v21385_v31 = vld [vmem:[#allocation217_spill] sm:$0xff] }
 0x3ba   : > { %v3903_v19 = vpop.f32.mrf.mxu0  ;;  %8166 = vmatprep.subr.bf16.mxu1 %v14557_v50  ;;  %v21391_v50 = vld [vmem:[#allocation223_spill] sm:$0xff] }
 0x3bb   : > { %21382 = vst [vmem:[#allocation225_spill] sm:$0xff] %v17902_v2  ;;  %v4256_v11 = vpop.f32.mrf.mxu1  ;;  %v17911_v21 = vadd.f32 %v4254_v46, %v3902_v5  ;;  %v3904_v26 = vadd.f32 %v3903_v19, %v17393_v44  ;;  %v21384_v2 = vld [vmem:[#allocation216_spill] sm:$0xff]  ;;  %8167 = vmatpush2.bf16.msra.mxu1 %v14555_v56 }
 0x3bc   : > { %v3907_v27 = vpop.f32.mrf.mxu0  ;;  %4532 = vmatmul.mubr.bf16.gmra.mxu0 %v21384_v2 }
 0x3bd   : > { %21383 = vst [vmem:[#allocation227_spill] sm:$0xff] %v17911_v21  ;;  %v4260_v17 = vpop.f32.mrf.mxu1  ;;  %12602 = vmatmul.mubr.msk.bf16.gmra.mxu1 %vm2154_vm0, %v21385_v31  ;;  %v17923_v46 = vadd.f32 %v4256_v11, %v3904_v26  ;;  %v3908_v5 = vadd.f32 %v3907_v27, %v17386_v51  ;;  %4541 = vmatprep.mubr.bf16.mxu0 %v21387_v52 }
 0x3be   : > { %4894 = vmatprep.mubr.bf16.mxu1 %v20841_v49  ;;  %v3909_v19 = vpop.f32.mrf.mxu0 }
 0x3bf   : > { %21386 = vst [vmem:[#allocation228_spill] sm:$0xff] %v17923_v46  ;;  %v4262_v21 = vpop.f32.mrf.mxu1  ;;  %v17928_v38 = vadd.f32 %v4260_v17, %v3908_v5  ;;  %v3910_v36 = vadd.f32 %v3909_v19, %v17393_v44  ;;  %v21392_v17 = vld [vmem:[#allocation224_spill] sm:$0xff] }
 0x3c0   : > { %v3911_v2 = vpop.f32.mrf.mxu0 }
 0x3c1   : > { %21388 = vst [vmem:[#allocation60_spill] sm:$0xff] %v17928_v38  ;;  %v4264_v61 = vpop.f32.mrf.mxu1  ;;  %v17931_v31 = vadd.f32 %v4262_v21, %v3910_v36  ;;  %v3912_v11 = vadd.f32 %v3911_v2, %v17386_v51  ;;  %v21394_v21 = vld [vmem:[#allocation226_spill] sm:$0xff] }
 0x3c2   : > { %v3913_v26 = vpop.f32.mrf.mxu0 }
 0x3c3   : > { %21389 = vst [vmem:[#allocation61_spill] sm:$0xff] %v17931_v31  ;;  %v4266_v27 = vpop.f32.mrf.mxu1  ;;  %v17934_v52 = vadd.f32 %v4264_v61, %v3912_v11  ;;  %v3914_v46 = vadd.f32 %v3913_v26, %v17393_v44 }
 0x3c4   : > { %v3917_v53 = vpop.f32.mrf.mxu0  ;;  %4542 = vmatmul.mubr.bf16.gmra.mxu0 %v21391_v50 }
 0x3c5   : > { %21390 = vst [vmem:[#allocation229_spill] sm:$0xff] %v17934_v52  ;;  %v4270_v15 = vpop.f32.mrf.mxu1  ;;  %12603 = vmatmul.mubr.msk.bf16.gmra.mxu1 %vm2154_vm0, %v21392_v17  ;;  %v17940_v56 = vadd.f32 %v4266_v27, %v3914_v46  ;;  %v3918_v36 = vadd.f32 %v3917_v53, %v17386_v51  ;;  %4551 = vmatprep.mubr.bf16.mxu0 %v21394_v21  ;;  %v14560_v53 = vld [vmem:[%s20381_s3 + $0x104] ss:$16 sps:$4 sm:$0xff]   ;;  %v14558_v21 = vld [vmem:[%s20381_s3 + $0x100] ss:$16 sps:$4 sm:$0xff]  }
 0x3c6   : > { %4904 = vmatprep.mubr.bf16.mxu1 %v20841_v49  ;;  %v3919_v5 = vpop.f32.mrf.mxu0  ;;  %7815 = vmatprep.subr.bf16.mxu0 %v14560_v53  ;;  %v21401_v53 = vld [vmem:[#allocation233_spill] sm:$0xff] }
 0x3c7   : > { %21393 = vst [vmem:[#allocation62_spill] sm:$0xff] %v17940_v56  ;;  %v4272_v61 = vpop.f32.mrf.mxu1  ;;  %v17945_v19 = vadd.f32 %v4270_v15, %v3918_v36  ;;  %v3920_v2 = vadd.f32 %v3919_v5, %v17393_v44  ;;  %v14561_v5 = vld [vmem:[%s20381_s3 + $0x300] ss:$16 sps:$4 sm:$0xff]   ;;  %7816 = vmatpush2.bf16.msra.mxu0 %v14558_v21 }
 0x3c8   : > { %v3921_v11 = vpop.f32.mrf.mxu0 }
 0x3c9   : > { %21395 = vst [vmem:[#allocation63_spill] sm:$0xff] %v17945_v19  ;;  %v4274_v26 = vpop.f32.mrf.mxu1  ;;  %v17948_v50 = vadd.f32 %v4272_v61, %v3920_v2  ;;  %v3922_v17 = vadd.f32 %v3921_v11, %v17386_v51  ;;  %v14563_v61 = vld [vmem:[%s20381_s3 + $0x304] ss:$16 sps:$4 sm:$0xff]   ;;  %v21399_v19 = vld [vmem:[#allocation231_spill] sm:$0xff] }
 0x3ca   : > { %v3923_v46 = vpop.f32.mrf.mxu0  ;;  %8168 = vmatprep.subr.bf16.mxu1 %v14563_v61  ;;  %v21405_v61 = vld [vmem:[#allocation236_spill] sm:$0xff] }
 0x3cb   : > { %21396 = vst [vmem:[#allocation232_spill] sm:$0xff] %v17948_v50  ;;  %v4276_v27 = vpop.f32.mrf.mxu1  ;;  %v17957_v15 = vadd.f32 %v4274_v26, %v3922_v17  ;;  %v3924_v36 = vadd.f32 %v3923_v46, %v17393_v44  ;;  %v21398_v50 = vld [vmem:[#allocation230_spill] sm:$0xff]  ;;  %8169 = vmatpush2.bf16.msra.mxu1 %v14561_v5 }
 0x3cc   : > { %v3927_v2 = vpop.f32.mrf.mxu0  ;;  %4552 = vmatmul.mubr.bf16.gmra.mxu0 %v21398_v50 }
 0x3cd   : > { %21397 = vst [vmem:[#allocation234_spill] sm:$0xff] %v17957_v15  ;;  %v4280_v11 = vpop.f32.mrf.mxu1  ;;  %12604 = vmatmul.mubr.msk.bf16.gmra.mxu1 %vm2154_vm0, %v21399_v19  ;;  %v17969_v26 = vadd.f32 %v4276_v27, %v3924_v36  ;;  %v3928_v17 = vadd.f32 %v3927_v2, %v17386_v51  ;;  %4561 = vmatprep.mubr.bf16.mxu0 %v21401_v53 }
 0x3ce   : > { %4914 = vmatprep.mubr.bf16.mxu1 %v20841_v49  ;;  %v3929_v46 = vpop.f32.mrf.mxu0 }
 0x3cf   : > { %21400 = vst [vmem:[#allocation235_spill] sm:$0xff] %v17969_v26  ;;  %v4282_v15 = vpop.f32.mrf.mxu1  ;;  %v17974_v56 = vadd.f32 %v4280_v11, %v3928_v17  ;;  %v3930_v52 = vadd.f32 %v3929_v46, %v17393_v44  ;;  %v21406_v11 = vld [vmem:[#allocation237_spill] sm:$0xff] }
 0x3d0   : > { %v3931_v50 = vpop.f32.mrf.mxu0 }
 0x3d1   : > { %21402 = vst [vmem:[#allocation64_spill] sm:$0xff] %v17974_v56  ;;  %v4284_v31 = vpop.f32.mrf.mxu1  ;;  %v17977_v19 = vadd.f32 %v4282_v15, %v3930_v52  ;;  %v3932_v27 = vadd.f32 %v3931_v50, %v17386_v51  ;;  %v21408_v15 = vld [vmem:[#allocation239_spill] sm:$0xff]  ;;  %v21418_v56 = vld [vmem:[#allocation249_spill] sm:$0xff] }
 0x3d2   : > { %v3933_v36 = vpop.f32.mrf.mxu0 }
 0x3d3   : > { %21403 = vst [vmem:[#allocation65_spill] sm:$0xff] %v17977_v19  ;;  %v4286_v2 = vpop.f32.mrf.mxu1  ;;  %v17980_v53 = vadd.f32 %v4284_v31, %v3932_v27  ;;  %v3934_v26 = vadd.f32 %v3933_v36, %v17393_v44 }
 0x3d4   : > { %v3937_v38 = vpop.f32.mrf.mxu0  ;;  %4562 = vmatmul.mubr.bf16.gmra.mxu0 %v21405_v61 }
 0x3d5   : > { %21404 = vst [vmem:[#allocation66_spill] sm:$0xff] %v17980_v53  ;;  %v4290_v21 = vpop.f32.mrf.mxu1  ;;  %12605 = vmatmul.mubr.msk.bf16.gmra.mxu1 %vm2154_vm0, %v21406_v11  ;;  %v17986_v5 = vadd.f32 %v4286_v2, %v3934_v26  ;;  %v3938_v52 = vadd.f32 %v3937_v38, %v17386_v51  ;;  %4571 = vmatprep.mubr.bf16.mxu0 %v21408_v15  ;;  %v14566_v38 = vld [vmem:[%s20381_s3 + $0xec] ss:$16 sps:$4 sm:$0xff]  }
 0x3d6   : > { %4924 = vmatprep.mubr.bf16.mxu1 %v20841_v49  ;;  %v3939_v17 = vpop.f32.mrf.mxu0  ;;  %8491 = vmatprep.subr.bf16.mxu0 %v14566_v38 }
 0x3d7   : > { %21407 = vst [vmem:[#allocation67_spill] sm:$0xff] %v17986_v5  ;;  %v4292_v31 = vpop.f32.mrf.mxu1  ;;  %v17991_v46 = vadd.f32 %v4290_v21, %v3938_v52  ;;  %v3940_v50 = vadd.f32 %v3939_v17, %v17393_v44  ;;  %v14569_v21 = vld [vmem:[%s20381_s3 + $0x2ec] ss:$16 sps:$4 sm:$0xff]  }
 0x3d8   : > { %v3941_v27 = vpop.f32.mrf.mxu0  ;;  %8844 = vmatprep.subr.bf16.mxu1 %v14569_v21 }
 0x3d9   : > { %21409 = vst [vmem:[#allocation238_spill] sm:$0xff] %v17991_v46  ;;  %v4294_v36 = vpop.f32.mrf.mxu1  ;;  %v17994_v61 = vadd.f32 %v4292_v31, %v3940_v50  ;;  %v3942_v11 = vadd.f32 %v3941_v27, %v17386_v51  ;;  %v21412_v31 = vld [vmem:[#allocation243_spill] sm:$0xff]  ;;  %v21413_v50 = vld [vmem:[#allocation244_spill] sm:$0xff] }
 0x3da   : > { %v3943_v26 = vpop.f32.mrf.mxu0 }
 0x3db   : > { %21410 = vst [vmem:[#allocation240_spill] sm:$0xff] %v17994_v61  ;;  %v4296_v2 = vpop.f32.mrf.mxu1  ;;  %v18000_v15 = vadd.f32 %v4294_v36, %v3942_v11  ;;  %v3944_v5 = vadd.f32 %v3943_v26, %v17393_v44  ;;  %v21415_v36 = vld [vmem:[#allocation246_spill] sm:$0xff] }
 0x3dc   : > { %v3947_v52 = vpop.f32.mrf.mxu0  ;;  %4572 = vmatmul.mubr.bf16.gmra.mxu0 %v21412_v31 }
 0x3dd   : > { %21411 = vst [vmem:[#allocation241_spill] sm:$0xff] %v18000_v15  ;;  %v4300_v17 = vpop.f32.mrf.mxu1  ;;  %12606 = vmatmul.mubr.msk.bf16.gmra.mxu1 %vm2154_vm0, %v21413_v50  ;;  %v18009_v27 = vadd.f32 %v4296_v2, %v3944_v5  ;;  %v3948_v61 = vadd.f32 %v3947_v52, %v17386_v51  ;;  %4581 = vmatprep.mubr.bf16.mxu0 %v21415_v36 }
 0x3de   : > { %4934 = vmatprep.mubr.bf16.mxu1 %v20841_v49  ;;  %v3949_v11 = vpop.f32.mrf.mxu0 }
 0x3df   : > { %21414 = vst [vmem:[#allocation68_spill] sm:$0xff] %v18009_v27  ;;  %v4302_v38 = vpop.f32.mrf.mxu1  ;;  %v18014_v26 = vadd.f32 %v4300_v17, %v3948_v61  ;;  %v3950_v15 = vadd.f32 %v3949_v11, %v17393_v44  ;;  %v21419_v61 = vld [vmem:[#allocation250_spill] sm:$0xff]  ;;  %v21421_v17 = vld [vmem:[#allocation252_spill] sm:$0xff] }
 0x3e0   : > { %v3951_v46 = vpop.f32.mrf.mxu0 }
 0x3e1   : > { %v4304_v31 = vpop.f32.mrf.mxu1  ;;  %v18017_v53 = vadd.f32 %v4302_v38, %v3950_v15  ;;  %v3952_v5 = vadd.f32 %v3951_v46, %v17386_v51 }
 0x3e2   : > { %v3953_v2 = vpop.f32.mrf.mxu0 }
 0x3e3   : > { %21416 = vst [vmem:[#allocation69_spill] sm:$0xff] %v18017_v53  ;;  %v4306_v50 = vpop.f32.mrf.mxu1  ;;  %v18020_v52 = vadd.f32 %v4304_v31, %v3952_v5  ;;  %v3954_v36 = vadd.f32 %v3953_v2, %v17393_v44  ;;  %v21425_v53 = vld [vmem:[#allocation256_spill] sm:$0xff] }
 0x3e4   : > { %v3957_v27 = vpop.f32.mrf.mxu0  ;;  %4582 = vmatmul.mubr.bf16.gmra.mxu0 %v21418_v56 }
 0x3e5   : > { %21417 = vst [vmem:[#allocation242_spill] sm:$0xff] %v18020_v52  ;;  %v4310_v19 = vpop.f32.mrf.mxu1  ;;  %12607 = vmatmul.mubr.msk.bf16.gmra.mxu1 %vm2154_vm0, %v21419_v61  ;;  %v18026_v21 = vadd.f32 %v4306_v50, %v3954_v36  ;;  %v3958_v15 = vadd.f32 %v3957_v27, %v17386_v51  ;;  %4591 = vmatprep.mubr.bf16.mxu0 %v21421_v17 }
 0x3e6   : > { %4944 = vmatprep.mubr.bf16.mxu1 %v20841_v49  ;;  %v3959_v46 = vpop.f32.mrf.mxu0 }
 0x3e7   : > { %21420 = vst [vmem:[#allocation70_spill] sm:$0xff] %v18026_v21  ;;  %v4312_v11 = vpop.f32.mrf.mxu1  ;;  %v18031_v38 = vadd.f32 %v4310_v19, %v3958_v15  ;;  %v3960_v31 = vadd.f32 %v3959_v46, %v17393_v44  ;;  %v21426_v19 = vld [vmem:[#allocation257_spill] sm:$0xff] }
 0x3e8   : > { %v3961_v5 = vpop.f32.mrf.mxu0 }
 0x3e9   : > { %21422 = vst [vmem:[#allocation71_spill] sm:$0xff] %v18031_v38  ;;  %v4314_v2 = vpop.f32.mrf.mxu1  ;;  %v18034_v56 = vadd.f32 %v4312_v11, %v3960_v31  ;;  %v3962_v61 = vadd.f32 %v3961_v5, %v17386_v51  ;;  %v21428_v11 = vld [vmem:[#allocation259_spill] sm:$0xff] }
 0x3ea   : > { %v3963_v50 = vpop.f32.mrf.mxu0  ;;  %v21432_v38 = vld [vmem:[#allocation263_spill] sm:$0xff] }
 0x3eb   : > { %21423 = vst [vmem:[#allocation245_spill] sm:$0xff] %v18034_v56  ;;  %v4316_v36 = vpop.f32.mrf.mxu1  ;;  %v18037_v21 = vadd.f32 %v4314_v2, %v3962_v61  ;;  %v3964_v27 = vadd.f32 %v3963_v50, %v17393_v44 }
 0x3ec   : > { %v3967_v17 = vpop.f32.mrf.mxu0  ;;  %4592 = vmatmul.mubr.bf16.gmra.mxu0 %v21425_v53 }
 0x3ed   : > { %21424 = vst [vmem:[#allocation247_spill] sm:$0xff] %v18037_v21  ;;  %v4320_v52 = vpop.f32.mrf.mxu1  ;;  %12608 = vmatmul.mubr.msk.bf16.gmra.mxu1 %vm2154_vm0, %v21426_v19  ;;  %v18043_v15 = vadd.f32 %v4316_v36, %v3964_v27  ;;  %v3968_v46 = vadd.f32 %v3967_v17, %v17386_v51  ;;  %4601 = vmatprep.mubr.bf16.mxu0 %v21428_v11 }
 0x3ee   : > { %4954 = vmatprep.mubr.bf16.mxu1 %v20841_v49  ;;  %v3969_v31 = vpop.f32.mrf.mxu0 }
 0x3ef   : > { %21427 = vst [vmem:[#allocation248_spill] sm:$0xff] %v18043_v15  ;;  %v4322_v5 = vpop.f32.mrf.mxu1  ;;  %v18048_v2 = vadd.f32 %v4320_v52, %v3968_v46  ;;  %v3970_v61 = vadd.f32 %v3969_v31, %v17393_v44  ;;  %v21433_v52 = vld [vmem:[#allocation264_spill] sm:$0xff] }
 0x3f0   : > { %v3971_v50 = vpop.f32.mrf.mxu0 }
 0x3f1   : > { %21429 = vst [vmem:[#allocation72_spill] sm:$0xff] %v18048_v2  ;;  %v4324_v21 = vpop.f32.mrf.mxu1  ;;  %v18051_v53 = vadd.f32 %v4322_v5, %v3970_v61  ;;  %v3972_v19 = vadd.f32 %v3971_v50, %v17386_v51  ;;  %v21435_v5 = vld [vmem:[#allocation266_spill] sm:$0xff] }
 0x3f2   : > { %v3973_v36 = vpop.f32.mrf.mxu0  ;;  %v21439_v2 = vld [vmem:[#allocation270_spill] sm:$0xff] }
 0x3f3   : > { %21430 = vst [vmem:[#allocation73_spill] sm:$0xff] %v18051_v53  ;;  %v4326_v27 = vpop.f32.mrf.mxu1  ;;  %v18054_v15 = vadd.f32 %v4324_v21, %v3972_v19  ;;  %v3974_v17 = vadd.f32 %v3973_v36, %v17393_v44 }
 0x3f4   : > { %v3977_v11 = vpop.f32.mrf.mxu0  ;;  %4602 = vmatmul.mubr.bf16.gmra.mxu0 %v21432_v38 }
 0x3f5   : > { %21431 = vst [vmem:[#allocation74_spill] sm:$0xff] %v18054_v15  ;;  %v4330_v56 = vpop.f32.mrf.mxu1  ;;  %12609 = vmatmul.mubr.msk.bf16.gmra.mxu1 %vm2154_vm0, %v21433_v52  ;;  %v18060_v46 = vadd.f32 %v4326_v27, %v3974_v17  ;;  %v3978_v31 = vadd.f32 %v3977_v11, %v17386_v51  ;;  %4611 = vmatprep.mubr.bf16.mxu0 %v21435_v5 }
 0x3f6   : > { %4964 = vmatprep.mubr.bf16.mxu1 %v20841_v49  ;;  %v3979_v61 = vpop.f32.mrf.mxu0 }
 0x3f7   : > { %21434 = vst [vmem:[#allocation75_spill] sm:$0xff] %v18060_v46  ;;  %v4332_v21 = vpop.f32.mrf.mxu1  ;;  %v18065_v50 = vadd.f32 %v4330_v56, %v3978_v31  ;;  %v3980_v19 = vadd.f32 %v3979_v61, %v17393_v44  ;;  %v21440_v56 = vld [vmem:[#allocation271_spill] sm:$0xff] }
 0x3f8   : > { %v3981_v36 = vpop.f32.mrf.mxu0 }
 0x3f9   : > { %21436 = vst [vmem:[#allocation251_spill] sm:$0xff] %v18065_v50  ;;  %v4334_v15 = vpop.f32.mrf.mxu1  ;;  %v18068_v38 = vadd.f32 %v4332_v21, %v3980_v19  ;;  %v3982_v52 = vadd.f32 %v3981_v36, %v17386_v51  ;;  %v21442_v21 = vld [vmem:[#allocation273_spill] sm:$0xff] }
 0x3fa   : > { %v3983_v27 = vpop.f32.mrf.mxu0  ;;  %v21446_v50 = vld [vmem:[#allocation277_spill] sm:$0xff] }
 0x3fb   : > { %21437 = vst [vmem:[#allocation253_spill] sm:$0xff] %v18068_v38  ;;  %v4336_v17 = vpop.f32.mrf.mxu1  ;;  %v18071_v46 = vadd.f32 %v4334_v15, %v3982_v52  ;;  %v3984_v11 = vadd.f32 %v3983_v27, %v17393_v44 }
 0x3fc   : > { %v3987_v5 = vpop.f32.mrf.mxu0  ;;  %4612 = vmatmul.mubr.bf16.gmra.mxu0 %v21439_v2 }
 0x3fd   : > { %21438 = vst [vmem:[#allocation254_spill] sm:$0xff] %v18071_v46  ;;  %v4340_v53 = vpop.f32.mrf.mxu1  ;;  %12610 = vmatmul.mubr.msk.bf16.gmra.mxu1 %vm2154_vm0, %v21440_v56  ;;  %v18077_v31 = vadd.f32 %v4336_v17, %v3984_v11  ;;  %v3988_v61 = vadd.f32 %v3987_v5, %v17386_v51  ;;  %4621 = vmatprep.mubr.bf16.mxu0 %v21442_v21 }
 0x3fe   : > { %4974 = vmatprep.mubr.bf16.mxu1 %v20841_v49  ;;  %v3989_v19 = vpop.f32.mrf.mxu0 }
 0x3ff   : > { %21441 = vst [vmem:[#allocation76_spill] sm:$0xff] %v18077_v31  ;;  %v4342_v15 = vpop.f32.mrf.mxu1  ;;  %v18082_v36 = vadd.f32 %v4340_v53, %v3988_v61  ;;  %v3990_v52 = vadd.f32 %v3989_v19, %v17393_v44  ;;  %v21447_v53 = vld [vmem:[#allocation278_spill] sm:$0xff] }
 0x400   : > { %v3991_v27 = vpop.f32.mrf.mxu0 }
 0x401   : > { %21443 = vst [vmem:[#allocation77_spill] sm:$0xff] %v18082_v36  ;;  %v4344_v46 = vpop.f32.mrf.mxu1  ;;  %v18085_v2 = vadd.f32 %v4342_v15, %v3990_v52  ;;  %v3992_v56 = vadd.f32 %v3991_v27, %v17386_v51  ;;  %v21449_v15 = vld [vmem:[#allocation280_spill] sm:$0xff] }
 0x402   : > { %v3993_v17 = vpop.f32.mrf.mxu0  ;;  %v21453_v36 = vld [vmem:[#allocation284_spill] sm:$0xff] }
 0x403   : > { %21444 = vst [vmem:[#allocation255_spill] sm:$0xff] %v18085_v2  ;;  %v4346_v11 = vpop.f32.mrf.mxu1  ;;  %v18088_v31 = vadd.f32 %v4344_v46, %v3992_v56  ;;  %v3994_v5 = vadd.f32 %v3993_v17, %v17393_v44 }
 0x404   : > { %v3997_v21 = vpop.f32.mrf.mxu0  ;;  %4622 = vmatmul.mubr.bf16.gmra.mxu0 %v21446_v50 }
 0x405   : > { %21445 = vst [vmem:[#allocation78_spill] sm:$0xff] %v18088_v31  ;;  %v4350_v38 = vpop.f32.mrf.mxu1  ;;  %12611 = vmatmul.mubr.msk.bf16.gmra.mxu1 %vm2154_vm0, %v21447_v53  ;;  %v18094_v61 = vadd.f32 %v4346_v11, %v3994_v5  ;;  %v3998_v19 = vadd.f32 %v3997_v21, %v17386_v51  ;;  %4631 = vmatprep.mubr.bf16.mxu0 %v21449_v15 }
 0x406   : > { %4984 = vmatprep.mubr.bf16.mxu1 %v20841_v49  ;;  %v3999_v52 = vpop.f32.mrf.mxu0 }
 0x407   : > { %21448 = vst [vmem:[#allocation79_spill] sm:$0xff] %v18094_v61  ;;  %v4352_v46 = vpop.f32.mrf.mxu1  ;;  %v18099_v27 = vadd.f32 %v4350_v38, %v3998_v19  ;;  %v4000_v56 = vadd.f32 %v3999_v52, %v17393_v44  ;;  %v21454_v38 = vld [vmem:[#allocation285_spill] sm:$0xff] }
 0x408   : > { %v4001_v17 = vpop.f32.mrf.mxu0 }
 0x409   : > { %21450 = vst [vmem:[#allocation258_spill] sm:$0xff] %v18099_v27  ;;  %v4354_v31 = vpop.f32.mrf.mxu1  ;;  %v18102_v50 = vadd.f32 %v4352_v46, %v4000_v56  ;;  %v4002_v53 = vadd.f32 %v4001_v17, %v17386_v51  ;;  %v21456_v46 = vld [vmem:[#allocation287_spill] sm:$0xff] }
 0x40a   : > { %v4003_v11 = vpop.f32.mrf.mxu0 }
 0x40b   : > { %21451 = vst [vmem:[#allocation260_spill] sm:$0xff] %v18102_v50  ;;  %v4356_v5 = vpop.f32.mrf.mxu1  ;;  %v18105_v61 = vadd.f32 %v4354_v31, %v4002_v53  ;;  %v4004_v21 = vadd.f32 %v4003_v11, %v17393_v44  ;;  %v21459_v50 = vld [vmem:[#allocation291_spill] sm:$0xff] }
 0x40c   : > { %v4007_v15 = vpop.f32.mrf.mxu0  ;;  %4632 = vmatmul.mubr.bf16.gmra.mxu0 %v21453_v36 }
 0x40d   : > { %21452 = vst [vmem:[#allocation261_spill] sm:$0xff] %v18105_v61  ;;  %v4360_v2 = vpop.f32.mrf.mxu1  ;;  %12612 = vmatmul.mubr.msk.bf16.gmra.mxu1 %vm2154_vm0, %v21454_v38  ;;  %v18111_v19 = vadd.f32 %v4356_v5, %v4004_v21  ;;  %v4008_v52 = vadd.f32 %v4007_v15, %v17386_v51  ;;  %4641 = vmatprep.mubr.bf16.mxu0 %v21456_v46 }
 0x40e   : > { %4994 = vmatprep.mubr.bf16.mxu1 %v20841_v49  ;;  %v4009_v56 = vpop.f32.mrf.mxu0 }
 0x40f   : > { %21455 = vst [vmem:[#allocation80_spill] sm:$0xff] %v18111_v19  ;;  %v4362_v31 = vpop.f32.mrf.mxu1  ;;  %v18116_v17 = vadd.f32 %v4360_v2, %v4008_v52  ;;  %v4010_v53 = vadd.f32 %v4009_v56, %v17393_v44  ;;  %v21460_v2 = vld [vmem:[#allocation292_spill] sm:$0xff] }
 0x410   : > { %v4011_v11 = vpop.f32.mrf.mxu0 }
 0x411   : > { %v4364_v61 = vpop.f32.mrf.mxu1  ;;  %v18119_v36 = vadd.f32 %v4362_v31, %v4010_v53  ;;  %v4012_v38 = vadd.f32 %v4011_v11, %v17386_v51  ;;  %v21462_v31 = vld [vmem:[#allocation294_spill] sm:$0xff] }
 0x412   : > { %v4013_v5 = vpop.f32.mrf.mxu0 }
 0x413   : > { %21457 = vst [vmem:[#allocation81_spill] sm:$0xff] %v18119_v36  ;;  %v4366_v21 = vpop.f32.mrf.mxu1  ;;  %v18122_v19 = vadd.f32 %v4364_v61, %v4012_v38  ;;  %v4014_v15 = vadd.f32 %v4013_v5, %v17393_v44 }
 0x414   : > { %v4403_v46 = vpop.f32.mrf.mxu0  ;;  %4642 = vmatmul.mubr.bf16.gmra.mxu0 %v21459_v50 }
 0x415   : > { %21458 = vst [vmem:[#allocation262_spill] sm:$0xff] %v18122_v19  ;;  %v4756_v27 = vpop.f32.mrf.mxu1  ;;  %12613 = vmatmul.mubr.msk.bf16.gmra.mxu1 %vm2154_vm0, %v21460_v2  ;;  %v18128_v52 = vadd.f32 %v4366_v21, %v4014_v15  ;;  %v4404_v56 = vadd.f32 %v4403_v46, %v17402_v6  ;;  %4651 = vmatprep.mubr.bf16.mxu0 %v21462_v31  ;;  %v21463_v46 = vld [vmem:[#allocation297_spill] sm:$0xff] }
 0x416   : > { %5004 = vmatprep.mubr.bf16.mxu1 %v20841_v49  ;;  %v4405_v51 = vpop.f32.mrf.mxu0 }
 0x417   : > { %21461 = vst [vmem:[#allocation82_spill] sm:$0xff] %v18128_v52  ;;  %v4758_v61 = vpop.f32.mrf.mxu1  ;;  %v4406_v53 = vadd.f32 %v4405_v51, %v17405_v58  ;;  %v4757_v38 = vadd.f32 %v4756_v27, %v4404_v56  ;;  %v21464_v52 = vld [vmem:[#allocation298_spill] sm:$0xff]  ;;  %v21465_v56 = vld [vmem:[#allocation299_spill] sm:$0xff] }
 0x418   : > { %v4407_v44 = vpop.f32.mrf.mxu0 }
 0x419   : > { %v4760_v11 = vpop.f32.mrf.mxu1  ;;  %v4408_v50 = vadd.f32 %v4407_v44, %v17410_v13  ;;  %v4759_v2 = vadd.f32 %v4758_v61, %v4406_v53  ;;  %v5077_v36 = vmax.f32 %v4757_v38, 0.0 }
 0x41a   : > { %v4409_v5 = vpop.f32.mrf.mxu0 }
 0x41b   : > { %v4762_v19 = vpop.f32.mrf.mxu1  ;;  %v4761_v21 = vadd.f32 %v4760_v11, %v4408_v50  ;;  %v4410_v15 = vadd.f32 %v4409_v5, %v17415_v42  ;;  %v5078_v53 = vmax.f32 %v4759_v2, 0.0 }
 0x41c   : > { %v4413_v6 = vpop.f32.mrf.mxu0  ;;  %4652 = vmatmul.mubr.bf16.gmra.mxu0 %v21463_v46 }
 0x41d   : > { %v4766_v31 = vpop.f32.mrf.mxu1  ;;  %12614 = vmatmul.mubr.msk.bf16.gmra.mxu1 %vm2154_vm0, %v21464_v52  ;;  %v5081_v58 = vmax.f32 %v4761_v21, 0.0  ;;  %v4763_v51 = vadd.f32 %v4762_v19, %v4410_v15  ;;  %v4414_v27 = vadd.f32 %v4413_v6, %v17420_v30  ;;  %4661 = vmatprep.mubr.bf16.mxu0 %v21465_v56 }
 0x41e   : > { %5014 = vmatprep.mubr.bf16.mxu1 %v20841_v49  ;;  %v4415_v13 = vpop.f32.mrf.mxu0 }
 0x41f   : > { %v4768_v61 = vpop.f32.mrf.mxu1  ;;  %v18142_v42 = vpack.c.bf16 %v5081_v58, %v5077_v36  ;;  %v5082_v44 = vmax.f32 %v4763_v51, 0.0  ;;  %v4416_v11 = vadd.f32 %v4415_v13, %v17423_v32  ;;  %v4767_v52 = vadd.f32 %v4766_v31, %v4414_v27 }
 0x420   : > { %v4417_v50 = vpop.f32.mrf.mxu0 }
 0x421   : > { %v4770_v5 = vpop.f32.mrf.mxu1  ;;  %v4418_v38 = vadd.f32 %v4417_v50, %v17426_v3  ;;  %v18146_v19 = vpack.c.bf16 %v5082_v44, %v5078_v53  ;;  %v4769_v15 = vadd.f32 %v4768_v61, %v4416_v11  ;;  %v5085_v32 = vmax.f32 %v4767_v52, 0.0 }
 0x422   : > { %v4419_v30 = vpop.f32.mrf.mxu0 }
 0x423   : > { %v4772_v21 = vpop.f32.mrf.mxu1  ;;  %v4771_v6 = vadd.f32 %v4770_v5, %v4418_v38  ;;  %v4420_v46 = vadd.f32 %v4419_v30, %v17431_v43  ;;  %v5086_v27 = vmax.f32 %v4769_v15, 0.0 }
 0x424   : > { %v4423_v56 = vpop.f32.mrf.mxu0  ;;  %4662 = vmatmul.mubr.bf16.gmra.mxu0 %v16848_v37 }
 0x425   : > { %v4776_v36 = vpop.f32.mrf.mxu1  ;;  %12615 = vmatmul.mubr.msk.bf16.gmra.mxu1 %vm2154_vm0, %v16850_v14  ;;  %v5089_v2 = vmax.f32 %v4771_v6, 0.0  ;;  %v4773_v31 = vadd.f32 %v4772_v21, %v4420_v46  ;;  %v4424_v3 = vadd.f32 %v4423_v56, %v17436_v25  ;;  %4671 = vmatprep.mubr.bf16.mxu0 %v16853_v0 }
 0x426   : > { %5024 = vmatprep.mubr.bf16.mxu1 %v20841_v49  ;;  %v4425_v58 = vpop.f32.mrf.mxu0 }
 0x427   : > { %v4778_v51 = vpop.f32.mrf.mxu1  ;;  %v18155_v43 = vpack.c.bf16 %v5089_v2, %v5085_v32  ;;  %v5090_v13 = vmax.f32 %v4773_v31, 0.0  ;;  %v4426_v37 = vadd.f32 %v4425_v58, %v17439_v34  ;;  %v4777_v14 = vadd.f32 %v4776_v36, %v4424_v3 }
 0x428   : > { %v4427_v61 = vpop.f32.mrf.mxu0 }
 0x429   : > { %v4780_v53 = vpop.f32.mrf.mxu1  ;;  %v4428_v44 = vadd.f32 %v4427_v61, %v17442_v8  ;;  %v18159_v11 = vpack.c.bf16 %v5090_v13, %v5086_v27  ;;  %v4779_v0 = vadd.f32 %v4778_v51, %v4426_v37  ;;  %v5093_v34 = vmax.f32 %v4777_v14, 0.0 }
 0x42a   : > { %v4429_v25 = vpop.f32.mrf.mxu0 }
 0x42b   : > { %v4782_v50 = vpop.f32.mrf.mxu1  ;;  %v4781_v5 = vadd.f32 %v4780_v53, %v4428_v44  ;;  %v4430_v52 = vadd.f32 %v4429_v25, %v17447_v54  ;;  %v5094_v56 = vmax.f32 %v4779_v0, 0.0 }
 0x42c   : > { %v4433_v38 = vpop.f32.mrf.mxu0  ;;  %4672 = vmatmul.mubr.bf16.gmra.mxu0 %v16873_v1 }
 0x42d   : > { %v4786_v30 = vpop.f32.mrf.mxu1  ;;  %12616 = vmatmul.mubr.msk.bf16.gmra.mxu1 %vm2154_vm0, %v16875_v57  ;;  %v5097_v21 = vmax.f32 %v4781_v5, 0.0  ;;  %v4783_v15 = vadd.f32 %v4782_v50, %v4430_v52  ;;  %v4434_v8 = vadd.f32 %v4433_v38, %v17452_v7  ;;  %4681 = vmatprep.mubr.bf16.mxu0 %v16878_v22 }
 0x42e   : > { %5034 = vmatprep.mubr.bf16.mxu1 %v20841_v49  ;;  %v4435_v6 = vpop.f32.mrf.mxu0 }
 0x42f   : > { %v4788_v46 = vpop.f32.mrf.mxu1  ;;  %v18168_v54 = vpack.c.bf16 %v5097_v21, %v5093_v34  ;;  %v5098_v36 = vmax.f32 %v4783_v15, 0.0  ;;  %v4436_v1 = vadd.f32 %v4435_v6, %v17455_v23  ;;  %v4787_v57 = vadd.f32 %v4786_v30, %v4434_v8 }
 0x430   : > { %v4437_v32 = vpop.f32.mrf.mxu0 }
 0x431   : > { %v4790_v2 = vpop.f32.mrf.mxu1  ;;  %v4438_v31 = vadd.f32 %v4437_v32, %v17458_v60  ;;  %v18172_v3 = vpack.c.bf16 %v5098_v36, %v5094_v56  ;;  %v4789_v22 = vadd.f32 %v4788_v46, %v4436_v1  ;;  %v5101_v23 = vmax.f32 %v4787_v57, 0.0 }
 0x432   : > { %v4439_v7 = vpop.f32.mrf.mxu0 }
 0x433   : > { %v4792_v58 = vpop.f32.mrf.mxu1  ;;  %v4791_v51 = vadd.f32 %v4790_v2, %v4438_v31  ;;  %v4440_v27 = vadd.f32 %v4439_v7, %v17463_v47  ;;  %v5102_v25 = vmax.f32 %v4789_v22, 0.0 }
 0x434   : > { %v4443_v13 = vpop.f32.mrf.mxu0  ;;  %4682 = vmatmul.mubr.bf16.gmra.mxu0 %v16898_v10 }
 0x435   : > { %v4796_v37 = vpop.f32.mrf.mxu1  ;;  %12617 = vmatmul.mubr.msk.bf16.gmra.mxu1 %vm2154_vm0, %v16900_v4  ;;  %v5105_v61 = vmax.f32 %v4791_v51, 0.0  ;;  %v4793_v53 = vadd.f32 %v4792_v58, %v4440_v27  ;;  %v4444_v60 = vadd.f32 %v4443_v13, %v17468_v63  ;;  %4691 = vmatprep.mubr.bf16.mxu0 %v16903_v9 }
 0x436   : > { %5044 = vmatprep.mubr.bf16.mxu1 %v20841_v49  ;;  %v4445_v14 = vpop.f32.mrf.mxu0 }
 0x437   : > { %v4798_v44 = vpop.f32.mrf.mxu1  ;;  %v18181_v47 = vpack.c.bf16 %v5105_v61, %v5101_v23  ;;  %v5106_v50 = vmax.f32 %v4793_v53, 0.0  ;;  %v4446_v10 = vadd.f32 %v4445_v14, %v17471_v24  ;;  %v4797_v4 = vadd.f32 %v4796_v37, %v4444_v60 }
 0x438   : > { %v4447_v0 = vpop.f32.mrf.mxu0 }
 0x439   : > { %v4800_v5 = vpop.f32.mrf.mxu1  ;;  %v4448_v52 = vadd.f32 %v4447_v0, %v17474_v16  ;;  %v18185_v38 = vpack.c.bf16 %v5106_v50, %v5102_v25  ;;  %v4799_v9 = vadd.f32 %v4798_v44, %v4446_v10  ;;  %v5109_v24 = vmax.f32 %v4797_v4, 0.0  ;;  %v21466_v4 = vld [vmem:[#allocation32_spill] sm:$0xff] }
 0x43a   : > { %v4449_v63 = vpop.f32.mrf.mxu0 }
 0x43b   : > { %v4802_v30 = vpop.f32.mrf.mxu1  ;;  %v4801_v34 = vadd.f32 %v4800_v5, %v4448_v52  ;;  %v4450_v21 = vadd.f32 %v4449_v63, %v17479_v39  ;;  %v5110_v1 = vmax.f32 %v4799_v9, 0.0 }
 0x43c   : > { %v4453_v15 = vpop.f32.mrf.mxu0  ;;  %4692 = vmatmul.mubr.bf16.gmra.mxu0 %v16923_v45 }
 0x43d   : > { %v4806_v8 = vpop.f32.mrf.mxu1  ;;  %12618 = vmatmul.mubr.msk.bf16.gmra.mxu1 %vm2154_vm0, %v16925_v18  ;;  %v5113_v6 = vmax.f32 %v4801_v34, 0.0  ;;  %v4803_v46 = vadd.f32 %v4802_v30, %v4450_v21  ;;  %v4454_v16 = vadd.f32 %v4453_v15, %v17484_v33  ;;  %4701 = vmatprep.mubr.bf16.mxu0 %v16928_v35  ;;  %v21467_v30 = vld [vmem:[#allocation311_spill] sm:$0xff]  ;;  %v21468_v34 = vld [vmem:[#allocation312_spill] sm:$0xff] }
 0x43e   : > { %5054 = vmatprep.mubr.bf16.mxu1 %v20841_v49  ;;  %v4455_v56 = vpop.f32.mrf.mxu0 }
 0x43f   : > { %v4808_v36 = vpop.f32.mrf.mxu1  ;;  %v18194_v39 = vpack.c.bf16 %v5113_v6, %v5109_v24  ;;  %v5114_v32 = vmax.f32 %v4803_v46, 0.0  ;;  %v4456_v45 = vadd.f32 %v4455_v56, %v17487_v41  ;;  %v4807_v18 = vadd.f32 %v4806_v8, %v4454_v16  ;;  %v21469_v8 = vld [vmem:[#allocation33_spill] sm:$0xff] }
 0x440   : > { %v4457_v2 = vpop.f32.mrf.mxu0  ;;  %v21470_v24 = vld [vmem:[#allocation301_spill] sm:$0xff] }
 0x441   : > { %v4810_v57 = vpop.f32.mrf.mxu1  ;;  %v4458_v31 = vadd.f32 %v4457_v2, %v17490_v40  ;;  %v18198_v7 = vpack.c.bf16 %v5114_v32, %v5110_v1  ;;  %v4809_v35 = vadd.f32 %v4808_v36, %v4456_v45  ;;  %v5117_v41 = vmax.f32 %v4807_v18, 0.0  ;;  %v21472_v1 = vld [vmem:[#allocation180_spill] sm:$0xff]  ;;  %v21473_v18 = vld [vmem:[#allocation34_spill] sm:$0xff] }
 0x442   : > { %v4459_v33 = vpop.f32.mrf.mxu0 }
 0x443   : > { %v4812_v58 = vpop.f32.mrf.mxu1  ;;  %v4811_v22 = vadd.f32 %v4810_v57, %v4458_v31  ;;  %v4460_v51 = vadd.f32 %v4459_v33, %v17495_v20  ;;  %v5118_v60 = vmax.f32 %v4809_v35, 0.0 }
 0x444   : > { %v4463_v27 = vpop.f32.mrf.mxu0  ;;  %4702 = vmatmul.mubr.bf16.gmra.mxu0 %v16948_v48 }
 0x445   : > { %v4816_v13 = vpop.f32.mrf.mxu1  ;;  %12619 = vmatmul.mubr.msk.bf16.gmra.mxu1 %vm2154_vm0, %v16950_v62  ;;  %v5121_v37 = vmax.f32 %v4811_v22, 0.0  ;;  %v4813_v23 = vadd.f32 %v4812_v58, %v4460_v51  ;;  %v4464_v40 = vadd.f32 %v4463_v27, %v17500_v28  ;;  %4711 = vmatprep.mubr.bf16.mxu0 %v16953_v29  ;;  %v14564_v22 = vld [vmem:[%s20381_s3 + $0xe8] ss:$16 sps:$4 sm:$0xff]  }
 0x446   : > { %5064 = vmatprep.mubr.bf16.mxu1 %v20841_v49  ;;  %v4465_v61 = vpop.f32.mrf.mxu0  ;;  %v14567_v51 = vld [vmem:[%s20381_s3 + $0x2e8] ss:$16 sps:$4 sm:$0xff]  }
 0x447   : > { %v4818_v53 = vpop.f32.mrf.mxu1  ;;  %v18207_v20 = vpack.c.bf16 %v5121_v37, %v5117_v41  ;;  %v5122_v14 = vmax.f32 %v4813_v23, 0.0  ;;  %v4466_v48 = vadd.f32 %v4465_v61, %v17503_v59  ;;  %v4817_v62 = vadd.f32 %v4816_v13, %v4464_v40  ;;  %v21475_v41 = vld [vmem:[#allocation35_spill] sm:$0xff] }
 0x448   : > { %v4467_v44 = vpop.f32.mrf.mxu0  ;;  %v14572_v23 = vld [vmem:[%s20381_s3 + $0xcc] ss:$16 sps:$4 sm:$0xff]  }
 0x449   : > { %v4820_v25 = vpop.f32.mrf.mxu1  ;;  %v4468_v50 = vadd.f32 %v4467_v44, %v17506_v55  ;;  %v18211_v10 = vpack.c.bf16 %v5122_v14, %v5118_v60  ;;  %v4819_v29 = vadd.f32 %v4818_v53, %v4466_v48  ;;  %v5125_v59 = vmax.f32 %v4817_v62, 0.0  ;;  %v14575_v40 = vld [vmem:[%s20381_s3 + $0x2cc] ss:$16 sps:$4 sm:$0xff]   ;;  %v21476_v60 = vld [vmem:[#allocation300_spill] sm:$0xff] }
 0x44a   : > { %v4469_v28 = vpop.f32.mrf.mxu0  ;;  %v21477_v62 = vld [vmem:[#allocation303_spill] sm:$0xff] }
 0x44b   : > { %v4822_v0 = vpop.f32.mrf.mxu1  ;;  %v4821_v5 = vadd.f32 %v4820_v25, %v4468_v50  ;;  %v4470_v52 = vadd.f32 %v4469_v28, %v21466_v4  ;;  %v5126_v16 = vmax.f32 %v4819_v29, 0.0  ;;  %v14573_v29 = vld [vmem:[%s20381_s3 + $0x2c8] ss:$16 sps:$4 sm:$0xff]  }
 0x44c   : > { %v4473_v63 = vpop.f32.mrf.mxu0  ;;  %4712 = vmatmul.mubr.bf16.gmra.mxu0 %v21467_v30  ;;  %v14578_v30 = vld [vmem:[%s20381_s3 + $0xac] ss:$16 sps:$4 sm:$0xff]  }
 0x44d   : > { %v4826_v9 = vpop.f32.mrf.mxu1  ;;  %12620 = vmatmul.mubr.msk.bf16.gmra.mxu1 %vm2154_vm0, %v21468_v34  ;;  %v5129_v21 = vmax.f32 %v4821_v5, 0.0  ;;  %v4823_v15 = vadd.f32 %v4822_v0, %v4470_v52  ;;  %v4474_v55 = vadd.f32 %v4473_v63, %v21469_v8  ;;  %7817 = vmatprep.mubr.bf16.mxu0 %v21470_v24  ;;  %v14570_v0 = vld [vmem:[%s20381_s3 + $0xc8] ss:$16 sps:$4 sm:$0xff]  }
 0x44e   : > { %8170 = vmatprep.mubr.bf16.mxu1 %v18146_v19  ;;  %v4475_v6 = vpop.f32.mrf.mxu0  ;;  %v21479_v52 = vld [vmem:[#allocation183_spill] sm:$0xff] }
 0x44f   : > { %v4828_v46 = vpop.f32.mrf.mxu1  ;;  %v18220_v56 = vpack.c.bf16 %v5129_v21, %v5125_v59  ;;  %v5130_v36 = vmax.f32 %v4823_v15, 0.0  ;;  %v4476_v32 = vadd.f32 %v4475_v6, %v21472_v1  ;;  %v4827_v57 = vadd.f32 %v4826_v9, %v4474_v55  ;;  %v14581_v9 = vld [vmem:[%s20381_s3 + $0x2ac] ss:$16 sps:$4 sm:$0xff]  }
 0x450   : > { %v4477_v45 = vpop.f32.mrf.mxu0  ;;  %v21480_v15 = vld [vmem:[#allocation185_spill] sm:$0xff] }
 0x451   : > { %21471 = vst [vmem:[#allocation83_spill] sm:$0xff] %v18220_v56  ;;  %v4830_v2 = vpop.f32.mrf.mxu1  ;;  %v4478_v31 = vadd.f32 %v4477_v45, %v21473_v18  ;;  %v18224_v33 = vpack.c.bf16 %v5130_v36, %v5126_v16  ;;  %v4829_v27 = vadd.f32 %v4828_v46, %v4476_v32  ;;  %v5133_v14 = vmax.f32 %v4827_v57, 0.0  ;;  %v14576_v16 = vld [vmem:[%s20381_s3 + $0xa8] ss:$16 sps:$4 sm:$0xff]   ;;  %v21482_v45 = vld [vmem:[#allocation186_spill] sm:$0xff] }
 0x452   : > { %v4479_v58 = vpop.f32.mrf.mxu0  ;;  %v14579_v36 = vld [vmem:[%s20381_s3 + $0x2a8] ss:$16 sps:$4 sm:$0xff]   ;;  %v14584_v57 = vld [vmem:[%s20381_s3 + $0x8c] ss:$16 sps:$4 sm:$0xff]  }
 0x453   : > { %21474 = vst [vmem:[#allocation265_spill] sm:$0xff] %v18224_v33  ;;  %v4832_v35 = vpop.f32.mrf.mxu1  ;;  %v4831_v13 = vadd.f32 %v4830_v2, %v4478_v31  ;;  %v4480_v37 = vadd.f32 %v4479_v58, %v21475_v41  ;;  %v5134_v5 = vmax.f32 %v4829_v27, 0.0  ;;  %v14587_v18 = vld [vmem:[%s20381_s3 + $0x28c] ss:$16 sps:$4 sm:$0xff]  }
 0x454   : > { %v4483_v61 = vpop.f32.mrf.mxu0  ;;  %7818 = vmatmul.mubr.bf16.vlgmr.msra.gmra.mxu0 %v21476_v60 }
 0x455   : > { %v4836_v53 = vpop.f32.mrf.mxu1  ;;  %8171 = vmatmul.mubr.bf16.vlgmr.msra.gmra.mxu1 %v18142_v42  ;;  %v5137_v48 = vmax.f32 %v4831_v13, 0.0  ;;  %v4833_v44 = vadd.f32 %v4832_v35, %v4480_v37  ;;  %v4484_v25 = vadd.f32 %v4483_v61, %v17557_v12  ;;  %7827 = vmatprep.mubr.bf16.mxu0 %v21477_v62  ;;  %v21483_v35 = vld [vmem:[#allocation302_spill] sm:$0xff]  ;;  %v21484_v13 = vld [vmem:[#allocation36_spill] sm:$0xff]  ;;  %v21485_v37 = vld [vmem:[#allocation305_spill] sm:$0xff] }
 0x456   : > { %8180 = vmatprep.mubr.bf16.mxu1 %v18159_v11  ;;  %8492 = vmatpush1.bf16.msra.mxu0 %v14564_v22  ;;  %v4485_v50 = vpop.f32.mrf.mxu0  ;;  %v14582_v61 = vld [vmem:[%s20381_s3 + $0x88] ss:$16 sps:$4 sm:$0xff]  }
 0x457   : > { %v4838_v28 = vpop.f32.mrf.mxu1  ;;  %8845 = vmatpush1.bf16.msra.mxu1 %v14567_v51  ;;  %v18250_v4 = vpack.c.bf16 %v5137_v48, %v5133_v14  ;;  %v5138_v12 = vmax.f32 %v4833_v44, 0.0  ;;  %v4486_v63 = vadd.f32 %v4485_v50, %v21479_v52  ;;  %8493 = vmatprep.subr.bf16.mxu0 %v14572_v23  ;;  %v4837_v21 = vadd.f32 %v4836_v53, %v4484_v25  ;;  %v14585_v53 = vld [vmem:[%s20381_s3 + $0x288] ss:$16 sps:$4 sm:$0xff]  }
 0x458   : > { %8846 = vmatprep.subr.bf16.mxu1 %v14575_v40  ;;  %v4487_v34 = vpop.f32.mrf.mxu0  ;;  %v21487_v25 = vld [vmem:[#allocation37_spill] sm:$0xff]  ;;  %v21488_v52 = vld [vmem:[#allocation187_spill] sm:$0xff] }
 0x459   : > { %21478 = vst [vmem:[#allocation267_spill] sm:$0xff] %v18250_v4  ;;  %v4840_v59 = vpop.f32.mrf.mxu1  ;;  %v4488_v8 = vadd.f32 %v4487_v34, %v21480_v15  ;;  %v18260_v55 = vpack.c.bf16 %v5138_v12, %v5134_v5  ;;  %v4839_v1 = vadd.f32 %v4838_v28, %v4486_v63  ;;  %v5141_v22 = vmax.f32 %v4837_v21, 0.0  ;;  %v14590_v28 = vld [vmem:[%s20381_s3 + $0x6c] ss:$16 sps:$4 sm:$0xff]   ;;  %v14591_v21 = vld [vmem:[%s20381_s3 + $0x268] ss:$16 sps:$4 sm:$0xff]  }
 0x45a   : > { %v4489_v6 = vpop.f32.mrf.mxu0  ;;  %8494 = vmatpush1.bf16.msra.mxu0 %v14570_v0  ;;  %v14593_v0 = vld [vmem:[%s20381_s3 + $0x26c] ss:$16 sps:$4 sm:$0xff]  }
 0x45b   : > { %21481 = vst [vmem:[#allocation268_spill] sm:$0xff] %v18260_v55  ;;  %v4842_v46 = vpop.f32.mrf.mxu1  ;;  %8847 = vmatpush1.bf16.msra.mxu1 %v14573_v29  ;;  %v4841_v32 = vadd.f32 %v4840_v59, %v4488_v8  ;;  %v4490_v2 = vadd.f32 %v4489_v6, %v21482_v45  ;;  %8495 = vmatprep.subr.bf16.mxu0 %v14578_v30  ;;  %v5142_v14 = vmax.f32 %v4839_v1, 0.0  ;;  %v14588_v59 = vld [vmem:[%s20381_s3 + $0x68] ss:$16 sps:$4 sm:$0xff]   ;;  %v21490_v6 = vld [vmem:[#allocation38_spill] sm:$0xff]  ;;  %v21491_v45 = vld [vmem:[#allocation304_spill] sm:$0xff] }
 0x45c   : > { %8848 = vmatprep.subr.bf16.mxu1 %v14581_v9  ;;  %v4493_v31 = vpop.f32.mrf.mxu0  ;;  %7828 = vmatmul.mubr.bf16.gmra.mxu0 %v21483_v35 }
 0x45d   : > { %v4846_v58 = vpop.f32.mrf.mxu1  ;;  %8181 = vmatmul.mubr.bf16.gmra.mxu1 %v18155_v43  ;;  %v5145_v51 = vmax.f32 %v4841_v32, 0.0  ;;  %v4843_v27 = vadd.f32 %v4842_v46, %v4490_v2  ;;  %v4494_v41 = vadd.f32 %v4493_v31, %v21484_v13  ;;  %7837 = vmatprep.mubr.bf16.mxu0 %v21485_v37  ;;  %v21492_v31 = vld [vmem:[#allocation39_spill] sm:$0xff] }
 0x45e   : > { %8190 = vmatprep.mubr.bf16.mxu1 %v18172_v3  ;;  %v4495_v23 = vpop.f32.mrf.mxu0  ;;  %8496 = vmatpush1.bf16.msra.mxu0 %v14576_v16  ;;  %v14596_v16 = vld [vmem:[%s20381_s3 + $0x4c] ss:$16 sps:$4 sm:$0xff]   ;;  %v14594_v13 = vld [vmem:[%s20381_s3 + $0x48] ss:$16 sps:$4 sm:$0xff]  }
 0x45f   : > { %v4848_v40 = vpop.f32.mrf.mxu1  ;;  %8849 = vmatpush1.bf16.msra.mxu1 %v14579_v36  ;;  %v18286_v48 = vpack.c.bf16 %v5145_v51, %v5141_v22  ;;  %v5146_v44 = vmax.f32 %v4843_v27, 0.0  ;;  %v4496_v50 = vadd.f32 %v4495_v23, %v21487_v25  ;;  %8497 = vmatprep.subr.bf16.mxu0 %v14584_v57  ;;  %v4847_v12 = vadd.f32 %v4846_v58, %v4494_v41  ;;  %v14599_v36 = vld [vmem:[%s20381_s3 + $0x24c] ss:$16 sps:$4 sm:$0xff]   ;;  %v14597_v41 = vld [vmem:[%s20381_s3 + $0x248] ss:$16 sps:$4 sm:$0xff]  }
 0x460   : > { %8850 = vmatprep.subr.bf16.mxu1 %v14587_v18  ;;  %v4497_v29 = vpop.f32.mrf.mxu0  ;;  %v21493_v22 = vld [vmem:[#allocation307_spill] sm:$0xff] }
 0x461   : > { %21486 = vst [vmem:[#allocation84_spill] sm:$0xff] %v18286_v48  ;;  %v4850_v5 = vpop.f32.mrf.mxu1  ;;  %v4498_v63 = vadd.f32 %v4497_v29, %v21488_v52  ;;  %v18296_v30 = vpack.c.bf16 %v5146_v44, %v5142_v14  ;;  %v4849_v15 = vadd.f32 %v4848_v40, %v4496_v50  ;;  %v5149_v2 = vmax.f32 %v4847_v12, 0.0  ;;  %v14602_v44 = vld [vmem:[%s20381_s3 + $0x2c] ss:$16 sps:$4 sm:$0xff]   ;;  %v21496_v29 = vld [vmem:[#allocation192_spill] sm:$0xff] }
 0x462   : > { %v4499_v9 = vpop.f32.mrf.mxu0  ;;  %8498 = vmatpush1.bf16.msra.mxu0 %v14582_v61  ;;  %v14605_v25 = vld [vmem:[%s20381_s3 + $0x22c] ss:$16 sps:$4 sm:$0xff]  }
 0x463   : > { %21489 = vst [vmem:[#allocation85_spill] sm:$0xff] %v18296_v30  ;;  %v4852_v34 = vpop.f32.mrf.mxu1  ;;  %8851 = vmatpush1.bf16.msra.mxu1 %v14585_v53  ;;  %v4851_v8 = vadd.f32 %v4850_v5, %v4498_v63  ;;  %v4500_v46 = vadd.f32 %v4499_v9, %v21490_v6  ;;  %8499 = vmatprep.subr.bf16.mxu0 %v14590_v28  ;;  %v5150_v23 = vmax.f32 %v4849_v15, 0.0  ;;  %v21495_v53 = vld [vmem:[#allocation190_spill] sm:$0xff]  ;;  %v14600_v9 = vld [vmem:[%s20381_s3 + $0x28] ss:$16 sps:$4 sm:$0xff]  }
 0x464   : > { %8852 = vmatprep.subr.bf16.mxu1 %v14593_v0  ;;  %v4503_v1 = vpop.f32.mrf.mxu0  ;;  %7838 = vmatmul.mubr.bf16.gmra.mxu0 %v21491_v45  ;;  %v21498_v15 = vld [vmem:[#allocation193_spill] sm:$0xff] }
 0x465   : > { %v4856_v32 = vpop.f32.mrf.mxu1  ;;  %8191 = vmatmul.mubr.bf16.gmra.mxu1 %v18168_v54  ;;  %v5153_v57 = vmax.f32 %v4851_v8, 0.0  ;;  %v4853_v18 = vadd.f32 %v4852_v34, %v4500_v46  ;;  %v4504_v58 = vadd.f32 %v4503_v1, %v21492_v31  ;;  %7847 = vmatprep.mubr.bf16.mxu0 %v21493_v22  ;;  %v14603_v34 = vld [vmem:[%s20381_s3 + $0x228] ss:$16 sps:$4 sm:$0xff]   ;;  %v14608_v6 = vld [vmem:[%s20381_s3 + $0xc] ss:$16 sps:$4 sm:$0xff]   ;;  %v21499_v1 = vld [vmem:[#allocation306_spill] sm:$0xff] }
 0x466   : > { %8200 = vmatprep.mubr.bf16.mxu1 %v18185_v38  ;;  %v4505_v51 = vpop.f32.mrf.mxu0  ;;  %8500 = vmatpush1.bf16.msra.mxu0 %v14588_v59  ;;  %v14611_v46 = vld [vmem:[%s20381_s3 + $0x20c] ss:$16 sps:$4 sm:$0xff]  }
 0x467   : > { %v4858_v27 = vpop.f32.mrf.mxu1  ;;  %8853 = vmatpush1.bf16.msra.mxu1 %v14591_v21  ;;  %v18322_v40 = vpack.c.bf16 %v5153_v57, %v5149_v2  ;;  %v5154_v61 = vmax.f32 %v4853_v18, 0.0  ;;  %v4506_v14 = vadd.f32 %v4505_v51, %v21495_v53  ;;  %8501 = vmatprep.subr.bf16.mxu0 %v14596_v16  ;;  %v4857_v0 = vadd.f32 %v4856_v32, %v4504_v58  ;;  %v21500_v18 = vld [vmem:[#allocation40_spill] sm:$0xff]  ;;  %v21501_v58 = vld [vmem:[#allocation309_spill] sm:$0xff] }
 0x468   : > { %8854 = vmatprep.subr.bf16.mxu1 %v14599_v36  ;;  %v4507_v50 = vpop.f32.mrf.mxu0 }
 0x469   : > { %21494 = vst [vmem:[#allocation269_spill] sm:$0xff] %v18322_v40  ;;  %v4860_v28 = vpop.f32.mrf.mxu1  ;;  %v4508_v5 = vadd.f32 %v4507_v50, %v21496_v29  ;;  %v18332_v12 = vpack.c.bf16 %v5154_v61, %v5150_v23  ;;  %v4859_v59 = vadd.f32 %v4858_v27, %v4506_v14  ;;  %v5157_v32 = vmax.f32 %v4857_v0, 0.0  ;;  %v21503_v14 = vld [vmem:[#allocation41_spill] sm:$0xff] }
 0x46a   : > { %v4509_v52 = vpop.f32.mrf.mxu0  ;;  %8502 = vmatpush1.bf16.msra.mxu0 %v14594_v13  ;;  %v14606_v13 = vld [vmem:[%s20381_s3 + $0x8] ss:$16 sps:$4 sm:$0xff]   ;;  %v14617_v50 = vld [vmem:[%s20381_s3 + $0x3ec] ss:$16 sps:$4 sm:$0xff]  }
 0x46b   : > { %21497 = vst [vmem:[#allocation86_spill] sm:$0xff] %v18332_v12  ;;  %v4862_v63 = vpop.f32.mrf.mxu1  ;;  %8855 = vmatpush1.bf16.msra.mxu1 %v14597_v41  ;;  %v4861_v21 = vadd.f32 %v4860_v28, %v4508_v5  ;;  %v4510_v8 = vadd.f32 %v4509_v52, %v21498_v15  ;;  %8503 = vmatprep.subr.bf16.mxu0 %v14602_v44  ;;  %v14609_v41 = vld [vmem:[%s20381_s3 + $0x208] ss:$16 sps:$4 sm:$0xff]   ;;  %v5158_v23 = vmax.f32 %v4859_v59, 0.0  ;;  %v21504_v5 = vld [vmem:[#allocation194_spill] sm:$0xff] }
 0x46c   : > { %8856 = vmatprep.subr.bf16.mxu1 %v14605_v25  ;;  %v4513_v16 = vpop.f32.mrf.mxu0  ;;  %7848 = vmatmul.mubr.bf16.gmra.mxu0 %v21499_v1  ;;  %v14614_v25 = vld [vmem:[%s20381_s3 + $0x1ec] ss:$16 sps:$4 sm:$0xff]   ;;  %v14612_v59 = vld [vmem:[%s20381_s3 + $0x1e8] ss:$16 sps:$4 sm:$0xff]  }
 0x46d   : > { %v4866_v36 = vpop.f32.mrf.mxu1  ;;  %8201 = vmatmul.mubr.bf16.gmra.mxu1 %v18181_v47  ;;  %v5161_v2 = vmax.f32 %v4861_v21, 0.0  ;;  %v4863_v57 = vadd.f32 %v4862_v63, %v4510_v8  ;;  %v4514_v31 = vadd.f32 %v4513_v16, %v21500_v18  ;;  %7857 = vmatprep.mubr.bf16.mxu0 %v21501_v58  ;;  %v14615_v21 = vld [vmem:[%s20381_s3 + $0x3e8] ss:$16 sps:$4 sm:$0xff]   ;;  %v14620_v16 = vld [vmem:[%s20381_s3 + $0x1cc] ss:$16 sps:$4 sm:$0xff]  }
 0x46e   : > { %8210 = vmatprep.mubr.bf16.mxu1 %v18198_v7  ;;  %v4515_v51 = vpop.f32.mrf.mxu0  ;;  %8504 = vmatpush1.bf16.msra.mxu0 %v14600_v9 }
 0x46f   : > { %v4868_v27 = vpop.f32.mrf.mxu1  ;;  %8857 = vmatpush1.bf16.msra.mxu1 %v14603_v34  ;;  %v18358_v61 = vpack.c.bf16 %v5161_v2, %v5157_v32  ;;  %v5162_v53 = vmax.f32 %v4863_v57, 0.0  ;;  %v4516_v44 = vadd.f32 %v4515_v51, %v21503_v14  ;;  %8505 = vmatprep.subr.bf16.mxu0 %v14608_v6  ;;  %v4867_v29 = vadd.f32 %v4866_v36, %v4514_v31  ;;  %v21506_v6 = vld [vmem:[#allocation42_spill] sm:$0xff]  ;;  %v14623_v36 = vld [vmem:[%s20381_s3 + $0x3cc] ss:$16 sps:$4 sm:$0xff]   ;;  %v21507_v57 = vld [vmem:[#allocation308_spill] sm:$0xff] }
 0x470   : > { %8858 = vmatprep.subr.bf16.mxu1 %v14611_v46  ;;  %v4517_v28 = vpop.f32.mrf.mxu0  ;;  %v14618_v14 = vld [vmem:[%s20381_s3 + $0x1c8] ss:$16 sps:$4 sm:$0xff]  }
 0x471   : > { %21502 = vst [vmem:[#allocation87_spill] sm:$0xff] %v18358_v61  ;;  %v4870_v0 = vpop.f32.mrf.mxu1  ;;  %v4518_v52 = vadd.f32 %v4517_v28, %v21504_v5  ;;  %v18368_v63 = vpack.c.bf16 %v5162_v53, %v5158_v23  ;;  %v4869_v15 = vadd.f32 %v4868_v27, %v4516_v44  ;;  %v5165_v18 = vmax.f32 %v4867_v29, 0.0  ;;  %v21508_v27 = vld [vmem:[#allocation43_spill] sm:$0xff] }
 0x472   : > { %v4519_v9 = vpop.f32.mrf.mxu0  ;;  %8506 = vmatpush1.bf16.msra.mxu0 %v14606_v13  ;;  %v14621_v44 = vld [vmem:[%s20381_s3 + $0x3c8] ss:$16 sps:$4 sm:$0xff]  }
 0x473   : > { %21505 = vst [vmem:[#allocation272_spill] sm:$0xff] %v18368_v63  ;;  %v4872_v34 = vpop.f32.mrf.mxu1  ;;  %8859 = vmatpush1.bf16.msra.mxu1 %v14609_v41  ;;  %v4871_v8 = vadd.f32 %v4870_v0, %v4518_v52  ;;  %v4520_v46 = vadd.f32 %v4519_v9, %v21506_v6  ;;  %8507 = vmatprep.subr.bf16.mxu0 %v14614_v25  ;;  %v21509_v41 = vld [vmem:[#allocation313_spill] sm:$0xff]  ;;  %v5166_v25 = vmax.f32 %v4869_v15, 0.0 }
 0x474   : > { %8860 = vmatprep.subr.bf16.mxu1 %v14617_v50  ;;  %v4523_v32 = vpop.f32.mrf.mxu0  ;;  %7858 = vmatmul.mubr.bf16.gmra.mxu0 %v21507_v57  ;;  %v21511_v0 = vld [vmem:[#allocation197_spill] sm:$0xff] }
 0x475   : > { %v4876_v2 = vpop.f32.mrf.mxu1  ;;  %8211 = vmatmul.mubr.bf16.gmra.mxu1 %v18194_v39  ;;  %v5169_v31 = vmax.f32 %v4871_v8, 0.0  ;;  %v4873_v51 = vadd.f32 %v4872_v34, %v4520_v46  ;;  %v4524_v13 = vadd.f32 %v4523_v32, %v21508_v27  ;;  %7867 = vmatprep.mubr.bf16.mxu0 %v21509_v41  ;;  %v21512_v34 = vld [vmem:[#allocation199_spill] sm:$0xff]  ;;  %v21514_v32 = vld [vmem:[#allocation200_spill] sm:$0xff] }
 0x476   : > { %8220 = vmatprep.mubr.bf16.mxu1 %v18211_v10  ;;  %v4525_v23 = vpop.f32.mrf.mxu0  ;;  %8508 = vmatpush2.bf16.msra.mxu0 %v14612_v59  ;;  %v14626_v8 = vld [vmem:[%s20381_s3 + $0x1ac] ss:$16 sps:$4 sm:$0xff]   ;;  %v14624_v46 = vld [vmem:[%s20381_s3 + $0x1a8] ss:$16 sps:$4 sm:$0xff]  }
 0x477   : > { %v4878_v53 = vpop.f32.mrf.mxu1  ;;  %8861 = vmatpush2.bf16.msra.mxu1 %v14615_v21  ;;  %v18394_v50 = vpack.c.bf16 %v5169_v31, %v5165_v18  ;;  %v5170_v28 = vmax.f32 %v4873_v51, 0.0  ;;  %v4526_v29 = vadd.f32 %v4525_v23, %v21511_v0  ;;  %8509 = vmatprep.subr.bf16.mxu0 %v14620_v16  ;;  %v4877_v9 = vadd.f32 %v4876_v2, %v4524_v13  ;;  %v14627_v18 = vld [vmem:[%s20381_s3 + $0x3a8] ss:$16 sps:$4 sm:$0xff]   ;;  %v14629_v31 = vld [vmem:[%s20381_s3 + $0x3ac] ss:$16 sps:$4 sm:$0xff]   ;;  %v21515_v13 = vld [vmem:[#allocation310_spill] sm:$0xff] }
 0x478   : > { %8862 = vmatprep.subr.bf16.mxu1 %v14623_v36  ;;  %v4527_v5 = vpop.f32.mrf.mxu0 }
 0x479   : > { %21510 = vst [vmem:[#allocation274_spill] sm:$0xff] %v18394_v50  ;;  %v4880_v52 = vpop.f32.mrf.mxu1  ;;  %v4528_v59 = vadd.f32 %v4527_v5, %v21512_v34  ;;  %v18398_v21 = vpack.c.bf16 %v5170_v28, %v5166_v25  ;;  %v4879_v16 = vadd.f32 %v4878_v53, %v4526_v29  ;;  %v5173_v23 = vmax.f32 %v4877_v9, 0.0  ;;  %v21517_v28 = vld [vmem:[#allocation315_spill] sm:$0xff] }
 0x47a   : > { %v4529_v6 = vpop.f32.mrf.mxu0  ;;  %8510 = vmatpush2.bf16.msra.mxu0 %v14618_v14 }
 0x47b   : > { %21513 = vst [vmem:[#allocation275_spill] sm:$0xff] %v18398_v21  ;;  %v4882_v15 = vpop.f32.mrf.mxu1  ;;  %8863 = vmatpush2.bf16.msra.mxu1 %v14621_v44  ;;  %v4881_v36 = vadd.f32 %v4880_v52, %v4528_v59  ;;  %v4530_v2 = vadd.f32 %v4529_v6, %v21514_v32  ;;  %8511 = vmatprep.subr.bf16.mxu0 %v14626_v8  ;;  %v21516_v44 = vld [vmem:[#allocation44_spill] sm:$0xff]  ;;  %v5174_v5 = vmax.f32 %v4879_v16, 0.0  ;;  %v21519_v59 = vld [vmem:[#allocation45_spill] sm:$0xff] }
 0x47c   : > { %v4533_v51 = vpop.f32.mrf.mxu0  ;;  %7868 = vmatmul.mubr.bf16.gmra.mxu0 %v21515_v13  ;;  %8864 = vmatprep.subr.bf16.mxu1 %v14629_v31 }
 0x47d   : > { %v4886_v27 = vpop.f32.mrf.mxu1  ;;  %8221 = vmatmul.mubr.bf16.gmra.mxu1 %v18207_v20  ;;  %v5177_v53 = vmax.f32 %v4881_v36, 0.0  ;;  %v4883_v14 = vadd.f32 %v4882_v15, %v4530_v2  ;;  %v4534_v25 = vadd.f32 %v4533_v51, %v21516_v44  ;;  %7877 = vmatprep.mubr.bf16.mxu0 %v21517_v28  ;;  %v21520_v36 = vld [vmem:[#allocation201_spill] sm:$0xff] }
 0x47e   : > { %8230 = vmatprep.mubr.bf16.mxu1 %v18224_v33  ;;  %v4535_v0 = vpop.f32.mrf.mxu0  ;;  %8512 = vmatpush2.bf16.msra.mxu0 %v14624_v46  ;;  %v21522_v46 = vld [vmem:[#allocation46_spill] sm:$0xff] }
 0x47f   : > { %v4888_v29 = vpop.f32.mrf.mxu1  ;;  %v18418_v52 = vpack.c.bf16 %v5177_v53, %v5173_v23  ;;  %v5178_v34 = vmax.f32 %v4883_v14, 0.0  ;;  %v4536_v8 = vadd.f32 %v4535_v0, %v21519_v59  ;;  %8865 = vmatpush2.bf16.msra.mxu1 %v14627_v18  ;;  %v4887_v15 = vadd.f32 %v4886_v27, %v4534_v25  ;;  %v21523_v53 = vld [vmem:[#allocation314_spill] sm:$0xff]  ;;  %v21524_v27 = vld [vmem:[#allocation47_spill] sm:$0xff] }
 0x480   : > { %v4537_v9 = vpop.f32.mrf.mxu0  ;;  %v21525_v59 = vld [vmem:[#allocation7_spill] sm:$0xff] }
 0x481   : > { %21518 = vst [vmem:[#allocation88_spill] sm:$0xff] %v18418_v52  ;;  %v4890_v6 = vpop.f32.mrf.mxu1  ;;  %v4538_v32 = vadd.f32 %v4537_v9, %v21520_v36  ;;  %v18422_v2 = vpack.c.bf16 %v5178_v34, %v5174_v5  ;;  %v4889_v33 = vadd.f32 %v4888_v29, %v4536_v8  ;;  %v5181_v18 = vmax.f32 %v4887_v15, 0.0  ;;  %v21528_v15 = vld [vmem:[#allocation206_spill] sm:$0xff] }
 0x482   : > { %v4539_v51 = vpop.f32.mrf.mxu0 }
 0x483   : > { %21521 = vst [vmem:[#allocation89_spill] sm:$0xff] %v18422_v2  ;;  %v4892_v44 = vpop.f32.mrf.mxu1  ;;  %v4891_v28 = vadd.f32 %v4890_v6, %v4538_v32  ;;  %v4540_v31 = vadd.f32 %v4539_v51, %v21522_v46  ;;  %v5182_v34 = vmax.f32 %v4889_v33, 0.0  ;;  %v21527_v6 = vld [vmem:[#allocation204_spill] sm:$0xff]  ;;  %v14630_v33 = vld [vmem:[%s20381_s3 + $0x188] ss:$16 sps:$4 sm:$0xff]  }
 0x484   : > { %v4543_v16 = vpop.f32.mrf.mxu0  ;;  %7878 = vmatmul.mubr.bf16.gmra.mxu0 %v21523_v53 }
 0x485   : > { %v4896_v23 = vpop.f32.mrf.mxu1  ;;  %8231 = vmatmul.mubr.bf16.gmra.mxu1 %v18220_v56  ;;  %v5185_v14 = vmax.f32 %v4891_v28, 0.0  ;;  %v4893_v0 = vadd.f32 %v4892_v44, %v4540_v31  ;;  %v4544_v25 = vadd.f32 %v4543_v16, %v21524_v27  ;;  %7887 = vmatprep.mubr.bf16.mxu0 %v21525_v59  ;;  %v14632_v31 = vld [vmem:[%s20381_s3 + $0x18c] ss:$16 sps:$4 sm:$0xff]  }
 0x486   : > { %8240 = vmatprep.mubr.bf16.mxu1 %v18260_v55  ;;  %v4545_v5 = vpop.f32.mrf.mxu0  ;;  %8513 = vmatprep.subr.bf16.mxu0 %v14632_v31 }
 0x487   : > { %v4898_v29 = vpop.f32.mrf.mxu1  ;;  %v18430_v8 = vpack.c.bf16 %v5185_v14, %v5181_v18  ;;  %v5186_v9 = vmax.f32 %v4893_v0, 0.0  ;;  %v4546_v36 = vadd.f32 %v4545_v5, %v21527_v6  ;;  %v4897_v46 = vadd.f32 %v4896_v23, %v4544_v25  ;;  %v21530_v0 = vld [vmem:[#allocation207_spill] sm:$0xff]  ;;  %v21531_v6 = vld [vmem:[#allocation6_spill] sm:$0xff]  ;;  %8514 = vmatpush2.bf16.msra.mxu0 %v14630_v33 }
 0x488   : > { %v4547_v32 = vpop.f32.mrf.mxu0  ;;  %v14633_v23 = vld [vmem:[%s20381_s3 + $0x388] ss:$16 sps:$4 sm:$0xff]   ;;  %v14635_v25 = vld [vmem:[%s20381_s3 + $0x38c] ss:$16 sps:$4 sm:$0xff]   ;;  %v21538_v33 = vld [vmem:[#allocation50_spill] sm:$0xff] }
 0x489   : > { %21526 = vst [vmem:[#allocation276_spill] sm:$0xff] %v18430_v8  ;;  %v4900_v51 = vpop.f32.mrf.mxu1  ;;  %v4548_v28 = vadd.f32 %v4547_v32, %v21528_v15  ;;  %v18434_v44 = vpack.c.bf16 %v5186_v9, %v5182_v34  ;;  %v4899_v18 = vadd.f32 %v4898_v29, %v4546_v36  ;;  %v5189_v32 = vmax.f32 %v4897_v46, 0.0  ;;  %8866 = vmatprep.subr.bf16.mxu1 %v14635_v25 }
 0x48a   : > { %v4549_v16 = vpop.f32.mrf.mxu0  ;;  %8867 = vmatpush2.bf16.msra.mxu1 %v14633_v23 }
 0x48b   : > { %21529 = vst [vmem:[#allocation90_spill] sm:$0xff] %v18434_v44  ;;  %v4902_v27 = vpop.f32.mrf.mxu1  ;;  %v4901_v14 = vadd.f32 %v4900_v51, %v4548_v28  ;;  %v4550_v5 = vadd.f32 %v4549_v16, %v21530_v0  ;;  %v21532_v51 = vld [vmem:[#allocation48_spill] sm:$0xff]  ;;  %v21533_v28 = vld [vmem:[#allocation139_spill] sm:$0xff]  ;;  %v5190_v0 = vmax.f32 %v4899_v18, 0.0 }
 0x48c   : > { %v4553_v34 = vpop.f32.mrf.mxu0  ;;  %7888 = vmatmul.mubr.bf16.gmra.mxu0 %v21531_v6  ;;  %v21535_v6 = vld [vmem:[#allocation49_spill] sm:$0xff] }
 0x48d   : > { %v4906_v9 = vpop.f32.mrf.mxu1  ;;  %8241 = vmatmul.mubr.bf16.gmra.mxu1 %v18250_v4  ;;  %v5193_v29 = vmax.f32 %v4901_v14, 0.0  ;;  %v4903_v36 = vadd.f32 %v4902_v27, %v4550_v5  ;;  %v4554_v15 = vadd.f32 %v4553_v34, %v21532_v51  ;;  %7897 = vmatprep.mubr.bf16.mxu0 %v21533_v28  ;;  %v21536_v5 = vld [vmem:[#allocation208_spill] sm:$0xff] }
 0x48e   : > { %8250 = vmatprep.mubr.bf16.mxu1 %v18296_v30  ;;  %v4555_v31 = vpop.f32.mrf.mxu0 }
 0x48f   : > { %v4908_v16 = vpop.f32.mrf.mxu1  ;;  %v18454_v55 = vpack.c.bf16 %v5193_v29, %v5189_v32  ;;  %v5194_v59 = vmax.f32 %v4903_v36, 0.0  ;;  %v4556_v56 = vadd.f32 %v4555_v31, %v21535_v6  ;;  %v4907_v27 = vadd.f32 %v4906_v9, %v4554_v15  ;;  %v21539_v29 = vld [vmem:[#allocation138_spill] sm:$0xff]  ;;  %v21540_v9 = vld [vmem:[#allocation51_spill] sm:$0xff]  ;;  %v21541_v31 = vld [vmem:[#allocation9_spill] sm:$0xff] }
 0x490   : > { %v4557_v46 = vpop.f32.mrf.mxu0 }
 0x491   : > { %21534 = vst [vmem:[#allocation91_spill] sm:$0xff] %v18454_v55  ;;  %v4910_v14 = vpop.f32.mrf.mxu1  ;;  %v4558_v34 = vadd.f32 %v4557_v46, %v21536_v5  ;;  %v18458_v51 = vpack.c.bf16 %v5194_v59, %v5190_v0  ;;  %v4909_v4 = vadd.f32 %v4908_v16, %v4556_v56  ;;  %v5197_v23 = vmax.f32 %v4907_v27, 0.0  ;;  %v21543_v46 = vld [vmem:[#allocation211_spill] sm:$0xff]  ;;  %v21544_v27 = vld [vmem:[#allocation213_spill] sm:$0xff] }
 0x492   : > { %v4559_v28 = vpop.f32.mrf.mxu0 }
 0x493   : > { %21537 = vst [vmem:[#allocation279_spill] sm:$0xff] %v18458_v51  ;;  %v4912_v30 = vpop.f32.mrf.mxu1  ;;  %v4911_v53 = vadd.f32 %v4910_v14, %v4558_v34  ;;  %v4560_v25 = vadd.f32 %v4559_v28, %v21538_v33  ;;  %v5198_v16 = vmax.f32 %v4909_v4, 0.0  ;;  %v14636_v4 = vld [vmem:[%s20381_s3 + $0x168] ss:$16 sps:$4 sm:$0xff]  }
 0x494   : > { %v4563_v18 = vpop.f32.mrf.mxu0  ;;  %7898 = vmatmul.mubr.bf16.gmra.mxu0 %v21539_v29 }
 0x495   : > { %v4916_v32 = vpop.f32.mrf.mxu1  ;;  %8251 = vmatmul.mubr.bf16.gmra.mxu1 %v18286_v48  ;;  %v5201_v6 = vmax.f32 %v4911_v53, 0.0  ;;  %v4913_v36 = vadd.f32 %v4912_v30, %v4560_v25  ;;  %v4564_v15 = vadd.f32 %v4563_v18, %v21540_v9  ;;  %7907 = vmatprep.mubr.bf16.mxu0 %v21541_v31  ;;  %v14638_v25 = vld [vmem:[%s20381_s3 + $0x16c] ss:$16 sps:$4 sm:$0xff]  }
 0x496   : > { %8260 = vmatprep.mubr.bf16.mxu1 %v18332_v12  ;;  %v4565_v59 = vpop.f32.mrf.mxu0  ;;  %8515 = vmatprep.subr.bf16.mxu0 %v14638_v25 }
 0x497   : > { %v4918_v56 = vpop.f32.mrf.mxu1  ;;  %v18466_v0 = vpack.c.bf16 %v5201_v6, %v5197_v23  ;;  %v5202_v28 = vmax.f32 %v4913_v36, 0.0  ;;  %v4566_v14 = vadd.f32 %v4565_v59, %v21543_v46  ;;  %v4917_v33 = vadd.f32 %v4916_v32, %v4564_v15  ;;  %v21546_v36 = vld [vmem:[#allocation214_spill] sm:$0xff]  ;;  %v14639_v32 = vld [vmem:[%s20381_s3 + $0x368] ss:$16 sps:$4 sm:$0xff]   ;;  %v14641_v15 = vld [vmem:[%s20381_s3 + $0x36c] ss:$16 sps:$4 sm:$0xff]   ;;  %8516 = vmatpush2.bf16.msra.mxu0 %v14636_v4 }
 0x498   : > { %v4567_v5 = vpop.f32.mrf.mxu0  ;;  %v21547_v46 = vld [vmem:[#allocation8_spill] sm:$0xff]  ;;  %8868 = vmatprep.subr.bf16.mxu1 %v14641_v15  ;;  %v21554_v4 = vld [vmem:[#allocation54_spill] sm:$0xff] }
 0x499   : > { %21542 = vst [vmem:[#allocation281_spill] sm:$0xff] %v18466_v0  ;;  %v4920_v34 = vpop.f32.mrf.mxu1  ;;  %v4568_v53 = vadd.f32 %v4567_v5, %v21544_v27  ;;  %v18470_v30 = vpack.c.bf16 %v5202_v28, %v5198_v16  ;;  %v4919_v23 = vadd.f32 %v4918_v56, %v4566_v14  ;;  %v5205_v5 = vmax.f32 %v4917_v33, 0.0  ;;  %8869 = vmatpush2.bf16.msra.mxu1 %v14639_v32 }
 0x49a   : > { %v4569_v18 = vpop.f32.mrf.mxu0 }
 0x49b   : > { %21545 = vst [vmem:[#allocation282_spill] sm:$0xff] %v18470_v30  ;;  %v4922_v9 = vpop.f32.mrf.mxu1  ;;  %v4921_v6 = vadd.f32 %v4920_v34, %v4568_v53  ;;  %v4570_v59 = vadd.f32 %v4569_v18, %v21546_v36  ;;  %v21548_v34 = vld [vmem:[#allocation52_spill] sm:$0xff]  ;;  %v21549_v53 = vld [vmem:[#allocation10_spill] sm:$0xff]  ;;  %v5206_v36 = vmax.f32 %v4919_v23, 0.0 }
 0x49c   : > { %v4573_v16 = vpop.f32.mrf.mxu0  ;;  %7908 = vmatmul.mubr.bf16.gmra.mxu0 %v21547_v46  ;;  %v21551_v46 = vld [vmem:[#allocation53_spill] sm:$0xff] }
 0x49d   : > { %v4926_v28 = vpop.f32.mrf.mxu1  ;;  %8261 = vmatmul.mubr.bf16.gmra.mxu1 %v18322_v40  ;;  %v5209_v56 = vmax.f32 %v4921_v6, 0.0  ;;  %v4923_v14 = vadd.f32 %v4922_v9, %v4570_v59  ;;  %v4574_v27 = vadd.f32 %v4573_v16, %v21548_v34  ;;  %7917 = vmatprep.mubr.bf16.mxu0 %v21549_v53  ;;  %v21552_v59 = vld [vmem:[#allocation215_spill] sm:$0xff] }
 0x49e   : > { %8270 = vmatprep.mubr.bf16.mxu1 %v18368_v63  ;;  %v4575_v25 = vpop.f32.mrf.mxu0 }
 0x49f   : > { %v4928_v18 = vpop.f32.mrf.mxu1  ;;  %v18490_v12 = vpack.c.bf16 %v5209_v56, %v5205_v5  ;;  %v5210_v31 = vmax.f32 %v4923_v14, 0.0  ;;  %v4576_v48 = vadd.f32 %v4575_v25, %v21551_v46  ;;  %v4927_v9 = vadd.f32 %v4926_v28, %v4574_v27  ;;  %v21555_v56 = vld [vmem:[#allocation140_spill] sm:$0xff]  ;;  %v21556_v28 = vld [vmem:[#allocation55_spill] sm:$0xff] }
 0x4a0   : > { %v4577_v33 = vpop.f32.mrf.mxu0  ;;  %v21557_v25 = vld [vmem:[#allocation143_spill] sm:$0xff] }
 0x4a1   : > { %21550 = vst [vmem:[#allocation92_spill] sm:$0xff] %v18490_v12  ;;  %v4930_v6 = vpop.f32.mrf.mxu1  ;;  %v4578_v16 = vadd.f32 %v4577_v33, %v21552_v59  ;;  %v18494_v34 = vpack.c.bf16 %v5210_v31, %v5206_v36  ;;  %v4929_v40 = vadd.f32 %v4928_v18, %v4576_v48  ;;  %v5213_v32 = vmax.f32 %v4927_v9, 0.0  ;;  %v21559_v33 = vld [vmem:[#allocation218_spill] sm:$0xff]  ;;  %v21560_v9 = vld [vmem:[#allocation220_spill] sm:$0xff] }
 0x4a2   : > { %v4579_v53 = vpop.f32.mrf.mxu0 }
 0x4a3   : > { %21553 = vst [vmem:[#allocation93_spill] sm:$0xff] %v18494_v34  ;;  %v4932_v63 = vpop.f32.mrf.mxu1  ;;  %v4931_v29 = vadd.f32 %v4930_v6, %v4578_v16  ;;  %v4580_v15 = vadd.f32 %v4579_v53, %v21554_v4  ;;  %v5214_v18 = vmax.f32 %v4929_v40, 0.0  ;;  %v14642_v40 = vld [vmem:[%s20381_s3 + $0x148] ss:$16 sps:$4 sm:$0xff]  }
 0x4a4   : > { %v4583_v23 = vpop.f32.mrf.mxu0  ;;  %7918 = vmatmul.mubr.bf16.gmra.mxu0 %v21555_v56 }
 0x4a5   : > { %v4936_v5 = vpop.f32.mrf.mxu1  ;;  %8271 = vmatmul.mubr.bf16.gmra.mxu1 %v18358_v61  ;;  %v5217_v46 = vmax.f32 %v4931_v29, 0.0  ;;  %v4933_v14 = vadd.f32 %v4932_v63, %v4580_v15  ;;  %v4584_v27 = vadd.f32 %v4583_v23, %v21556_v28  ;;  %7927 = vmatprep.mubr.bf16.mxu0 %v21557_v25  ;;  %v14644_v15 = vld [vmem:[%s20381_s3 + $0x14c] ss:$16 sps:$4 sm:$0xff]  }
 0x4a6   : > { %8280 = vmatprep.mubr.bf16.mxu1 %v18398_v21  ;;  %v4585_v31 = vpop.f32.mrf.mxu0  ;;  %8517 = vmatprep.subr.bf16.mxu0 %v14644_v15 }
 0x4a7   : > { %v4938_v48 = vpop.f32.mrf.mxu1  ;;  %v18502_v36 = vpack.c.bf16 %v5217_v46, %v5213_v32  ;;  %v5218_v53 = vmax.f32 %v4933_v14, 0.0  ;;  %v4586_v6 = vadd.f32 %v4585_v31, %v21559_v33  ;;  %v4937_v4 = vadd.f32 %v4936_v5, %v4584_v27  ;;  %v21562_v14 = vld [vmem:[#allocation221_spill] sm:$0xff]  ;;  %v21563_v33 = vld [vmem:[#allocation11_spill] sm:$0xff]  ;;  %8518 = vmatpush2.bf16.msra.mxu0 %v14642_v40  ;;  %v21570_v40 = vld [vmem:[#allocation58_spill] sm:$0xff] }
 0x4a8   : > { %v4587_v59 = vpop.f32.mrf.mxu0  ;;  %v14645_v5 = vld [vmem:[%s20381_s3 + $0x348] ss:$16 sps:$4 sm:$0xff]   ;;  %v14647_v27 = vld [vmem:[%s20381_s3 + $0x34c] ss:$16 sps:$4 sm:$0xff]  }
 0x4a9   : > { %21558 = vst [vmem:[#allocation283_spill] sm:$0xff] %v18502_v36  ;;  %v4940_v16 = vpop.f32.mrf.mxu1  ;;  %v4588_v29 = vadd.f32 %v4587_v59, %v21560_v9  ;;  %v18506_v63 = vpack.c.bf16 %v5218_v53, %v5214_v18  ;;  %v4939_v32 = vadd.f32 %v4938_v48, %v4586_v6  ;;  %v5221_v59 = vmax.f32 %v4937_v4, 0.0  ;;  %8870 = vmatprep.subr.bf16.mxu1 %v14647_v27 }
 0x4aa   : > { %v4589_v23 = vpop.f32.mrf.mxu0  ;;  %8871 = vmatpush2.bf16.msra.mxu1 %v14645_v5 }
 0x4ab   : > { %21561 = vst [vmem:[#allocation94_spill] sm:$0xff] %v18506_v63  ;;  %v4942_v28 = vpop.f32.mrf.mxu1  ;;  %v4941_v46 = vadd.f32 %v4940_v16, %v4588_v29  ;;  %v4590_v31 = vadd.f32 %v4589_v23, %v21562_v14  ;;  %v21564_v16 = vld [vmem:[#allocation56_spill] sm:$0xff]  ;;  %v21565_v29 = vld [vmem:[#allocation146_spill] sm:$0xff]  ;;  %v5222_v14 = vmax.f32 %v4939_v32, 0.0 }
 0x4ac   : > { %v4593_v18 = vpop.f32.mrf.mxu0  ;;  %7928 = vmatmul.mubr.bf16.gmra.mxu0 %v21563_v33  ;;  %v21567_v33 = vld [vmem:[#allocation57_spill] sm:$0xff] }
 0x4ad   : > { %v4946_v53 = vpop.f32.mrf.mxu1  ;;  %8281 = vmatmul.mubr.bf16.gmra.mxu1 %v18394_v50  ;;  %v5225_v48 = vmax.f32 %v4941_v46, 0.0  ;;  %v4943_v6 = vadd.f32 %v4942_v28, %v4590_v31  ;;  %v4594_v9 = vadd.f32 %v4593_v18, %v21564_v16  ;;  %7937 = vmatprep.mubr.bf16.mxu0 %v21565_v29  ;;  %v21568_v31 = vld [vmem:[#allocation222_spill] sm:$0xff] }
 0x4ae   : > { %8290 = vmatprep.mubr.bf16.mxu1 %v18422_v2  ;;  %v4595_v15 = vpop.f32.mrf.mxu0 }
 0x4af   : > { %v4948_v23 = vpop.f32.mrf.mxu1  ;;  %v18526_v21 = vpack.c.bf16 %v5225_v48, %v5221_v59  ;;  %v5226_v25 = vmax.f32 %v4943_v6, 0.0  ;;  %v4596_v61 = vadd.f32 %v4595_v15, %v21567_v33  ;;  %v4947_v28 = vadd.f32 %v4946_v53, %v4594_v9  ;;  %v21571_v48 = vld [vmem:[#allocation145_spill] sm:$0xff]  ;;  %v21572_v53 = vld [vmem:[#allocation59_spill] sm:$0xff] }
 0x4b0   : > { %v4597_v4 = vpop.f32.mrf.mxu0  ;;  %v21573_v15 = vld [vmem:[#allocation13_spill] sm:$0xff] }
 0x4b1   : > { %21566 = vst [vmem:[#allocation95_spill] sm:$0xff] %v18526_v21  ;;  %v4950_v46 = vpop.f32.mrf.mxu1  ;;  %v4598_v18 = vadd.f32 %v4597_v4, %v21568_v31  ;;  %v18530_v16 = vpack.c.bf16 %v5226_v25, %v5222_v14  ;;  %v4949_v50 = vadd.f32 %v4948_v23, %v4596_v61  ;;  %v5229_v5 = vmax.f32 %v4947_v28, 0.0  ;;  %v21575_v4 = vld [vmem:[#allocation225_spill] sm:$0xff]  ;;  %v21576_v28 = vld [vmem:[#allocation227_spill] sm:$0xff] }
 0x4b2   : > { %v4599_v29 = vpop.f32.mrf.mxu0 }
 0x4b3   : > { %21569 = vst [vmem:[#allocation286_spill] sm:$0xff] %v18530_v16  ;;  %v4952_v2 = vpop.f32.mrf.mxu1  ;;  %v4951_v56 = vadd.f32 %v4950_v46, %v4598_v18  ;;  %v4600_v27 = vadd.f32 %v4599_v29, %v21570_v40  ;;  %v5230_v23 = vmax.f32 %v4949_v50, 0.0  ;;  %v14648_v50 = vld [vmem:[%s20381_s3 + $0x128] ss:$16 sps:$4 sm:$0xff]  }
 0x4b4   : > { %v4603_v32 = vpop.f32.mrf.mxu0  ;;  %7938 = vmatmul.mubr.bf16.gmra.mxu0 %v21571_v48 }
 0x4b5   : > { %v4956_v59 = vpop.f32.mrf.mxu1  ;;  %8291 = vmatmul.mubr.bf16.gmra.mxu1 %v18418_v52  ;;  %v5233_v33 = vmax.f32 %v4951_v56, 0.0  ;;  %v4953_v6 = vadd.f32 %v4952_v2, %v4600_v27  ;;  %v4604_v9 = vadd.f32 %v4603_v32, %v21572_v53  ;;  %7947 = vmatprep.mubr.bf16.mxu0 %v21573_v15  ;;  %v14650_v27 = vld [vmem:[%s20381_s3 + $0x12c] ss:$16 sps:$4 sm:$0xff]  }
 0x4b6   : > { %8300 = vmatprep.mubr.bf16.mxu1 %v18434_v44  ;;  %v4605_v25 = vpop.f32.mrf.mxu0  ;;  %8519 = vmatprep.subr.bf16.mxu0 %v14650_v27 }
 0x4b7   : > { %v4958_v61 = vpop.f32.mrf.mxu1  ;;  %v18538_v14 = vpack.c.bf16 %v5233_v33, %v5229_v5  ;;  %v5234_v29 = vmax.f32 %v4953_v6, 0.0  ;;  %v4606_v46 = vadd.f32 %v4605_v25, %v21575_v4  ;;  %v4957_v40 = vadd.f32 %v4956_v59, %v4604_v9  ;;  %v21578_v6 = vld [vmem:[#allocation228_spill] sm:$0xff]  ;;  %v14651_v59 = vld [vmem:[%s20381_s3 + $0x328] ss:$16 sps:$4 sm:$0xff]   ;;  %v14653_v9 = vld [vmem:[%s20381_s3 + $0x32c] ss:$16 sps:$4 sm:$0xff]   ;;  %8520 = vmatpush2.bf16.msra.mxu0 %v14648_v50 }
 0x4b8   : > { %v4607_v31 = vpop.f32.mrf.mxu0  ;;  %v21579_v4 = vld [vmem:[#allocation12_spill] sm:$0xff]  ;;  %8872 = vmatprep.subr.bf16.mxu1 %v14653_v9  ;;  %v21586_v50 = vld [vmem:[#allocation62_spill] sm:$0xff] }
 0x4b9   : > { %21574 = vst [vmem:[#allocation288_spill] sm:$0xff] %v18538_v14  ;;  %v4960_v18 = vpop.f32.mrf.mxu1  ;;  %v4608_v56 = vadd.f32 %v4607_v31, %v21576_v28  ;;  %v18542_v2 = vpack.c.bf16 %v5234_v29, %v5230_v23  ;;  %v4959_v5 = vadd.f32 %v4958_v61, %v4606_v46  ;;  %v5237_v31 = vmax.f32 %v4957_v40, 0.0  ;;  %8873 = vmatpush2.bf16.msra.mxu1 %v14651_v59 }
 0x4ba   : > { %v4609_v32 = vpop.f32.mrf.mxu0 }
 0x4bb   : > { %21577 = vst [vmem:[#allocation289_spill] sm:$0xff] %v18542_v2  ;;  %v4962_v53 = vpop.f32.mrf.mxu1  ;;  %v4961_v33 = vadd.f32 %v4960_v18, %v4608_v56  ;;  %v4610_v25 = vadd.f32 %v4609_v32, %v21578_v6  ;;  %v21580_v18 = vld [vmem:[#allocation60_spill] sm:$0xff]  ;;  %v21581_v56 = vld [vmem:[#allocation14_spill] sm:$0xff]  ;;  %v5238_v6 = vmax.f32 %v4959_v5, 0.0 }
 0x4bc   : > { %v4613_v23 = vpop.f32.mrf.mxu0  ;;  %7948 = vmatmul.mubr.bf16.gmra.mxu0 %v21579_v4  ;;  %v21583_v4 = vld [vmem:[#allocation61_spill] sm:$0xff] }
 0x4bd   : > { %v4966_v29 = vpop.f32.mrf.mxu1  ;;  %8301 = vmatmul.mubr.bf16.gmra.mxu1 %v18430_v8  ;;  %v5241_v61 = vmax.f32 %v4961_v33, 0.0  ;;  %v4963_v46 = vadd.f32 %v4962_v53, %v4610_v25  ;;  %v4614_v28 = vadd.f32 %v4613_v23, %v21580_v18  ;;  %7957 = vmatprep.mubr.bf16.mxu0 %v21581_v56  ;;  %v21584_v25 = vld [vmem:[#allocation229_spill] sm:$0xff] }
 0x4be   : > { %8310 = vmatprep.mubr.bf16.mxu1 %v18458_v51  ;;  %v4615_v27 = vpop.f32.mrf.mxu0 }
 0x4bf   : > { %v4968_v32 = vpop.f32.mrf.mxu1  ;;  %v18562_v44 = vpack.c.bf16 %v5241_v61, %v5237_v31  ;;  %v5242_v15 = vmax.f32 %v4963_v46, 0.0  ;;  %v4616_v52 = vadd.f32 %v4615_v27, %v21583_v4  ;;  %v4967_v53 = vadd.f32 %v4966_v29, %v4614_v28  ;;  %v21587_v61 = vld [vmem:[#allocation147_spill] sm:$0xff]  ;;  %v21589_v27 = vld [vmem:[#allocation150_spill] sm:$0xff] }
 0x4c0   : > { %v4617_v40 = vpop.f32.mrf.mxu0  ;;  %v21588_v29 = vld [vmem:[#allocation63_spill] sm:$0xff] }
 0x4c1   : > { %21582 = vst [vmem:[#allocation97_spill] sm:$0xff] %v18562_v44  ;;  %v4970_v33 = vpop.f32.mrf.mxu1  ;;  %v4618_v23 = vadd.f32 %v4617_v40, %v21584_v25  ;;  %v18566_v18 = vpack.c.bf16 %v5242_v15, %v5238_v6  ;;  %v4969_v8 = vadd.f32 %v4968_v32, %v4616_v52  ;;  %v5245_v59 = vmax.f32 %v4967_v53, 0.0  ;;  %v21591_v40 = vld [vmem:[#allocation232_spill] sm:$0xff]  ;;  %v21592_v53 = vld [vmem:[#allocation234_spill] sm:$0xff] }
 0x4c2   : > { %v4619_v56 = vpop.f32.mrf.mxu0 }
 0x4c3   : > { %21585 = vst [vmem:[#allocation98_spill] sm:$0xff] %v18566_v18  ;;  %v4972_v51 = vpop.f32.mrf.mxu1  ;;  %v4971_v48 = vadd.f32 %v4970_v33, %v4618_v23  ;;  %v4620_v9 = vadd.f32 %v4619_v56, %v21586_v50  ;;  %v5246_v32 = vmax.f32 %v4969_v8, 0.0  ;;  %v14654_v8 = vld [vmem:[%s20381_s3 + $0x108] ss:$16 sps:$4 sm:$0xff]  }
 0x4c4   : > { %v4623_v5 = vpop.f32.mrf.mxu0  ;;  %7958 = vmatmul.mubr.bf16.gmra.mxu0 %v21587_v61 }
 0x4c5   : > { %v4976_v31 = vpop.f32.mrf.mxu1  ;;  %8311 = vmatmul.mubr.bf16.gmra.mxu1 %v18454_v55  ;;  %v5249_v4 = vmax.f32 %v4971_v48, 0.0  ;;  %v4973_v46 = vadd.f32 %v4972_v51, %v4620_v9  ;;  %v4624_v28 = vadd.f32 %v4623_v5, %v21588_v29  ;;  %7967 = vmatprep.mubr.bf16.mxu0 %v21589_v27  ;;  %v14656_v9 = vld [vmem:[%s20381_s3 + $0x10c] ss:$16 sps:$4 sm:$0xff]  }
 0x4c6   : > { %8320 = vmatprep.mubr.bf16.mxu1 %v18470_v30  ;;  %v4625_v15 = vpop.f32.mrf.mxu0  ;;  %8521 = vmatprep.subr.bf16.mxu0 %v14656_v9 }
 0x4c7   : > { %v4978_v52 = vpop.f32.mrf.mxu1  ;;  %v18574_v6 = vpack.c.bf16 %v5249_v4, %v5245_v59  ;;  %v5250_v56 = vmax.f32 %v4973_v46, 0.0  ;;  %v4626_v33 = vadd.f32 %v4625_v15, %v21591_v40  ;;  %v4977_v50 = vadd.f32 %v4976_v31, %v4624_v28  ;;  %v21594_v46 = vld [vmem:[#allocation235_spill] sm:$0xff]  ;;  %8522 = vmatpush2.bf16.msra.mxu0 %v14654_v8 }
 0x4c8   : > { %v4627_v25 = vpop.f32.mrf.mxu0  ;;  %v14657_v31 = vld [vmem:[%s20381_s3 + $0x308] ss:$16 sps:$4 sm:$0xff]   ;;  %v14659_v28 = vld [vmem:[%s20381_s3 + $0x30c] ss:$16 sps:$4 sm:$0xff]   ;;  %11380 = vmatprep.subr.bf16.mxu0 %v20841_v49 }
 0x4c9   : > { %21590 = vst [vmem:[#allocation290_spill] sm:$0xff] %v18574_v6  ;;  %v4980_v23 = vpop.f32.mrf.mxu1  ;;  %v4628_v48 = vadd.f32 %v4627_v25, %v21592_v53  ;;  %v18578_v51 = vpack.c.bf16 %v5250_v56, %v5246_v32  ;;  %v4979_v59 = vadd.f32 %v4978_v52, %v4626_v33  ;;  %v21595_v40 = vld [vmem:[#allocation15_spill] sm:$0xff]  ;;  %v5253_v25 = vmax.f32 %v4977_v50, 0.0  ;;  %8874 = vmatprep.subr.bf16.mxu1 %v14659_v28 }
 0x4ca   : > { %v4629_v5 = vpop.f32.mrf.mxu0  ;;  %8875 = vmatpush2.bf16.msra.mxu1 %v14657_v31  ;;  %v21603_v31 = vld [vmem:[#allocation152_spill] sm:$0xff] }
 0x4cb   : > { %21593 = vst [vmem:[#allocation99_spill] sm:$0xff] %v18578_v51  ;;  %v4982_v29 = vpop.f32.mrf.mxu1  ;;  %v4981_v4 = vadd.f32 %v4980_v23, %v4628_v48  ;;  %v4630_v15 = vadd.f32 %v4629_v5, %v21594_v46  ;;  %v21596_v23 = vld [vmem:[#allocation64_spill] sm:$0xff]  ;;  %v21597_v48 = vld [vmem:[#allocation153_spill] sm:$0xff]  ;;  %v5254_v46 = vmax.f32 %v4979_v59, 0.0  ;;  %11669 = vmatprep.subr.bf16.mxu1 %v20841_v49 }
 0x4cc   : > { %v4633_v32 = vpop.f32.mrf.mxu0  ;;  %7968 = vmatmul.mubr.bf16.gmra.mxu0 %v21595_v40  ;;  %v21599_v40 = vld [vmem:[#allocation65_spill] sm:$0xff] }
 0x4cd   : > { %v4986_v56 = vpop.f32.mrf.mxu1  ;;  %8321 = vmatmul.mubr.bf16.gmra.mxu1 %v18466_v0  ;;  %v5257_v52 = vmax.f32 %v4981_v4, 0.0  ;;  %v4983_v33 = vadd.f32 %v4982_v29, %v4630_v15  ;;  %v4634_v53 = vadd.f32 %v4633_v32, %v21596_v23  ;;  %7977 = vmatprep.mubr.bf16.mxu0 %v21597_v48  ;;  %v21600_v15 = vld [vmem:[#allocation66_spill] sm:$0xff] }
 0x4ce   : > { %8330 = vmatprep.mubr.bf16.mxu1 %v18494_v34  ;;  %v4635_v9 = vpop.f32.mrf.mxu0 }
 0x4cf   : > { %v4988_v5 = vpop.f32.mrf.mxu1  ;;  %v18598_v30 = vpack.c.bf16 %v5257_v52, %v5253_v25  ;;  %v5258_v27 = vmax.f32 %v4983_v33, 0.0  ;;  %v4636_v55 = vadd.f32 %v4635_v9, %v21599_v40  ;;  %v4987_v4 = vadd.f32 %v4986_v56, %v4634_v53  ;;  %v21602_v52 = vld [vmem:[#allocation67_spill] sm:$0xff]  ;;  %v21604_v56 = vld [vmem:[#allocation238_spill] sm:$0xff] }
 0x4d0   : > { %v4637_v50 = vpop.f32.mrf.mxu0 }
 0x4d1   : > { %21598 = vst [vmem:[#allocation100_spill] sm:$0xff] %v18598_v30  ;;  %v4990_v29 = vpop.f32.mrf.mxu1  ;;  %v4638_v32 = vadd.f32 %v4637_v50, %v21600_v15  ;;  %v18604_v23 = vpack.c.bf16 %v5258_v27, %v5254_v46  ;;  %v4989_v59 = vadd.f32 %v4988_v5, %v4636_v55  ;;  %v5261_v9 = vmax.f32 %v4987_v4, 0.0  ;;  %v21605_v50 = vld [vmem:[#allocation17_spill] sm:$0xff]  ;;  %v21607_v15 = vld [vmem:[#allocation240_spill] sm:$0xff] }
 0x4d2   : > { %v4639_v8 = vpop.f32.mrf.mxu0  ;;  %v21608_v4 = vld [vmem:[#allocation241_spill] sm:$0xff] }
 0x4d3   : > { %21601 = vst [vmem:[#allocation293_spill] sm:$0xff] %v18604_v23  ;;  %v4992_v28 = vpop.f32.mrf.mxu1  ;;  %v4991_v25 = vadd.f32 %v4990_v29, %v4638_v32  ;;  %v4640_v33 = vadd.f32 %v4639_v8, %v21602_v52  ;;  %v5262_v5 = vmax.f32 %v4989_v59, 0.0 }
 0x4d4   : > { %v4643_v34 = vpop.f32.mrf.mxu0  ;;  %7978 = vmatmul.mubr.bf16.gmra.mxu0 %v21603_v31 }
 0x4d5   : > { %v4996_v40 = vpop.f32.mrf.mxu1  ;;  %8331 = vmatmul.mubr.bf16.gmra.mxu1 %v18490_v12  ;;  %v5265_v48 = vmax.f32 %v4991_v25, 0.0  ;;  %v4993_v0 = vadd.f32 %v4992_v28, %v4640_v33  ;;  %v4644_v53 = vadd.f32 %v4643_v34, %v21604_v56  ;;  %7987 = vmatprep.mubr.bf16.mxu0 %v21605_v50 }
 0x4d6   : > { %8340 = vmatprep.mubr.bf16.mxu1 %v18506_v63  ;;  %v4645_v27 = vpop.f32.mrf.mxu0  ;;  %v21610_v63 = vld [vmem:[#allocation68_spill] sm:$0xff] }
 0x4d7   : > { %v4998_v55 = vpop.f32.mrf.mxu1  ;;  %v18612_v46 = vpack.c.bf16 %v5265_v48, %v5261_v9  ;;  %v5266_v29 = vmax.f32 %v4993_v0, 0.0  ;;  %v4646_v32 = vadd.f32 %v4645_v27, %v21607_v15  ;;  %v4997_v12 = vadd.f32 %v4996_v40, %v4644_v53  ;;  %v21611_v48 = vld [vmem:[#allocation16_spill] sm:$0xff]  ;;  %v21612_v53 = vld [vmem:[#allocation18_spill] sm:$0xff] }
 0x4d8   : > { %v4647_v8 = vpop.f32.mrf.mxu0 }
 0x4d9   : > { %21606 = vst [vmem:[#allocation295_spill] sm:$0xff] %v18612_v46  ;;  %v5000_v52 = vpop.f32.mrf.mxu1  ;;  %v4648_v25 = vadd.f32 %v4647_v8, %v21608_v4  ;;  %v18616_v28 = vpack.c.bf16 %v5266_v29, %v5262_v5  ;;  %v4999_v56 = vadd.f32 %v4998_v55, %v4646_v32  ;;  %v5269_v0 = vmax.f32 %v4997_v12, 0.0  ;;  %v21614_v32 = vld [vmem:[#allocation69_spill] sm:$0xff]  ;;  %v21615_v12 = vld [vmem:[#allocation242_spill] sm:$0xff] }
 0x4da   : > { %v4649_v34 = vpop.f32.mrf.mxu0 }
 0x4db   : > { %21609 = vst [vmem:[#allocation296_spill] sm:$0xff] %v18616_v28  ;;  %v5002_v33 = vpop.f32.mrf.mxu1  ;;  %v5001_v50 = vadd.f32 %v5000_v52, %v4648_v25  ;;  %v4650_v31 = vadd.f32 %v4649_v34, %v21610_v63  ;;  %v5270_v29 = vmax.f32 %v4999_v56, 0.0 }
 0x4dc   : > { %v4653_v61 = vpop.f32.mrf.mxu0  ;;  %7988 = vmatmul.mubr.bf16.gmra.mxu0 %v21611_v48 }
 0x4dd   : > { %v5006_v59 = vpop.f32.mrf.mxu1  ;;  %8341 = vmatmul.mubr.bf16.gmra.mxu1 %v18502_v36  ;;  %v5273_v9 = vmax.f32 %v5001_v50, 0.0  ;;  %v5003_v27 = vadd.f32 %v5002_v33, %v4650_v31  ;;  %v4654_v40 = vadd.f32 %v4653_v61, %v18014_v26  ;;  %7997 = vmatprep.mubr.bf16.mxu0 %v21612_v53 }
 0x4de   : > { %8350 = vmatprep.mubr.bf16.mxu1 %v18530_v16  ;;  %v4655_v5 = vpop.f32.mrf.mxu0  ;;  %v21617_v16 = vld [vmem:[#allocation70_spill] sm:$0xff] }
 0x4df   : > { %v5008_v55 = vpop.f32.mrf.mxu1  ;;  %v18624_v15 = vpack.c.bf16 %v5273_v9, %v5269_v0  ;;  %v5274_v63 = vmax.f32 %v5003_v27, 0.0  ;;  %v4656_v8 = vadd.f32 %v4655_v5, %v21614_v32  ;;  %v5007_v25 = vadd.f32 %v5006_v59, %v4654_v40  ;;  %v21618_v0 = vld [vmem:[#allocation154_spill] sm:$0xff]  ;;  %v21619_v59 = vld [vmem:[#allocation71_spill] sm:$0xff]  ;;  %v21620_v32 = vld [vmem:[#allocation157_spill] sm:$0xff] }
 0x4e0   : > { %v4657_v52 = vpop.f32.mrf.mxu0 }
 0x4e1   : > { %21613 = vst [vmem:[#allocation101_spill] sm:$0xff] %v18624_v15  ;;  %v5010_v4 = vpop.f32.mrf.mxu1  ;;  %v4658_v50 = vadd.f32 %v4657_v52, %v21615_v12  ;;  %v18628_v31 = vpack.c.bf16 %v5274_v63, %v5270_v29  ;;  %v5009_v34 = vadd.f32 %v5008_v55, %v4656_v8  ;;  %v5277_v9 = vmax.f32 %v5007_v25, 0.0  ;;  %v21622_v52 = vld [vmem:[#allocation245_spill] sm:$0xff]  ;;  %v21623_v25 = vld [vmem:[#allocation247_spill] sm:$0xff] }
 0x4e2   : > { %v4659_v26 = vpop.f32.mrf.mxu0 }
 0x4e3   : > { %21616 = vst [vmem:[#allocation102_spill] sm:$0xff] %v18628_v31  ;;  %v5012_v61 = vpop.f32.mrf.mxu1  ;;  %v5011_v33 = vadd.f32 %v5010_v4, %v4658_v50  ;;  %v4660_v53 = vadd.f32 %v4659_v26, %v21617_v16  ;;  %v5278_v63 = vmax.f32 %v5009_v34, 0.0 }
 0x4e4   : > { %v4663_v36 = vpop.f32.mrf.mxu0  ;;  %7998 = vmatmul.mubr.bf16.gmra.mxu0 %v21618_v0 }
 0x4e5   : > { %v5016_v56 = vpop.f32.mrf.mxu1  ;;  %8351 = vmatmul.mubr.bf16.gmra.mxu1 %v18526_v21  ;;  %v5281_v27 = vmax.f32 %v5011_v33, 0.0  ;;  %v5013_v5 = vadd.f32 %v5012_v61, %v4660_v53  ;;  %v4664_v40 = vadd.f32 %v4663_v36, %v21619_v59  ;;  %8007 = vmatprep.mubr.bf16.mxu0 %v21620_v32 }
 0x4e6   : > { %8360 = vmatprep.mubr.bf16.mxu1 %v18542_v2  ;;  %v4665_v29 = vpop.f32.mrf.mxu0  ;;  %v21625_v2 = vld [vmem:[#allocation248_spill] sm:$0xff] }
 0x4e7   : > { %v5018_v55 = vpop.f32.mrf.mxu1  ;;  %v18636_v8 = vpack.c.bf16 %v5281_v27, %v5277_v9  ;;  %v5282_v16 = vmax.f32 %v5013_v5, 0.0  ;;  %v4666_v4 = vadd.f32 %v4665_v29, %v21622_v52  ;;  %v5017_v26 = vadd.f32 %v5016_v56, %v4664_v40  ;;  %v21626_v9 = vld [vmem:[#allocation19_spill] sm:$0xff]  ;;  %v21627_v56 = vld [vmem:[#allocation72_spill] sm:$0xff] }
 0x4e8   : > { %v4667_v12 = vpop.f32.mrf.mxu0  ;;  %v21628_v52 = vld [vmem:[#allocation160_spill] sm:$0xff] }
 0x4e9   : > { %21621 = vst [vmem:[#allocation103_spill] sm:$0xff] %v18636_v8  ;;  %v5020_v50 = vpop.f32.mrf.mxu1  ;;  %v4668_v33 = vadd.f32 %v4667_v12, %v21623_v25  ;;  %v18640_v53 = vpack.c.bf16 %v5282_v16, %v5278_v63  ;;  %v5019_v59 = vadd.f32 %v5018_v55, %v4666_v4  ;;  %v5285_v27 = vmax.f32 %v5017_v26, 0.0  ;;  %v21629_v12 = vld [vmem:[#allocation73_spill] sm:$0xff]  ;;  %v21630_v26 = vld [vmem:[#allocation74_spill] sm:$0xff] }
 0x4ea   : > { %v4669_v36 = vpop.f32.mrf.mxu0 }
 0x4eb   : > { %21624 = vst [vmem:[#allocation104_spill] sm:$0xff] %v18640_v53  ;;  %v5022_v61 = vpop.f32.mrf.mxu1  ;;  %v5021_v32 = vadd.f32 %v5020_v50, %v4668_v33  ;;  %v4670_v21 = vadd.f32 %v4669_v36, %v21625_v2  ;;  %v5286_v16 = vmax.f32 %v5019_v59, 0.0 }
 0x4ec   : > { %v4673_v0 = vpop.f32.mrf.mxu0  ;;  %8008 = vmatmul.mubr.bf16.gmra.mxu0 %v21626_v9 }
 0x4ed   : > { %v5026_v34 = vpop.f32.mrf.mxu1  ;;  %8361 = vmatmul.mubr.bf16.gmra.mxu1 %v18538_v14  ;;  %v5289_v5 = vmax.f32 %v5021_v32, 0.0  ;;  %v5023_v29 = vadd.f32 %v5022_v61, %v4670_v21  ;;  %v4674_v40 = vadd.f32 %v4673_v0, %v21627_v56  ;;  %8017 = vmatprep.mubr.bf16.mxu0 %v21628_v52 }
 0x4ee   : > { %8370 = vmatprep.mubr.bf16.mxu1 %v18566_v18  ;;  %v4675_v63 = vpop.f32.mrf.mxu0  ;;  %v21632_v18 = vld [vmem:[#allocation75_spill] sm:$0xff] }
 0x4ef   : > { %v5028_v55 = vpop.f32.mrf.mxu1  ;;  %v18648_v4 = vpack.c.bf16 %v5289_v5, %v5285_v27  ;;  %v5290_v2 = vmax.f32 %v5023_v29, 0.0  ;;  %v4676_v50 = vadd.f32 %v4675_v63, %v21629_v12  ;;  %v5027_v36 = vadd.f32 %v5026_v34, %v4674_v40  ;;  %v21633_v27 = vld [vmem:[#allocation159_spill] sm:$0xff]  ;;  %v21635_v12 = vld [vmem:[#allocation21_spill] sm:$0xff] }
 0x4f0   : > { %v4677_v25 = vpop.f32.mrf.mxu0  ;;  %v21634_v34 = vld [vmem:[#allocation251_spill] sm:$0xff] }
 0x4f1   : > { %v5030_v33 = vpop.f32.mrf.mxu1  ;;  %v4678_v32 = vadd.f32 %v4677_v25, %v21630_v26  ;;  %v18652_v21 = vpack.c.bf16 %v5290_v2, %v5286_v16  ;;  %v5029_v56 = vadd.f32 %v5028_v55, %v4676_v50  ;;  %v5293_v5 = vmax.f32 %v5027_v36, 0.0  ;;  %v21636_v25 = vld [vmem:[#allocation253_spill] sm:$0xff]  ;;  %v21637_v36 = vld [vmem:[#allocation254_spill] sm:$0xff] }
 0x4f2   : > { %v4679_v0 = vpop.f32.mrf.mxu0 }
 0x4f3   : > { %21631 = vst [vmem:[#allocation105_spill] sm:$0xff] %v18652_v21  ;;  %v5032_v61 = vpop.f32.mrf.mxu1  ;;  %v5031_v52 = vadd.f32 %v5030_v33, %v4678_v32  ;;  %v4680_v14 = vadd.f32 %v4679_v0, %v21632_v18  ;;  %v5294_v2 = vmax.f32 %v5029_v56, 0.0 }
 0x4f4   : > { %v4683_v9 = vpop.f32.mrf.mxu0  ;;  %8018 = vmatmul.mubr.bf16.gmra.mxu0 %v21633_v27 }
 0x4f5   : > { %v5036_v59 = vpop.f32.mrf.mxu1  ;;  %8371 = vmatmul.mubr.bf16.gmra.mxu1 %v18562_v44  ;;  %v5297_v29 = vmax.f32 %v5031_v52, 0.0  ;;  %v5033_v63 = vadd.f32 %v5032_v61, %v4680_v14  ;;  %v4684_v40 = vadd.f32 %v4683_v9, %v21634_v34  ;;  %8027 = vmatprep.mubr.bf16.mxu0 %v21635_v12 }
 0x4f6   : > { %8380 = vmatprep.mubr.bf16.mxu1 %v18578_v51  ;;  %v4685_v16 = vpop.f32.mrf.mxu0  ;;  %v21639_v51 = vld [vmem:[#allocation76_spill] sm:$0xff] }
 0x4f7   : > { %v5038_v55 = vpop.f32.mrf.mxu1  ;;  %v18660_v50 = vpack.c.bf16 %v5297_v29, %v5293_v5  ;;  %v5298_v18 = vmax.f32 %v5033_v63, 0.0  ;;  %v4686_v33 = vadd.f32 %v4685_v16, %v21636_v25  ;;  %v5037_v0 = vadd.f32 %v5036_v59, %v4684_v40  ;;  %v21640_v5 = vld [vmem:[#allocation20_spill] sm:$0xff]  ;;  %v21641_v59 = vld [vmem:[#allocation77_spill] sm:$0xff]  ;;  %v21642_v25 = vld [vmem:[#allocation23_spill] sm:$0xff] }
 0x4f8   : > { %v4687_v26 = vpop.f32.mrf.mxu0 }
 0x4f9   : > { %v5040_v32 = vpop.f32.mrf.mxu1  ;;  %v4688_v52 = vadd.f32 %v4687_v26, %v21637_v36  ;;  %v18664_v14 = vpack.c.bf16 %v5298_v18, %v5294_v2  ;;  %v5039_v34 = vadd.f32 %v5038_v55, %v4686_v33  ;;  %v5301_v29 = vmax.f32 %v5037_v0, 0.0  ;;  %v21643_v26 = vld [vmem:[#allocation255_spill] sm:$0xff]  ;;  %v21644_v0 = vld [vmem:[#allocation78_spill] sm:$0xff] }
 0x4fa   : > { %v4689_v9 = vpop.f32.mrf.mxu0 }
 0x4fb   : > { %21638 = vst [vmem:[#allocation106_spill] sm:$0xff] %v18664_v14  ;;  %v5042_v61 = vpop.f32.mrf.mxu1  ;;  %v5041_v12 = vadd.f32 %v5040_v32, %v4688_v52  ;;  %v4690_v44 = vadd.f32 %v4689_v9, %v21639_v51  ;;  %v5302_v18 = vmax.f32 %v5039_v34, 0.0 }
 0x4fc   : > { %v4693_v27 = vpop.f32.mrf.mxu0  ;;  %8028 = vmatmul.mubr.bf16.gmra.mxu0 %v21640_v5 }
 0x4fd   : > { %v5046_v56 = vpop.f32.mrf.mxu1  ;;  %8381 = vmatmul.mubr.bf16.gmra.mxu1 %v18574_v6  ;;  %v5305_v63 = vmax.f32 %v5041_v12, 0.0  ;;  %v5043_v16 = vadd.f32 %v5042_v61, %v4690_v44  ;;  %v4694_v40 = vadd.f32 %v4693_v27, %v21641_v59  ;;  %8037 = vmatprep.mubr.bf16.mxu0 %v21642_v25 }
 0x4fe   : > { %8390 = vmatprep.mubr.bf16.mxu1 %v18604_v23  ;;  %v4695_v2 = vpop.f32.mrf.mxu0  ;;  %v21646_v23 = vld [vmem:[#allocation79_spill] sm:$0xff] }
 0x4ff   : > { %v5048_v55 = vpop.f32.mrf.mxu1  ;;  %v18672_v33 = vpack.c.bf16 %v5305_v63, %v5301_v29  ;;  %v5306_v51 = vmax.f32 %v5043_v16, 0.0  ;;  %v4696_v32 = vadd.f32 %v4695_v2, %v21643_v26  ;;  %v5047_v9 = vadd.f32 %v5046_v56, %v4694_v40  ;;  %v21647_v29 = vld [vmem:[#allocation22_spill] sm:$0xff]  ;;  %v21649_v26 = vld [vmem:[#allocation165_spill] sm:$0xff] }
 0x500   : > { %v4697_v36 = vpop.f32.mrf.mxu0  ;;  %v21648_v56 = vld [vmem:[#allocation258_spill] sm:$0xff] }
 0x501   : > { %v5050_v52 = vpop.f32.mrf.mxu1  ;;  %v4698_v12 = vadd.f32 %v4697_v36, %v21644_v0  ;;  %v18676_v44 = vpack.c.bf16 %v5306_v51, %v5302_v18  ;;  %v5049_v59 = vadd.f32 %v5048_v55, %v4696_v32  ;;  %v5309_v63 = vmax.f32 %v5047_v9, 0.0  ;;  %v21650_v36 = vld [vmem:[#allocation260_spill] sm:$0xff]  ;;  %v21651_v9 = vld [vmem:[#allocation261_spill] sm:$0xff] }
 0x502   : > { %v4699_v27 = vpop.f32.mrf.mxu0 }
 0x503   : > { %21645 = vst [vmem:[#allocation107_spill] sm:$0xff] %v18676_v44  ;;  %v5052_v61 = vpop.f32.mrf.mxu1  ;;  %v5051_v25 = vadd.f32 %v5050_v52, %v4698_v12  ;;  %v4700_v6 = vadd.f32 %v4699_v27, %v21646_v23  ;;  %v5310_v51 = vmax.f32 %v5049_v59, 0.0 }
 0x504   : > { %v4703_v5 = vpop.f32.mrf.mxu0  ;;  %8038 = vmatmul.mubr.bf16.gmra.mxu0 %v21647_v29 }
 0x505   : > { %v5056_v34 = vpop.f32.mrf.mxu1  ;;  %8391 = vmatmul.mubr.bf16.gmra.mxu1 %v18598_v30  ;;  %v5313_v16 = vmax.f32 %v5051_v25, 0.0  ;;  %v5053_v2 = vadd.f32 %v5052_v61, %v4700_v6  ;;  %v4704_v40 = vadd.f32 %v4703_v5, %v21648_v56  ;;  %8047 = vmatprep.mubr.bf16.mxu0 %v21649_v26 }
 0x506   : > { %8400 = vmatprep.mubr.bf16.mxu1 %v18616_v28  ;;  %v4705_v18 = vpop.f32.mrf.mxu0  ;;  %v21653_v28 = vld [vmem:[#allocation80_spill] sm:$0xff] }
 0x507   : > { %v5058_v55 = vpop.f32.mrf.mxu1  ;;  %v18684_v32 = vpack.c.bf16 %v5313_v16, %v5309_v63  ;;  %v5314_v23 = vmax.f32 %v5053_v2, 0.0  ;;  %v4706_v52 = vadd.f32 %v4705_v18, %v21650_v36  ;;  %v5057_v27 = vadd.f32 %v5056_v34, %v4704_v40  ;;  %v21654_v63 = vld [vmem:[#allocation164_spill] sm:$0xff]  ;;  %v21655_v40 = vld [vmem:[#allocation25_spill] sm:$0xff] }
 0x508   : > { %v4707_v0 = vpop.f32.mrf.mxu0 }
 0x509   : > { %v5060_v12 = vpop.f32.mrf.mxu1  ;;  %v4708_v25 = vadd.f32 %v4707_v0, %v21651_v9  ;;  %v18688_v6 = vpack.c.bf16 %v5314_v23, %v5310_v51  ;;  %v5059_v56 = vadd.f32 %v5058_v55, %v4706_v52  ;;  %v5317_v16 = vmax.f32 %v5057_v27, 0.0  ;;  %v21656_v0 = vld [vmem:[#allocation81_spill] sm:$0xff]  ;;  %v21658_v9 = vld [vmem:[#allocation96_spill] sm:$0xff] }
 0x50a   : > { %v4709_v5 = vpop.f32.mrf.mxu0 }
 0x50b   : > { %21652 = vst [vmem:[#allocation108_spill] sm:$0xff] %v18688_v6  ;;  %v5062_v61 = vpop.f32.mrf.mxu1  ;;  %v5061_v26 = vadd.f32 %v5060_v12, %v4708_v25  ;;  %v4710_v30 = vadd.f32 %v4709_v5, %v21653_v28  ;;  %v6483_v28 = vld [vmem:[%s20382_s4] sm:$0xf]  ;;  %v5318_v23 = vmax.f32 %v5059_v56, 0.0  ;;  %v21659_v25 = vsub.s32 0, %v21658_v9 }
 0x50c   : > { %v4713_v29 = vpop.f32.mrf.mxu0  ;;  %8048 = vmatmul.mubr.bf16.gmra.mxu0 %v21654_v63 }
 0x50d   : > { %v5066_v59 = vpop.f32.mrf.mxu1  ;;  %8401 = vmatmul.mubr.bf16.gmra.mxu1 %v18612_v46  ;;  %v5321_v2 = vmax.f32 %v5061_v26, 0.0  ;;  %v5063_v18 = vadd.f32 %v5062_v61, %v4710_v30  ;;  %v4714_v34 = vadd.f32 %v4713_v29, %v18116_v17  ;;  %8057 = vmatprep.mubr.bf16.mxu0 %v21655_v40  ;;  %v21657_v17 = vld [vmem:[#allocation262_spill] sm:$0xff]  ;;  %v18705_v5 = vrot.slane %v6483_v28, %v21659_v25 }
 0x50e   : > { %8410 = vmatprep.mubr.bf16.mxu1 %v18628_v31  ;;  %v4715_v51 = vpop.f32.mrf.mxu0 }
 0x50f   : > { %v5068_v55 = vpop.f32.mrf.mxu1  ;;  %v18699_v36 = vpack.c.bf16 %v5321_v2, %v5317_v16  ;;  %v5322_v52 = vmax.f32 %v5063_v18, 0.0  ;;  %v4716_v12 = vadd.f32 %v4715_v51, %v21656_v0  ;;  %v5067_v27 = vadd.f32 %v5066_v59, %v4714_v34  ;;  %v21661_v16 = vld [vmem:[#allocation82_spill] sm:$0xff]  ;;  %v21663_v59 = vld [vmem:[#allocation24_spill] sm:$0xff] }
 0x510   : > { %v4717_v26 = vpop.f32.mrf.mxu0  ;;  %v21662_v18 = vsub.s32 1, %v21658_v9 }
 0x511   : > { %v5070_v30 = vpop.f32.mrf.mxu1  ;;  %v4718_v29 = vadd.f32 %v4717_v26, %v21657_v17  ;;  %v18707_v61 = vpack.c.bf16 %v5322_v52, %v5318_v23  ;;  %v5069_v31 = vadd.f32 %v5068_v55, %v4716_v12  ;;  %v5325_v26 = vmax.f32 %v5067_v27, 0.0  ;;  %v21664_v52 = vld [vmem:[#allocation26_spill] sm:$0xff] }
 0x512   : > { %v4719_v40 = vpop.f32.mrf.mxu0  ;;  %v18712_v51 = vrot.slane %v6483_v28, %v21662_v18 }
 0x513   : > { %21660 = vst [vmem:[#allocation109_spill] sm:$0xff] %v18707_v61  ;;  %v5072_v46 = vpop.f32.mrf.mxu1  ;;  %v5071_v56 = vadd.f32 %v5070_v30, %v4718_v29  ;;  %v4720_v2 = vadd.f32 %v4719_v40, %v21661_v16  ;;  %v5326_v40 = vmax.f32 %v5069_v31, 0.0 }
 0x514   : > { %v7819_v0 = vpop.f32.mrf.mxu0  ;;  %8058 = vmatmul.mubr.bf16.gmra.mxu0 %v21663_v59 }
 0x515   : > { %v8172_v34 = vpop.f32.mrf.mxu1  ;;  %8411 = vmatmul.mubr.bf16.gmra.mxu1 %v18624_v15  ;;  %v5329_v17 = vmax.f32 %v5071_v56, 0.0  ;;  %v5073_v23 = vadd.f32 %v5072_v46, %v4720_v2  ;;  %v7820_v55 = vadd.f32 %v7819_v0, %v18705_v5  ;;  %8067 = vmatprep.mubr.bf16.mxu0 %v21664_v52  ;;  %v21666_v15 = vld [vmem:[#allocation166_spill] sm:$0xff] }
 0x516   : > { %8420 = vmatprep.mubr.bf16.mxu1 %v18640_v53  ;;  %v7821_v12 = vpop.f32.mrf.mxu0 }
 0x517   : > { %v8174_v30 = vpop.f32.mrf.mxu1  ;;  %v18719_v28 = vpack.c.bf16 %v5329_v17, %v5325_v26  ;;  %v5330_v29 = vmax.f32 %v5073_v23, 0.0  ;;  %v8173_v25 = vadd.f32 %v8172_v34, %v7820_v55  ;;  %v7822_v16 = vadd.f32 %v7821_v12, %v18712_v51  ;;  %v21667_v12 = vld [vmem:[#allocation169_spill] sm:$0xff] }
 0x518   : > { %v7823_v18 = vpop.f32.mrf.mxu0 }
 0x519   : > { %v8176_v9 = vpop.f32.mrf.mxu1  ;;  %v8175_v27 = vadd.f32 %v8174_v30, %v7822_v16  ;;  %v7824_v46 = vadd.f32 %v7823_v18, %v18705_v5  ;;  %v18723_v56 = vpack.c.bf16 %v5330_v29, %v5326_v40  ;;  %v9197_v34 = vmax.f32 %v8173_v25, 0.0 }
 0x51a   : > { %v7825_v2 = vpop.f32.mrf.mxu0 }
 0x51b   : > { %21665 = vst [vmem:[#allocation110_spill] sm:$0xff] %v18723_v56  ;;  %v8178_v0 = vpop.f32.mrf.mxu1  ;;  %v8177_v52 = vadd.f32 %v8176_v9, %v7824_v46  ;;  %v7826_v31 = vadd.f32 %v7825_v2, %v18712_v51  ;;  %v9198_v40 = vmax.f32 %v8175_v27, 0.0 }
 0x51c   : > { %v7829_v53 = vpop.f32.mrf.mxu0  ;;  %8068 = vmatmul.mubr.bf16.gmra.mxu0 %v21666_v15  ;;  %v21670_v15 = vld [vmem:[#allocation27_spill] sm:$0xff] }
 0x51d   : > { %v8182_v26 = vpop.f32.mrf.mxu1  ;;  %8421 = vmatmul.mubr.bf16.gmra.mxu1 %v18636_v8  ;;  %v9201_v17 = vmax.f32 %v8177_v52, 0.0  ;;  %v8179_v23 = vadd.f32 %v8178_v0, %v7826_v31  ;;  %v7830_v55 = vadd.f32 %v7829_v53, %v18705_v5  ;;  %8077 = vmatprep.mubr.bf16.mxu0 %v21667_v12 }
 0x51e   : > { %8430 = vmatprep.mubr.bf16.mxu1 %v18652_v21  ;;  %v7831_v30 = vpop.f32.mrf.mxu0 }
 0x51f   : > { %v8184_v9 = vpop.f32.mrf.mxu1  ;;  %v18731_v29 = vpack.c.bf16 %v9201_v17, %v9197_v34  ;;  %v9202_v16 = vmax.f32 %v8179_v23, 0.0  ;;  %v8183_v18 = vadd.f32 %v8182_v26, %v7830_v55  ;;  %v7832_v46 = vadd.f32 %v7831_v30, %v18712_v51  ;;  %v21671_v30 = vld [vmem:[#allocation172_spill] sm:$0xff] }
 0x520   : > { %v7833_v2 = vpop.f32.mrf.mxu0 }
 0x521   : > { %21668 = vst [vmem:[#allocation111_spill] sm:$0xff] %v18731_v29  ;;  %v8186_v8 = vpop.f32.mrf.mxu1  ;;  %v8185_v25 = vadd.f32 %v8184_v9, %v7832_v46  ;;  %v7834_v52 = vadd.f32 %v7833_v2, %v18705_v5  ;;  %v18735_v0 = vpack.c.bf16 %v9202_v16, %v9198_v40  ;;  %v9205_v26 = vmax.f32 %v8183_v18, 0.0 }
 0x522   : > { %v7835_v53 = vpop.f32.mrf.mxu0 }
 0x523   : > { %21669 = vst [vmem:[#allocation112_spill] sm:$0xff] %v18735_v0  ;;  %v8188_v31 = vpop.f32.mrf.mxu1  ;;  %v8187_v12 = vadd.f32 %v8186_v8, %v7834_v52  ;;  %v7836_v27 = vadd.f32 %v7835_v53, %v18712_v51  ;;  %v9206_v40 = vmax.f32 %v8185_v25, 0.0 }
 0x524   : > { %v7839_v21 = vpop.f32.mrf.mxu0  ;;  %8078 = vmatmul.mubr.bf16.gmra.mxu0 %v21670_v15 }
 0x525   : > { %v8192_v34 = vpop.f32.mrf.mxu1  ;;  %8431 = vmatmul.mubr.bf16.gmra.mxu1 %v18648_v4  ;;  %v9209_v17 = vmax.f32 %v8187_v12, 0.0  ;;  %v8189_v23 = vadd.f32 %v8188_v31, %v7836_v27  ;;  %v7840_v55 = vadd.f32 %v7839_v21, %v18705_v5  ;;  %8087 = vmatprep.mubr.bf16.mxu0 %v21671_v30  ;;  %v21674_v30 = vld [vmem:[#allocation171_spill] sm:$0xff] }
 0x526   : > { %8440 = vmatprep.mubr.bf16.mxu1 %v18664_v14  ;;  %v7841_v9 = vpop.f32.mrf.mxu0 }
 0x527   : > { %v8194_v8 = vpop.f32.mrf.mxu1  ;;  %v18743_v16 = vpack.c.bf16 %v9209_v17, %v9205_v26  ;;  %v9210_v46 = vmax.f32 %v8189_v23, 0.0  ;;  %v8193_v2 = vadd.f32 %v8192_v34, %v7840_v55  ;;  %v7842_v52 = vadd.f32 %v7841_v9, %v18712_v51  ;;  %v21675_v9 = vld [vmem:[#allocation29_spill] sm:$0xff] }
 0x528   : > { %v7843_v53 = vpop.f32.mrf.mxu0 }
 0x529   : > { %21672 = vst [vmem:[#allocation113_spill] sm:$0xff] %v18743_v16  ;;  %v8196_v29 = vpop.f32.mrf.mxu1  ;;  %v8195_v18 = vadd.f32 %v8194_v8, %v7842_v52  ;;  %v7844_v12 = vadd.f32 %v7843_v53, %v18705_v5  ;;  %v18747_v31 = vpack.c.bf16 %v9210_v46, %v9206_v40  ;;  %v9213_v34 = vmax.f32 %v8193_v2, 0.0 }
 0x52a   : > { %v7845_v21 = vpop.f32.mrf.mxu0 }
 0x52b   : > { %21673 = vst [vmem:[#allocation114_spill] sm:$0xff] %v18747_v31  ;;  %v8198_v27 = vpop.f32.mrf.mxu1  ;;  %v8197_v0 = vadd.f32 %v8196_v29, %v7844_v12  ;;  %v7846_v25 = vadd.f32 %v7845_v21, %v18712_v51  ;;  %v9214_v40 = vmax.f32 %v8195_v18, 0.0 }
 0x52c   : > { %v7849_v14 = vpop.f32.mrf.mxu0  ;;  %8088 = vmatmul.mubr.bf16.gmra.mxu0 %v21674_v30 }
 0x52d   : > { %v8202_v26 = vpop.f32.mrf.mxu1  ;;  %8441 = vmatmul.mubr.bf16.gmra.mxu1 %v18660_v50  ;;  %v9217_v17 = vmax.f32 %v8197_v0, 0.0  ;;  %v8199_v23 = vadd.f32 %v8198_v27, %v7846_v25  ;;  %v7850_v55 = vadd.f32 %v7849_v14, %v18705_v5  ;;  %8097 = vmatprep.mubr.bf16.mxu0 %v21675_v9  ;;  %v21678_v9 = vld [vmem:[#allocation28_spill] sm:$0xff] }
 0x52e   : > { %8450 = vmatprep.mubr.bf16.mxu1 %v18676_v44  ;;  %v7851_v8 = vpop.f32.mrf.mxu0 }
 0x52f   : > { %v8204_v29 = vpop.f32.mrf.mxu1  ;;  %v18755_v46 = vpack.c.bf16 %v9217_v17, %v9213_v34  ;;  %v9218_v52 = vmax.f32 %v8199_v23, 0.0  ;;  %v8203_v53 = vadd.f32 %v8202_v26, %v7850_v55  ;;  %v7852_v12 = vadd.f32 %v7851_v8, %v18712_v51  ;;  %v21679_v8 = vld [vmem:[#allocation30_spill] sm:$0xff] }
 0x530   : > { %v7853_v21 = vpop.f32.mrf.mxu0 }
 0x531   : > { %21676 = vst [vmem:[#allocation115_spill] sm:$0xff] %v18755_v46  ;;  %v8206_v16 = vpop.f32.mrf.mxu1  ;;  %v8205_v2 = vadd.f32 %v8204_v29, %v7852_v12  ;;  %v7854_v0 = vadd.f32 %v7853_v21, %v18705_v5  ;;  %v18759_v27 = vpack.c.bf16 %v9218_v52, %v9214_v40  ;;  %v9221_v26 = vmax.f32 %v8203_v53, 0.0 }
 0x532   : > { %v7855_v14 = vpop.f32.mrf.mxu0 }
 0x533   : > { %21677 = vst [vmem:[#allocation116_spill] sm:$0xff] %v18759_v27  ;;  %v8208_v25 = vpop.f32.mrf.mxu1  ;;  %v8207_v31 = vadd.f32 %v8206_v16, %v7854_v0  ;;  %v7856_v18 = vadd.f32 %v7855_v14, %v18712_v51  ;;  %v9222_v40 = vmax.f32 %v8205_v2, 0.0 }
 0x534   : > { %v7859_v44 = vpop.f32.mrf.mxu0  ;;  %8098 = vmatmul.mubr.bf16.gmra.mxu0 %v21678_v9 }
 0x535   : > { %v8212_v34 = vpop.f32.mrf.mxu1  ;;  %8451 = vmatmul.mubr.bf16.gmra.mxu1 %v18672_v33  ;;  %v9225_v17 = vmax.f32 %v8207_v31, 0.0  ;;  %v8209_v23 = vadd.f32 %v8208_v25, %v7856_v18  ;;  %v7860_v55 = vadd.f32 %v7859_v44, %v18705_v5  ;;  %8107 = vmatprep.mubr.bf16.mxu0 %v21679_v8  ;;  %v21682_v8 = vld [vmem:[#allocation173_spill] sm:$0xff] }
 0x536   : > { %8460 = vmatprep.mubr.bf16.mxu1 %v18688_v6  ;;  %v7861_v29 = vpop.f32.mrf.mxu0 }
 0x537   : > { %v8214_v16 = vpop.f32.mrf.mxu1  ;;  %v18767_v52 = vpack.c.bf16 %v9225_v17, %v9221_v26  ;;  %v9226_v12 = vmax.f32 %v8209_v23, 0.0  ;;  %v8213_v21 = vadd.f32 %v8212_v34, %v7860_v55  ;;  %v7862_v0 = vadd.f32 %v7861_v29, %v18712_v51  ;;  %v21683_v29 = vld [vmem:[#allocation176_spill] sm:$0xff] }
 0x538   : > { %v7863_v14 = vpop.f32.mrf.mxu0 }
 0x539   : > { %21680 = vst [vmem:[#allocation117_spill] sm:$0xff] %v18767_v52  ;;  %v8216_v46 = vpop.f32.mrf.mxu1  ;;  %v8215_v53 = vadd.f32 %v8214_v16, %v7862_v0  ;;  %v7864_v31 = vadd.f32 %v7863_v14, %v18705_v5  ;;  %v18771_v25 = vpack.c.bf16 %v9226_v12, %v9222_v40  ;;  %v9229_v34 = vmax.f32 %v8213_v21, 0.0 }
 0x53a   : > { %v7865_v44 = vpop.f32.mrf.mxu0 }
 0x53b   : > { %21681 = vst [vmem:[#allocation118_spill] sm:$0xff] %v18771_v25  ;;  %v8218_v18 = vpop.f32.mrf.mxu1  ;;  %v8217_v27 = vadd.f32 %v8216_v46, %v7864_v31  ;;  %v7866_v2 = vadd.f32 %v7865_v44, %v18712_v51  ;;  %v9230_v40 = vmax.f32 %v8215_v53, 0.0 }
 0x53c   : > { %v7869_v6 = vpop.f32.mrf.mxu0  ;;  %8108 = vmatmul.mubr.bf16.gmra.mxu0 %v21682_v8 }
 0x53d   : > { %v8222_v26 = vpop.f32.mrf.mxu1  ;;  %8461 = vmatmul.mubr.bf16.gmra.mxu1 %v18684_v32  ;;  %v9233_v17 = vmax.f32 %v8217_v27, 0.0  ;;  %v8219_v23 = vadd.f32 %v8218_v18, %v7866_v2  ;;  %v7870_v55 = vadd.f32 %v7869_v6, %v18705_v5  ;;  %8117 = vmatprep.mubr.bf16.mxu0 %v21683_v29  ;;  %v21686_v29 = vld [vmem:[#allocation31_spill] sm:$0xff] }
 0x53e   : > { %8470 = vmatprep.mubr.bf16.mxu1 %v18707_v61  ;;  %v7871_v16 = vpop.f32.mrf.mxu0 }
 0x53f   : > { %v8224_v46 = vpop.f32.mrf.mxu1  ;;  %v18779_v12 = vpack.c.bf16 %v9233_v17, %v9229_v34  ;;  %v9234_v0 = vmax.f32 %v8219_v23, 0.0  ;;  %v8223_v14 = vadd.f32 %v8222_v26, %v7870_v55  ;;  %v7872_v31 = vadd.f32 %v7871_v16, %v18712_v51  ;;  %v21687_v16 = vld [vmem:[#allocation179_spill] sm:$0xff] }
 0x540   : > { %v7873_v44 = vpop.f32.mrf.mxu0 }
 0x541   : > { %21684 = vst [vmem:[#allocation119_spill] sm:$0xff] %v18779_v12  ;;  %v8226_v52 = vpop.f32.mrf.mxu1  ;;  %v8225_v21 = vadd.f32 %v8224_v46, %v7872_v31  ;;  %v7874_v27 = vadd.f32 %v7873_v44, %v18705_v5  ;;  %v18783_v18 = vpack.c.bf16 %v9234_v0, %v9230_v40  ;;  %v9237_v26 = vmax.f32 %v8223_v14, 0.0 }
 0x542   : > { %v7875_v6 = vpop.f32.mrf.mxu0 }
 0x543   : > { %21685 = vst [vmem:[#allocation120_spill] sm:$0xff] %v18783_v18  ;;  %v8228_v2 = vpop.f32.mrf.mxu1  ;;  %v8227_v25 = vadd.f32 %v8226_v52, %v7874_v27  ;;  %v7876_v53 = vadd.f32 %v7875_v6, %v18712_v51  ;;  %v9238_v40 = vmax.f32 %v8225_v21, 0.0 }
 0x544   : > { %v7879_v61 = vpop.f32.mrf.mxu0  ;;  %8118 = vmatmul.mubr.bf16.gmra.mxu0 %v21686_v29 }
 0x545   : > { %v8232_v34 = vpop.f32.mrf.mxu1  ;;  %8471 = vmatmul.mubr.bf16.gmra.mxu1 %v18699_v36  ;;  %v9241_v17 = vmax.f32 %v8227_v25, 0.0  ;;  %v8229_v23 = vadd.f32 %v8228_v2, %v7876_v53  ;;  %v7880_v55 = vadd.f32 %v7879_v61, %v18705_v5  ;;  %8127 = vmatprep.mubr.bf16.mxu0 %v21687_v16  ;;  %v21689_v16 = vld [vmem:[#allocation178_spill] sm:$0xff] }
 0x546   : > { %8480 = vmatprep.mubr.bf16.mxu1 %v18723_v56  ;;  %v7881_v46 = vpop.f32.mrf.mxu0 }
 0x547   : > { %v8234_v52 = vpop.f32.mrf.mxu1  ;;  %v18791_v0 = vpack.c.bf16 %v9241_v17, %v9237_v26  ;;  %v9242_v31 = vmax.f32 %v8229_v23, 0.0  ;;  %v8233_v44 = vadd.f32 %v8232_v34, %v7880_v55  ;;  %v7882_v27 = vadd.f32 %v7881_v46, %v18712_v51 }
 0x548   : > { %v7883_v6 = vpop.f32.mrf.mxu0 }
 0x549   : > { %21688 = vst [vmem:[#allocation121_spill] sm:$0xff] %v18791_v0  ;;  %v8236_v12 = vpop.f32.mrf.mxu1  ;;  %v8235_v14 = vadd.f32 %v8234_v52, %v7882_v27  ;;  %v7884_v25 = vadd.f32 %v7883_v6, %v18705_v5  ;;  %v18795_v2 = vpack.c.bf16 %v9242_v31, %v9238_v40  ;;  %v9245_v34 = vmax.f32 %v8233_v44, 0.0  ;;  %v21835_v0 = vld [vmem:[#allocation110_spill] sm:$0xff] }
 0x54a   : > { %v7885_v61 = vpop.f32.mrf.mxu0 }
 0x54b   : > { %v8238_v53 = vpop.f32.mrf.mxu1  ;;  %v8237_v18 = vadd.f32 %v8236_v12, %v7884_v25  ;;  %v7886_v21 = vadd.f32 %v7885_v61, %v18712_v51  ;;  %v9246_v40 = vmax.f32 %v8235_v14, 0.0  ;;  %v14661_v14 = vld [vmem:[%s20383_s5 + $0xb8] sm:$0xff]  }
 0x54c   : > { %v7889_v56 = vpop.f32.mrf.mxu0  ;;  %8128 = vmatmul.mubr.bf16.gmra.mxu0 %v21689_v16 }
 0x54d   : > { %v8242_v26 = vpop.f32.mrf.mxu1  ;;  %8481 = vmatmul.mubr.bf16.gmra.mxu1 %v18719_v28  ;;  %v9249_v17 = vmax.f32 %v8237_v18, 0.0  ;;  %v8239_v23 = vadd.f32 %v8238_v53, %v7886_v21  ;;  %v7890_v55 = vadd.f32 %v7889_v56, %v18705_v5  ;;  %8523 = vmatprep.mubr.bf16.mxu0 %v21470_v24 }
 0x54e   : > { %8876 = vmatprep.mubr.bf16.mxu1 %v18146_v19  ;;  %v7891_v46 = vpop.f32.mrf.mxu0  ;;  %v14660_v19 = vld [vmem:[%s20383_s5 + $0x38] sm:$0xff]  }
 0x54f   : > { %v8244_v12 = vpop.f32.mrf.mxu1  ;;  %v18803_v52 = vpack.c.bf16 %v9249_v17, %v9245_v34  ;;  %v9250_v31 = vmax.f32 %v8239_v23, 0.0  ;;  %v8243_v27 = vadd.f32 %v8242_v26, %v7890_v55  ;;  %v7892_v6 = vadd.f32 %v7891_v46, %v18712_v51 }
 0x550   : > { %v7893_v25 = vpop.f32.mrf.mxu0 }
 0x551   : > { %21690 = vst [vmem:[#allocation122_spill] sm:$0xff] %v18803_v52  ;;  %v8246_v61 = vpop.f32.mrf.mxu1  ;;  %v8245_v44 = vadd.f32 %v8244_v12, %v7892_v6  ;;  %v7894_v18 = vadd.f32 %v7893_v25, %v18705_v5  ;;  %v18807_v53 = vpack.c.bf16 %v9250_v31, %v9246_v40  ;;  %v9253_v23 = vmax.f32 %v8243_v27, 0.0 }
 0x552   : > { %v7895_v56 = vpop.f32.mrf.mxu0 }
 0x553   : > { %21691 = vst [vmem:[#allocation123_spill] sm:$0xff] %v18807_v53  ;;  %v8248_v24 = vpop.f32.mrf.mxu1  ;;  %v8247_v21 = vadd.f32 %v8246_v61, %v7894_v18  ;;  %v7896_v26 = vadd.f32 %v7895_v56, %v18712_v51  ;;  %v9254_v12 = vmax.f32 %v8245_v44, 0.0  ;;  %v21834_v53 = vld [vmem:[#allocation179_spill] sm:$0xff] }
 0x554   : > { %v7899_v34 = vpop.f32.mrf.mxu0  ;;  %8524 = vmatmul.mubr.bf16.vlgmr.msra.gmra.mxu0 %v21476_v60  ;;  %v14662_v60 = vld [vmem:[%s20383_s5 + $0x30] sm:$0xff]  }
 0x555   : > { %v8252_v17 = vpop.f32.mrf.mxu1  ;;  %8877 = vmatmul.mubr.bf16.vlgmr.msra.gmra.mxu1 %v18142_v42  ;;  %v9257_v55 = vmax.f32 %v8247_v21, 0.0  ;;  %v8249_v40 = vadd.f32 %v8248_v24, %v7896_v26  ;;  %v7900_v46 = vadd.f32 %v7899_v34, %v18705_v5  ;;  %8533 = vmatprep.mubr.bf16.mxu0 %v21477_v62  ;;  %v14663_v42 = vld [vmem:[%s20383_s5 + $0xb0] sm:$0xff]   ;;  %v14664_v21 = vld [vmem:[%s20383_s5 + $0x28] sm:$0xff]  }
 0x556   : > { %8886 = vmatprep.mubr.bf16.mxu1 %v18159_v11  ;;  %11381 = vmatpush1.bf16.msra.mxu0 %v14660_v19  ;;  %v7901_v31 = vpop.f32.mrf.mxu0  ;;  %v14665_v26 = vld [vmem:[%s20383_s5 + $0xa8] sm:$0xff]  }
 0x557   : > { %v8254_v6 = vpop.f32.mrf.mxu1  ;;  %11670 = vmatpush1.bf16.msra.mxu1 %v14661_v14  ;;  %v18827_v27 = vpack.c.bf16 %v9257_v55, %v9253_v23  ;;  %v9258_v25 = vmax.f32 %v8249_v40, 0.0  ;;  %v8253_v61 = vadd.f32 %v8252_v17, %v7900_v46  ;;  %v7902_v62 = vadd.f32 %v7901_v31, %v18712_v51  ;;  %11382 = vmatprep.subr.bf16.mxu0 %v20841_v49 }
 0x558   : > { %11671 = vmatprep.subr.bf16.mxu1 %v20841_v49  ;;  %v7903_v11 = vpop.f32.mrf.mxu0 }
 0x559   : > { %21692 = vst [vmem:[#allocation124_spill] sm:$0xff] %v18827_v27  ;;  %v8256_v44 = vpop.f32.mrf.mxu1  ;;  %v8255_v18 = vadd.f32 %v8254_v6, %v7902_v62  ;;  %v7904_v56 = vadd.f32 %v7903_v11, %v18705_v5  ;;  %v18833_v24 = vpack.c.bf16 %v9258_v25, %v9254_v12  ;;  %v9261_v40 = vmax.f32 %v8253_v61, 0.0 }
 0x55a   : > { %v7905_v19 = vpop.f32.mrf.mxu0  ;;  %11383 = vmatpush1.bf16.msra.mxu0 %v14662_v60 }
 0x55b   : > { %21693 = vst [vmem:[#allocation125_spill] sm:$0xff] %v18833_v24  ;;  %v8258_v14 = vpop.f32.mrf.mxu1  ;;  %11672 = vmatpush1.bf16.msra.mxu1 %v14663_v42  ;;  %v8257_v34 = vadd.f32 %v8256_v44, %v7904_v56  ;;  %v7906_v17 = vadd.f32 %v7905_v19, %v18712_v51  ;;  %11384 = vmatprep.subr.bf16.mxu0 %v20841_v49  ;;  %v9262_v6 = vmax.f32 %v8255_v18, 0.0 }
 0x55c   : > { %11673 = vmatprep.subr.bf16.mxu1 %v20841_v49  ;;  %v7909_v23 = vpop.f32.mrf.mxu0  ;;  %8534 = vmatmul.mubr.bf16.gmra.mxu0 %v21483_v35  ;;  %v14666_v35 = vld [vmem:[%s20383_s5 + $0x20] sm:$0xff]  }
 0x55d   : > { %v8262_v55 = vpop.f32.mrf.mxu1  ;;  %8887 = vmatmul.mubr.bf16.gmra.mxu1 %v18155_v43  ;;  %v9265_v46 = vmax.f32 %v8257_v34, 0.0  ;;  %v8259_v12 = vadd.f32 %v8258_v14, %v7906_v17  ;;  %v7910_v31 = vadd.f32 %v7909_v23, %v18705_v5  ;;  %8543 = vmatprep.mubr.bf16.mxu0 %v21485_v37  ;;  %v14667_v43 = vld [vmem:[%s20383_s5 + $0xa0] sm:$0xff]  }
 0x55e   : > { %8896 = vmatprep.mubr.bf16.mxu1 %v18172_v3  ;;  %v7911_v60 = vpop.f32.mrf.mxu0  ;;  %11385 = vmatpush1.bf16.msra.mxu0 %v14664_v21  ;;  %v14668_v21 = vld [vmem:[%s20383_s5 + $0x18] sm:$0xff]  }
 0x55f   : > { %v8264_v42 = vpop.f32.mrf.mxu1  ;;  %11674 = vmatpush1.bf16.msra.mxu1 %v14665_v26  ;;  %v18855_v25 = vpack.c.bf16 %v9265_v46, %v9261_v40  ;;  %v9266_v61 = vmax.f32 %v8259_v12, 0.0  ;;  %v8263_v62 = vadd.f32 %v8262_v55, %v7910_v31  ;;  %v7912_v37 = vadd.f32 %v7911_v60, %v18712_v51  ;;  %11386 = vmatprep.subr.bf16.mxu0 %v20841_v49  ;;  %v14669_v26 = vld [vmem:[%s20383_s5 + $0x98] sm:$0xff]  }
 0x560   : > { %11675 = vmatprep.subr.bf16.mxu1 %v20841_v49  ;;  %v7913_v3 = vpop.f32.mrf.mxu0 }
 0x561   : > { %21694 = vst [vmem:[#allocation126_spill] sm:$0xff] %v18855_v25  ;;  %v8266_v11 = vpop.f32.mrf.mxu1  ;;  %v8265_v44 = vadd.f32 %v8264_v42, %v7912_v37  ;;  %v7914_v18 = vadd.f32 %v7913_v3, %v18705_v5  ;;  %v18861_v56 = vpack.c.bf16 %v9266_v61, %v9262_v6  ;;  %v9269_v40 = vmax.f32 %v8263_v62, 0.0 }
 0x562   : > { %v7915_v19 = vpop.f32.mrf.mxu0  ;;  %11387 = vmatpush1.bf16.msra.mxu0 %v14666_v35 }
 0x563   : > { %21695 = vst [vmem:[#allocation127_spill] sm:$0xff] %v18861_v56  ;;  %v8268_v14 = vpop.f32.mrf.mxu1  ;;  %11676 = vmatpush1.bf16.msra.mxu1 %v14667_v43  ;;  %v8267_v34 = vadd.f32 %v8266_v11, %v7914_v18  ;;  %v7916_v17 = vadd.f32 %v7915_v19, %v18712_v51  ;;  %11388 = vmatprep.subr.bf16.mxu0 %v20841_v49  ;;  %v9270_v6 = vmax.f32 %v8265_v44, 0.0  ;;  %v14672_v19 = vld [vmem:[%s20383_s5 + $0x8] sm:$0xff]  }
 0x564   : > { %11677 = vmatprep.subr.bf16.mxu1 %v20841_v49  ;;  %v7919_v23 = vpop.f32.mrf.mxu0  ;;  %8544 = vmatmul.mubr.bf16.gmra.mxu0 %v21491_v45  ;;  %v14670_v45 = vld [vmem:[%s20383_s5 + $0x10] sm:$0xff]  }
 0x565   : > { %v8272_v55 = vpop.f32.mrf.mxu1  ;;  %8897 = vmatmul.mubr.bf16.gmra.mxu1 %v18168_v54  ;;  %v9273_v46 = vmax.f32 %v8267_v34, 0.0  ;;  %v8269_v12 = vadd.f32 %v8268_v14, %v7916_v17  ;;  %v7920_v31 = vadd.f32 %v7919_v23, %v18705_v5  ;;  %8553 = vmatprep.mubr.bf16.mxu0 %v21493_v22  ;;  %v14671_v54 = vld [vmem:[%s20383_s5 + $0x90] sm:$0xff]   ;;  %v14673_v14 = vld [vmem:[%s20383_s5 + $0x88] sm:$0xff]  }
 0x566   : > { %8906 = vmatprep.mubr.bf16.mxu1 %v18185_v38  ;;  %v7921_v60 = vpop.f32.mrf.mxu0  ;;  %11389 = vmatpush1.bf16.msra.mxu0 %v14668_v21 }
 0x567   : > { %v8274_v42 = vpop.f32.mrf.mxu1  ;;  %11678 = vmatpush1.bf16.msra.mxu1 %v14669_v26  ;;  %v18883_v35 = vpack.c.bf16 %v9273_v46, %v9269_v40  ;;  %v9274_v43 = vmax.f32 %v8269_v12, 0.0  ;;  %v8273_v61 = vadd.f32 %v8272_v55, %v7920_v31  ;;  %v7922_v22 = vadd.f32 %v7921_v60, %v18712_v51  ;;  %11390 = vmatprep.subr.bf16.mxu0 %v20841_v49 }
 0x568   : > { %11679 = vmatprep.subr.bf16.mxu1 %v20841_v49  ;;  %v7923_v38 = vpop.f32.mrf.mxu0 }
 0x569   : > { %21696 = vst [vmem:[#allocation128_spill] sm:$0xff] %v18883_v35  ;;  %v8276_v62 = vpop.f32.mrf.mxu1  ;;  %v8275_v37 = vadd.f32 %v8274_v42, %v7922_v22  ;;  %v7924_v3 = vadd.f32 %v7923_v38, %v18705_v5  ;;  %v18889_v11 = vpack.c.bf16 %v9274_v43, %v9270_v6  ;;  %v9277_v23 = vmax.f32 %v8273_v61, 0.0 }
 0x56a   : > { %v7925_v44 = vpop.f32.mrf.mxu0  ;;  %11391 = vmatpush1.bf16.msra.mxu0 %v14670_v45 }
 0x56b   : > { %21697 = vst [vmem:[#allocation129_spill] sm:$0xff] %v18889_v11  ;;  %v8278_v18 = vpop.f32.mrf.mxu1  ;;  %11680 = vmatpush1.bf16.msra.mxu1 %v14671_v54  ;;  %v8277_v21 = vadd.f32 %v8276_v62, %v7924_v3  ;;  %v7926_v26 = vadd.f32 %v7925_v44, %v18712_v51  ;;  %11392 = vmatprep.subr.bf16.mxu0 %v20841_v49  ;;  %v9278_v12 = vmax.f32 %v8275_v37, 0.0  ;;  %v14676_v37 = vld [vmem:[%s20383_s5 + $0x78] sm:$0xff]  }
 0x56c   : > { %11681 = vmatprep.subr.bf16.mxu1 %v20841_v49  ;;  %v7929_v34 = vpop.f32.mrf.mxu0  ;;  %8554 = vmatmul.mubr.bf16.gmra.mxu0 %v21499_v1  ;;  %v14674_v1 = vld [vmem:[%s20383_s5] sm:$0xff]   ;;  %v14677_v3 = vld [vmem:[%s20383_s5 + $0xf8] sm:$0xff]  }
 0x56d   : > { %v8282_v17 = vpop.f32.mrf.mxu1  ;;  %8907 = vmatmul.mubr.bf16.gmra.mxu1 %v18181_v47  ;;  %v9281_v55 = vmax.f32 %v8277_v21, 0.0  ;;  %v8279_v40 = vadd.f32 %v8278_v18, %v7926_v26  ;;  %v7930_v46 = vadd.f32 %v7929_v34, %v18705_v5  ;;  %8563 = vmatprep.mubr.bf16.mxu0 %v21501_v58  ;;  %v14675_v47 = vld [vmem:[%s20383_s5 + $0x80] sm:$0xff]  }
 0x56e   : > { %8916 = vmatprep.mubr.bf16.mxu1 %v18198_v7  ;;  %v7931_v31 = vpop.f32.mrf.mxu0  ;;  %11393 = vmatpush1.bf16.msra.mxu0 %v14672_v19 }
 0x56f   : > { %v8284_v6 = vpop.f32.mrf.mxu1  ;;  %11682 = vmatpush1.bf16.msra.mxu1 %v14673_v14  ;;  %v18911_v60 = vpack.c.bf16 %v9281_v55, %v9277_v23  ;;  %v9282_v42 = vmax.f32 %v8279_v40, 0.0  ;;  %v8283_v45 = vadd.f32 %v8282_v17, %v7930_v46  ;;  %v7932_v58 = vadd.f32 %v7931_v31, %v18712_v51  ;;  %11394 = vmatprep.subr.bf16.mxu0 %v20841_v49 }
 0x570   : > { %11683 = vmatprep.subr.bf16.mxu1 %v20841_v49  ;;  %v7933_v7 = vpop.f32.mrf.mxu0 }
 0x571   : > { %21698 = vst [vmem:[#allocation130_spill] sm:$0xff] %v18911_v60  ;;  %v8286_v54 = vpop.f32.mrf.mxu1  ;;  %v8285_v43 = vadd.f32 %v8284_v6, %v7932_v58  ;;  %v7934_v61 = vadd.f32 %v7933_v7, %v18705_v5  ;;  %v18917_v22 = vpack.c.bf16 %v9282_v42, %v9278_v12  ;;  %v9285_v21 = vmax.f32 %v8283_v45, 0.0  ;;  %v14680_v7 = vld [vmem:[%s20383_s5 + $0x68] sm:$0xff]   ;;  %v21829_v60 = vld [vmem:[#allocation176_spill] sm:$0xff] }
 0x572   : > { %v7935_v38 = vpop.f32.mrf.mxu0  ;;  %11395 = vmatpush1.bf16.msra.mxu0 %v14674_v1 }
 0x573   : > { %21699 = vst [vmem:[#allocation131_spill] sm:$0xff] %v18917_v22  ;;  %v8288_v62 = vpop.f32.mrf.mxu1  ;;  %11684 = vmatpush1.bf16.msra.mxu1 %v14675_v47  ;;  %v8287_v44 = vadd.f32 %v8286_v54, %v7934_v61  ;;  %v7936_v18 = vadd.f32 %v7935_v38, %v18712_v51  ;;  %11396 = vmatprep.subr.bf16.mxu0 %v20841_v49  ;;  %v9286_v23 = vmax.f32 %v8285_v43, 0.0  ;;  %v14681_v61 = vld [vmem:[%s20383_s5 + $0xe8] sm:$0xff]   ;;  %v21830_v22 = vld [vmem:[#allocation109_spill] sm:$0xff] }
 0x574   : > { %11685 = vmatprep.subr.bf16.mxu1 %v20841_v49  ;;  %v7939_v19 = vpop.f32.mrf.mxu0  ;;  %8564 = vmatmul.mubr.bf16.gmra.mxu0 %v21507_v57  ;;  %v14678_v57 = vld [vmem:[%s20383_s5 + $0x70] sm:$0xff]  }
 0x575   : > { %v8292_v14 = vpop.f32.mrf.mxu1  ;;  %8917 = vmatmul.mubr.bf16.gmra.mxu1 %v18194_v39  ;;  %v9289_v26 = vmax.f32 %v8287_v44, 0.0  ;;  %v8289_v34 = vadd.f32 %v8288_v62, %v7936_v18  ;;  %v7940_v17 = vadd.f32 %v7939_v19, %v18705_v5  ;;  %8573 = vmatprep.mubr.bf16.mxu0 %v21509_v41  ;;  %v14679_v39 = vld [vmem:[%s20383_s5 + $0xf0] sm:$0xff]   ;;  %v21702_v19 = vld [vmem:[#allocation315_spill] sm:$0xff] }
 0x576   : > { %8926 = vmatprep.mubr.bf16.mxu1 %v18211_v10  ;;  %v7941_v55 = vpop.f32.mrf.mxu0  ;;  %11397 = vmatpush2.bf16.msra.mxu0 %v14676_v37 }
 0x577   : > { %v8294_v40 = vpop.f32.mrf.mxu1  ;;  %11686 = vmatpush2.bf16.msra.mxu1 %v14677_v3  ;;  %v18939_v46 = vpack.c.bf16 %v9289_v26, %v9285_v21  ;;  %v9290_v12 = vmax.f32 %v8289_v34, 0.0  ;;  %v8293_v31 = vadd.f32 %v8292_v14, %v7940_v17  ;;  %v7942_v41 = vadd.f32 %v7941_v55, %v18712_v51  ;;  %11398 = vmatprep.subr.bf16.mxu0 %v20841_v49  ;;  %v21703_v14 = vld [vmem:[#allocation265_spill] sm:$0xff] }
 0x578   : > { %11687 = vmatprep.subr.bf16.mxu1 %v20841_v49  ;;  %v7943_v10 = vpop.f32.mrf.mxu0 }
 0x579   : > { %21700 = vst [vmem:[#allocation132_spill] sm:$0xff] %v18939_v46  ;;  %v8296_v6 = vpop.f32.mrf.mxu1  ;;  %v8295_v1 = vadd.f32 %v8294_v40, %v7942_v41  ;;  %v7944_v47 = vadd.f32 %v7943_v10, %v18705_v5  ;;  %v18945_v42 = vpack.c.bf16 %v9290_v12, %v9286_v23  ;;  %v9293_v37 = vmax.f32 %v8293_v31, 0.0 }
 0x57a   : > { %v7945_v45 = vpop.f32.mrf.mxu0  ;;  %11399 = vmatpush2.bf16.msra.mxu0 %v14678_v57 }
 0x57b   : > { %21701 = vst [vmem:[#allocation133_spill] sm:$0xff] %v18945_v42  ;;  %v8298_v58 = vpop.f32.mrf.mxu1  ;;  %11688 = vmatpush2.bf16.msra.mxu1 %v14679_v39  ;;  %v8297_v54 = vadd.f32 %v8296_v6, %v7944_v47  ;;  %v7946_v43 = vadd.f32 %v7945_v45, %v18712_v51  ;;  %11400 = vmatprep.subr.bf16.mxu0 %v20841_v49  ;;  %v9294_v21 = vmax.f32 %v8295_v1, 0.0  ;;  %v21706_v45 = vld [vmem:[#allocation314_spill] sm:$0xff] }
 0x57c   : > { %11689 = vmatprep.subr.bf16.mxu1 %v20841_v49  ;;  %v7949_v38 = vpop.f32.mrf.mxu0  ;;  %8574 = vmatmul.mubr.bf16.gmra.mxu0 %v21515_v13 }
 0x57d   : > { %v8302_v62 = vpop.f32.mrf.mxu1  ;;  %8927 = vmatmul.mubr.bf16.gmra.mxu1 %v18207_v20  ;;  %v9297_v3 = vmax.f32 %v8297_v54, 0.0  ;;  %v8299_v44 = vadd.f32 %v8298_v58, %v7946_v43  ;;  %v7950_v18 = vadd.f32 %v7949_v38, %v18705_v5  ;;  %8583 = vmatprep.mubr.bf16.mxu0 %v21702_v19  ;;  %v21707_v58 = vld [vmem:[#allocation83_spill] sm:$0xff] }
 0x57e   : > { %8936 = vmatprep.mubr.bf16.mxu1 %v21703_v14  ;;  %v7951_v26 = vpop.f32.mrf.mxu0  ;;  %11401 = vmatpush2.bf16.msra.mxu0 %v14680_v7  ;;  %v21708_v38 = vld [vmem:[#allocation7_spill] sm:$0xff] }
 0x57f   : > { %v8304_v34 = vpop.f32.mrf.mxu1  ;;  %11690 = vmatpush2.bf16.msra.mxu1 %v14681_v61  ;;  %v18961_v17 = vpack.c.bf16 %v9297_v3, %v9293_v37  ;;  %v9298_v23 = vmax.f32 %v8299_v44, 0.0  ;;  %v8303_v13 = vadd.f32 %v8302_v62, %v7950_v18  ;;  %v7952_v20 = vadd.f32 %v7951_v26, %v18712_v51  ;;  %11402 = vmatprep.subr.bf16.mxu0 %v20841_v49  ;;  %v21709_v62 = vld [vmem:[#allocation268_spill] sm:$0xff] }
 0x580   : > { %11691 = vmatprep.subr.bf16.mxu1 %v20841_v49  ;;  %v7953_v55 = vpop.f32.mrf.mxu0 }
 0x581   : > { %21704 = vst [vmem:[#allocation134_spill] sm:$0xff] %v18961_v17  ;;  %v8306_v40 = vpop.f32.mrf.mxu1  ;;  %v8305_v57 = vadd.f32 %v8304_v34, %v7952_v20  ;;  %v7954_v39 = vadd.f32 %v7953_v55, %v18705_v5  ;;  %v18967_v12 = vpack.c.bf16 %v9298_v23, %v9294_v21  ;;  %v9301_v7 = vmax.f32 %v8303_v13, 0.0  ;;  %v14682_v20 = vld [vmem:[%s20383_s5 + $0x60] sm:$0xff]  }
 0x582   : > { %v7955_v31 = vpop.f32.mrf.mxu0  ;;  %11403 = vmatpush2.bf16.msra.mxu0 %v14682_v20 }
 0x583   : > { %21705 = vst [vmem:[#allocation135_spill] sm:$0xff] %v18967_v12  ;;  %v8308_v41 = vpop.f32.mrf.mxu1  ;;  %v8307_v10 = vadd.f32 %v8306_v40, %v7954_v39  ;;  %v7956_v6 = vadd.f32 %v7955_v31, %v18712_v51  ;;  %v9302_v37 = vmax.f32 %v8305_v57, 0.0  ;;  %11404 = vmatprep.subr.bf16.mxu0 %v20841_v49 }
 0x584   : > { %v7959_v1 = vpop.f32.mrf.mxu0  ;;  %8584 = vmatmul.mubr.bf16.gmra.mxu0 %v21706_v45 }
 0x585   : > { %v8312_v47 = vpop.f32.mrf.mxu1  ;;  %8937 = vmatmul.mubr.bf16.gmra.mxu1 %v21707_v58  ;;  %v9305_v54 = vmax.f32 %v8307_v10, 0.0  ;;  %v8309_v43 = vadd.f32 %v8308_v41, %v7956_v6  ;;  %v7960_v61 = vadd.f32 %v7959_v1, %v18705_v5  ;;  %8593 = vmatprep.mubr.bf16.mxu0 %v21708_v38  ;;  %v14683_v41 = vld [vmem:[%s20383_s5 + $0xe0] sm:$0xff]  }
 0x586   : > { %8946 = vmatprep.mubr.bf16.mxu1 %v21709_v62  ;;  %v7961_v3 = vpop.f32.mrf.mxu0  ;;  %v21712_v1 = vld [vmem:[#allocation6_spill] sm:$0xff]  ;;  %11692 = vmatpush2.bf16.msra.mxu1 %v14683_v41 }
 0x587   : > { %v8314_v44 = vpop.f32.mrf.mxu1  ;;  %v18975_v18 = vpack.c.bf16 %v9305_v54, %v9301_v7  ;;  %v9306_v19 = vmax.f32 %v8309_v43, 0.0  ;;  %v8313_v14 = vadd.f32 %v8312_v47, %v7960_v61  ;;  %v7962_v21 = vadd.f32 %v7961_v3, %v18712_v51  ;;  %v21713_v47 = vld [vmem:[#allocation267_spill] sm:$0xff]  ;;  %v21715_v61 = vld [vmem:[#allocation85_spill] sm:$0xff]  ;;  %11693 = vmatprep.subr.bf16.mxu1 %v20841_v49 }
 0x588   : > { %v7963_v26 = vpop.f32.mrf.mxu0  ;;  %v21714_v43 = vld [vmem:[#allocation139_spill] sm:$0xff] }
 0x589   : > { %21710 = vst [vmem:[#allocation136_spill] sm:$0xff] %v18975_v18  ;;  %v8316_v34 = vpop.f32.mrf.mxu1  ;;  %v8315_v23 = vadd.f32 %v8314_v44, %v7962_v21  ;;  %v7964_v13 = vadd.f32 %v7963_v26, %v18705_v5  ;;  %v18982_v55 = vpack.c.bf16 %v9306_v19, %v9302_v37  ;;  %v9309_v45 = vmax.f32 %v8313_v14, 0.0 }
 0x58a   : > { %v7965_v40 = vpop.f32.mrf.mxu0 }
 0x58b   : > { %21711 = vst [vmem:[#allocation137_spill] sm:$0xff] %v18982_v55  ;;  %v8318_v57 = vpop.f32.mrf.mxu1  ;;  %v8317_v39 = vadd.f32 %v8316_v34, %v7964_v13  ;;  %v7966_v31 = vadd.f32 %v7965_v40, %v18712_v51  ;;  %v9310_v38 = vmax.f32 %v8315_v23, 0.0 }
 0x58c   : > { %v7969_v10 = vpop.f32.mrf.mxu0  ;;  %8594 = vmatmul.mubr.bf16.gmra.mxu0 %v21712_v1 }
 0x58d   : > { %v8322_v6 = vpop.f32.mrf.mxu1  ;;  %8947 = vmatmul.mubr.bf16.gmra.mxu1 %v21713_v47  ;;  %v9313_v58 = vmax.f32 %v8317_v39, 0.0  ;;  %v8319_v7 = vadd.f32 %v8318_v57, %v7966_v31  ;;  %v7970_v54 = vadd.f32 %v7969_v10, %v18705_v5  ;;  %8603 = vmatprep.mubr.bf16.mxu0 %v21714_v43  ;;  %v21718_v10 = vld [vmem:[#allocation138_spill] sm:$0xff] }
 0x58e   : > { %8956 = vmatprep.mubr.bf16.mxu1 %v21715_v61  ;;  %v7971_v62 = vpop.f32.mrf.mxu0 }
 0x58f   : > { %v8324_v37 = vpop.f32.mrf.mxu1  ;;  %v18994_v3 = vpack.c.bf16 %v9313_v58, %v9309_v45  ;;  %v9314_v44 = vmax.f32 %v8319_v7, 0.0  ;;  %v8323_v19 = vadd.f32 %v8322_v6, %v7970_v54  ;;  %v7972_v14 = vadd.f32 %v7971_v62, %v18712_v51  ;;  %v21719_v6 = vld [vmem:[#allocation84_spill] sm:$0xff]  ;;  %v21720_v7 = vld [vmem:[#allocation9_spill] sm:$0xff]  ;;  %v21721_v54 = vld [vmem:[#allocation86_spill] sm:$0xff] }
 0x590   : > { %v7973_v21 = vpop.f32.mrf.mxu0 }
 0x591   : > { %21716 = vst [vmem:[#allocation141_spill] sm:$0xff] %v18994_v3  ;;  %v8326_v26 = vpop.f32.mrf.mxu1  ;;  %v8325_v34 = vadd.f32 %v8324_v37, %v7972_v14  ;;  %v7974_v13 = vadd.f32 %v7973_v21, %v18705_v5  ;;  %v18999_v20 = vpack.c.bf16 %v9314_v44, %v9310_v38  ;;  %v9317_v1 = vmax.f32 %v8323_v19, 0.0 }
 0x592   : > { %v7975_v23 = vpop.f32.mrf.mxu0 }
 0x593   : > { %21717 = vst [vmem:[#allocation142_spill] sm:$0xff] %v18999_v20  ;;  %v8328_v40 = vpop.f32.mrf.mxu1  ;;  %v8327_v57 = vadd.f32 %v8326_v26, %v7974_v13  ;;  %v7976_v39 = vadd.f32 %v7975_v23, %v18712_v51  ;;  %v9318_v43 = vmax.f32 %v8325_v34, 0.0  ;;  %v14684_v23 = vld [vmem:[%s20383_s5 + $0x58] sm:$0xff]  }
 0x594   : > { %v7979_v31 = vpop.f32.mrf.mxu0  ;;  %8604 = vmatmul.mubr.bf16.gmra.mxu0 %v21718_v10 }
 0x595   : > { %v8332_v41 = vpop.f32.mrf.mxu1  ;;  %8957 = vmatmul.mubr.bf16.gmra.mxu1 %v21719_v6  ;;  %v9321_v47 = vmax.f32 %v8327_v57, 0.0  ;;  %v8329_v45 = vadd.f32 %v8328_v40, %v7976_v39  ;;  %v7980_v58 = vadd.f32 %v7979_v31, %v18705_v5  ;;  %8613 = vmatprep.mubr.bf16.mxu0 %v21720_v7 }
 0x596   : > { %8966 = vmatprep.mubr.bf16.mxu1 %v21721_v54  ;;  %v7981_v61 = vpop.f32.mrf.mxu0  ;;  %11405 = vmatpush2.bf16.msra.mxu0 %v14684_v23 }
 0x597   : > { %v8334_v38 = vpop.f32.mrf.mxu1  ;;  %v19007_v62 = vpack.c.bf16 %v9321_v47, %v9317_v1  ;;  %v9322_v37 = vmax.f32 %v8329_v45, 0.0  ;;  %v8333_v44 = vadd.f32 %v8332_v41, %v7980_v58  ;;  %v7982_v14 = vadd.f32 %v7981_v61, %v18712_v51  ;;  %v14685_v41 = vld [vmem:[%s20383_s5 + $0xd8] sm:$0xff]   ;;  %v21724_v1 = vld [vmem:[#allocation8_spill] sm:$0xff]  ;;  %11406 = vmatprep.subr.bf16.mxu0 %v20841_v49 }
 0x598   : > { %v7983_v21 = vpop.f32.mrf.mxu0  ;;  %v21725_v47 = vld [vmem:[#allocation269_spill] sm:$0xff]  ;;  %v21727_v61 = vld [vmem:[#allocation272_spill] sm:$0xff]  ;;  %11694 = vmatpush2.bf16.msra.mxu1 %v14685_v41 }
 0x599   : > { %21722 = vst [vmem:[#allocation144_spill] sm:$0xff] %v19007_v62  ;;  %v8336_v26 = vpop.f32.mrf.mxu1  ;;  %v8335_v19 = vadd.f32 %v8334_v38, %v7982_v14  ;;  %v7984_v13 = vadd.f32 %v7983_v21, %v18705_v5  ;;  %v19014_v40 = vpack.c.bf16 %v9322_v37, %v9318_v43  ;;  %v9325_v45 = vmax.f32 %v8333_v44, 0.0  ;;  %v21726_v43 = vld [vmem:[#allocation10_spill] sm:$0xff]  ;;  %11695 = vmatprep.subr.bf16.mxu1 %v20841_v49 }
 0x59a   : > { %v7985_v34 = vpop.f32.mrf.mxu0 }
 0x59b   : > { %21723 = vst [vmem:[#allocation148_spill] sm:$0xff] %v19014_v40  ;;  %v8338_v57 = vpop.f32.mrf.mxu1  ;;  %v8337_v39 = vadd.f32 %v8336_v26, %v7984_v13  ;;  %v7986_v31 = vadd.f32 %v7985_v34, %v18712_v51  ;;  %v9326_v38 = vmax.f32 %v8335_v19, 0.0 }
 0x59c   : > { %v7989_v10 = vpop.f32.mrf.mxu0  ;;  %8614 = vmatmul.mubr.bf16.gmra.mxu0 %v21724_v1 }
 0x59d   : > { %v8342_v6 = vpop.f32.mrf.mxu1  ;;  %8967 = vmatmul.mubr.bf16.gmra.mxu1 %v21725_v47  ;;  %v9329_v58 = vmax.f32 %v8337_v39, 0.0  ;;  %v8339_v7 = vadd.f32 %v8338_v57, %v7986_v31  ;;  %v7990_v54 = vadd.f32 %v7989_v10, %v18705_v5  ;;  %8623 = vmatprep.mubr.bf16.mxu0 %v21726_v43 }
 0x59e   : > { %8976 = vmatprep.mubr.bf16.mxu1 %v21727_v61  ;;  %v7991_v37 = vpop.f32.mrf.mxu0 }
 0x59f   : > { %v8344_v14 = vpop.f32.mrf.mxu1  ;;  %v19026_v21 = vpack.c.bf16 %v9329_v58, %v9325_v45  ;;  %v9330_v26 = vmax.f32 %v8339_v7, 0.0  ;;  %v8343_v13 = vadd.f32 %v8342_v6, %v7990_v54  ;;  %v7992_v44 = vadd.f32 %v7991_v37, %v18712_v51  ;;  %v21730_v58 = vld [vmem:[#allocation140_spill] sm:$0xff]  ;;  %v21731_v6 = vld [vmem:[#allocation87_spill] sm:$0xff] }
 0x5a0   : > { %v7993_v23 = vpop.f32.mrf.mxu0  ;;  %v21732_v37 = vld [vmem:[#allocation143_spill] sm:$0xff] }
 0x5a1   : > { %21728 = vst [vmem:[#allocation149_spill] sm:$0xff] %v19026_v21  ;;  %v8346_v34 = vpop.f32.mrf.mxu1  ;;  %v8345_v57 = vadd.f32 %v8344_v14, %v7992_v44  ;;  %v7994_v39 = vadd.f32 %v7993_v23, %v18705_v5  ;;  %v19031_v31 = vpack.c.bf16 %v9330_v26, %v9326_v38  ;;  %v9333_v7 = vmax.f32 %v8343_v13, 0.0  ;;  %v21733_v38 = vld [vmem:[#allocation275_spill] sm:$0xff] }
 0x5a2   : > { %v7995_v19 = vpop.f32.mrf.mxu0 }
 0x5a3   : > { %21729 = vst [vmem:[#allocation151_spill] sm:$0xff] %v19031_v31  ;;  %v8348_v10 = vpop.f32.mrf.mxu1  ;;  %v8347_v41 = vadd.f32 %v8346_v34, %v7994_v39  ;;  %v7996_v1 = vadd.f32 %v7995_v19, %v18712_v51  ;;  %v9334_v14 = vmax.f32 %v8345_v57, 0.0 }
 0x5a4   : > { %v7999_v47 = vpop.f32.mrf.mxu0  ;;  %8624 = vmatmul.mubr.bf16.gmra.mxu0 %v21730_v58 }
 0x5a5   : > { %v8352_v45 = vpop.f32.mrf.mxu1  ;;  %8977 = vmatmul.mubr.bf16.gmra.mxu1 %v21731_v6  ;;  %v9337_v54 = vmax.f32 %v8347_v41, 0.0  ;;  %v8349_v43 = vadd.f32 %v8348_v10, %v7996_v1  ;;  %v8000_v61 = vadd.f32 %v7999_v47, %v18705_v5  ;;  %8633 = vmatprep.mubr.bf16.mxu0 %v21732_v37  ;;  %v14686_v41 = vld [vmem:[%s20383_s5 + $0x50] sm:$0xff]  }
 0x5a6   : > { %8986 = vmatprep.mubr.bf16.mxu1 %v21733_v38  ;;  %v8001_v26 = vpop.f32.mrf.mxu0  ;;  %11407 = vmatpush2.bf16.msra.mxu0 %v14686_v41  ;;  %v21737_v38 = vld [vmem:[#allocation274_spill] sm:$0xff] }
 0x5a7   : > { %v8354_v44 = vpop.f32.mrf.mxu1  ;;  %v19039_v23 = vpack.c.bf16 %v9337_v54, %v9333_v7  ;;  %v9338_v34 = vmax.f32 %v8349_v43, 0.0  ;;  %v8353_v39 = vadd.f32 %v8352_v45, %v8000_v61  ;;  %v8002_v19 = vadd.f32 %v8001_v26, %v18712_v51  ;;  %v14687_v45 = vld [vmem:[%s20383_s5 + $0xd0] sm:$0xff]   ;;  %v21736_v61 = vld [vmem:[#allocation11_spill] sm:$0xff]  ;;  %11408 = vmatprep.subr.bf16.mxu0 %v20841_v49 }
 0x5a8   : > { %v8003_v58 = vpop.f32.mrf.mxu0  ;;  %11696 = vmatpush2.bf16.msra.mxu1 %v14687_v45 }
 0x5a9   : > { %21734 = vst [vmem:[#allocation155_spill] sm:$0xff] %v19039_v23  ;;  %v8356_v6 = vpop.f32.mrf.mxu1  ;;  %v8355_v13 = vadd.f32 %v8354_v44, %v8002_v19  ;;  %v8004_v10 = vadd.f32 %v8003_v58, %v18705_v5  ;;  %v19046_v1 = vpack.c.bf16 %v9338_v34, %v9334_v14  ;;  %v9341_v26 = vmax.f32 %v8353_v39, 0.0  ;;  %v21738_v19 = vld [vmem:[#allocation146_spill] sm:$0xff]  ;;  %v21739_v58 = vld [vmem:[#allocation89_spill] sm:$0xff]  ;;  %11697 = vmatprep.subr.bf16.mxu1 %v20841_v49 }
 0x5aa   : > { %v8005_v57 = vpop.f32.mrf.mxu0 }
 0x5ab   : > { %21735 = vst [vmem:[#allocation156_spill] sm:$0xff] %v19046_v1  ;;  %v8358_v47 = vpop.f32.mrf.mxu1  ;;  %v8357_v37 = vadd.f32 %v8356_v6, %v8004_v10  ;;  %v8006_v7 = vadd.f32 %v8005_v57, %v18712_v51  ;;  %v9342_v6 = vmax.f32 %v8355_v13, 0.0 }
 0x5ac   : > { %v8009_v54 = vpop.f32.mrf.mxu0  ;;  %8634 = vmatmul.mubr.bf16.gmra.mxu0 %v21736_v61 }
 0x5ad   : > { %v8362_v43 = vpop.f32.mrf.mxu1  ;;  %8987 = vmatmul.mubr.bf16.gmra.mxu1 %v21737_v38  ;;  %v9345_v44 = vmax.f32 %v8357_v37, 0.0  ;;  %v8359_v14 = vadd.f32 %v8358_v47, %v8006_v7  ;;  %v8010_v34 = vadd.f32 %v8009_v54, %v18705_v5  ;;  %8643 = vmatprep.mubr.bf16.mxu0 %v21738_v19 }
 0x5ae   : > { %8996 = vmatprep.mubr.bf16.mxu1 %v21739_v58  ;;  %v8011_v10 = vpop.f32.mrf.mxu0 }
 0x5af   : > { %v8364_v41 = vpop.f32.mrf.mxu1  ;;  %v19058_v57 = vpack.c.bf16 %v9345_v44, %v9341_v26  ;;  %v9346_v61 = vmax.f32 %v8359_v14, 0.0  ;;  %v8363_v23 = vadd.f32 %v8362_v43, %v8010_v34  ;;  %v8012_v39 = vadd.f32 %v8011_v10, %v18712_v51  ;;  %v21742_v14 = vld [vmem:[#allocation145_spill] sm:$0xff]  ;;  %v21743_v43 = vld [vmem:[#allocation88_spill] sm:$0xff] }
 0x5b0   : > { %v8013_v47 = vpop.f32.mrf.mxu0 }
 0x5b1   : > { %21740 = vst [vmem:[#allocation158_spill] sm:$0xff] %v19058_v57  ;;  %v8366_v37 = vpop.f32.mrf.mxu1  ;;  %v8365_v7 = vadd.f32 %v8364_v41, %v8012_v39  ;;  %v8014_v54 = vadd.f32 %v8013_v47, %v18705_v5  ;;  %v19063_v38 = vpack.c.bf16 %v9346_v61, %v9342_v6  ;;  %v9349_v34 = vmax.f32 %v8363_v23, 0.0  ;;  %v21744_v39 = vld [vmem:[#allocation13_spill] sm:$0xff]  ;;  %v21745_v6 = vld [vmem:[#allocation90_spill] sm:$0xff] }
 0x5b2   : > { %v8015_v13 = vpop.f32.mrf.mxu0 }
 0x5b3   : > { %21741 = vst [vmem:[#allocation161_spill] sm:$0xff] %v19063_v38  ;;  %v8368_v19 = vpop.f32.mrf.mxu1  ;;  %v8367_v45 = vadd.f32 %v8366_v37, %v8014_v54  ;;  %v8016_v58 = vadd.f32 %v8015_v13, %v18712_v51  ;;  %v9350_v61 = vmax.f32 %v8365_v7, 0.0 }
 0x5b4   : > { %v8019_v26 = vpop.f32.mrf.mxu0  ;;  %8644 = vmatmul.mubr.bf16.gmra.mxu0 %v21742_v14 }
 0x5b5   : > { %v8372_v44 = vpop.f32.mrf.mxu1  ;;  %8997 = vmatmul.mubr.bf16.gmra.mxu1 %v21743_v43  ;;  %v9353_v10 = vmax.f32 %v8367_v45, 0.0  ;;  %v8369_v57 = vadd.f32 %v8368_v19, %v8016_v58  ;;  %v8020_v41 = vadd.f32 %v8019_v26, %v18705_v5  ;;  %8653 = vmatprep.mubr.bf16.mxu0 %v21744_v39  ;;  %v14688_v45 = vld [vmem:[%s20383_s5 + $0x48] sm:$0xff]  }
 0x5b6   : > { %9006 = vmatprep.mubr.bf16.mxu1 %v21745_v6  ;;  %v8021_v47 = vpop.f32.mrf.mxu0  ;;  %11409 = vmatpush2.bf16.msra.mxu0 %v14688_v45 }
 0x5b7   : > { %v8374_v37 = vpop.f32.mrf.mxu1  ;;  %v19071_v54 = vpack.c.bf16 %v9353_v10, %v9349_v34  ;;  %v9354_v13 = vmax.f32 %v8369_v57, 0.0  ;;  %v8373_v38 = vadd.f32 %v8372_v44, %v8020_v41  ;;  %v8022_v14 = vadd.f32 %v8021_v47, %v18712_v51  ;;  %v14689_v57 = vld [vmem:[%s20383_s5 + $0xc8] sm:$0xff]   ;;  %v21748_v41 = vld [vmem:[#allocation12_spill] sm:$0xff]  ;;  %11410 = vmatprep.subr.bf16.mxu0 %v20841_v49 }
 0x5b8   : > { %v8023_v1 = vpop.f32.mrf.mxu0  ;;  %11698 = vmatpush2.bf16.msra.mxu1 %v14689_v57 }
 0x5b9   : > { %21746 = vst [vmem:[#allocation162_spill] sm:$0xff] %v19071_v54  ;;  %v8376_v43 = vpop.f32.mrf.mxu1  ;;  %v8375_v23 = vadd.f32 %v8374_v37, %v8022_v14  ;;  %v8024_v19 = vadd.f32 %v8023_v1, %v18705_v5  ;;  %v19078_v58 = vpack.c.bf16 %v9354_v13, %v9350_v61  ;;  %v21749_v1 = vld [vmem:[#allocation276_spill] sm:$0xff]  ;;  %v9357_v6 = vmax.f32 %v8373_v38, 0.0  ;;  %v21750_v13 = vld [vmem:[#allocation14_spill] sm:$0xff]  ;;  %v21751_v14 = vld [vmem:[#allocation279_spill] sm:$0xff]  ;;  %11699 = vmatprep.subr.bf16.mxu1 %v20841_v49 }
 0x5ba   : > { %v8025_v7 = vpop.f32.mrf.mxu0 }
 0x5bb   : > { %21747 = vst [vmem:[#allocation163_spill] sm:$0xff] %v19078_v58  ;;  %v8378_v26 = vpop.f32.mrf.mxu1  ;;  %v8377_v39 = vadd.f32 %v8376_v43, %v8024_v19  ;;  %v8026_v34 = vadd.f32 %v8025_v7, %v18712_v51  ;;  %v9358_v43 = vmax.f32 %v8375_v23, 0.0 }
 0x5bc   : > { %v8029_v44 = vpop.f32.mrf.mxu0  ;;  %8654 = vmatmul.mubr.bf16.gmra.mxu0 %v21748_v41 }
 0x5bd   : > { %v8382_v10 = vpop.f32.mrf.mxu1  ;;  %9007 = vmatmul.mubr.bf16.gmra.mxu1 %v21749_v1  ;;  %v9361_v47 = vmax.f32 %v8377_v39, 0.0  ;;  %v8379_v61 = vadd.f32 %v8378_v26, %v8026_v34  ;;  %v8030_v37 = vadd.f32 %v8029_v44, %v18705_v5  ;;  %8663 = vmatprep.mubr.bf16.mxu0 %v21750_v13 }
 0x5be   : > { %9016 = vmatprep.mubr.bf16.mxu1 %v21751_v14  ;;  %v8031_v19 = vpop.f32.mrf.mxu0 }
 0x5bf   : > { %v8384_v45 = vpop.f32.mrf.mxu1  ;;  %v19090_v7 = vpack.c.bf16 %v9361_v47, %v9357_v6  ;;  %v9362_v41 = vmax.f32 %v8379_v61, 0.0  ;;  %v8383_v54 = vadd.f32 %v8382_v10, %v8030_v37  ;;  %v8032_v38 = vadd.f32 %v8031_v19, %v18712_v51  ;;  %v21754_v61 = vld [vmem:[#allocation147_spill] sm:$0xff] }
 0x5c0   : > { %v8033_v26 = vpop.f32.mrf.mxu0  ;;  %v21755_v10 = vld [vmem:[#allocation91_spill] sm:$0xff] }
 0x5c1   : > { %21752 = vst [vmem:[#allocation167_spill] sm:$0xff] %v19090_v7  ;;  %v8386_v39 = vpop.f32.mrf.mxu1  ;;  %v8385_v34 = vadd.f32 %v8384_v45, %v8032_v38  ;;  %v8034_v44 = vadd.f32 %v8033_v26, %v18705_v5  ;;  %v19095_v1 = vpack.c.bf16 %v9362_v41, %v9358_v43  ;;  %v9365_v37 = vmax.f32 %v8383_v54, 0.0  ;;  %v21756_v38 = vld [vmem:[#allocation150_spill] sm:$0xff] }
 0x5c2   : > { %v8035_v23 = vpop.f32.mrf.mxu0  ;;  %v21757_v43 = vld [vmem:[#allocation282_spill] sm:$0xff] }
 0x5c3   : > { %21753 = vst [vmem:[#allocation168_spill] sm:$0xff] %v19095_v1  ;;  %v8388_v13 = vpop.f32.mrf.mxu1  ;;  %v8387_v57 = vadd.f32 %v8386_v39, %v8034_v44  ;;  %v8036_v14 = vadd.f32 %v8035_v23, %v18712_v51  ;;  %v9366_v41 = vmax.f32 %v8385_v34, 0.0 }
 0x5c4   : > { %v8039_v6 = vpop.f32.mrf.mxu0  ;;  %8664 = vmatmul.mubr.bf16.gmra.mxu0 %v21754_v61 }
 0x5c5   : > { %v8392_v47 = vpop.f32.mrf.mxu1  ;;  %9017 = vmatmul.mubr.bf16.gmra.mxu1 %v21755_v10  ;;  %v9369_v49 = vmax.f32 %v8387_v57, 0.0  ;;  %v8389_v19 = vadd.f32 %v8388_v13, %v8036_v14  ;;  %v8040_v45 = vadd.f32 %v8039_v6, %v18705_v5  ;;  %8673 = vmatprep.mubr.bf16.mxu0 %v21756_v38  ;;  %v14690_v57 = vld [vmem:[%s20383_s5 + $0x40] sm:$0xff]  }
 0x5c6   : > { %9026 = vmatprep.mubr.bf16.mxu1 %v21757_v43  ;;  %v8041_v26 = vpop.f32.mrf.mxu0  ;;  %11411 = vmatpush2.bf16.msra.mxu0 %v14690_v57 }
 0x5c7   : > { %v8394_v39 = vpop.f32.mrf.mxu1  ;;  %v19103_v44 = vpack.c.bf16 %v9369_v49, %v9365_v37  ;;  %v9370_v23 = vmax.f32 %v8389_v19, 0.0  ;;  %v8393_v7 = vadd.f32 %v8392_v47, %v8040_v45  ;;  %v8042_v61 = vadd.f32 %v8041_v26, %v18712_v51  ;;  %v14691_v47 = vld [vmem:[%s20383_s5 + $0xc0] sm:$0xff]   ;;  %v21760_v45 = vld [vmem:[#allocation15_spill] sm:$0xff] }
 0x5c8   : > { %v8043_v1 = vpop.f32.mrf.mxu0  ;;  %11700 = vmatpush2.bf16.msra.mxu1 %v14691_v47 }
 0x5c9   : > { %21758 = vst [vmem:[#allocation170_spill] sm:$0xff] %v19103_v44  ;;  %v8396_v10 = vpop.f32.mrf.mxu1  ;;  %v8395_v54 = vadd.f32 %v8394_v39, %v8042_v61  ;;  %v8044_v13 = vadd.f32 %v8043_v1, %v18705_v5  ;;  %v19110_v14 = vpack.c.bf16 %v9370_v23, %v9366_v41  ;;  %v21761_v1 = vld [vmem:[#allocation281_spill] sm:$0xff]  ;;  %v9373_v43 = vmax.f32 %v8393_v7, 0.0 }
 0x5ca   : > { %v8045_v34 = vpop.f32.mrf.mxu0  ;;  %v21762_v23 = vld [vmem:[#allocation153_spill] sm:$0xff] }
 0x5cb   : > { %21759 = vst [vmem:[#allocation174_spill] sm:$0xff] %v19110_v14  ;;  %v8398_v6 = vpop.f32.mrf.mxu1  ;;  %v8397_v38 = vadd.f32 %v8396_v10, %v8044_v13  ;;  %v8046_v37 = vadd.f32 %v8045_v34, %v18712_v51  ;;  %v21763_v61 = vld [vmem:[#allocation93_spill] sm:$0xff]  ;;  %v9374_v10 = vmax.f32 %v8395_v54, 0.0 }
 0x5cc   : > { %v8049_v49 = vpop.f32.mrf.mxu0  ;;  %8674 = vmatmul.mubr.bf16.gmra.mxu0 %v21760_v45 }
 0x5cd   : > { %v8402_v19 = vpop.f32.mrf.mxu1  ;;  %9027 = vmatmul.mubr.bf16.gmra.mxu1 %v21761_v1  ;;  %v9377_v26 = vmax.f32 %v8397_v38, 0.0  ;;  %v8399_v41 = vadd.f32 %v8398_v6, %v8046_v37  ;;  %v8050_v39 = vadd.f32 %v8049_v49, %v18705_v5  ;;  %8683 = vmatprep.mubr.bf16.mxu0 %v21762_v23 }
 0x5ce   : > { %9036 = vmatprep.mubr.bf16.mxu1 %v21763_v61  ;;  %v8051_v13 = vpop.f32.mrf.mxu0 }
 0x5cf   : > { %v8404_v57 = vpop.f32.mrf.mxu1  ;;  %v19121_v34 = vpack.c.bf16 %v9377_v26, %v9373_v43  ;;  %v9378_v44 = vmax.f32 %v8399_v41, 0.0  ;;  %v8403_v14 = vadd.f32 %v8402_v19, %v8050_v39  ;;  %v8052_v45 = vadd.f32 %v8051_v13, %v18712_v51  ;;  %v21766_v43 = vld [vmem:[#allocation152_spill] sm:$0xff] }
 0x5d0   : > { %v8053_v1 = vpop.f32.mrf.mxu0  ;;  %v21767_v26 = vld [vmem:[#allocation92_spill] sm:$0xff] }
 0x5d1   : > { %21764 = vst [vmem:[#allocation175_spill] sm:$0xff] %v19121_v34  ;;  %v8406_v7 = vpop.f32.mrf.mxu1  ;;  %v8405_v38 = vadd.f32 %v8404_v57, %v8052_v45  ;;  %v8054_v6 = vadd.f32 %v8053_v1, %v18705_v5  ;;  %v19125_v37 = vpack.c.bf16 %v9378_v44, %v9374_v10  ;;  %v9381_v19 = vmax.f32 %v8403_v14, 0.0  ;;  %v21768_v57 = vld [vmem:[#allocation17_spill] sm:$0xff]  ;;  %v21769_v44 = vld [vmem:[#allocation94_spill] sm:$0xff] }
 0x5d2   : > { %v8055_v49 = vpop.f32.mrf.mxu0 }
 0x5d3   : > { %21765 = vst [vmem:[#allocation177_spill] sm:$0xff] %v19125_v37  ;;  %v8408_v23 = vpop.f32.mrf.mxu1  ;;  %v8407_v61 = vadd.f32 %v8406_v7, %v8054_v6  ;;  %v8056_v54 = vadd.f32 %v8055_v49, %v18712_v51  ;;  %v9382_v10 = vmax.f32 %v8405_v38, 0.0 }
 0x5d4   : > { %v8059_v58 = vpop.f32.mrf.mxu0  ;;  %8684 = vmatmul.mubr.bf16.gmra.mxu0 %v21766_v43 }
 0x5d5   : > { %v8412_v47 = vpop.f32.mrf.mxu1  ;;  %9037 = vmatmul.mubr.bf16.gmra.mxu1 %v21767_v26  ;;  %v9385_v41 = vmax.f32 %v8407_v61, 0.0  ;;  %v8409_v39 = vadd.f32 %v8408_v23, %v8056_v54  ;;  %v8060_v13 = vadd.f32 %v8059_v58, %v18705_v5  ;;  %8693 = vmatprep.mubr.bf16.mxu0 %v21768_v57 }
 0x5d6   : > { %9046 = vmatprep.mubr.bf16.mxu1 %v21769_v44  ;;  %v8061_v45 = vpop.f32.mrf.mxu0 }
 0x5d7   : > { %v8414_v1 = vpop.f32.mrf.mxu1  ;;  %v19133_v7 = vpack.c.bf16 %v9385_v41, %v9381_v19  ;;  %v9386_v6 = vmax.f32 %v8409_v39, 0.0  ;;  %v8413_v49 = vadd.f32 %v8412_v47, %v8060_v13  ;;  %v8062_v43 = vadd.f32 %v8061_v45, %v18712_v51  ;;  %v21772_v19 = vld [vmem:[#allocation283_spill] sm:$0xff]  ;;  %v21773_v45 = vld [vmem:[#allocation18_spill] sm:$0xff] }
 0x5d8   : > { %v8063_v34 = vpop.f32.mrf.mxu0 }
 0x5d9   : > { %21770 = vst [vmem:[#allocation181_spill] sm:$0xff] %v19133_v7  ;;  %v8416_v26 = vpop.f32.mrf.mxu1  ;;  %v8415_v14 = vadd.f32 %v8414_v1, %v8062_v43  ;;  %v8064_v23 = vadd.f32 %v8063_v34, %v18705_v5  ;;  %v19137_v61 = vpack.c.bf16 %v9386_v6, %v9382_v10  ;;  %v9389_v47 = vmax.f32 %v8413_v49, 0.0  ;;  %v21774_v34 = vld [vmem:[#allocation286_spill] sm:$0xff] }
 0x5da   : > { %v8065_v58 = vpop.f32.mrf.mxu0 }
 0x5db   : > { %21771 = vst [vmem:[#allocation182_spill] sm:$0xff] %v19137_v61  ;;  %v8418_v54 = vpop.f32.mrf.mxu1  ;;  %v8417_v57 = vadd.f32 %v8416_v26, %v8064_v23  ;;  %v8066_v38 = vadd.f32 %v8065_v58, %v18712_v51  ;;  %v9390_v10 = vmax.f32 %v8415_v14, 0.0 }
 0x5dc   : > { %v8069_v44 = vpop.f32.mrf.mxu0  ;;  %8694 = vmatmul.mubr.bf16.gmra.mxu0 %v21611_v48 }
 0x5dd   : > { %v8422_v37 = vpop.f32.mrf.mxu1  ;;  %9047 = vmatmul.mubr.bf16.gmra.mxu1 %v21772_v19  ;;  %v9393_v41 = vmax.f32 %v8417_v57, 0.0  ;;  %v8419_v39 = vadd.f32 %v8418_v54, %v8066_v38  ;;  %v8070_v13 = vadd.f32 %v8069_v44, %v18705_v5  ;;  %8703 = vmatprep.mubr.bf16.mxu0 %v21773_v45 }
 0x5de   : > { %9056 = vmatprep.mubr.bf16.mxu1 %v21774_v34  ;;  %v8071_v1 = vpop.f32.mrf.mxu0 }
 0x5df   : > { %v8424_v6 = vpop.f32.mrf.mxu1  ;;  %v19145_v43 = vpack.c.bf16 %v9393_v41, %v9389_v47  ;;  %v9394_v26 = vmax.f32 %v8419_v39, 0.0  ;;  %v8423_v23 = vadd.f32 %v8422_v37, %v8070_v13  ;;  %v8072_v48 = vadd.f32 %v8071_v1, %v18712_v51  ;;  %v21777_v47 = vld [vmem:[#allocation154_spill] sm:$0xff]  ;;  %v21778_v41 = vld [vmem:[#allocation95_spill] sm:$0xff] }
 0x5e0   : > { %v8073_v58 = vpop.f32.mrf.mxu0 }
 0x5e1   : > { %21775 = vst [vmem:[#allocation184_spill] sm:$0xff] %v19145_v43  ;;  %v8426_v19 = vpop.f32.mrf.mxu1  ;;  %v8425_v49 = vadd.f32 %v8424_v6, %v8072_v48  ;;  %v8074_v54 = vadd.f32 %v8073_v58, %v18705_v5  ;;  %v19149_v57 = vpack.c.bf16 %v9394_v26, %v9390_v10  ;;  %v9397_v37 = vmax.f32 %v8423_v23, 0.0  ;;  %v21779_v6 = vld [vmem:[#allocation157_spill] sm:$0xff] }
 0x5e2   : > { %v8075_v38 = vpop.f32.mrf.mxu0  ;;  %v21780_v10 = vld [vmem:[#allocation289_spill] sm:$0xff] }
 0x5e3   : > { %21776 = vst [vmem:[#allocation188_spill] sm:$0xff] %v19149_v57  ;;  %v8428_v44 = vpop.f32.mrf.mxu1  ;;  %v8427_v45 = vadd.f32 %v8426_v19, %v8074_v54  ;;  %v8076_v14 = vadd.f32 %v8075_v38, %v18712_v51  ;;  %v9398_v26 = vmax.f32 %v8425_v49, 0.0 }
 0x5e4   : > { %v8079_v34 = vpop.f32.mrf.mxu0  ;;  %8704 = vmatmul.mubr.bf16.gmra.mxu0 %v21777_v47 }
 0x5e5   : > { %v8432_v7 = vpop.f32.mrf.mxu1  ;;  %9057 = vmatmul.mubr.bf16.gmra.mxu1 %v21778_v41  ;;  %v9401_v39 = vmax.f32 %v8427_v45, 0.0  ;;  %v8429_v13 = vadd.f32 %v8428_v44, %v8076_v14  ;;  %v8080_v1 = vadd.f32 %v8079_v34, %v18705_v5  ;;  %8713 = vmatprep.mubr.bf16.mxu0 %v21779_v6 }
 0x5e6   : > { %9066 = vmatprep.mubr.bf16.mxu1 %v21780_v10  ;;  %v8081_v48 = vpop.f32.mrf.mxu0 }
 0x5e7   : > { %v8434_v58 = vpop.f32.mrf.mxu1  ;;  %v19157_v19 = vpack.c.bf16 %v9401_v39, %v9397_v37  ;;  %v9402_v54 = vmax.f32 %v8429_v13, 0.0  ;;  %v8433_v38 = vadd.f32 %v8432_v7, %v8080_v1  ;;  %v8082_v47 = vadd.f32 %v8081_v48, %v18712_v51  ;;  %v21783_v37 = vld [vmem:[#allocation19_spill] sm:$0xff]  ;;  %v21784_v39 = vld [vmem:[#allocation288_spill] sm:$0xff] }
 0x5e8   : > { %v8083_v43 = vpop.f32.mrf.mxu0 }
 0x5e9   : > { %21781 = vst [vmem:[#allocation189_spill] sm:$0xff] %v19157_v19  ;;  %v8436_v41 = vpop.f32.mrf.mxu1  ;;  %v8435_v23 = vadd.f32 %v8434_v58, %v8082_v47  ;;  %v8084_v44 = vadd.f32 %v8083_v43, %v18705_v5  ;;  %v19161_v45 = vpack.c.bf16 %v9402_v54, %v9398_v26  ;;  %v9405_v7 = vmax.f32 %v8433_v38, 0.0  ;;  %v21785_v58 = vld [vmem:[#allocation160_spill] sm:$0xff]  ;;  %v21786_v43 = vld [vmem:[#allocation98_spill] sm:$0xff] }
 0x5ea   : > { %v8085_v14 = vpop.f32.mrf.mxu0 }
 0x5eb   : > { %21782 = vst [vmem:[#allocation191_spill] sm:$0xff] %v19161_v45  ;;  %v8438_v34 = vpop.f32.mrf.mxu1  ;;  %v8437_v6 = vadd.f32 %v8436_v41, %v8084_v44  ;;  %v8086_v49 = vadd.f32 %v8085_v14, %v18712_v51  ;;  %v9406_v26 = vmax.f32 %v8435_v23, 0.0 }
 0x5ec   : > { %v8089_v10 = vpop.f32.mrf.mxu0  ;;  %8714 = vmatmul.mubr.bf16.gmra.mxu0 %v21783_v37 }
 0x5ed   : > { %v8442_v57 = vpop.f32.mrf.mxu1  ;;  %9067 = vmatmul.mubr.bf16.gmra.mxu1 %v21784_v39  ;;  %v9409_v13 = vmax.f32 %v8437_v6, 0.0  ;;  %v8439_v1 = vadd.f32 %v8438_v34, %v8086_v49  ;;  %v8090_v48 = vadd.f32 %v8089_v10, %v18705_v5  ;;  %8723 = vmatprep.mubr.bf16.mxu0 %v21785_v58 }
 0x5ee   : > { %9076 = vmatprep.mubr.bf16.mxu1 %v21786_v43  ;;  %v8091_v54 = vpop.f32.mrf.mxu0 }
 0x5ef   : > { %v8444_v47 = vpop.f32.mrf.mxu1  ;;  %v19169_v41 = vpack.c.bf16 %v9409_v13, %v9405_v7  ;;  %v9410_v44 = vmax.f32 %v8439_v1, 0.0  ;;  %v8443_v14 = vadd.f32 %v8442_v57, %v8090_v48  ;;  %v8092_v37 = vadd.f32 %v8091_v54, %v18712_v51  ;;  %v21789_v7 = vld [vmem:[#allocation159_spill] sm:$0xff]  ;;  %v21790_v13 = vld [vmem:[#allocation97_spill] sm:$0xff] }
 0x5f0   : > { %v8093_v19 = vpop.f32.mrf.mxu0 }
 0x5f1   : > { %21787 = vst [vmem:[#allocation195_spill] sm:$0xff] %v19169_v41  ;;  %v8446_v39 = vpop.f32.mrf.mxu1  ;;  %v8445_v38 = vadd.f32 %v8444_v47, %v8092_v37  ;;  %v8094_v34 = vadd.f32 %v8093_v19, %v18705_v5  ;;  %v19173_v6 = vpack.c.bf16 %v9410_v44, %v9406_v26  ;;  %v9413_v57 = vmax.f32 %v8443_v14, 0.0  ;;  %v21791_v47 = vld [vmem:[#allocation21_spill] sm:$0xff]  ;;  %v21792_v19 = vld [vmem:[#allocation99_spill] sm:$0xff] }
 0x5f2   : > { %v8095_v49 = vpop.f32.mrf.mxu0 }
 0x5f3   : > { %21788 = vst [vmem:[#allocation196_spill] sm:$0xff] %v19173_v6  ;;  %v8448_v10 = vpop.f32.mrf.mxu1  ;;  %v8447_v58 = vadd.f32 %v8446_v39, %v8094_v34  ;;  %v8096_v23 = vadd.f32 %v8095_v49, %v18712_v51  ;;  %v9414_v26 = vmax.f32 %v8445_v38, 0.0 }
 0x5f4   : > { %v8099_v43 = vpop.f32.mrf.mxu0  ;;  %8724 = vmatmul.mubr.bf16.gmra.mxu0 %v21789_v7 }
 0x5f5   : > { %v8452_v45 = vpop.f32.mrf.mxu1  ;;  %9077 = vmatmul.mubr.bf16.gmra.mxu1 %v21790_v13  ;;  %v9417_v1 = vmax.f32 %v8447_v58, 0.0  ;;  %v8449_v48 = vadd.f32 %v8448_v10, %v8096_v23  ;;  %v8100_v54 = vadd.f32 %v8099_v43, %v18705_v5  ;;  %8733 = vmatprep.mubr.bf16.mxu0 %v21791_v47 }
 0x5f6   : > { %9086 = vmatprep.mubr.bf16.mxu1 %v21792_v19  ;;  %v8101_v44 = vpop.f32.mrf.mxu0 }
 0x5f7   : > { %v8454_v37 = vpop.f32.mrf.mxu1  ;;  %v19181_v39 = vpack.c.bf16 %v9417_v1, %v9413_v57  ;;  %v9418_v34 = vmax.f32 %v8449_v48, 0.0  ;;  %v8453_v49 = vadd.f32 %v8452_v45, %v8100_v54  ;;  %v8102_v7 = vadd.f32 %v8101_v44, %v18712_v51  ;;  %v21795_v57 = vld [vmem:[#allocation20_spill] sm:$0xff]  ;;  %v21796_v1 = vld [vmem:[#allocation290_spill] sm:$0xff] }
 0x5f8   : > { %v8103_v41 = vpop.f32.mrf.mxu0 }
 0x5f9   : > { %21793 = vst [vmem:[#allocation198_spill] sm:$0xff] %v19181_v39  ;;  %v8456_v13 = vpop.f32.mrf.mxu1  ;;  %v8455_v14 = vadd.f32 %v8454_v37, %v8102_v7  ;;  %v8104_v10 = vadd.f32 %v8103_v41, %v18705_v5  ;;  %v19185_v58 = vpack.c.bf16 %v9418_v34, %v9414_v26  ;;  %v9421_v45 = vmax.f32 %v8453_v49, 0.0  ;;  %v21797_v37 = vld [vmem:[#allocation23_spill] sm:$0xff]  ;;  %v21798_v41 = vld [vmem:[#allocation293_spill] sm:$0xff] }
 0x5fa   : > { %v8105_v23 = vpop.f32.mrf.mxu0 }
 0x5fb   : > { %21794 = vst [vmem:[#allocation202_spill] sm:$0xff] %v19185_v58  ;;  %v8458_v43 = vpop.f32.mrf.mxu1  ;;  %v8457_v47 = vadd.f32 %v8456_v13, %v8104_v10  ;;  %v8106_v38 = vadd.f32 %v8105_v23, %v18712_v51  ;;  %v9422_v26 = vmax.f32 %v8455_v14, 0.0 }
 0x5fc   : > { %v8109_v19 = vpop.f32.mrf.mxu0  ;;  %8734 = vmatmul.mubr.bf16.gmra.mxu0 %v21795_v57 }
 0x5fd   : > { %v8462_v6 = vpop.f32.mrf.mxu1  ;;  %9087 = vmatmul.mubr.bf16.gmra.mxu1 %v21796_v1  ;;  %v9425_v48 = vmax.f32 %v8457_v47, 0.0  ;;  %v8459_v54 = vadd.f32 %v8458_v43, %v8106_v38  ;;  %v8110_v44 = vadd.f32 %v8109_v19, %v18705_v5  ;;  %8743 = vmatprep.mubr.bf16.mxu0 %v21797_v37 }
 0x5fe   : > { %9096 = vmatprep.mubr.bf16.mxu1 %v21798_v41  ;;  %v8111_v34 = vpop.f32.mrf.mxu0 }
 0x5ff   : > { %v8464_v7 = vpop.f32.mrf.mxu1  ;;  %v19193_v13 = vpack.c.bf16 %v9425_v48, %v9421_v45  ;;  %v9426_v10 = vmax.f32 %v8459_v54, 0.0  ;;  %v8463_v23 = vadd.f32 %v8462_v6, %v8110_v44  ;;  %v8112_v57 = vadd.f32 %v8111_v34, %v18712_v51  ;;  %v21801_v45 = vld [vmem:[#allocation22_spill] sm:$0xff]  ;;  %v21802_v48 = vld [vmem:[#allocation100_spill] sm:$0xff] }
 0x600   : > { %v8113_v39 = vpop.f32.mrf.mxu0 }
 0x601   : > { %21799 = vst [vmem:[#allocation203_spill] sm:$0xff] %v19193_v13  ;;  %v8466_v1 = vpop.f32.mrf.mxu1  ;;  %v8465_v49 = vadd.f32 %v8464_v7, %v8112_v57  ;;  %v8114_v43 = vadd.f32 %v8113_v39, %v18705_v5  ;;  %v19197_v47 = vpack.c.bf16 %v9426_v10, %v9422_v26  ;;  %v9429_v6 = vmax.f32 %v8463_v23, 0.0  ;;  %v21803_v7 = vld [vmem:[#allocation165_spill] sm:$0xff]  ;;  %v21804_v39 = vld [vmem:[#allocation296_spill] sm:$0xff] }
 0x602   : > { %v8115_v38 = vpop.f32.mrf.mxu0 }
 0x603   : > { %21800 = vst [vmem:[#allocation205_spill] sm:$0xff] %v19197_v47  ;;  %v8468_v19 = vpop.f32.mrf.mxu1  ;;  %v8467_v37 = vadd.f32 %v8466_v1, %v8114_v43  ;;  %v8116_v14 = vadd.f32 %v8115_v38, %v18712_v51  ;;  %v9430_v26 = vmax.f32 %v8465_v49, 0.0 }
 0x604   : > { %v8119_v41 = vpop.f32.mrf.mxu0  ;;  %8744 = vmatmul.mubr.bf16.gmra.mxu0 %v21801_v45 }
 0x605   : > { %v8472_v58 = vpop.f32.mrf.mxu1  ;;  %9097 = vmatmul.mubr.bf16.gmra.mxu1 %v21802_v48  ;;  %v9433_v54 = vmax.f32 %v8467_v37, 0.0  ;;  %v8469_v44 = vadd.f32 %v8468_v19, %v8116_v14  ;;  %v8120_v34 = vadd.f32 %v8119_v41, %v18705_v5  ;;  %8753 = vmatprep.mubr.bf16.mxu0 %v21803_v7 }
 0x606   : > { %9106 = vmatprep.mubr.bf16.mxu1 %v21804_v39  ;;  %v8121_v10 = vpop.f32.mrf.mxu0 }
 0x607   : > { %v8474_v57 = vpop.f32.mrf.mxu1  ;;  %v19205_v1 = vpack.c.bf16 %v9433_v54, %v9429_v6  ;;  %v9434_v43 = vmax.f32 %v8469_v44, 0.0  ;;  %v8473_v38 = vadd.f32 %v8472_v58, %v8120_v34  ;;  %v8122_v45 = vadd.f32 %v8121_v10, %v18712_v51  ;;  %v21807_v6 = vld [vmem:[#allocation295_spill] sm:$0xff]  ;;  %v21808_v10 = vld [vmem:[#allocation25_spill] sm:$0xff] }
 0x608   : > { %v8123_v13 = vpop.f32.mrf.mxu0 }
 0x609   : > { %21805 = vst [vmem:[#allocation209_spill] sm:$0xff] %v19205_v1  ;;  %v8476_v48 = vpop.f32.mrf.mxu1  ;;  %v8475_v23 = vadd.f32 %v8474_v57, %v8122_v45  ;;  %v8124_v19 = vadd.f32 %v8123_v13, %v18705_v5  ;;  %v19209_v37 = vpack.c.bf16 %v9434_v43, %v9430_v26  ;;  %v9437_v58 = vmax.f32 %v8473_v38, 0.0  ;;  %v21809_v13 = vld [vmem:[#allocation102_spill] sm:$0xff] }
 0x60a   : > { %v8125_v14 = vpop.f32.mrf.mxu0 }
 0x60b   : > { %21806 = vst [vmem:[#allocation210_spill] sm:$0xff] %v19209_v37  ;;  %v8478_v41 = vpop.f32.mrf.mxu1  ;;  %v8477_v7 = vadd.f32 %v8476_v48, %v8124_v19  ;;  %v8126_v49 = vadd.f32 %v8125_v14, %v18712_v51  ;;  %v9438_v26 = vmax.f32 %v8475_v23, 0.0 }
 0x60c   : > { %v8129_v39 = vpop.f32.mrf.mxu0  ;;  %8754 = vmatmul.mubr.bf16.gmra.mxu0 %v21654_v63 }
 0x60d   : > { %v8482_v47 = vpop.f32.mrf.mxu1  ;;  %9107 = vmatmul.mubr.bf16.gmra.mxu1 %v21807_v6  ;;  %v9441_v54 = vmax.f32 %v8477_v7, 0.0  ;;  %v8479_v44 = vadd.f32 %v8478_v41, %v8126_v49  ;;  %v8130_v34 = vadd.f32 %v8129_v39, %v18705_v5  ;;  %8763 = vmatprep.mubr.bf16.mxu0 %v21808_v10 }
 0x60e   : > { %9116 = vmatprep.mubr.bf16.mxu1 %v21809_v13  ;;  %v8131_v57 = vpop.f32.mrf.mxu0 }
 0x60f   : > { %v8484_v43 = vpop.f32.mrf.mxu1  ;;  %v19217_v45 = vpack.c.bf16 %v9441_v54, %v9437_v58  ;;  %v9442_v48 = vmax.f32 %v8479_v44, 0.0  ;;  %v8483_v19 = vadd.f32 %v8482_v47, %v8130_v34  ;;  %v8132_v63 = vadd.f32 %v8131_v57, %v18712_v51  ;;  %v21812_v47 = vld [vmem:[#allocation101_spill] sm:$0xff]  ;;  %v21813_v57 = vld [vmem:[#allocation26_spill] sm:$0xff] }
 0x610   : > { %v8133_v14 = vpop.f32.mrf.mxu0 }
 0x611   : > { %21810 = vst [vmem:[#allocation212_spill] sm:$0xff] %v19217_v45  ;;  %v8486_v6 = vpop.f32.mrf.mxu1  ;;  %v8485_v38 = vadd.f32 %v8484_v43, %v8132_v63  ;;  %v8134_v41 = vadd.f32 %v8133_v14, %v18705_v5  ;;  %v19221_v7 = vpack.c.bf16 %v9442_v48, %v9438_v26  ;;  %v9445_v54 = vmax.f32 %v8483_v19, 0.0  ;;  %v21814_v5 = vld [vmem:[#allocation104_spill] sm:$0xff] }
 0x612   : > { %v8135_v49 = vpop.f32.mrf.mxu0 }
 0x613   : > { %21811 = vst [vmem:[#allocation216_spill] sm:$0xff] %v19221_v7  ;;  %v8488_v39 = vpop.f32.mrf.mxu1  ;;  %v8487_v10 = vadd.f32 %v8486_v6, %v8134_v41  ;;  %v8136_v23 = vadd.f32 %v8135_v49, %v18712_v51  ;;  %v9446_v51 = vmax.f32 %v8485_v38, 0.0  ;;  %v21819_v38 = vld [vmem:[#allocation169_spill] sm:$0xff] }
 0x614   : > { %v19224_v13 = vpop.f32.mrf.mxu0  ;;  %8764 = vmatmul.mubr.bf16.gmra.mxu0 %v21663_v59 }
 0x615   : > { %v19227_v58 = vpop.f32.mrf.mxu1  ;;  %9117 = vmatmul.mubr.bf16.gmra.mxu1 %v21812_v47  ;;  %v9449_v44 = vmax.f32 %v8487_v10, 0.0  ;;  %v8489_v34 = vadd.f32 %v8488_v39, %v8136_v23  ;;  %8773 = vmatprep.mubr.bf16.mxu0 %v21813_v57  ;;  %v21817_v39 = vld [vmem:[#allocation166_spill] sm:$0xff]  ;;  %v21818_v23 = vld [vmem:[#allocation103_spill] sm:$0xff]  ;;  %v21820_v47 = vld [vmem:[#allocation105_spill] sm:$0xff] }
 0x616   : > { %9126 = vmatprep.mubr.bf16.mxu1 %v21814_v5  ;;  %v19232_v26 = vpop.f32.mrf.mxu0 }
 0x617   : > { %v19234_v43 = vpop.f32.mrf.mxu1  ;;  %v19236_v48 = vpack.c.bf16 %v9449_v44, %v9445_v54  ;;  %v9450_v63 = vmax.f32 %v8489_v34, 0.0 }
 0x618   : > { %v19238_v59 = vpop.f32.mrf.mxu0 }
 0x619   : > { %21815 = vst [vmem:[#allocation217_spill] sm:$0xff] %v19236_v48  ;;  %v19240_v14 = vpop.f32.mrf.mxu1  ;;  %v19242_v6 = vpack.c.bf16 %v9450_v63, %v9446_v51 }
 0x61a   : > { %v8531_v19 = vpop.f32.mrf.mxu0 }
 0x61b   : > { %21816 = vst [vmem:[#allocation219_spill] sm:$0xff] %v19242_v6  ;;  %v19244_v41 = vpop.f32.mrf.mxu1 }
 0x61c   : > { %v19246_v49 = vpop.f32.mrf.mxu0  ;;  %8774 = vmatmul.mubr.bf16.gmra.mxu0 %v21817_v39 }
 0x61d   : > { %v19249_v10 = vpop.f32.mrf.mxu1  ;;  %9127 = vmatmul.mubr.bf16.gmra.mxu1 %v21818_v23  ;;  %8783 = vmatprep.mubr.bf16.mxu0 %v21819_v38  ;;  %v21821_v23 = vld [vmem:[#allocation172_spill] sm:$0xff]  ;;  %v21822_v38 = vld [vmem:[#allocation106_spill] sm:$0xff] }
 0x61e   : > { %9136 = vmatprep.mubr.bf16.mxu1 %v21820_v47  ;;  %v19254_v54 = vpop.f32.mrf.mxu0 }
 0x61f   : > { %v19256_v44 = vpop.f32.mrf.mxu1 }
 0x620   : > { %v19258_v34 = vpop.f32.mrf.mxu0 }
 0x621   : > { %v19260_v57 = vpop.f32.mrf.mxu1 }
 0x622   : > { %v19262_v5 = vpop.f32.mrf.mxu0 }
 0x623   : > { %v19264_v51 = vpop.f32.mrf.mxu1 }
 0x624   : > { %v19266_v63 = vpop.f32.mrf.mxu0  ;;  %8784 = vmatmul.mubr.bf16.gmra.mxu0 %v21670_v15 }
 0x625   : > { %v19269_v39 = vpop.f32.mrf.mxu1  ;;  %9137 = vmatmul.mubr.bf16.gmra.mxu1 %v18648_v4  ;;  %8793 = vmatprep.mubr.bf16.mxu0 %v21821_v23  ;;  %v21823_v23 = vld [vmem:[#allocation29_spill] sm:$0xff] }
 0x626   : > { %9146 = vmatprep.mubr.bf16.mxu1 %v21822_v38  ;;  %v19274_v47 = vpop.f32.mrf.mxu0  ;;  %v21824_v38 = vld [vmem:[#allocation107_spill] sm:$0xff] }
 0x627   : > { %v19276_v48 = vpop.f32.mrf.mxu1 }
 0x628   : > { %v19278_v6 = vpop.f32.mrf.mxu0 }
 0x629   : > { %v19280_v45 = vpop.f32.mrf.mxu1 }
 0x62a   : > { %v19282_v7 = vpop.f32.mrf.mxu0 }
 0x62b   : > { %v19284_v1 = vpop.f32.mrf.mxu1 }
 0x62c   : > { %v19286_v15 = vpop.f32.mrf.mxu0  ;;  %8794 = vmatmul.mubr.bf16.gmra.mxu0 %v21674_v30 }
 0x62d   : > { %v19289_v4 = vpop.f32.mrf.mxu1  ;;  %9147 = vmatmul.mubr.bf16.gmra.mxu1 %v18660_v50  ;;  %8803 = vmatprep.mubr.bf16.mxu0 %v21823_v23  ;;  %v21825_v23 = vld [vmem:[#allocation30_spill] sm:$0xff] }
 0x62e   : > { %9156 = vmatprep.mubr.bf16.mxu1 %v21824_v38  ;;  %v19294_v37 = vpop.f32.mrf.mxu0  ;;  %v21826_v38 = vld [vmem:[#allocation108_spill] sm:$0xff] }
 0x62f   : > { %v19296_v61 = vpop.f32.mrf.mxu1 }
 0x630   : > { %v19298_v21 = vpop.f32.mrf.mxu0 }
 0x631   : > { %v19300_v31 = vpop.f32.mrf.mxu1 }
 0x632   : > { %v19302_v62 = vpop.f32.mrf.mxu0 }
 0x633   : > { %v19304_v40 = vpop.f32.mrf.mxu1 }
 0x634   : > { %v19306_v30 = vpop.f32.mrf.mxu0  ;;  %8804 = vmatmul.mubr.bf16.gmra.mxu0 %v21678_v9 }
 0x635   : > { %v19309_v50 = vpop.f32.mrf.mxu1  ;;  %9157 = vmatmul.mubr.bf16.gmra.mxu1 %v18672_v33  ;;  %8813 = vmatprep.mubr.bf16.mxu0 %v21825_v23  ;;  %v14693_v23 = vld [vmem:[%s20382_s4] sm:$0xf] }
 0x636   : > { %9166 = vmatprep.mubr.bf16.mxu1 %v21826_v38  ;;  %v19314_v3 = vpop.f32.mrf.mxu0  ;;  %v21827_v38 = vld [vmem:[#allocation96_spill] sm:$0xff] }
 0x637   : > { %v19316_v20 = vpop.f32.mrf.mxu1  ;;  %v21828_v46 = vsub.s32 3, %v21827_v38 }
 0x638   : > { %v19318_v18 = vpop.f32.mrf.mxu0 }
 0x639   : > { %v19320_v55 = vpop.f32.mrf.mxu1  ;;  %v19337_v42 = vrot.slane %v14693_v23, %v21828_v46 }
 0x63a   : > { %v19322_v17 = vpop.f32.mrf.mxu0 }
 0x63b   : > { %v19324_v12 = vpop.f32.mrf.mxu1  ;;  %v8528_v56 = vadd.f32 %v19232_v26, %v19337_v42 }
 0x63c   : > { %v19326_v9 = vpop.f32.mrf.mxu0  ;;  %8814 = vmatmul.mubr.bf16.gmra.mxu0 %v21682_v8  ;;  %v8532_v8 = vadd.f32 %v8531_v19, %v19337_v42 }
 0x63d   : > { %v19329_v33 = vpop.f32.mrf.mxu1  ;;  %9167 = vmatmul.mubr.bf16.gmra.mxu1 %v18684_v32  ;;  %8823 = vmatprep.mubr.bf16.mxu0 %v21829_v60  ;;  %v8881_v26 = vadd.f32 %v19234_v43, %v8528_v56 }
 0x63e   : > { %9176 = vmatprep.mubr.bf16.mxu1 %v21830_v22  ;;  %v19341_v35 = vpop.f32.mrf.mxu0  ;;  %v8885_v60 = vadd.f32 %v19244_v41, %v8532_v8  ;;  %v21831_v22 = vsub.s32 2, %v21827_v38 }
 0x63f   : > { %v19343_v11 = vpop.f32.mrf.mxu1 }
 0x640   : > { %v19346_v25 = vpop.f32.mrf.mxu0  ;;  %v19359_v24 = vrot.slane %v14693_v23, %v21831_v22  ;;  %v9204_v8 = vmax.f32 %v8885_v60, 0.0 }
 0x641   : > { %v19348_v32 = vpop.f32.mrf.mxu1 }
 0x642   : > { %v19352_v27 = vpop.f32.mrf.mxu0  ;;  %v8530_v41 = vadd.f32 %v19238_v59, %v19359_v24 }
 0x643   : > { %v19354_v46 = vpop.f32.mrf.mxu1 }
 0x644   : > { %v19361_v52 = vpop.f32.mrf.mxu0  ;;  %8824 = vmatmul.mubr.bf16.gmra.mxu0 %v21686_v29  ;;  %v8542_v29 = vadd.f32 %v19262_v5, %v19337_v42  ;;  %v8883_v43 = vadd.f32 %v19240_v14, %v8530_v41  ;;  %v21838_v14 = vld [vmem:[#allocation112_spill] sm:$0xff] }
 0x645   : > { %21832 = vst [vmem:[#allocation223_spill] sm:$0xff] %v19361_v52  ;;  %v19364_v19 = vpop.f32.mrf.mxu1  ;;  %9177 = vmatmul.mubr.bf16.gmra.mxu1 %v18699_v36  ;;  %8833 = vmatprep.mubr.bf16.mxu0 %v21834_v53  ;;  %v8526_v36 = vadd.f32 %v19224_v13, %v19359_v24  ;;  %v9200_v53 = vmax.f32 %v8881_v26, 0.0 }
 0x646   : > { %21833 = vst [vmem:[#allocation224_spill] sm:$0xff] %v19364_v19  ;;  %9186 = vmatprep.mubr.bf16.mxu1 %v21835_v0  ;;  %v19372_v38 = vpop.f32.mrf.mxu0  ;;  %v8538_v0 = vadd.f32 %v19254_v54, %v19337_v42  ;;  %v8895_v60 = vadd.f32 %v19264_v51, %v8542_v29  ;;  %v9203_v26 = vmax.f32 %v8883_v43, 0.0  ;;  %v8540_v51 = vadd.f32 %v19258_v34, %v19359_v24 }
 0x647   : > { %v19374_v23 = vpop.f32.mrf.mxu1  ;;  %v14006_v5 = vpack.c.bf16 %v9204_v8, %v9200_v53  ;;  %v8879_v52 = vadd.f32 %v19227_v58, %v8526_v36  ;;  %v8548_v34 = vadd.f32 %v19274_v47, %v19337_v42 }
 0x648   : > { %v19380_v22 = vpop.f32.mrf.mxu0  ;;  %v8891_v54 = vadd.f32 %v19256_v44, %v8538_v0  ;;  %v9212_v8 = vmax.f32 %v8895_v60, 0.0  ;;  %v8893_v43 = vadd.f32 %v19260_v57, %v8540_v51  ;;  %v8550_v51 = vadd.f32 %v19278_v6, %v19359_v24 }
 0x649   : > { %v19382_v56 = vpop.f32.mrf.mxu1  ;;  %v9199_v29 = vmax.f32 %v8879_v52, 0.0  ;;  %v8901_v47 = vadd.f32 %v19276_v48, %v8548_v34  ;;  %v8558_v6 = vadd.f32 %v19294_v37, %v19337_v42 }
 0x64a   : > { %21836 = vst [vmem:[#allocation226_spill] sm:$0xff] %v19382_v56  ;;  %v19387_v59 = vpop.f32.mrf.mxu0  ;;  %v9208_v53 = vmax.f32 %v8891_v54, 0.0  ;;  %v21839_v54 = vld [vmem:[#allocation111_spill] sm:$0xff]  ;;  %v9211_v57 = vmax.f32 %v8893_v43, 0.0  ;;  %v8903_v43 = vadd.f32 %v19280_v45, %v8550_v51  ;;  %v8560_v51 = vadd.f32 %v19298_v21, %v19359_v24 }
 0x64b   : > { %v19389_v19 = vpop.f32.mrf.mxu1  ;;  %v14005_v0 = vpack.c.bf16 %v9203_v26, %v9199_v29  ;;  %v21840_v26 = vld [vmem:[#allocation114_spill] sm:$0xff]  ;;  %v9216_v34 = vmax.f32 %v8901_v47, 0.0  ;;  %v21841_v47 = vld [vmem:[#allocation113_spill] sm:$0xff]  ;;  %v8911_v37 = vadd.f32 %v19296_v61, %v8558_v6  ;;  %v8568_v21 = vadd.f32 %v19314_v3, %v19337_v42 }
 0x64c   : > { %v19393_v13 = vpop.f32.mrf.mxu0  ;;  %8834 = vmatmul.mubr.bf16.gmra.mxu0 %v21689_v16  ;;  %v8552_v16 = vadd.f32 %v19282_v7, %v19337_v42  ;;  %v14010_v7 = vpack.c.bf16 %v9212_v8, %v9208_v53  ;;  %v9219_v45 = vmax.f32 %v8903_v43, 0.0  ;;  %v8913_v43 = vadd.f32 %v19300_v31, %v8560_v51 }
 0x64d   : > { %v19396_v56 = vpop.f32.mrf.mxu1  ;;  %9187 = vmatmul.mubr.bf16.gmra.mxu1 %v18719_v28  ;;  %11412 = vmatprep.mubr.bf16.mxu0 %v21838_v14  ;;  %v8536_v28 = vadd.f32 %v19246_v49, %v19359_v24  ;;  %v9224_v6 = vmax.f32 %v8911_v37, 0.0  ;;  %v21843_v37 = vld [vmem:[#allocation115_spill] sm:$0xff]  ;;  %v8921_v3 = vadd.f32 %v19316_v20, %v8568_v21  ;;  %v8570_v51 = vadd.f32 %v19318_v18, %v19359_v24 }
 0x64e   : > { %21837 = vst [vmem:[#allocation230_spill] sm:$0xff] %v19396_v56  ;;  %11701 = vmatprep.mubr.bf16.mxu1 %v14006_v5  ;;  %v19403_v41 = vpop.f32.mrf.mxu0  ;;  %v8905_v52 = vadd.f32 %v19284_v1, %v8552_v16  ;;  %v8562_v16 = vadd.f32 %v19302_v62, %v19337_v42  ;;  %v9227_v31 = vmax.f32 %v8913_v43, 0.0  ;;  %v8578_v18 = vadd.f32 %v19341_v35, %v19337_v42 }
 0x64f   : > { %v19405_v58 = vpop.f32.mrf.mxu1  ;;  %v8889_v49 = vadd.f32 %v19249_v10, %v8536_v28  ;;  %v8546_v28 = vadd.f32 %v19266_v63, %v19359_v24  ;;  %v9232_v21 = vmax.f32 %v8921_v3, 0.0  ;;  %v8923_v43 = vadd.f32 %v19320_v55, %v8570_v51  ;;  %v21845_v3 = vld [vmem:[#allocation117_spill] sm:$0xff] }
 0x650   : > { %v19411_v44 = vpop.f32.mrf.mxu0  ;;  %v9220_v10 = vmax.f32 %v8905_v52, 0.0  ;;  %v8915_v62 = vadd.f32 %v19304_v40, %v8562_v16  ;;  %v8572_v16 = vadd.f32 %v19322_v17, %v19337_v42  ;;  %v8931_v35 = vadd.f32 %v19343_v11, %v8578_v18 }
 0x651   : > { %v19413_v36 = vpop.f32.mrf.mxu1  ;;  %v9207_v29 = vmax.f32 %v8889_v49, 0.0  ;;  %v8899_v63 = vadd.f32 %v19269_v39, %v8546_v28  ;;  %v8556_v28 = vadd.f32 %v19286_v15, %v19359_v24  ;;  %v9235_v55 = vmax.f32 %v8923_v43, 0.0 }
 0x652   : > { %v19418_v5 = vpop.f32.mrf.mxu0  ;;  %v14014_v49 = vpack.c.bf16 %v9220_v10, %v9216_v34  ;;  %v9228_v39 = vmax.f32 %v8915_v62, 0.0  ;;  %v8925_v17 = vadd.f32 %v19324_v12, %v8572_v16  ;;  %v8582_v16 = vadd.f32 %v19352_v27, %v19337_v42 }
 0x653   : > { %v19420_v60 = vpop.f32.mrf.mxu1  ;;  %v8909_v15 = vadd.f32 %v19289_v4, %v8556_v28  ;;  %v8566_v28 = vadd.f32 %v19306_v30, %v19359_v24  ;;  %v8580_v51 = vadd.f32 %v19346_v25, %v19359_v24  ;;  %v9240_v18 = vmax.f32 %v8931_v35, 0.0  ;;  %v21849_v35 = vld [vmem:[#allocation119_spill] sm:$0xff] }
 0x654   : > { %v19424_v14 = vpop.f32.mrf.mxu0  ;;  %11413 = vmatmul.mubr.bf16.vlgmr.msra.gmra.mxu0 %v21839_v54  ;;  %v9236_v4 = vmax.f32 %v8925_v17, 0.0  ;;  %v8935_v27 = vadd.f32 %v19354_v46, %v8582_v16  ;;  %v8592_v16 = vadd.f32 %v19387_v59, %v19337_v42  ;;  %v8588_v25 = vadd.f32 %v19372_v38, %v19337_v42 }
 0x655   : > { %v19426_v56 = vpop.f32.mrf.mxu1  ;;  %11702 = vmatmul.mubr.bf16.vlgmr.msra.gmra.mxu1 %v14005_v0  ;;  %11420 = vmatprep.mubr.bf16.mxu0 %v21840_v26  ;;  %v14009_v0 = vpack.c.bf16 %v9211_v57, %v9207_v29  ;;  %v21842_v57 = vld [vmem:[#allocation116_spill] sm:$0xff]  ;;  %v9215_v29 = vmax.f32 %v8899_v63, 0.0  ;;  %v14018_v63 = vpack.c.bf16 %v9228_v39, %v9224_v6  ;;  %v8919_v30 = vadd.f32 %v19309_v50, %v8566_v28 }
 0x656   : > { %11709 = vmatprep.mubr.bf16.mxu1 %v14010_v7  ;;  %v19433_v1 = vpop.f32.mrf.mxu0  ;;  %v9244_v50 = vmax.f32 %v8935_v27, 0.0  ;;  %v8576_v28 = vadd.f32 %v19326_v9, %v19359_v24  ;;  %v8933_v43 = vadd.f32 %v19348_v32, %v8580_v51  ;;  %v8945_v59 = vadd.f32 %v19389_v19, %v8592_v16 }
 0x657   : > { %v19435_v8 = vpop.f32.mrf.mxu1  ;;  %v8941_v38 = vadd.f32 %v19374_v23, %v8588_v25 }
 0x658   : > { %v19441_v48 = vpop.f32.mrf.mxu0  ;;  %v8929_v9 = vadd.f32 %v19329_v33, %v8576_v28  ;;  %v9243_v32 = vmax.f32 %v8933_v43, 0.0  ;;  %v9252_v33 = vmax.f32 %v8945_v59, 0.0 }
 0x659   : > { %v19443_v53 = vpop.f32.mrf.mxu1 }
 0x65a   : > { %v19448_v7 = vpop.f32.mrf.mxu0  ;;  %v9239_v16 = vmax.f32 %v8929_v9, 0.0 }
 0x65b   : > { %v19450_v52 = vpop.f32.mrf.mxu1 }
 0x65c   : > { %v19454_v54 = vpop.f32.mrf.mxu0  ;;  %11421 = vmatmul.mubr.bf16.gmra.mxu0 %v21841_v47  ;;  %v14025_v25 = vpack.c.bf16 %v9243_v32, %v9239_v16  ;;  %v21855_v32 = vld [vmem:[#allocation123_spill] sm:$0xff]  ;;  %v8600_v16 = vadd.f32 %v19411_v44, %v19359_v24  ;;  %v8608_v44 = vadd.f32 %v19433_v1, %v19337_v42 }
 0x65d   : > { %v19456_v26 = vpop.f32.mrf.mxu1  ;;  %11710 = vmatmul.mubr.bf16.gmra.mxu1 %v14009_v0  ;;  %11428 = vmatprep.mubr.bf16.mxu0 %v21842_v57  ;;  %v14013_v0 = vpack.c.bf16 %v9219_v45, %v9215_v29  ;;  %v21844_v45 = vld [vmem:[#allocation118_spill] sm:$0xff]  ;;  %v9223_v29 = vmax.f32 %v8909_v15, 0.0  ;;  %v14022_v15 = vpack.c.bf16 %v9236_v4, %v9232_v21 }
 0x65e   : > { %11717 = vmatprep.mubr.bf16.mxu1 %v14014_v49  ;;  %v19463_v40 = vpop.f32.mrf.mxu0  ;;  %v8961_v1 = vadd.f32 %v19435_v8, %v8608_v44 }
 0x65f   : > { %v19465_v10 = vpop.f32.mrf.mxu1 }
 0x660   : > { %v19471_v61 = vpop.f32.mrf.mxu0 }
 0x661   : > { %v19473_v34 = vpop.f32.mrf.mxu1 }
 0x662   : > { %v19478_v49 = vpop.f32.mrf.mxu0 }
 0x663   : > { %v19480_v62 = vpop.f32.mrf.mxu1 }
 0x664   : > { %v19484_v47 = vpop.f32.mrf.mxu0  ;;  %11429 = vmatmul.mubr.bf16.gmra.mxu0 %v21843_v37 }
 0x665   : > { %v19486_v57 = vpop.f32.mrf.mxu1  ;;  %11718 = vmatmul.mubr.bf16.gmra.mxu1 %v14013_v0  ;;  %11436 = vmatprep.mubr.bf16.mxu0 %v21844_v45  ;;  %v14017_v0 = vpack.c.bf16 %v9227_v31, %v9223_v29  ;;  %v21846_v31 = vld [vmem:[#allocation120_spill] sm:$0xff]  ;;  %v9231_v29 = vmax.f32 %v8919_v30, 0.0  ;;  %v14026_v30 = vpack.c.bf16 %v9244_v50, %v9240_v18  ;;  %v8602_v50 = vadd.f32 %v19418_v5, %v19337_v42 }
 0x666   : > { %11725 = vmatprep.mubr.bf16.mxu1 %v14018_v63  ;;  %v19493_v12 = vpop.f32.mrf.mxu0  ;;  %v9248_v18 = vmax.f32 %v8941_v38, 0.0  ;;  %v21854_v38 = vld [vmem:[#allocation121_spill] sm:$0xff] }
 0x667   : > { %v19495_v39 = vpop.f32.mrf.mxu1  ;;  %v8955_v5 = vadd.f32 %v19420_v60, %v8602_v50 }
 0x668   : > { %v19501_v20 = vpop.f32.mrf.mxu0  ;;  %v14030_v9 = vpack.c.bf16 %v9252_v33, %v9248_v18 }
 0x669   : > { %v19503_v6 = vpop.f32.mrf.mxu1  ;;  %v9260_v50 = vmax.f32 %v8955_v5, 0.0 }
 0x66a   : > { %v19508_v63 = vpop.f32.mrf.mxu0 }
 0x66b   : > { %v19510_v17 = vpop.f32.mrf.mxu1 }
 0x66c   : > { %v19514_v37 = vpop.f32.mrf.mxu0  ;;  %11437 = vmatmul.mubr.bf16.gmra.mxu0 %v21845_v3 }
 0x66d   : > { %v19516_v45 = vpop.f32.mrf.mxu1  ;;  %11726 = vmatmul.mubr.bf16.gmra.mxu1 %v14017_v0  ;;  %11444 = vmatprep.mubr.bf16.mxu0 %v21846_v31  ;;  %v14021_v0 = vpack.c.bf16 %v9235_v55, %v9231_v29  ;;  %v8590_v55 = vadd.f32 %v19380_v22, %v19359_v24  ;;  %v21850_v29 = vld [vmem:[#allocation223_spill] sm:$0xff]  ;;  %v8598_v22 = vadd.f32 %v19403_v41, %v19337_v42 }
 0x66e   : > { %11733 = vmatprep.mubr.bf16.mxu1 %v14022_v15  ;;  %v19523_v46 = vpop.f32.mrf.mxu0  ;;  %v8586_v28 = vadd.f32 %v21850_v29, %v19359_v24 }
 0x66f   : > { %v19525_v4 = vpop.f32.mrf.mxu1  ;;  %v8951_v41 = vadd.f32 %v19405_v58, %v8598_v22 }
 0x670   : > { %v19531_v11 = vpop.f32.mrf.mxu0 }
 0x671   : > { %v19533_v21 = vpop.f32.mrf.mxu1 }
 0x672   : > { %v19538_v15 = vpop.f32.mrf.mxu0 }
 0x673   : > { %v19540_v27 = vpop.f32.mrf.mxu1 }
 0x674   : > { %v19544_v3 = vpop.f32.mrf.mxu0  ;;  %11445 = vmatmul.mubr.bf16.gmra.mxu0 %v21849_v35  ;;  %v21852_v35 = vld [vmem:[#allocation224_spill] sm:$0xff] }
 0x675   : > { %21847 = vst [vmem:[#allocation231_spill] sm:$0xff] %v19544_v3  ;;  %v19546_v31 = vpop.f32.mrf.mxu1  ;;  %11734 = vmatmul.mubr.bf16.gmra.mxu1 %v14021_v0  ;;  %11452 = vmatprep.mubr.bf16.mxu0 %v18795_v2  ;;  %v21851_v0 = vld [vmem:[#allocation226_spill] sm:$0xff]  ;;  %v8939_v29 = vadd.f32 %v21852_v35, %v8586_v28  ;;  %v8612_v28 = vadd.f32 %v19448_v7, %v19337_v42 }
 0x676   : > { %21848 = vst [vmem:[#allocation233_spill] sm:$0xff] %v19546_v31  ;;  %11741 = vmatprep.mubr.bf16.mxu1 %v14026_v30  ;;  %v19553_v19 = vpop.f32.mrf.mxu0  ;;  %v8943_v43 = vadd.f32 %v21851_v0, %v8590_v55  ;;  %v9256_v0 = vmax.f32 %v8951_v41, 0.0  ;;  %v21857_v41 = vld [vmem:[#allocation122_spill] sm:$0xff] }
 0x677   : > { %v19555_v51 = vpop.f32.mrf.mxu1  ;;  %v9247_v18 = vmax.f32 %v8939_v29, 0.0  ;;  %v8965_v7 = vadd.f32 %v19450_v52, %v8612_v28 }
 0x678   : > { %v19561_v23 = vpop.f32.mrf.mxu0  ;;  %v9251_v55 = vmax.f32 %v8943_v43, 0.0  ;;  %v14034_v29 = vpack.c.bf16 %v9260_v50, %v9256_v0  ;;  %v8606_v0 = vadd.f32 %v19424_v14, %v19359_v24 }
 0x679   : > { %v19563_v2 = vpop.f32.mrf.mxu1  ;;  %v9268_v28 = vmax.f32 %v8965_v7, 0.0 }
 0x67a   : > { %v19568_v30 = vpop.f32.mrf.mxu0  ;;  %v14029_v43 = vpack.c.bf16 %v9251_v55, %v9247_v18  ;;  %v21858_v55 = vld [vmem:[#allocation125_spill] sm:$0xff]  ;;  %v8622_v18 = vadd.f32 %v19478_v49, %v19337_v42  ;;  %v8959_v14 = vadd.f32 %v19426_v56, %v8606_v0  ;;  %v8616_v0 = vadd.f32 %v19454_v54, %v19359_v24 }
 0x67b   : > { %v19570_v59 = vpop.f32.mrf.mxu1 }
 0x67c   : > { %v19574_v31 = vpop.f32.mrf.mxu0  ;;  %11453 = vmatmul.mubr.bf16.gmra.mxu0 %v21854_v38  ;;  %v21856_v38 = vld [vmem:[#allocation230_spill] sm:$0xff]  ;;  %v8975_v49 = vadd.f32 %v19480_v62, %v8622_v18  ;;  %v8632_v18 = vadd.f32 %v19508_v63, %v19337_v42  ;;  %v8969_v54 = vadd.f32 %v19456_v26, %v8616_v0  ;;  %v8626_v0 = vadd.f32 %v19484_v47, %v19359_v24 }
 0x67d   : > { %v19576_v3 = vpop.f32.mrf.mxu1  ;;  %11742 = vmatmul.mubr.bf16.gmra.mxu1 %v14025_v25  ;;  %11460 = vmatprep.mubr.bf16.mxu0 %v21855_v32  ;;  %v8596_v25 = vadd.f32 %v19393_v13, %v19359_v24 }
 0x67e   : > { %21853 = vst [vmem:[#allocation236_spill] sm:$0xff] %v19576_v3  ;;  %11749 = vmatprep.mubr.bf16.mxu1 %v14030_v9  ;;  %v19583_v60 = vpop.f32.mrf.mxu0  ;;  %v8953_v9 = vadd.f32 %v19413_v36, %v8600_v16  ;;  %v8610_v16 = vadd.f32 %v19441_v48, %v19359_v24  ;;  %v8618_v48 = vadd.f32 %v19463_v40, %v19337_v42  ;;  %v9276_v56 = vmax.f32 %v8975_v49, 0.0 }
 0x67f   : > { %v19585_v33 = vpop.f32.mrf.mxu1  ;;  %v8949_v13 = vadd.f32 %v21856_v38, %v8596_v25  ;;  %v8985_v63 = vadd.f32 %v19510_v17, %v8632_v18  ;;  %v8642_v18 = vadd.f32 %v19538_v15, %v19337_v42  ;;  %v8979_v47 = vadd.f32 %v19486_v57, %v8626_v0 }
 0x680   : > { %v19591_v58 = vpop.f32.mrf.mxu0  ;;  %v9259_v36 = vmax.f32 %v8953_v9, 0.0  ;;  %v8971_v40 = vadd.f32 %v19465_v10, %v8618_v48  ;;  %v8636_v0 = vadd.f32 %v19514_v37, %v19359_v24 }
 0x681   : > { %v19593_v22 = vpop.f32.mrf.mxu1  ;;  %v9255_v25 = vmax.f32 %v8949_v13, 0.0  ;;  %v9284_v26 = vmax.f32 %v8985_v63, 0.0  ;;  %v8995_v15 = vadd.f32 %v19540_v27, %v8642_v18  ;;  %v8652_v18 = vadd.f32 %v19568_v30, %v19337_v42 }
 0x682   : > { %v19598_v35 = vpop.f32.mrf.mxu0  ;;  %v9272_v48 = vmax.f32 %v8971_v40, 0.0  ;;  %v21861_v40 = vld [vmem:[#allocation126_spill] sm:$0xff]  ;;  %v8989_v37 = vadd.f32 %v19516_v45, %v8636_v0  ;;  %v21869_v0 = vld [vmem:[#allocation231_spill] sm:$0xff] }
 0x683   : > { %v19600_v5 = vpop.f32.mrf.mxu1  ;;  %v14033_v9 = vpack.c.bf16 %v9259_v36, %v9255_v25  ;;  %v21860_v36 = vld [vmem:[#allocation127_spill] sm:$0xff]  ;;  %v9263_v25 = vmax.f32 %v8959_v14, 0.0  ;;  %v9292_v57 = vmax.f32 %v8995_v15, 0.0  ;;  %v9005_v30 = vadd.f32 %v19570_v59, %v8652_v18 }
 0x684   : > { %v19604_v32 = vpop.f32.mrf.mxu0  ;;  %11461 = vmatmul.mubr.bf16.gmra.mxu0 %v21857_v41  ;;  %v14042_v14 = vpack.c.bf16 %v9276_v56, %v9272_v48  ;;  %v8662_v18 = vadd.f32 %v19598_v35, %v19337_v42 }
 0x685   : > { %v19606_v3 = vpop.f32.mrf.mxu1  ;;  %11750 = vmatmul.mubr.bf16.gmra.mxu1 %v14029_v43  ;;  %11468 = vmatprep.mubr.bf16.mxu0 %v21858_v55  ;;  %v9264_v43 = vmax.f32 %v8961_v1, 0.0  ;;  %v21859_v1 = vld [vmem:[#allocation124_spill] sm:$0xff]  ;;  %v9300_v45 = vmax.f32 %v9005_v30, 0.0 }
 0x686   : > { %11757 = vmatprep.mubr.bf16.mxu1 %v14034_v29  ;;  %v19613_v52 = vpop.f32.mrf.mxu0  ;;  %v8963_v29 = vadd.f32 %v19443_v53, %v8610_v16  ;;  %v8620_v16 = vadd.f32 %v19471_v61, %v19359_v24  ;;  %v8628_v61 = vadd.f32 %v19493_v12, %v19337_v42  ;;  %v9015_v35 = vadd.f32 %v19600_v5, %v8662_v18 }
 0x687   : > { %v19615_v50 = vpop.f32.mrf.mxu1  ;;  %v14038_v13 = vpack.c.bf16 %v9268_v28, %v9264_v43 }
 0x688   : > { %v19621_v8 = vpop.f32.mrf.mxu0  ;;  %v9267_v53 = vmax.f32 %v8963_v29, 0.0  ;;  %v8973_v29 = vadd.f32 %v19473_v34, %v8620_v16  ;;  %v8981_v12 = vadd.f32 %v19495_v39, %v8628_v61  ;;  %v8630_v16 = vadd.f32 %v19501_v20, %v19359_v24 }
 0x689   : > { %v19623_v44 = vpop.f32.mrf.mxu1  ;;  %v8638_v20 = vadd.f32 %v19523_v46, %v19337_v42  ;;  %v9308_v18 = vmax.f32 %v9015_v35, 0.0 }
 0x68a   : > { %v19628_v38 = vpop.f32.mrf.mxu0  ;;  %v9275_v34 = vmax.f32 %v8973_v29, 0.0  ;;  %v9280_v61 = vmax.f32 %v8981_v12, 0.0  ;;  %v8983_v29 = vadd.f32 %v19503_v6, %v8630_v16  ;;  %v21863_v12 = vld [vmem:[#allocation128_spill] sm:$0xff]  ;;  %v8640_v16 = vadd.f32 %v19531_v11, %v19359_v24 }
 0x68b   : > { %v19630_v7 = vpop.f32.mrf.mxu1  ;;  %v8991_v46 = vadd.f32 %v19525_v4, %v8638_v20  ;;  %v8648_v11 = vadd.f32 %v19553_v19, %v19337_v42 }
 0x68c   : > { %v19634_v41 = vpop.f32.mrf.mxu0  ;;  %11469 = vmatmul.mubr.bf16.gmra.mxu0 %v21859_v1  ;;  %v9283_v6 = vmax.f32 %v8983_v29, 0.0  ;;  %v8993_v29 = vadd.f32 %v19533_v21, %v8640_v16  ;;  %v8650_v16 = vadd.f32 %v19561_v23, %v19359_v24  ;;  %v8658_v23 = vadd.f32 %v19583_v60, %v19337_v42 }
 0x68d   : > { %v19636_v55 = vpop.f32.mrf.mxu1  ;;  %11758 = vmatmul.mubr.bf16.gmra.mxu1 %v14033_v9  ;;  %11476 = vmatprep.mubr.bf16.mxu0 %v21860_v36  ;;  %v14037_v9 = vpack.c.bf16 %v9267_v53, %v9263_v25  ;;  %v21862_v53 = vld [vmem:[#allocation129_spill] sm:$0xff]  ;;  %v9271_v25 = vmax.f32 %v8969_v54, 0.0  ;;  %v14046_v54 = vpack.c.bf16 %v9284_v26, %v9280_v61  ;;  %v9288_v20 = vmax.f32 %v8991_v46, 0.0  ;;  %v21867_v46 = vld [vmem:[#allocation130_spill] sm:$0xff] }
 0x68e   : > { %11765 = vmatprep.mubr.bf16.mxu1 %v14038_v13  ;;  %v19643_v62 = vpop.f32.mrf.mxu0  ;;  %v9001_v19 = vadd.f32 %v19555_v51, %v8648_v11  ;;  %v9291_v21 = vmax.f32 %v8993_v29, 0.0  ;;  %v9011_v60 = vadd.f32 %v19585_v33, %v8658_v23 }
 0x68f   : > { %v19645_v28 = vpop.f32.mrf.mxu1 }
 0x690   : > { %v19651_v10 = vpop.f32.mrf.mxu0 }
 0x691   : > { %v19653_v43 = vpop.f32.mrf.mxu1 }
 0x692   : > { %v19658_v13 = vpop.f32.mrf.mxu0 }
 0x693   : > { %v19660_v49 = vpop.f32.mrf.mxu1 }
 0x694   : > { %v19664_v1 = vpop.f32.mrf.mxu0  ;;  %11477 = vmatmul.mubr.bf16.gmra.mxu0 %v21861_v40 }
 0x695   : > { %v19666_v36 = vpop.f32.mrf.mxu1  ;;  %11766 = vmatmul.mubr.bf16.gmra.mxu1 %v14037_v9  ;;  %11484 = vmatprep.mubr.bf16.mxu0 %v21862_v53  ;;  %v14041_v9 = vpack.c.bf16 %v9275_v34, %v9271_v25  ;;  %v21864_v34 = vld [vmem:[#allocation131_spill] sm:$0xff]  ;;  %v9279_v25 = vmax.f32 %v8979_v47, 0.0  ;;  %v14050_v47 = vpack.c.bf16 %v9292_v57, %v9288_v20  ;;  %v8646_v20 = vadd.f32 %v21869_v0, %v19359_v24 }
 0x696   : > { %11773 = vmatprep.mubr.bf16.mxu1 %v14042_v14  ;;  %v19673_v17 = vpop.f32.mrf.mxu0 }
 0x697   : > { %v19675_v56 = vpop.f32.mrf.mxu1 }
 0x698   : > { %v19681_v39 = vpop.f32.mrf.mxu0 }
 0x699   : > { %v19683_v48 = vpop.f32.mrf.mxu1 }
 0x69a   : > { %v19688_v14 = vpop.f32.mrf.mxu0 }
 0x69b   : > { %v19690_v63 = vpop.f32.mrf.mxu1 }
 0x69c   : > { %v19694_v40 = vpop.f32.mrf.mxu0  ;;  %11485 = vmatmul.mubr.bf16.gmra.mxu0 %v21863_v12 }
 0x69d   : > { %v19696_v53 = vpop.f32.mrf.mxu1  ;;  %11774 = vmatmul.mubr.bf16.gmra.mxu1 %v14041_v9  ;;  %11492 = vmatprep.mubr.bf16.mxu0 %v21864_v34  ;;  %v14045_v9 = vpack.c.bf16 %v9283_v6, %v9279_v25  ;;  %v21868_v6 = vld [vmem:[#allocation133_spill] sm:$0xff]  ;;  %v9287_v25 = vmax.f32 %v8989_v37, 0.0 }
 0x69e   : > { %11781 = vmatprep.mubr.bf16.mxu1 %v14046_v54  ;;  %v19703_v27 = vpop.f32.mrf.mxu0 }
 0x69f   : > { %v19705_v26 = vpop.f32.mrf.mxu1  ;;  %v14049_v29 = vpack.c.bf16 %v9291_v21, %v9287_v25  ;;  %v21873_v21 = vld [vmem:[#allocation135_spill] sm:$0xff]  ;;  %v8672_v25 = vadd.f32 %v19628_v38, %v19337_v42 }
 0x6a0   : > { %v19711_v4 = vpop.f32.mrf.mxu0 }
 0x6a1   : > { %v19713_v61 = vpop.f32.mrf.mxu1  ;;  %v9025_v38 = vadd.f32 %v19630_v7, %v8672_v25 }
 0x6a2   : > { %v19718_v54 = vpop.f32.mrf.mxu0 }
 0x6a3   : > { %v19720_v15 = vpop.f32.mrf.mxu1  ;;  %v9316_v25 = vmax.f32 %v9025_v38, 0.0 }
 0x6a4   : > { %v19724_v12 = vpop.f32.mrf.mxu0  ;;  %11493 = vmatmul.mubr.bf16.gmra.mxu0 %v21867_v46 }
 0x6a5   : > { %21865 = vst [vmem:[#allocation237_spill] sm:$0xff] %v19724_v12  ;;  %v19726_v34 = vpop.f32.mrf.mxu1  ;;  %11782 = vmatmul.mubr.bf16.gmra.mxu1 %v14045_v9  ;;  %11500 = vmatprep.mubr.bf16.mxu0 %v21868_v6  ;;  %v9296_v9 = vmax.f32 %v9001_v19, 0.0  ;;  %v21870_v6 = vld [vmem:[#allocation233_spill] sm:$0xff]  ;;  %v21872_v19 = vld [vmem:[#allocation132_spill] sm:$0xff] }
 0x6a6   : > { %21866 = vst [vmem:[#allocation239_spill] sm:$0xff] %v19726_v34  ;;  %11789 = vmatprep.mubr.bf16.mxu1 %v14050_v47  ;;  %v19733_v59 = vpop.f32.mrf.mxu0  ;;  %v9003_v47 = vadd.f32 %v19563_v2, %v8650_v16  ;;  %v8999_v0 = vadd.f32 %v21870_v6, %v8646_v20  ;;  %v8660_v16 = vadd.f32 %v19591_v58, %v19359_v24 }
 0x6a7   : > { %v19735_v57 = vpop.f32.mrf.mxu1  ;;  %v14054_v37 = vpack.c.bf16 %v9300_v45, %v9296_v9  ;;  %v8656_v9 = vadd.f32 %v19574_v31, %v19359_v24  ;;  %v8668_v58 = vadd.f32 %v19613_v52, %v19337_v42 }
 0x6a8   : > { %v19741_v51 = vpop.f32.mrf.mxu0  ;;  %v9299_v2 = vmax.f32 %v9003_v47, 0.0  ;;  %v9295_v20 = vmax.f32 %v8999_v0, 0.0 }
 0x6a9   : > { %v19743_v11 = vpop.f32.mrf.mxu1  ;;  %v9021_v52 = vadd.f32 %v19615_v50, %v8668_v58 }
 0x6aa   : > { %v19748_v46 = vpop.f32.mrf.mxu0  ;;  %v14053_v47 = vpack.c.bf16 %v9299_v2, %v9295_v20  ;;  %v21876_v2 = vld [vmem:[#allocation137_spill] sm:$0xff]  ;;  %v8682_v20 = vadd.f32 %v19658_v13, %v19337_v42 }
 0x6ab   : > { %v19750_v30 = vpop.f32.mrf.mxu1 }
 0x6ac   : > { %v19754_v34 = vpop.f32.mrf.mxu0  ;;  %11501 = vmatmul.mubr.bf16.gmra.mxu0 %v21872_v19  ;;  %v21874_v19 = vld [vmem:[#allocation236_spill] sm:$0xff]  ;;  %v9035_v13 = vadd.f32 %v19660_v49, %v8682_v20  ;;  %v8692_v20 = vadd.f32 %v19688_v14, %v19337_v42 }
 0x6ad   : > { %v19756_v12 = vpop.f32.mrf.mxu1  ;;  %11790 = vmatmul.mubr.bf16.gmra.mxu1 %v14049_v29  ;;  %11508 = vmatprep.mubr.bf16.mxu0 %v21873_v21  ;;  %v9304_v29 = vmax.f32 %v9011_v60, 0.0  ;;  %v9009_v31 = vadd.f32 %v21874_v19, %v8656_v9  ;;  %v21875_v60 = vld [vmem:[#allocation134_spill] sm:$0xff] }
 0x6ae   : > { %21871 = vst [vmem:[#allocation243_spill] sm:$0xff] %v19756_v12  ;;  %11797 = vmatprep.mubr.bf16.mxu1 %v14054_v37  ;;  %v19763_v5 = vpop.f32.mrf.mxu0  ;;  %v9013_v37 = vadd.f32 %v19593_v22, %v8660_v16  ;;  %v8670_v16 = vadd.f32 %v19621_v8, %v19359_v24  ;;  %v8678_v8 = vadd.f32 %v19643_v62, %v19337_v42 }
 0x6af   : > { %v19765_v45 = vpop.f32.mrf.mxu1  ;;  %v14058_v0 = vpack.c.bf16 %v9308_v18, %v9304_v29  ;;  %v9303_v9 = vmax.f32 %v9009_v31, 0.0  ;;  %v8666_v29 = vadd.f32 %v19604_v32, %v19359_v24  ;;  %v9045_v14 = vadd.f32 %v19690_v63, %v8692_v20 }
 0x6b0   : > { %v19771_v33 = vpop.f32.mrf.mxu0  ;;  %v9307_v22 = vmax.f32 %v9013_v37, 0.0  ;;  %v9031_v62 = vadd.f32 %v19645_v28, %v8678_v8  ;;  %v8702_v20 = vadd.f32 %v19718_v54, %v19337_v42 }
 0x6b1   : > { %v19773_v23 = vpop.f32.mrf.mxu1  ;;  %v9019_v32 = vadd.f32 %v19606_v3, %v8666_v29  ;;  %v9324_v3 = vmax.f32 %v9035_v13, 0.0  ;;  %v8676_v29 = vadd.f32 %v19634_v41, %v19359_v24 }
 0x6b2   : > { %v19778_v6 = vpop.f32.mrf.mxu0  ;;  %v14057_v37 = vpack.c.bf16 %v9307_v22, %v9303_v9  ;;  %v21878_v22 = vld [vmem:[#allocation142_spill] sm:$0xff]  ;;  %v9320_v8 = vmax.f32 %v9031_v62, 0.0  ;;  %v21879_v62 = vld [vmem:[#allocation141_spill] sm:$0xff]  ;;  %v9055_v54 = vadd.f32 %v19720_v15, %v8702_v20  ;;  %v8712_v20 = vadd.f32 %v19748_v46, %v19337_v42 }
 0x6b3   : > { %v19780_v35 = vpop.f32.mrf.mxu1  ;;  %v9311_v9 = vmax.f32 %v9019_v32, 0.0  ;;  %v9029_v41 = vadd.f32 %v19636_v55, %v8676_v29  ;;  %v9332_v55 = vmax.f32 %v9045_v14, 0.0  ;;  %v8686_v29 = vadd.f32 %v19664_v1, %v19359_v24 }
 0x6b4   : > { %v19784_v21 = vpop.f32.mrf.mxu0  ;;  %11509 = vmatmul.mubr.bf16.gmra.mxu0 %v21875_v60  ;;  %v14066_v32 = vpack.c.bf16 %v9324_v3, %v9320_v8  ;;  %v9065_v46 = vadd.f32 %v19750_v30, %v8712_v20  ;;  %v8722_v20 = vadd.f32 %v19778_v6, %v19337_v42 }
 0x6b5   : > { %v19786_v12 = vpop.f32.mrf.mxu1  ;;  %11798 = vmatmul.mubr.bf16.gmra.mxu1 %v14053_v47  ;;  %11516 = vmatprep.mubr.bf16.mxu0 %v21876_v2  ;;  %v9312_v47 = vmax.f32 %v9021_v52, 0.0  ;;  %v21877_v52 = vld [vmem:[#allocation136_spill] sm:$0xff]  ;;  %v9039_v1 = vadd.f32 %v19666_v36, %v8686_v29  ;;  %v9340_v36 = vmax.f32 %v9055_v54, 0.0  ;;  %v8696_v29 = vadd.f32 %v19694_v40, %v19359_v24 }
 0x6b6   : > { %11805 = vmatprep.mubr.bf16.mxu1 %v14058_v0  ;;  %v19793_v7 = vpop.f32.mrf.mxu0  ;;  %v9023_v0 = vadd.f32 %v19623_v44, %v8670_v16  ;;  %v8680_v16 = vadd.f32 %v19651_v10, %v19359_v24  ;;  %v8688_v10 = vadd.f32 %v19673_v17, %v19337_v42  ;;  %v9075_v6 = vadd.f32 %v19780_v35, %v8722_v20 }
 0x6b7   : > { %v19795_v18 = vpop.f32.mrf.mxu1  ;;  %v14062_v31 = vpack.c.bf16 %v9316_v25, %v9312_v47  ;;  %v9049_v40 = vadd.f32 %v19696_v53, %v8696_v29  ;;  %v9348_v53 = vmax.f32 %v9065_v46, 0.0  ;;  %v21887_v29 = vld [vmem:[#allocation237_spill] sm:$0xff] }
 0x6b8   : > { %v19801_v50 = vpop.f32.mrf.mxu0  ;;  %v9315_v44 = vmax.f32 %v9023_v0, 0.0  ;;  %v9033_v0 = vadd.f32 %v19653_v43, %v8680_v16  ;;  %v9041_v17 = vadd.f32 %v19675_v56, %v8688_v10  ;;  %v8690_v16 = vadd.f32 %v19681_v39, %v19359_v24 }
 0x6b9   : > { %v19803_v58 = vpop.f32.mrf.mxu1  ;;  %v8698_v39 = vadd.f32 %v19703_v27, %v19337_v42  ;;  %v9356_v20 = vmax.f32 %v9075_v6, 0.0 }
 0x6ba   : > { %v19808_v19 = vpop.f32.mrf.mxu0  ;;  %v9323_v43 = vmax.f32 %v9033_v0, 0.0  ;;  %v9328_v10 = vmax.f32 %v9041_v17, 0.0  ;;  %v9043_v0 = vadd.f32 %v19683_v48, %v8690_v16  ;;  %v21881_v17 = vld [vmem:[#allocation144_spill] sm:$0xff]  ;;  %v8700_v16 = vadd.f32 %v19711_v4, %v19359_v24 }
 0x6bb   : > { %v19810_v38 = vpop.f32.mrf.mxu1  ;;  %v9051_v27 = vadd.f32 %v19705_v26, %v8698_v39  ;;  %v8708_v4 = vadd.f32 %v19733_v59, %v19337_v42 }
 0x6bc   : > { %v19814_v60 = vpop.f32.mrf.mxu0  ;;  %11517 = vmatmul.mubr.bf16.gmra.mxu0 %v21877_v52  ;;  %v9331_v48 = vmax.f32 %v9043_v0, 0.0  ;;  %v9053_v0 = vadd.f32 %v19713_v61, %v8700_v16  ;;  %v8710_v16 = vadd.f32 %v19741_v51, %v19359_v24  ;;  %v8718_v51 = vadd.f32 %v19763_v5, %v19337_v42 }
 0x6bd   : > { %v19816_v2 = vpop.f32.mrf.mxu1  ;;  %11806 = vmatmul.mubr.bf16.gmra.mxu1 %v14057_v37  ;;  %11524 = vmatprep.mubr.bf16.mxu0 %v21878_v22  ;;  %v14061_v37 = vpack.c.bf16 %v9315_v44, %v9311_v9  ;;  %v21880_v44 = vld [vmem:[#allocation148_spill] sm:$0xff]  ;;  %v9319_v9 = vmax.f32 %v9029_v41, 0.0  ;;  %v14070_v41 = vpack.c.bf16 %v9332_v55, %v9328_v10  ;;  %v9336_v39 = vmax.f32 %v9051_v27, 0.0  ;;  %v21885_v27 = vld [vmem:[#allocation149_spill] sm:$0xff] }
 0x6be   : > { %11813 = vmatprep.mubr.bf16.mxu1 %v14062_v31  ;;  %v19823_v49 = vpop.f32.mrf.mxu0  ;;  %v9061_v59 = vadd.f32 %v19735_v57, %v8708_v4  ;;  %v9339_v61 = vmax.f32 %v9053_v0, 0.0  ;;  %v9071_v5 = vadd.f32 %v19765_v45, %v8718_v51 }
 0x6bf   : > { %v19825_v25 = vpop.f32.mrf.mxu1 }
 0x6c0   : > { %v19831_v28 = vpop.f32.mrf.mxu0 }
 0x6c1   : > { %v19833_v47 = vpop.f32.mrf.mxu1 }
 0x6c2   : > { %v19838_v31 = vpop.f32.mrf.mxu0 }
 0x6c3   : > { %v19840_v13 = vpop.f32.mrf.mxu1 }
 0x6c4   : > { %v19844_v52 = vpop.f32.mrf.mxu0  ;;  %11525 = vmatmul.mubr.bf16.gmra.mxu0 %v21879_v62 }
 0x6c5   : > { %v19846_v22 = vpop.f32.mrf.mxu1  ;;  %11814 = vmatmul.mubr.bf16.gmra.mxu1 %v14061_v37  ;;  %11532 = vmatprep.mubr.bf16.mxu0 %v21880_v44  ;;  %v14065_v37 = vpack.c.bf16 %v9323_v43, %v9319_v9  ;;  %v21882_v43 = vld [vmem:[#allocation151_spill] sm:$0xff]  ;;  %v9327_v9 = vmax.f32 %v9039_v1, 0.0  ;;  %v14074_v1 = vpack.c.bf16 %v9340_v36, %v9336_v39  ;;  %v8706_v39 = vadd.f32 %v21887_v29, %v19359_v24 }
 0x6c6   : > { %11821 = vmatprep.mubr.bf16.mxu1 %v14066_v32  ;;  %v19853_v63 = vpop.f32.mrf.mxu0 }
 0x6c7   : > { %v19855_v3 = vpop.f32.mrf.mxu1 }
 0x6c8   : > { %v19861_v56 = vpop.f32.mrf.mxu0 }
 0x6c9   : > { %v19863_v8 = vpop.f32.mrf.mxu1 }
 0x6ca   : > { %v19868_v32 = vpop.f32.mrf.mxu0 }
 0x6cb   : > { %v19870_v14 = vpop.f32.mrf.mxu1 }
 0x6cc   : > { %v19874_v62 = vpop.f32.mrf.mxu0  ;;  %11533 = vmatmul.mubr.bf16.gmra.mxu0 %v21881_v17 }
 0x6cd   : > { %v19876_v44 = vpop.f32.mrf.mxu1  ;;  %11822 = vmatmul.mubr.bf16.gmra.mxu1 %v14065_v37  ;;  %11540 = vmatprep.mubr.bf16.mxu0 %v21882_v43  ;;  %v14069_v37 = vpack.c.bf16 %v9331_v48, %v9327_v9  ;;  %v21886_v48 = vld [vmem:[#allocation156_spill] sm:$0xff]  ;;  %v9335_v9 = vmax.f32 %v9049_v40, 0.0 }
 0x6ce   : > { %11829 = vmatprep.mubr.bf16.mxu1 %v14070_v41  ;;  %v19883_v15 = vpop.f32.mrf.mxu0 }
 0x6cf   : > { %v19885_v55 = vpop.f32.mrf.mxu1  ;;  %v14073_v0 = vpack.c.bf16 %v9339_v61, %v9335_v9  ;;  %v21891_v61 = vld [vmem:[#allocation161_spill] sm:$0xff]  ;;  %v8732_v9 = vadd.f32 %v19808_v19, %v19337_v42 }
 0x6d0   : > { %v19891_v26 = vpop.f32.mrf.mxu0 }
 0x6d1   : > { %v19893_v10 = vpop.f32.mrf.mxu1  ;;  %v9085_v19 = vadd.f32 %v19810_v38, %v8732_v9 }
 0x6d2   : > { %v19898_v41 = vpop.f32.mrf.mxu0 }
 0x6d3   : > { %v19900_v54 = vpop.f32.mrf.mxu1  ;;  %v9364_v9 = vmax.f32 %v9085_v19, 0.0 }
 0x6d4   : > { %v19904_v17 = vpop.f32.mrf.mxu0  ;;  %11541 = vmatmul.mubr.bf16.gmra.mxu0 %v21885_v27 }
 0x6d5   : > { %21883 = vst [vmem:[#allocation244_spill] sm:$0xff] %v19904_v17  ;;  %v19906_v43 = vpop.f32.mrf.mxu1  ;;  %11830 = vmatmul.mubr.bf16.gmra.mxu1 %v14069_v37  ;;  %11548 = vmatprep.mubr.bf16.mxu0 %v21886_v48  ;;  %v9344_v37 = vmax.f32 %v9061_v59, 0.0  ;;  %v21888_v48 = vld [vmem:[#allocation239_spill] sm:$0xff] }
 0x6d6   : > { %21884 = vst [vmem:[#allocation246_spill] sm:$0xff] %v19906_v43  ;;  %11837 = vmatprep.mubr.bf16.mxu1 %v14074_v1  ;;  %v19913_v30 = vpop.f32.mrf.mxu0  ;;  %v9063_v1 = vadd.f32 %v19743_v11, %v8710_v16  ;;  %v9059_v29 = vadd.f32 %v21888_v48, %v8706_v39  ;;  %v21890_v59 = vld [vmem:[#allocation155_spill] sm:$0xff]  ;;  %v8720_v16 = vadd.f32 %v19771_v33, %v19359_v24 }
 0x6d7   : > { %v19915_v36 = vpop.f32.mrf.mxu1  ;;  %v14078_v40 = vpack.c.bf16 %v9348_v53, %v9344_v37  ;;  %v8716_v37 = vadd.f32 %v19754_v34, %v19359_v24  ;;  %v8728_v33 = vadd.f32 %v19793_v7, %v19337_v42 }
 0x6d8   : > { %v19921_v57 = vpop.f32.mrf.mxu0  ;;  %v9347_v11 = vmax.f32 %v9063_v1, 0.0  ;;  %v9343_v39 = vmax.f32 %v9059_v29, 0.0 }
 0x6d9   : > { %v19923_v4 = vpop.f32.mrf.mxu1  ;;  %v9081_v7 = vadd.f32 %v19795_v18, %v8728_v33 }
 0x6da   : > { %v19928_v27 = vpop.f32.mrf.mxu0  ;;  %v14077_v1 = vpack.c.bf16 %v9347_v11, %v9343_v39  ;;  %v21894_v11 = vld [vmem:[#allocation163_spill] sm:$0xff]  ;;  %v8742_v39 = vadd.f32 %v19838_v31, %v19337_v42 }
 0x6db   : > { %v19930_v46 = vpop.f32.mrf.mxu1 }
 0x6dc   : > { %v19934_v43 = vpop.f32.mrf.mxu0  ;;  %11549 = vmatmul.mubr.bf16.gmra.mxu0 %v21890_v59  ;;  %v21892_v59 = vld [vmem:[#allocation243_spill] sm:$0xff]  ;;  %v9095_v31 = vadd.f32 %v19840_v13, %v8742_v39  ;;  %v8752_v39 = vadd.f32 %v19868_v32, %v19337_v42 }
 0x6dd   : > { %v19936_v17 = vpop.f32.mrf.mxu1  ;;  %11838 = vmatmul.mubr.bf16.gmra.mxu1 %v14073_v0  ;;  %11556 = vmatprep.mubr.bf16.mxu0 %v21891_v61  ;;  %v9352_v0 = vmax.f32 %v9071_v5, 0.0  ;;  %v9069_v34 = vadd.f32 %v21892_v59, %v8716_v37  ;;  %v21893_v5 = vld [vmem:[#allocation158_spill] sm:$0xff] }
 0x6de   : > { %21889 = vst [vmem:[#allocation249_spill] sm:$0xff] %v19936_v17  ;;  %11845 = vmatprep.mubr.bf16.mxu1 %v14078_v40  ;;  %v19943_v35 = vpop.f32.mrf.mxu0  ;;  %v9073_v40 = vadd.f32 %v19773_v23, %v8720_v16  ;;  %v8730_v16 = vadd.f32 %v19801_v50, %v19359_v24  ;;  %v8738_v50 = vadd.f32 %v19823_v49, %v19337_v42 }
 0x6df   : > { %v19945_v53 = vpop.f32.mrf.mxu1  ;;  %v14082_v29 = vpack.c.bf16 %v9356_v20, %v9352_v0  ;;  %v9351_v37 = vmax.f32 %v9069_v34, 0.0  ;;  %v8726_v0 = vadd.f32 %v19784_v21, %v19359_v24  ;;  %v9105_v32 = vadd.f32 %v19870_v14, %v8752_v39 }
 0x6e0   : > { %v19951_v45 = vpop.f32.mrf.mxu0  ;;  %v9355_v23 = vmax.f32 %v9073_v40, 0.0  ;;  %v9091_v49 = vadd.f32 %v19825_v25, %v8738_v50  ;;  %v8762_v39 = vadd.f32 %v19898_v41, %v19337_v42 }
 0x6e1   : > { %v19953_v51 = vpop.f32.mrf.mxu1  ;;  %v9079_v21 = vadd.f32 %v19786_v12, %v8726_v0  ;;  %v9372_v12 = vmax.f32 %v9095_v31, 0.0  ;;  %v8736_v0 = vadd.f32 %v19814_v60, %v19359_v24 }
 0x6e2   : > { %v19958_v48 = vpop.f32.mrf.mxu0  ;;  %v14081_v40 = vpack.c.bf16 %v9355_v23, %v9351_v37  ;;  %v21896_v23 = vld [vmem:[#allocation168_spill] sm:$0xff]  ;;  %v9368_v50 = vmax.f32 %v9091_v49, 0.0  ;;  %v21897_v49 = vld [vmem:[#allocation167_spill] sm:$0xff]  ;;  %v9115_v41 = vadd.f32 %v19900_v54, %v8762_v39  ;;  %v8772_v39 = vadd.f32 %v19928_v27, %v19337_v42 }
 0x6e3   : > { %v19960_v6 = vpop.f32.mrf.mxu1  ;;  %v9359_v37 = vmax.f32 %v9079_v21, 0.0  ;;  %v9089_v60 = vadd.f32 %v19816_v2, %v8736_v0  ;;  %v9380_v2 = vmax.f32 %v9105_v32, 0.0  ;;  %v8746_v0 = vadd.f32 %v19844_v52, %v19359_v24 }
 0x6e4   : > { %v19964_v61 = vpop.f32.mrf.mxu0  ;;  %11557 = vmatmul.mubr.bf16.gmra.mxu0 %v21893_v5  ;;  %v14090_v21 = vpack.c.bf16 %v9372_v12, %v9368_v50  ;;  %v9125_v27 = vadd.f32 %v19930_v46, %v8772_v39  ;;  %v8782_v39 = vadd.f32 %v19958_v48, %v19337_v42 }
 0x6e5   : > { %v19966_v17 = vpop.f32.mrf.mxu1  ;;  %11846 = vmatmul.mubr.bf16.gmra.mxu1 %v14077_v1  ;;  %11564 = vmatprep.mubr.bf16.mxu0 %v21894_v11  ;;  %v9360_v1 = vmax.f32 %v9081_v7, 0.0  ;;  %v21895_v7 = vld [vmem:[#allocation162_spill] sm:$0xff]  ;;  %v9099_v52 = vadd.f32 %v19846_v22, %v8746_v0  ;;  %v9388_v22 = vmax.f32 %v9115_v41, 0.0  ;;  %v8756_v0 = vadd.f32 %v19874_v62, %v19359_v24 }
 0x6e6   : > { %11853 = vmatprep.mubr.bf16.mxu1 %v14082_v29  ;;  %v19973_v38 = vpop.f32.mrf.mxu0  ;;  %v9083_v29 = vadd.f32 %v19803_v58, %v8730_v16  ;;  %v8740_v16 = vadd.f32 %v19831_v28, %v19359_v24  ;;  %v8748_v28 = vadd.f32 %v19853_v63, %v19337_v42  ;;  %v9135_v48 = vadd.f32 %v19960_v6, %v8782_v39 }
 0x6e7   : > { %v19975_v20 = vpop.f32.mrf.mxu1  ;;  %v14086_v34 = vpack.c.bf16 %v9364_v9, %v9360_v1  ;;  %v9109_v62 = vadd.f32 %v19876_v44, %v8756_v0  ;;  %v9396_v44 = vmax.f32 %v9125_v27, 0.0  ;;  %v21905_v0 = vld [vmem:[#allocation244_spill] sm:$0xff] }
 0x6e8   : > { %v19981_v18 = vpop.f32.mrf.mxu0  ;;  %v9363_v58 = vmax.f32 %v9083_v29, 0.0  ;;  %v9093_v29 = vadd.f32 %v19833_v47, %v8740_v16  ;;  %v9101_v63 = vadd.f32 %v19855_v3, %v8748_v28  ;;  %v8750_v16 = vadd.f32 %v19861_v56, %v19359_v24 }
 0x6e9   : > { %v19983_v33 = vpop.f32.mrf.mxu1  ;;  %v8758_v56 = vadd.f32 %v19883_v15, %v19337_v42  ;;  %v9404_v39 = vmax.f32 %v9135_v48, 0.0 }
 0x6ea   : > { %v19988_v59 = vpop.f32.mrf.mxu0  ;;  %v9371_v47 = vmax.f32 %v9093_v29, 0.0  ;;  %v9376_v28 = vmax.f32 %v9101_v63, 0.0  ;;  %v9103_v29 = vadd.f32 %v19863_v8, %v8750_v16  ;;  %v21899_v63 = vld [vmem:[#allocation170_spill] sm:$0xff]  ;;  %v8760_v16 = vadd.f32 %v19891_v26, %v19359_v24 }
 0x6eb   : > { %v19990_v19 = vpop.f32.mrf.mxu1  ;;  %v9111_v15 = vadd.f32 %v19885_v55, %v8758_v56  ;;  %v8768_v26 = vadd.f32 %v19913_v30, %v19337_v42 }
 0x6ec   : > { %v19994_v5 = vpop.f32.mrf.mxu0  ;;  %11565 = vmatmul.mubr.bf16.gmra.mxu0 %v21895_v7  ;;  %v9379_v8 = vmax.f32 %v9103_v29, 0.0  ;;  %v9113_v29 = vadd.f32 %v19893_v10, %v8760_v16  ;;  %v8770_v16 = vadd.f32 %v19921_v57, %v19359_v24  ;;  %v8778_v57 = vadd.f32 %v19943_v35, %v19337_v42 }
 0x6ed   : > { %v19996_v11 = vpop.f32.mrf.mxu1  ;;  %11854 = vmatmul.mubr.bf16.gmra.mxu1 %v14081_v40  ;;  %11572 = vmatprep.mubr.bf16.mxu0 %v21896_v23  ;;  %v14085_v40 = vpack.c.bf16 %v9363_v58, %v9359_v37  ;;  %v21898_v58 = vld [vmem:[#allocation174_spill] sm:$0xff]  ;;  %v9367_v37 = vmax.f32 %v9089_v60, 0.0  ;;  %v14094_v60 = vpack.c.bf16 %v9380_v2, %v9376_v28  ;;  %v9384_v56 = vmax.f32 %v9111_v15, 0.0  ;;  %v21903_v15 = vld [vmem:[#allocation175_spill] sm:$0xff] }
 0x6ee   : > { %11861 = vmatprep.mubr.bf16.mxu1 %v14086_v34  ;;  %v20003_v13 = vpop.f32.mrf.mxu0  ;;  %v9121_v30 = vadd.f32 %v19915_v36, %v8768_v26  ;;  %v9387_v10 = vmax.f32 %v9113_v29, 0.0  ;;  %v9131_v35 = vadd.f32 %v19945_v53, %v8778_v57 }
 0x6ef   : > { %v20005_v9 = vpop.f32.mrf.mxu1 }
 0x6f0   : > { %v20011_v25 = vpop.f32.mrf.mxu0 }
 0x6f1   : > { %v20013_v1 = vpop.f32.mrf.mxu1 }
 0x6f2   : > { %v20018_v34 = vpop.f32.mrf.mxu0 }
 0x6f3   : > { %v20020_v31 = vpop.f32.mrf.mxu1 }
 0x6f4   : > { %v20024_v7 = vpop.f32.mrf.mxu0  ;;  %11573 = vmatmul.mubr.bf16.gmra.mxu0 %v21897_v49 }
 0x6f5   : > { %v20026_v23 = vpop.f32.mrf.mxu1  ;;  %11862 = vmatmul.mubr.bf16.gmra.mxu1 %v14085_v40  ;;  %11580 = vmatprep.mubr.bf16.mxu0 %v21898_v58  ;;  %v14089_v40 = vpack.c.bf16 %v9371_v47, %v9367_v37  ;;  %v21900_v47 = vld [vmem:[#allocation177_spill] sm:$0xff]  ;;  %v9375_v37 = vmax.f32 %v9099_v52, 0.0  ;;  %v14098_v52 = vpack.c.bf16 %v9388_v22, %v9384_v56  ;;  %v8766_v56 = vadd.f32 %v21905_v0, %v19359_v24 }
 0x6f6   : > { %11869 = vmatprep.mubr.bf16.mxu1 %v14090_v21  ;;  %v20033_v14 = vpop.f32.mrf.mxu0 }
 0x6f7   : > { %v20035_v12 = vpop.f32.mrf.mxu1 }
 0x6f8   : > { %v20041_v3 = vpop.f32.mrf.mxu0 }
 0x6f9   : > { %v20043_v50 = vpop.f32.mrf.mxu1 }
 0x6fa   : > { %v20048_v21 = vpop.f32.mrf.mxu0 }
 0x6fb   : > { %v20050_v32 = vpop.f32.mrf.mxu1 }
 0x6fc   : > { %v20054_v49 = vpop.f32.mrf.mxu0  ;;  %11581 = vmatmul.mubr.bf16.gmra.mxu0 %v21899_v63 }
 0x6fd   : > { %v20056_v58 = vpop.f32.mrf.mxu1  ;;  %11870 = vmatmul.mubr.bf16.gmra.mxu1 %v14089_v40  ;;  %11588 = vmatprep.mubr.bf16.mxu0 %v21900_v47  ;;  %v14093_v40 = vpack.c.bf16 %v9379_v8, %v9375_v37  ;;  %v21904_v8 = vld [vmem:[#allocation182_spill] sm:$0xff]  ;;  %v9383_v37 = vmax.f32 %v9109_v62, 0.0 }
 0x6fe   : > { %11877 = vmatprep.mubr.bf16.mxu1 %v14094_v60  ;;  %v20063_v54 = vpop.f32.mrf.mxu0 }
 0x6ff   : > { %v20065_v2 = vpop.f32.mrf.mxu1  ;;  %v14097_v29 = vpack.c.bf16 %v9387_v10, %v9383_v37  ;;  %v21910_v10 = vld [vmem:[#allocation188_spill] sm:$0xff]  ;;  %v8792_v37 = vadd.f32 %v19988_v59, %v19337_v42 }
 0x700   : > { %v20071_v55 = vpop.f32.mrf.mxu0 }
 0x701   : > { %v20073_v28 = vpop.f32.mrf.mxu1  ;;  %v9145_v59 = vadd.f32 %v19990_v19, %v8792_v37 }
 0x702   : > { %v20078_v60 = vpop.f32.mrf.mxu0 }
 0x703   : > { %v20080_v41 = vpop.f32.mrf.mxu1 }
 0x704   : > { %v20084_v63 = vpop.f32.mrf.mxu0  ;;  %11589 = vmatmul.mubr.bf16.gmra.mxu0 %v21903_v15 }
 0x705   : > { %21901 = vst [vmem:[#allocation250_spill] sm:$0xff] %v20084_v63  ;;  %v20086_v47 = vpop.f32.mrf.mxu1  ;;  %11878 = vmatmul.mubr.bf16.gmra.mxu1 %v14093_v40  ;;  %11596 = vmatprep.mubr.bf16.mxu0 %v21904_v8  ;;  %v9392_v40 = vmax.f32 %v9121_v30, 0.0  ;;  %v21906_v8 = vld [vmem:[#allocation246_spill] sm:$0xff]  ;;  %v21909_v30 = vld [vmem:[#allocation181_spill] sm:$0xff] }
 0x706   : > { %21902 = vst [vmem:[#allocation252_spill] sm:$0xff] %v20086_v47  ;;  %11885 = vmatprep.mubr.bf16.mxu1 %v14098_v52  ;;  %v20093_v46 = vpop.f32.mrf.mxu0  ;;  %v9123_v52 = vadd.f32 %v19923_v4, %v8770_v16  ;;  %v9119_v0 = vadd.f32 %v21906_v8, %v8766_v56  ;;  %v8780_v16 = vadd.f32 %v19951_v45, %v19359_v24 }
 0x707   : > { %v20095_v22 = vpop.f32.mrf.mxu1  ;;  %v14102_v62 = vpack.c.bf16 %v9396_v44, %v9392_v40  ;;  %v8776_v40 = vadd.f32 %v19934_v43, %v19359_v24  ;;  %v8788_v45 = vadd.f32 %v19973_v38, %v19337_v42  ;;  %v21912_v43 = vld [vmem:[#allocation249_spill] sm:$0xff]  ;;  %v21913_v38 = vld [vmem:[#allocation184_spill] sm:$0xff] }
 0x708   : > { %v20101_v36 = vpop.f32.mrf.mxu0  ;;  %v9395_v4 = vmax.f32 %v9123_v52, 0.0  ;;  %v9391_v56 = vmax.f32 %v9119_v0, 0.0 }
 0x709   : > { %v20103_v26 = vpop.f32.mrf.mxu1 }
 0x70a   : > { %v20108_v15 = vpop.f32.mrf.mxu0  ;;  %v14101_v52 = vpack.c.bf16 %v9395_v4, %v9391_v56 }
 0x70b   : > { %v20110_v27 = vpop.f32.mrf.mxu1 }
 0x70c   : > { %v20114_v47 = vpop.f32.mrf.mxu0  ;;  %11597 = vmatmul.mubr.bf16.gmra.mxu0 %v21909_v30  ;;  %v9129_v30 = vadd.f32 %v21912_v43, %v8776_v40  ;;  %v9412_v40 = vmax.f32 %v9145_v59, 0.0 }
 0x70d   : > { %21907 = vst [vmem:[#allocation256_spill] sm:$0xff] %v20114_v47  ;;  %v20116_v63 = vpop.f32.mrf.mxu1  ;;  %11886 = vmatmul.mubr.bf16.gmra.mxu1 %v14097_v29  ;;  %11604 = vmatprep.mubr.bf16.mxu0 %v21910_v10  ;;  %v9400_v29 = vmax.f32 %v9131_v35, 0.0  ;;  %v20147_v35 = vld [vmem:[%s20384_s6] ss:$0 sm:$0xff] }
 0x70e   : > { %21908 = vst [vmem:[#allocation257_spill] sm:$0xff] %v20116_v63  ;;  %11893 = vmatprep.mubr.bf16.mxu1 %v14102_v62  ;;  %v20123_v6 = vpop.f32.mrf.mxu0  ;;  %v9133_v62 = vadd.f32 %v19953_v51, %v8780_v16  ;;  %v9141_v51 = vadd.f32 %v19975_v20, %v8788_v45  ;;  %v21914_v16 = vld [vmem:[#allocation191_spill] sm:$0xff]  ;;  %v8786_v20 = vadd.f32 %v19964_v61, %v19359_v24 }
 0x70f   : > { %v20125_v44 = vpop.f32.mrf.mxu1  ;;  %v14106_v0 = vpack.c.bf16 %v9404_v39, %v9400_v29  ;;  %v8790_v39 = vadd.f32 %v19981_v18, %v19359_v24  ;;  %v8802_v29 = vadd.f32 %v20018_v34, %v19337_v42 }
 0x710   : > { %v20131_v53 = vpop.f32.mrf.mxu0  ;;  %v9403_v19 = vmax.f32 %v9133_v62, 0.0  ;;  %v8798_v62 = vadd.f32 %v20003_v13, %v19337_v42  ;;  %v9139_v63 = vadd.f32 %v19966_v17, %v8786_v20  ;;  %v8812_v17 = vadd.f32 %v20048_v21, %v19337_v42 }
 0x711   : > { %v20133_v57 = vpop.f32.mrf.mxu1 }
 0x712   : > { %21911 = vst [vmem:[#allocation259_spill] sm:$0xff] %v20133_v57  ;;  %v20138_v8 = vpop.f32.mrf.mxu0  ;;  %v21915_v57 = vld [vmem:[#allocation189_spill] sm:$0xff] }
 0x713   : > { %v20140_v48 = vpop.f32.mrf.mxu1 }
 0x714   : > { %v11414_v10 = vpop.f32.mrf.mxu0  ;;  %11605 = vmatmul.mubr.bf16.gmra.mxu0 %v21913_v38  ;;  %v9408_v38 = vmax.f32 %v9141_v51, 0.0 }
 0x715   : > { %v11703_v4 = vpop.f32.mrf.mxu1  ;;  %11894 = vmatmul.mubr.bf16.gmra.mxu1 %v14101_v52  ;;  %11612 = vmatprep.mubr.bf16.mxu0 %v21914_v16  ;;  %v11415_v43 = vadd.f32 %v20147_v35, %v11414_v10  ;;  %v9399_v52 = vmax.f32 %v9129_v30, 0.0  ;;  %v9143_v16 = vadd.f32 %v19983_v33, %v8790_v39  ;;  %v9155_v30 = vadd.f32 %v20020_v31, %v8802_v29 }
 0x716   : > { %11901 = vmatprep.mubr.bf16.mxu1 %v14106_v0  ;;  %v11416_v37 = vpop.f32.mrf.mxu0  ;;  %v14110_v61 = vpack.c.bf16 %v9412_v40, %v9408_v38  ;;  %v8800_v31 = vadd.f32 %v20011_v25, %v19359_v24  ;;  %v8796_v29 = vadd.f32 %v19994_v5, %v19359_v24  ;;  %v8808_v25 = vadd.f32 %v20033_v14, %v19337_v42 }
 0x717   : > { %v11705_v56 = vpop.f32.mrf.mxu1  ;;  %v14105_v59 = vpack.c.bf16 %v9403_v19, %v9399_v52  ;;  %v11704_v10 = vadd.f32 %v11703_v4, %v11415_v43  ;;  %v21916_v19 = vld [vmem:[#allocation196_spill] sm:$0xff]  ;;  %v9411_v33 = vmax.f32 %v9143_v16, 0.0  ;;  %v9420_v40 = vmax.f32 %v9155_v30, 0.0 }
 0x718   : > { %v11417_v45 = vpop.f32.mrf.mxu0  ;;  %v9153_v21 = vadd.f32 %v20013_v1, %v8800_v31  ;;  %v9149_v5 = vadd.f32 %v19996_v11, %v8796_v29  ;;  %v9161_v14 = vadd.f32 %v20035_v12, %v8808_v25  ;;  %v8822_v11 = vadd.f32 %v20078_v60, %v19337_v42  ;;  %v21919_v25 = vld [vmem:[#allocation198_spill] sm:$0xff] }
 0x719   : > { %v11706_v0 = vpop.f32.mrf.mxu1  ;;  %v11418_v18 = vadd.f32 %v20147_v35, %v11417_v45  ;;  %v9151_v45 = vadd.f32 %v20005_v9, %v8798_v62  ;;  %v8806_v12 = vadd.f32 %v20024_v7, %v19359_v24 }
 0x71a   : > { %v11419_v34 = vpop.f32.mrf.mxu0  ;;  %v9419_v1 = vmax.f32 %v9153_v21, 0.0  ;;  %v21920_v21 = vld [vmem:[#allocation205_spill] sm:$0xff] }
 0x71b   : > { %v11708_v37 = vpop.f32.mrf.mxu1  ;;  %v11707_v56 = vadd.f32 %v11706_v0, %v11418_v18  ;;  %v9416_v20 = vmax.f32 %v9151_v45, 0.0  ;;  %v9159_v7 = vadd.f32 %v20026_v23, %v8806_v12  ;;  %v8832_v23 = vadd.f32 %v20108_v15, %v19337_v42 }
 0x71c   : > { %v11422_v51 = vpop.f32.mrf.mxu0  ;;  %11613 = vmatmul.mubr.bf16.gmra.mxu0 %v21915_v57  ;;  %v9407_v57 = vmax.f32 %v9139_v63, 0.0  ;;  %v21917_v37 = vld [vmem:[#allocation195_spill] sm:$0xff] }
 0x71d   : > { %v11711_v13 = vpop.f32.mrf.mxu1  ;;  %11902 = vmatmul.mubr.bf16.gmra.mxu1 %v14105_v59  ;;  %v13687_v47 = vpack.c.bf16 %v11707_v56, %v11704_v10  ;;  %11620 = vmatprep.mubr.bf16.mxu0 %v21916_v19  ;;  %v11423_v9 = vadd.f32 %v20147_v35, %v11422_v51  ;;  %v14114_v16 = vpack.c.bf16 %v9420_v40, %v9416_v20  ;;  %v21918_v56 = vld [vmem:[#allocation202_spill] sm:$0xff]  ;;  %v9415_v19 = vmax.f32 %v9149_v5, 0.0 }
 0x71e   : > { %11909 = vmatprep.mubr.bf16.mxu1 %v14110_v61  ;;  %v11424_v4 = vpop.f32.mrf.mxu0  ;;  %v14109_v38 = vpack.c.bf16 %v9411_v33, %v9407_v57  ;;  %v9175_v57 = vadd.f32 %v20080_v41, %v8822_v11  ;;  %v8820_v41 = vadd.f32 %v20071_v55, %v19359_v24 }
 0x71f   : > { %v11713_v39 = vpop.f32.mrf.mxu1  ;;  %13688 = vst [vmem:[%s20175_s15] sm:$0xff] %v13687_v47   ;;  %v9165_v47 = vadd.f32 %v20050_v32, %v8812_v17  ;;  %v11712_v59 = vadd.f32 %v11711_v13, %v11423_v9  ;;  %v8810_v32 = vadd.f32 %v20041_v3, %v19359_v24  ;;  %v9424_v4 = vmax.f32 %v9161_v14, 0.0 }
 0x720   : > { %v11425_v43 = vpop.f32.mrf.mxu0  ;;  %v8818_v39 = vadd.f32 %v20063_v54, %v19337_v42  ;;  %v14113_v40 = vpack.c.bf16 %v9419_v1, %v9415_v19  ;;  %v9173_v14 = vadd.f32 %v20073_v28, %v8820_v41  ;;  %v21922_v19 = vld [vmem:[#allocation210_spill] sm:$0xff]  ;;  %v21926_v41 = vld [vmem:[#allocation216_spill] sm:$0xff] }
 0x721   : > { %v11714_v52 = vpop.f32.mrf.mxu1  ;;  %v11426_v0 = vadd.f32 %v20147_v35, %v11425_v43  ;;  %v9428_v13 = vmax.f32 %v9165_v47, 0.0  ;;  %v9163_v17 = vadd.f32 %v20043_v50, %v8810_v32  ;;  %v9436_v47 = vmax.f32 %v9175_v57, 0.0 }
 0x722   : > { %v11427_v62 = vpop.f32.mrf.mxu0  ;;  %v9171_v54 = vadd.f32 %v20065_v2, %v8818_v39  ;;  %v8816_v2 = vadd.f32 %v20054_v49, %v19359_v24  ;;  %v9435_v28 = vmax.f32 %v9173_v14, 0.0 }
 0x723   : > { %v11716_v18 = vpop.f32.mrf.mxu1  ;;  %v11715_v63 = vadd.f32 %v11714_v52, %v11426_v0  ;;  %v14118_v52 = vpack.c.bf16 %v9428_v13, %v9424_v4  ;;  %v9427_v50 = vmax.f32 %v9163_v17, 0.0  ;;  %v21921_v13 = vld [vmem:[#allocation203_spill] sm:$0xff] }
 0x724   : > { %v11430_v34 = vpop.f32.mrf.mxu0  ;;  %11621 = vmatmul.mubr.bf16.gmra.mxu0 %v21917_v37  ;;  %v8828_v37 = vadd.f32 %v20093_v46, %v19337_v42  ;;  %v9169_v49 = vadd.f32 %v20056_v58, %v8816_v2  ;;  %v8842_v58 = vadd.f32 %v20138_v8, %v19337_v42 }
 0x725   : > { %v11719_v30 = vpop.f32.mrf.mxu1  ;;  %11910 = vmatmul.mubr.bf16.gmra.mxu1 %v14109_v38  ;;  %v13692_v10 = vpack.c.bf16 %v11715_v63, %v11712_v59  ;;  %11628 = vmatprep.mubr.bf16.mxu0 %v21918_v56  ;;  %v11431_v45 = vadd.f32 %v20147_v35, %v11430_v34  ;;  %v9423_v63 = vmax.f32 %v9159_v7, 0.0  ;;  %v9432_v34 = vmax.f32 %v9171_v54, 0.0 }
 0x726   : > { %11917 = vmatprep.mubr.bf16.mxu1 %v14114_v16  ;;  %v11432_v61 = vpop.f32.mrf.mxu0  ;;  %v9185_v56 = vadd.f32 %v20110_v27, %v8832_v23  ;;  %v9181_v46 = vadd.f32 %v20095_v22, %v8828_v37  ;;  %v8830_v27 = vadd.f32 %v20101_v36, %v19359_v24  ;;  %v9431_v39 = vmax.f32 %v9169_v49, 0.0  ;;  %v21923_v22 = vld [vmem:[#allocation250_spill] sm:$0xff]  ;;  %v21930_v49 = vld [vmem:[#allocation212_spill] sm:$0xff] }
 0x727   : > { %v11721_v51 = vpop.f32.mrf.mxu1  ;;  %13844 = vst [vmem:[%s20175_s15 + $0x8] sm:$0xff] %v13692_v10   ;;  %v11720_v29 = vadd.f32 %v11719_v30, %v11431_v45  ;;  %v14117_v30 = vpack.c.bf16 %v9427_v50, %v9423_v63  ;;  %v14122_v61 = vpack.c.bf16 %v9436_v47, %v9432_v34  ;;  %v21927_v63 = vld [vmem:[#allocation256_spill] sm:$0xff] }
 0x728   : > { %v11433_v33 = vpop.f32.mrf.mxu0  ;;  %v14121_v57 = vpack.c.bf16 %v9435_v28, %v9431_v39  ;;  %v8836_v2 = vadd.f32 %v21927_v63, %v19359_v24 }
 0x729   : > { %v11722_v31 = vpop.f32.mrf.mxu1  ;;  %v11434_v3 = vadd.f32 %v20147_v35, %v11433_v33 }
 0x72a   : > { %v11435_v9 = vpop.f32.mrf.mxu0 }
 0x72b   : > { %v11724_v60 = vpop.f32.mrf.mxu1  ;;  %v11723_v43 = vadd.f32 %v11722_v31, %v11434_v3  ;;  %v9444_v31 = vmax.f32 %v9185_v56, 0.0  ;;  %v8826_v3 = vadd.f32 %v21923_v22, %v19359_v24  ;;  %v9440_v9 = vmax.f32 %v9181_v46, 0.0 }
 0x72c   : > { %v11438_v20 = vpop.f32.mrf.mxu0  ;;  %11629 = vmatmul.mubr.bf16.gmra.mxu0 %v21919_v25  ;;  %v8838_v60 = vadd.f32 %v20123_v6, %v19337_v42 }
 0x72d   : > { %v11727_v0 = vpop.f32.mrf.mxu1  ;;  %11918 = vmatmul.mubr.bf16.gmra.mxu1 %v14113_v40  ;;  %v13697_v38 = vpack.c.bf16 %v11723_v43, %v11720_v29  ;;  %11636 = vmatprep.mubr.bf16.mxu0 %v21920_v21  ;;  %v11439_v59 = vadd.f32 %v20147_v35, %v11438_v20  ;;  %v9183_v29 = vadd.f32 %v20103_v26, %v8830_v27  ;;  %v21925_v21 = vld [vmem:[#allocation209_spill] sm:$0xff] }
 0x72e   : > { %11925 = vmatprep.mubr.bf16.mxu1 %v14118_v52  ;;  %v11440_v62 = vpop.f32.mrf.mxu0  ;;  %v9195_v52 = vadd.f32 %v20140_v48, %v8842_v58  ;;  %v14126_v25 = vpack.c.bf16 %v9444_v31, %v9440_v9  ;;  %v9191_v42 = vadd.f32 %v20125_v44, %v8838_v60  ;;  %v8840_v48 = vadd.f32 %v20131_v53, %v19359_v24 }
 0x72f   : > { %v11729_v18 = vpop.f32.mrf.mxu1  ;;  %13845 = vst [vmem:[%s20175_s15 + $0x10] sm:$0xff] %v13697_v38   ;;  %v11728_v1 = vadd.f32 %v11727_v0, %v11439_v59  ;;  %v21924_v0 = vld [vmem:[#allocation252_spill] sm:$0xff]  ;;  %v9443_v26 = vmax.f32 %v9183_v29, 0.0 }
 0x730   : > { %v11441_v16 = vpop.f32.mrf.mxu0  ;;  %v9179_v54 = vadd.f32 %v21924_v0, %v8826_v3  ;;  %v9452_v47 = vmax.f32 %v9195_v52, 0.0 }
 0x731   : > { %v11730_v5 = vpop.f32.mrf.mxu1  ;;  %v11442_v55 = vadd.f32 %v20147_v35, %v11441_v16 }
 0x732   : > { %v11443_v10 = vpop.f32.mrf.mxu0  ;;  %v9439_v59 = vmax.f32 %v9179_v54, 0.0 }
 0x733   : > { %v11732_v15 = vpop.f32.mrf.mxu1  ;;  %v11731_v32 = vadd.f32 %v11730_v5, %v11442_v55  ;;  %v9448_v5 = vmax.f32 %v9191_v42, 0.0  ;;  %v21928_v55 = vld [vmem:[#allocation259_spill] sm:$0xff] }
 0x734   : > { %v11446_v51 = vpop.f32.mrf.mxu0  ;;  %11637 = vmatmul.mubr.bf16.gmra.mxu0 %v21921_v13  ;;  %v14125_v37 = vpack.c.bf16 %v9443_v26, %v9439_v59  ;;  %v21931_v13 = vld [vmem:[#allocation219_spill] sm:$0xff] }
 0x735   : > { %v11735_v11 = vpop.f32.mrf.mxu1  ;;  %11926 = vmatmul.mubr.bf16.gmra.mxu1 %v14117_v30  ;;  %v13702_v45 = vpack.c.bf16 %v11731_v32, %v11728_v1  ;;  %11644 = vmatprep.mubr.bf16.mxu0 %v21922_v19  ;;  %v11447_v4 = vadd.f32 %v20147_v35, %v11446_v51  ;;  %v9193_v30 = vadd.f32 %v21928_v55, %v8840_v48  ;;  %v21929_v1 = vld [vmem:[#allocation257_spill] sm:$0xff] }
 0x736   : > { %11933 = vmatprep.mubr.bf16.mxu1 %v14122_v61  ;;  %v11448_v12 = vpop.f32.mrf.mxu0  ;;  %v14130_v56 = vpack.c.bf16 %v9452_v47, %v9448_v5  ;;  %v9189_v32 = vadd.f32 %v21929_v1, %v8836_v2 }
 0x737   : > { %v11737_v33 = vpop.f32.mrf.mxu1  ;;  %13846 = vst [vmem:[%s20175_s15 + $0x18] sm:$0xff] %v13702_v45   ;;  %v11736_v7 = vadd.f32 %v11735_v11, %v11447_v4  ;;  %v9451_v11 = vmax.f32 %v9193_v30, 0.0 }
 0x738   : > { %v11449_v40 = vpop.f32.mrf.mxu0  ;;  %v9447_v28 = vmax.f32 %v9189_v32, 0.0 }
 0x739   : > { %v11738_v17 = vpop.f32.mrf.mxu1  ;;  %v11450_v36 = vadd.f32 %v20147_v35, %v11449_v40  ;;  %v21932_v40 = vld [vmem:[#allocation217_spill] sm:$0xff] }
 0x73a   : > { %v11451_v43 = vpop.f32.mrf.mxu0  ;;  %v14129_v31 = vpack.c.bf16 %v9451_v11, %v9447_v28 }
 0x73b   : > { %v11740_v8 = vpop.f32.mrf.mxu1  ;;  %v11739_v20 = vadd.f32 %v11738_v17, %v11450_v36 }
 0x73c   : > { %v11454_v38 = vpop.f32.mrf.mxu0  ;;  %11645 = vmatmul.mubr.bf16.gmra.mxu0 %v21925_v21 }
 0x73d   : > { %v11743_v50 = vpop.f32.mrf.mxu1  ;;  %11934 = vmatmul.mubr.bf16.gmra.mxu1 %v14121_v57  ;;  %v13707_v6 = vpack.c.bf16 %v11739_v20, %v11736_v7  ;;  %11652 = vmatprep.mubr.bf16.mxu0 %v21926_v41  ;;  %v11455_v23 = vadd.f32 %v20147_v35, %v11454_v38 }
 0x73e   : > { %11941 = vmatprep.mubr.bf16.mxu1 %v14126_v25  ;;  %v11456_v62 = vpop.f32.mrf.mxu0 }
 0x73f   : > { %v11745_v18 = vpop.f32.mrf.mxu1  ;;  %13847 = vst [vmem:[%s20175_s15 + $0x20] sm:$0xff] %v13707_v6   ;;  %v11744_v10 = vadd.f32 %v11743_v50, %v11455_v23 }
 0x740   : > { %v11457_v16 = vpop.f32.mrf.mxu0 }
 0x741   : > { %v11746_v44 = vpop.f32.mrf.mxu1  ;;  %v11458_v34 = vadd.f32 %v20147_v35, %v11457_v16 }
 0x742   : > { %v11459_v14 = vpop.f32.mrf.mxu0 }
 0x743   : > { %v11748_v53 = vpop.f32.mrf.mxu1  ;;  %v11747_v15 = vadd.f32 %v11746_v44, %v11458_v34 }
 0x744   : > { %v11462_v61 = vpop.f32.mrf.mxu0  ;;  %11653 = vmatmul.mubr.bf16.gmra.mxu0 %v21930_v49 }
 0x745   : > { %v11751_v24 = vpop.f32.mrf.mxu1  ;;  %11942 = vmatmul.mubr.bf16.gmra.mxu1 %v14125_v37  ;;  %v13712_v51 = vpack.c.bf16 %v11747_v15, %v11744_v10  ;;  %11660 = vmatprep.mubr.bf16.mxu0 %v21931_v13  ;;  %v11463_v19 = vadd.f32 %v20147_v35, %v11462_v61 }
 0x746   : > { %11949 = vmatprep.mubr.bf16.mxu1 %v14130_v56  ;;  %v11464_v46 = vpop.f32.mrf.mxu0 }
 0x747   : > { %v11753_v45 = vpop.f32.mrf.mxu1  ;;  %13848 = vst [vmem:[%s20175_s15 + $0x28] sm:$0xff] %v13712_v51   ;;  %v11752_v39 = vadd.f32 %v11751_v24, %v11463_v19 }
 0x748   : > { %v11465_v27 = vpop.f32.mrf.mxu0 }
 0x749   : > { %v11754_v12 = vpop.f32.mrf.mxu1  ;;  %v11466_v33 = vadd.f32 %v20147_v35, %v11465_v27 }
 0x74a   : > { %v11467_v58 = vpop.f32.mrf.mxu0 }
 0x74b   : > { %v11756_v4 = vpop.f32.mrf.mxu1  ;;  %v11755_v22 = vadd.f32 %v11754_v12, %v11466_v33 }
 0x74c   : > { %v11470_v3 = vpop.f32.mrf.mxu0  ;;  %11661 = vmatmul.mubr.bf16.gmra.mxu0 %v21932_v40 }
 0x74d   : > { %v11759_v17 = vpop.f32.mrf.mxu1  ;;  %11950 = vmatmul.mubr.bf16.gmra.mxu1 %v14129_v31  ;;  %v13717_v9 = vpack.c.bf16 %v11755_v22, %v11752_v39  ;;  %v11471_v57 = vadd.f32 %v20147_v35, %v11470_v3 }
 0x74e   : > { %v11472_v60 = vpop.f32.mrf.mxu0 }
 0x74f   : > { %v11761_v36 = vpop.f32.mrf.mxu1  ;;  %13849 = vst [vmem:[%s20175_s15 + $0x30] sm:$0xff] %v13717_v9   ;;  %v11760_v20 = vadd.f32 %v11759_v17, %v11471_v57 }
 0x750   : > { %v11473_v29 = vpop.f32.mrf.mxu0 }
 0x751   : > { %v11762_v43 = vpop.f32.mrf.mxu1  ;;  %v11474_v8 = vadd.f32 %v20147_v35, %v11473_v29 }
 0x752   : > { %v11475_v52 = vpop.f32.mrf.mxu0 }
 0x753   : > { %v11764_v7 = vpop.f32.mrf.mxu1  ;;  %v11763_v25 = vadd.f32 %v11762_v43, %v11474_v8 }
 0x754   : > { %v11478_v0 = vpop.f32.mrf.mxu0 }
 0x755   : > { %v11767_v54 = vpop.f32.mrf.mxu1  ;;  %v13722_v38 = vpack.c.bf16 %v11763_v25, %v11760_v20  ;;  %v11479_v42 = vadd.f32 %v20147_v35, %v11478_v0 }
 0x756   : > { %v11480_v21 = vpop.f32.mrf.mxu0 }
 0x757   : > { %v11769_v50 = vpop.f32.mrf.mxu1  ;;  %13850 = vst [vmem:[%s20175_s15 + $0x38] sm:$0xff] %v13722_v38   ;;  %v11768_v18 = vadd.f32 %v11767_v54, %v11479_v42 }
 0x758   : > { %v11481_v6 = vpop.f32.mrf.mxu0 }
 0x759   : > { %v11770_v41 = vpop.f32.mrf.mxu1  ;;  %v11482_v26 = vadd.f32 %v20147_v35, %v11481_v6 }
 0x75a   : > { %v11483_v48 = vpop.f32.mrf.mxu0 }
 0x75b   : > { %v11772_v62 = vpop.f32.mrf.mxu1  ;;  %v11771_v47 = vadd.f32 %v11770_v41, %v11482_v26 }
 0x75c   : > { %v11486_v23 = vpop.f32.mrf.mxu0 }
 0x75d   : > { %v11775_v59 = vpop.f32.mrf.mxu1  ;;  %v13727_v63 = vpack.c.bf16 %v11771_v47, %v11768_v18  ;;  %v11487_v44 = vadd.f32 %v20147_v35, %v11486_v23 }
 0x75e   : > { %v11488_v2 = vpop.f32.mrf.mxu0 }
 0x75f   : > { %v11777_v16 = vpop.f32.mrf.mxu1  ;;  %13851 = vst [vmem:[%s20175_s15 + $0x40] sm:$0xff] %v13727_v63   ;;  %v11776_v14 = vadd.f32 %v11775_v59, %v11487_v44 }
 0x760   : > { %v11489_v5 = vpop.f32.mrf.mxu0 }
 0x761   : > { %v11778_v34 = vpop.f32.mrf.mxu1  ;;  %v11490_v37 = vadd.f32 %v20147_v35, %v11489_v5 }
 0x762   : > { %v11491_v55 = vpop.f32.mrf.mxu0 }
 0x763   : > { %v11780_v30 = vpop.f32.mrf.mxu1  ;;  %v11779_v53 = vadd.f32 %v11778_v34, %v11490_v37 }
 0x764   : > { %v11494_v10 = vpop.f32.mrf.mxu0 }
 0x765   : > { %v11783_v15 = vpop.f32.mrf.mxu1  ;;  %v13732_v56 = vpack.c.bf16 %v11779_v53, %v11776_v14  ;;  %v11495_v61 = vadd.f32 %v20147_v35, %v11494_v10 }
 0x766   : > { %v11496_v1 = vpop.f32.mrf.mxu0 }
 0x767   : > { %v11785_v32 = vpop.f32.mrf.mxu1  ;;  %13852 = vst [vmem:[%s20175_s15 + $0x48] sm:$0xff] %v13732_v56   ;;  %v11784_v46 = vadd.f32 %v11783_v15, %v11495_v61 }
 0x768   : > { %v11497_v49 = vpop.f32.mrf.mxu0 }
 0x769   : > { %v11786_v24 = vpop.f32.mrf.mxu1  ;;  %v11498_v51 = vadd.f32 %v20147_v35, %v11497_v49 }
 0x76a   : > { %v11499_v13 = vpop.f32.mrf.mxu0 }
 0x76b   : > { %v11788_v11 = vpop.f32.mrf.mxu1  ;;  %v11787_v45 = vadd.f32 %v11786_v24, %v11498_v51 }
 0x76c   : > { %v11502_v19 = vpop.f32.mrf.mxu0 }
 0x76d   : > { %v11791_v28 = vpop.f32.mrf.mxu1  ;;  %v13737_v27 = vpack.c.bf16 %v11787_v45, %v11784_v46  ;;  %v11503_v31 = vadd.f32 %v20147_v35, %v11502_v19 }
 0x76e   : > { %v11504_v12 = vpop.f32.mrf.mxu0 }
 0x76f   : > { %v11793_v33 = vpop.f32.mrf.mxu1  ;;  %13853 = vst [vmem:[%s20175_s15 + $0x50] sm:$0xff] %v13737_v27   ;;  %v11792_v40 = vadd.f32 %v11791_v28, %v11503_v31 }
 0x770   : > { %v11505_v58 = vpop.f32.mrf.mxu0 }
 0x771   : > { %v11794_v4 = vpop.f32.mrf.mxu1  ;;  %v11506_v39 = vadd.f32 %v20147_v35, %v11505_v58 }
 0x772   : > { %v11507_v22 = vpop.f32.mrf.mxu0 }
 0x773   : > { %v11796_v3 = vpop.f32.mrf.mxu1  ;;  %v11795_v17 = vadd.f32 %v11794_v4, %v11506_v39 }
 0x774   : > { %v11510_v9 = vpop.f32.mrf.mxu0 }
 0x775   : > { %v11799_v60 = vpop.f32.mrf.mxu1  ;;  %v13742_v36 = vpack.c.bf16 %v11795_v17, %v11792_v40  ;;  %v11511_v43 = vadd.f32 %v20147_v35, %v11510_v9 }
 0x776   : > { %v11512_v57 = vpop.f32.mrf.mxu0 }
 0x777   : > { %v11801_v29 = vpop.f32.mrf.mxu1  ;;  %13854 = vst [vmem:[%s20175_s15 + $0x58] sm:$0xff] %v13742_v36   ;;  %v11800_v0 = vadd.f32 %v11799_v60, %v11511_v43 }
 0x778   : > { %v11513_v8 = vpop.f32.mrf.mxu0 }
 0x779   : > { %v11802_v52 = vpop.f32.mrf.mxu1  ;;  %v11514_v7 = vadd.f32 %v20147_v35, %v11513_v8 }
 0x77a   : > { %v11515_v20 = vpop.f32.mrf.mxu0 }
 0x77b   : > { %v11804_v25 = vpop.f32.mrf.mxu1  ;;  %v11803_v54 = vadd.f32 %v11802_v52, %v11514_v7 }
 0x77c   : > { %v11518_v38 = vpop.f32.mrf.mxu0 }
 0x77d   : > { %v11807_v21 = vpop.f32.mrf.mxu1  ;;  %v13747_v50 = vpack.c.bf16 %v11803_v54, %v11800_v0  ;;  %v11519_v41 = vadd.f32 %v20147_v35, %v11518_v38 }
 0x77e   : > { %v11520_v42 = vpop.f32.mrf.mxu0 }
 0x77f   : > { %v11809_v6 = vpop.f32.mrf.mxu1  ;;  %13855 = vst [vmem:[%s20175_s15 + $0x60] sm:$0xff] %v13747_v50   ;;  %v11808_v23 = vadd.f32 %v11807_v21, %v11519_v41 }
 0x780   : > { %v11521_v26 = vpop.f32.mrf.mxu0 }
 0x781   : > { %v11810_v48 = vpop.f32.mrf.mxu1  ;;  %v11522_v62 = vadd.f32 %v20147_v35, %v11521_v26 }
 0x782   : > { %v11523_v18 = vpop.f32.mrf.mxu0 }
 0x783   : > { %v11812_v47 = vpop.f32.mrf.mxu1  ;;  %v11811_v59 = vadd.f32 %v11810_v48, %v11522_v62 }
 0x784   : > { %v11526_v63 = vpop.f32.mrf.mxu0 }
 0x785   : > { %v11815_v2 = vpop.f32.mrf.mxu1  ;;  %v13752_v16 = vpack.c.bf16 %v11811_v59, %v11808_v23  ;;  %v11527_v34 = vadd.f32 %v20147_v35, %v11526_v63 }
 0x786   : > { %v11528_v44 = vpop.f32.mrf.mxu0 }
 0x787   : > { %v11817_v5 = vpop.f32.mrf.mxu1  ;;  %13856 = vst [vmem:[%s20175_s15 + $0x68] sm:$0xff] %v13752_v16   ;;  %v11816_v10 = vadd.f32 %v11815_v2, %v11527_v34 }
 0x788   : > { %v11529_v37 = vpop.f32.mrf.mxu0 }
 0x789   : > { %v11818_v55 = vpop.f32.mrf.mxu1  ;;  %v11530_v30 = vadd.f32 %v20147_v35, %v11529_v37 }
 0x78a   : > { %v11531_v14 = vpop.f32.mrf.mxu0 }
 0x78b   : > { %v11820_v53 = vpop.f32.mrf.mxu1  ;;  %v11819_v15 = vadd.f32 %v11818_v55, %v11530_v30 }
 0x78c   : > { %v11534_v56 = vpop.f32.mrf.mxu0 }
 0x78d   : > { %v11823_v1 = vpop.f32.mrf.mxu1  ;;  %v13757_v32 = vpack.c.bf16 %v11819_v15, %v11816_v10  ;;  %v11535_v24 = vadd.f32 %v20147_v35, %v11534_v56 }
 0x78e   : > { %v11536_v61 = vpop.f32.mrf.mxu0 }
 0x78f   : > { %v11825_v49 = vpop.f32.mrf.mxu1  ;;  %13857 = vst [vmem:[%s20175_s15 + $0x70] sm:$0xff] %v13757_v32   ;;  %v11824_v19 = vadd.f32 %v11823_v1, %v11535_v24 }
 0x790   : > { %v11537_v51 = vpop.f32.mrf.mxu0 }
 0x791   : > { %v11826_v13 = vpop.f32.mrf.mxu1  ;;  %v11538_v11 = vadd.f32 %v20147_v35, %v11537_v51 }
 0x792   : > { %v11539_v46 = vpop.f32.mrf.mxu0 }
 0x793   : > { %v11828_v45 = vpop.f32.mrf.mxu1  ;;  %v11827_v28 = vadd.f32 %v11826_v13, %v11538_v11 }
 0x794   : > { %v11542_v27 = vpop.f32.mrf.mxu0 }
 0x795   : > { %v11831_v12 = vpop.f32.mrf.mxu1  ;;  %v13762_v33 = vpack.c.bf16 %v11827_v28, %v11824_v19  ;;  %v11543_v4 = vadd.f32 %v20147_v35, %v11542_v27 }
 0x796   : > { %v11544_v31 = vpop.f32.mrf.mxu0 }
 0x797   : > { %v11833_v58 = vpop.f32.mrf.mxu1  ;;  %13858 = vst [vmem:[%s20175_s15 + $0x78] sm:$0xff] %v13762_v33   ;;  %v11832_v9 = vadd.f32 %v11831_v12, %v11543_v4 }
 0x798   : > { %v11545_v39 = vpop.f32.mrf.mxu0 }
 0x799   : > { %v11834_v22 = vpop.f32.mrf.mxu1  ;;  %v11546_v3 = vadd.f32 %v20147_v35, %v11545_v39 }
 0x79a   : > { %v11547_v40 = vpop.f32.mrf.mxu0 }
 0x79b   : > { %v11836_v17 = vpop.f32.mrf.mxu1  ;;  %v11835_v60 = vadd.f32 %v11834_v22, %v11546_v3 }
 0x79c   : > { %v11550_v36 = vpop.f32.mrf.mxu0 }
 0x79d   : > { %v11839_v57 = vpop.f32.mrf.mxu1  ;;  %v13767_v29 = vpack.c.bf16 %v11835_v60, %v11832_v9  ;;  %v11551_v52 = vadd.f32 %v20147_v35, %v11550_v36 }
 0x79e   : > { %v11552_v43 = vpop.f32.mrf.mxu0 }
 0x79f   : > { %v11841_v8 = vpop.f32.mrf.mxu1  ;;  %13859 = vst [vmem:[%s20175_s15 + $0x80] sm:$0xff] %v13767_v29   ;;  %v11840_v38 = vadd.f32 %v11839_v57, %v11551_v52 }
 0x7a0   : > { %v11553_v7 = vpop.f32.mrf.mxu0 }
 0x7a1   : > { %v11842_v20 = vpop.f32.mrf.mxu1  ;;  %v11554_v25 = vadd.f32 %v20147_v35, %v11553_v7 }
 0x7a2   : > { %v11555_v0 = vpop.f32.mrf.mxu0 }
 0x7a3   : > { %v11844_v54 = vpop.f32.mrf.mxu1  ;;  %v11843_v21 = vadd.f32 %v11842_v20, %v11554_v25 }
 0x7a4   : > { %v11558_v50 = vpop.f32.mrf.mxu0 }
 0x7a5   : > { %v11847_v42 = vpop.f32.mrf.mxu1  ;;  %v13772_v6 = vpack.c.bf16 %v11843_v21, %v11840_v38  ;;  %v11559_v48 = vadd.f32 %v20147_v35, %v11558_v50 }
 0x7a6   : > { %v11560_v41 = vpop.f32.mrf.mxu0 }
 0x7a7   : > { %v11849_v26 = vpop.f32.mrf.mxu1  ;;  %13860 = vst [vmem:[%s20175_s15 + $0x88] sm:$0xff] %v13772_v6   ;;  %v11848_v63 = vadd.f32 %v11847_v42, %v11559_v48 }
 0x7a8   : > { %v11561_v62 = vpop.f32.mrf.mxu0 }
 0x7a9   : > { %v11850_v18 = vpop.f32.mrf.mxu1  ;;  %v11562_v47 = vadd.f32 %v20147_v35, %v11561_v62 }
 0x7aa   : > { %v11563_v23 = vpop.f32.mrf.mxu0 }
 0x7ab   : > { %v11852_v59 = vpop.f32.mrf.mxu1  ;;  %v11851_v2 = vadd.f32 %v11850_v18, %v11562_v47 }
 0x7ac   : > { %v11566_v16 = vpop.f32.mrf.mxu0 }
 0x7ad   : > { %v11855_v44 = vpop.f32.mrf.mxu1  ;;  %v13777_v5 = vpack.c.bf16 %v11851_v2, %v11848_v63  ;;  %v11567_v55 = vadd.f32 %v20147_v35, %v11566_v16 }
 0x7ae   : > { %v11568_v34 = vpop.f32.mrf.mxu0 }
 0x7af   : > { %v11857_v37 = vpop.f32.mrf.mxu1  ;;  %13861 = vst [vmem:[%s20175_s15 + $0x90] sm:$0xff] %v13777_v5   ;;  %v11856_v56 = vadd.f32 %v11855_v44, %v11567_v55 }
 0x7b0   : > { %v11569_v30 = vpop.f32.mrf.mxu0 }
 0x7b1   : > { %v11858_v14 = vpop.f32.mrf.mxu1  ;;  %v11570_v53 = vadd.f32 %v20147_v35, %v11569_v30 }
 0x7b2   : > { %v11571_v10 = vpop.f32.mrf.mxu0 }
 0x7b3   : > { %v11860_v15 = vpop.f32.mrf.mxu1  ;;  %v11859_v1 = vadd.f32 %v11858_v14, %v11570_v53 }
 0x7b4   : > { %v11574_v32 = vpop.f32.mrf.mxu0 }
 0x7b5   : > { %v11863_v61 = vpop.f32.mrf.mxu1  ;;  %v13782_v49 = vpack.c.bf16 %v11859_v1, %v11856_v56  ;;  %v11575_v13 = vadd.f32 %v20147_v35, %v11574_v32 }
 0x7b6   : > { %v11576_v24 = vpop.f32.mrf.mxu0 }
 0x7b7   : > { %v11865_v51 = vpop.f32.mrf.mxu1  ;;  %13862 = vst [vmem:[%s20175_s15 + $0x98] sm:$0xff] %v13782_v49   ;;  %v11864_v27 = vadd.f32 %v11863_v61, %v11575_v13 }
 0x7b8   : > { %v11577_v11 = vpop.f32.mrf.mxu0 }
 0x7b9   : > { %v11866_v46 = vpop.f32.mrf.mxu1  ;;  %v11578_v45 = vadd.f32 %v20147_v35, %v11577_v11 }
 0x7ba   : > { %v11579_v19 = vpop.f32.mrf.mxu0 }
 0x7bb   : > { %v11868_v28 = vpop.f32.mrf.mxu1  ;;  %v11867_v12 = vadd.f32 %v11866_v46, %v11578_v45 }
 0x7bc   : > { %v11582_v33 = vpop.f32.mrf.mxu0 }
 0x7bd   : > { %v11871_v31 = vpop.f32.mrf.mxu1  ;;  %v13787_v58 = vpack.c.bf16 %v11867_v12, %v11864_v27  ;;  %v11583_v22 = vadd.f32 %v20147_v35, %v11582_v33 }
 0x7be   : > { %v11584_v4 = vpop.f32.mrf.mxu0 }
 0x7bf   : > { %v11873_v39 = vpop.f32.mrf.mxu1  ;;  %13863 = vst [vmem:[%s20175_s15 + $0xa0] sm:$0xff] %v13787_v58   ;;  %v11872_v36 = vadd.f32 %v11871_v31, %v11583_v22 }
 0x7c0   : > { %v11585_v3 = vpop.f32.mrf.mxu0 }
 0x7c1   : > { %v11874_v40 = vpop.f32.mrf.mxu1  ;;  %v11586_v17 = vadd.f32 %v20147_v35, %v11585_v3 }
 0x7c2   : > { %v11587_v9 = vpop.f32.mrf.mxu0 }
 0x7c3   : > { %v11876_v60 = vpop.f32.mrf.mxu1  ;;  %v11875_v57 = vadd.f32 %v11874_v40, %v11586_v17 }
 0x7c4   : > { %v11590_v29 = vpop.f32.mrf.mxu0 }
 0x7c5   : > { %v11879_v43 = vpop.f32.mrf.mxu1  ;;  %v13792_v8 = vpack.c.bf16 %v11875_v57, %v11872_v36  ;;  %v11591_v20 = vadd.f32 %v20147_v35, %v11590_v29 }
 0x7c6   : > { %v11592_v52 = vpop.f32.mrf.mxu0 }
 0x7c7   : > { %v11881_v7 = vpop.f32.mrf.mxu1  ;;  %13864 = vst [vmem:[%s20175_s15 + $0xa8] sm:$0xff] %v13792_v8   ;;  %v11880_v50 = vadd.f32 %v11879_v43, %v11591_v20 }
 0x7c8   : > { %v11593_v25 = vpop.f32.mrf.mxu0 }
 0x7c9   : > { %v11882_v0 = vpop.f32.mrf.mxu1  ;;  %v11594_v54 = vadd.f32 %v20147_v35, %v11593_v25 }
 0x7ca   : > { %v11595_v38 = vpop.f32.mrf.mxu0 }
 0x7cb   : > { %v11884_v21 = vpop.f32.mrf.mxu1  ;;  %v11883_v42 = vadd.f32 %v11882_v0, %v11594_v54 }
 0x7cc   : > { %v11598_v6 = vpop.f32.mrf.mxu0 }
 0x7cd   : > { %v11887_v41 = vpop.f32.mrf.mxu1  ;;  %v13797_v26 = vpack.c.bf16 %v11883_v42, %v11880_v50  ;;  %v11599_v18 = vadd.f32 %v20147_v35, %v11598_v6 }
 0x7ce   : > { %v11600_v48 = vpop.f32.mrf.mxu0 }
 0x7cf   : > { %v11889_v62 = vpop.f32.mrf.mxu1  ;;  %13865 = vst [vmem:[%s20175_s15 + $0xb0] sm:$0xff] %v13797_v26   ;;  %v11888_v16 = vadd.f32 %v11887_v41, %v11599_v18 }
 0x7d0   : > { %v11601_v47 = vpop.f32.mrf.mxu0 }
 0x7d1   : > { %v11890_v23 = vpop.f32.mrf.mxu1  ;;  %v11602_v59 = vadd.f32 %v20147_v35, %v11601_v47 }
 0x7d2   : > { %v11603_v63 = vpop.f32.mrf.mxu0 }
 0x7d3   : > { %v11892_v2 = vpop.f32.mrf.mxu1  ;;  %v11891_v44 = vadd.f32 %v11890_v23, %v11602_v59  ;;  %v14694_v23 = vld [vmem:[%s20384_s6] ss:$0 sm:$0xff] }
 0x7d4   : > { %v11606_v5 = vpop.f32.mrf.mxu0 }
 0x7d5   : > { %v11895_v34 = vpop.f32.mrf.mxu1  ;;  %v13802_v37 = vpack.c.bf16 %v11891_v44, %v11888_v16  ;;  %v11607_v14 = vadd.f32 %v20147_v35, %v11606_v5 }
 0x7d6   : > { %v11608_v55 = vpop.f32.mrf.mxu0 }
 0x7d7   : > { %v11897_v30 = vpop.f32.mrf.mxu1  ;;  %13866 = vst [vmem:[%s20175_s15 + $0xb8] sm:$0xff] %v13802_v37   ;;  %v11896_v32 = vadd.f32 %v11895_v34, %v11607_v14 }
 0x7d8   : > { %v11609_v53 = vpop.f32.mrf.mxu0 }
 0x7d9   : > { %v11898_v10 = vpop.f32.mrf.mxu1  ;;  %v11610_v15 = vadd.f32 %v20147_v35, %v11609_v53 }
 0x7da   : > { %v11611_v56 = vpop.f32.mrf.mxu0 }
 0x7db   : > { %v11900_v1 = vpop.f32.mrf.mxu1  ;;  %v11899_v61 = vadd.f32 %v11898_v10, %v11610_v15 }
 0x7dc   : > { %v11614_v49 = vpop.f32.mrf.mxu0 }
 0x7dd   : > { %v11903_v24 = vpop.f32.mrf.mxu1  ;;  %v13807_v51 = vpack.c.bf16 %v11899_v61, %v11896_v32  ;;  %v11615_v46 = vadd.f32 %v20147_v35, %v11614_v49 }
 0x7de   : > { %v11616_v13 = vpop.f32.mrf.mxu0 }
 0x7df   : > { %v11905_v11 = vpop.f32.mrf.mxu1  ;;  %13867 = vst [vmem:[%s20175_s15 + $0xc0] sm:$0xff] %v13807_v51   ;;  %v11904_v33 = vadd.f32 %v11903_v24, %v11615_v46 }
 0x7e0   : > { %v11617_v45 = vpop.f32.mrf.mxu0 }
 0x7e1   : > { %v11906_v19 = vpop.f32.mrf.mxu1  ;;  %v11618_v28 = vadd.f32 %v20147_v35, %v11617_v45 }
 0x7e2   : > { %v11619_v27 = vpop.f32.mrf.mxu0 }
 0x7e3   : > { %v11908_v12 = vpop.f32.mrf.mxu1  ;;  %v11907_v31 = vadd.f32 %v11906_v19, %v11618_v28 }
 0x7e4   : > { %v11622_v58 = vpop.f32.mrf.mxu0 }
 0x7e5   : > { %v11911_v4 = vpop.f32.mrf.mxu1  ;;  %v13812_v39 = vpack.c.bf16 %v11907_v31, %v11904_v33  ;;  %v11623_v40 = vadd.f32 %v20147_v35, %v11622_v58 }
 0x7e6   : > { %v11624_v22 = vpop.f32.mrf.mxu0 }
 0x7e7   : > { %v11913_v3 = vpop.f32.mrf.mxu1  ;;  %13868 = vst [vmem:[%s20175_s15 + $0xc8] sm:$0xff] %v13812_v39   ;;  %v11912_v29 = vadd.f32 %v11911_v4, %v11623_v40 }
 0x7e8   : > { %v11625_v17 = vpop.f32.mrf.mxu0 }
 0x7e9   : > { %v11914_v9 = vpop.f32.mrf.mxu1  ;;  %v11626_v60 = vadd.f32 %v20147_v35, %v11625_v17 }
 0x7ea   : > { %v11627_v36 = vpop.f32.mrf.mxu0 }
 0x7eb   : > { %v11916_v57 = vpop.f32.mrf.mxu1  ;;  %v11915_v43 = vadd.f32 %v11914_v9, %v11626_v60 }
 0x7ec   : > { %v11630_v8 = vpop.f32.mrf.mxu0 }
 0x7ed   : > { %v11919_v52 = vpop.f32.mrf.mxu1  ;;  %v13817_v7 = vpack.c.bf16 %v11915_v43, %v11912_v29  ;;  %v11631_v0 = vadd.f32 %v20147_v35, %v11630_v8 }
 0x7ee   : > { %v11632_v20 = vpop.f32.mrf.mxu0 }
 0x7ef   : > { %v11921_v25 = vpop.f32.mrf.mxu1  ;;  %13869 = vst [vmem:[%s20175_s15 + $0xd0] sm:$0xff] %v13817_v7   ;;  %v11920_v6 = vadd.f32 %v11919_v52, %v11631_v0 }
 0x7f0   : > { %v11633_v54 = vpop.f32.mrf.mxu0 }
 0x7f1   : > { %v11922_v38 = vpop.f32.mrf.mxu1  ;;  %v11634_v21 = vadd.f32 %v20147_v35, %v11633_v54 }
 0x7f2   : > { %v11635_v50 = vpop.f32.mrf.mxu0 }
 0x7f3   : > { %v11924_v42 = vpop.f32.mrf.mxu1  ;;  %v11923_v41 = vadd.f32 %v11922_v38, %v11634_v21 }
 0x7f4   : > { %v11638_v26 = vpop.f32.mrf.mxu0 }
 0x7f5   : > { %v11927_v48 = vpop.f32.mrf.mxu1  ;;  %v13822_v62 = vpack.c.bf16 %v11923_v41, %v11920_v6  ;;  %v11639_v59 = vadd.f32 %v14694_v23, %v11638_v26 }
 0x7f6   : > { %v11640_v18 = vpop.f32.mrf.mxu0 }
 0x7f7   : > { %v11929_v47 = vpop.f32.mrf.mxu1  ;;  %13870 = vst [vmem:[%s20175_s15 + $0xd8] sm:$0xff] %v13822_v62   ;;  %v11928_v5 = vadd.f32 %v11927_v48, %v11639_v59 }
 0x7f8   : > { %v11641_v63 = vpop.f32.mrf.mxu0 }
 0x7f9   : > { %v11930_v2 = vpop.f32.mrf.mxu1  ;;  %v11642_v16 = vadd.f32 %v14694_v23, %v11641_v63 }
 0x7fa   : > { %v11643_v35 = vpop.f32.mrf.mxu0 }
 0x7fb   : > { %v11932_v44 = vpop.f32.mrf.mxu1  ;;  %v11931_v34 = vadd.f32 %v11930_v2, %v11642_v16 }
 0x7fc   : > { %v11646_v37 = vpop.f32.mrf.mxu0 }
 0x7fd   : > { %v11935_v55 = vpop.f32.mrf.mxu1  ;;  %v13827_v30 = vpack.c.bf16 %v11931_v34, %v11928_v5  ;;  %v11647_v10 = vadd.f32 %v14694_v23, %v11646_v37 }
 0x7fe   : > { %v11648_v14 = vpop.f32.mrf.mxu0 }
 0x7ff   : > { %v11937_v53 = vpop.f32.mrf.mxu1  ;;  %13871 = vst [vmem:[%s20175_s15 + $0xe0] sm:$0xff] %v13827_v30   ;;  %v11936_v49 = vadd.f32 %v11935_v55, %v11647_v10 }
 0x800   : > { %v11649_v15 = vpop.f32.mrf.mxu0 }
 0x801   : > { %v11938_v56 = vpop.f32.mrf.mxu1  ;;  %v11650_v1 = vadd.f32 %v14694_v23, %v11649_v15 }
 0x802   : > { %v11651_v32 = vpop.f32.mrf.mxu0 }
 0x803   : > { %v11940_v61 = vpop.f32.mrf.mxu1  ;;  %v11939_v24 = vadd.f32 %v11938_v56, %v11650_v1 }
 0x804   : > { %v11654_v51 = vpop.f32.mrf.mxu0 }
 0x805   : > { %v11943_v13 = vpop.f32.mrf.mxu1  ;;  %v13832_v11 = vpack.c.bf16 %v11939_v24, %v11936_v49  ;;  %v11655_v19 = vadd.f32 %v14694_v23, %v11654_v51 }
 0x806   : > { %v11656_v46 = vpop.f32.mrf.mxu0 }
 0x807   : > { %v11945_v45 = vpop.f32.mrf.mxu1  ;;  %13872 = vst [vmem:[%s20175_s15 + $0xe8] sm:$0xff] %v13832_v11   ;;  %v11944_v58 = vadd.f32 %v11943_v13, %v11655_v19 }
 0x808   : > { %v11657_v28 = vpop.f32.mrf.mxu0 }
 0x809   : > { %v11946_v27 = vpop.f32.mrf.mxu1  ;;  %v11658_v12 = vadd.f32 %v14694_v23, %v11657_v28 }
 0x80a   : > { %v11659_v33 = vpop.f32.mrf.mxu0 }
 0x80b   : > { %v11948_v31 = vpop.f32.mrf.mxu1  ;;  %v11947_v4 = vadd.f32 %v11946_v27, %v11658_v12 }
 0x80c   : > { %v11662_v39 = vpop.f32.mrf.mxu0 }
 0x80d   : > { %v11951_v22 = vpop.f32.mrf.mxu1  ;;  %v13837_v3 = vpack.c.bf16 %v11947_v4, %v11944_v58  ;;  %v11663_v9 = vadd.f32 %v14694_v23, %v11662_v39 }
 0x80e   : > { %v11664_v40 = vpop.f32.mrf.mxu0 }
 0x80f   : > { %v11953_v17 = vpop.f32.mrf.mxu1  ;;  %13873 = vst [vmem:[%s20175_s15 + $0xf0] sm:$0xff] %v13837_v3   ;;  %v11952_v8 = vadd.f32 %v11951_v22, %v11663_v9 }
 0x810   : > { %v11665_v60 = vpop.f32.mrf.mxu0 }
 0x811   : > { %v11954_v36 = vpop.f32.mrf.mxu1  ;;  %v11666_v57 = vadd.f32 %v14694_v23, %v11665_v60 }
 0x812   : > { %v11667_v29 = vpop.f32.mrf.mxu0 }
 0x813   : > { %v11956_v43 = vpop.f32.mrf.mxu1  ;;  %v11955_v52 = vadd.f32 %v11954_v36, %v11666_v57 }
 0x815   : > { %v13842_v7 = vpack.c.bf16 %v11955_v52, %v11952_v8 }
 0x817   : > { %13874 = vst [vmem:[%s20175_s15 + $0xf8] sm:$0xff] %v13842_v7  }
 0x818   : > { %14708 = shalt.err (!%p14705_p3)
}
 0x819   : > { %s14709_s22 = scalar_lea.hbm %s20331_s13, 4096  ;;  %s14713_s19 = scalar_lea.hbm %s20385_s7, 8192 }
 0x81a   : > { %p14710_p4 = scmp.ne.s32.totalorder %s20331_s13, %s14709_s22  ;;  %p14714_p9 = scmp.lt.s32.totalorder %s20331_s13, %s20385_s7 }
 0x81b   : > { %p14715_p10 = scmp.lt.s32.totalorder %s14713_s19, %s14709_s22 }
 0x81c   : > { %p14711_p7 = pnand %p14710_p4, %p14839_p5 }
 0x81d   : > { %p14716_p11 = por %p14715_p10, %p14714_p9 }
 0x81e   : > { %p14712_p8 = pneg %p14711_p7 }
 0x820   : > { %p14717_p12 = pnand %p14716_p11, %p14712_p8 }
 0x822   : > { %14720 = shalt.err (!%p14717_p12)
}
 0x823   : > { %s14759_s8 = smov 64   ;;  %s14760_s9 = smov 4  }
 0x824   : > { %14132 = dma.vmem_to_hbm [thread:$0]  (%p14839_p5), %s20333_s29, 4096, %s20331_s13, %s20338_s23, %s14759_s8, %s14759_s8, %s14760_s9  }
 0x825 PF: > { %p14138_p13 = scmp.ge.s32.totalorder %s14755_s27, 2  ;;  %s12307_s28 = sand.u32 1, %s14743_s24  }
 0x826   : > { %s12308_s14 = scalar_lea.sflag [#allocation4], %s12307_s28 }
 0x827   : > { %p14135_p0 = pnand %p14138_p13, %p14843_p6 }
 0x829   : > { %p14136_p1 = pneg %p14135_p0 }
 0x82b   : > { %14738 = dma.done.wait (%p14136_p1), %s12308_s14, 4096  }
 0x82c   : > { %14740 = vsyncadd (%p14136_p1), %s12308_s14, 4294963200  ;;  %p17_p2 = scmp.ge.s32.totalorder %s14826_s30, 4   ;;  %s21933_s24 = smov %s14747_s25 }
 0x82d   : > { %s21934_s25 = smov %s14751_s26  ;;  %s21935_s26 = smov %s14837_s10 }
 0x82e   : > { %s21936_s27 = smov %s14826_s30  ;;  %19 = sbr.rel (!%p17_p2) target bundleno = 3 (0x3), region = 83 }
 0x833   :  { %12313 = vsyncpa [#allocation4], 1 }
 0x834   :  { %12315 = vsyncpa [#allocation4 + $0x1], 1 }

</bundles_post_ra>
